<compile_context>
chip_gen: v5e
topology: v5e:2x2
jax: 0.10.0
libtpu: 0.0.40
codegen_flags: <defaults>
</compile_context>

<pallas_src>
import functools

import numpy as np

import jax
import jax.numpy as jnp
from jax import lax
from jax.experimental import pallas as pl


# ----------------------------------------------------------------------------
# Kernel A: fused conv stack + BatchNorm + LeakyReLU + rf head + WLD FC
# ----------------------------------------------------------------------------

def _d_stack_kernel(x_ref,
                    sel1_ref, sel2_ref, sel3_ref, sel4_ref,
                    wt1_ref, wt2_ref, wt3_ref, wt4_ref,
                    g1_ref, b1_ref, g2_ref, b2_ref,
                    g3_ref, b3_ref, g4_ref, b4_ref,
                    gt1_ref, gt2_ref, gt3_ref, gt4_ref,
                    whead_ref, rfb_ref, wfc_ref, fcb_ref,
                    logit_ref, fc_ref,
                    *, B, eps, slope):
    f32 = jnp.float32
    bf16 = jnp.bfloat16

    def group_sum(v, gt):
        # (1, Wo*O) x (O, Wo*O) contracted over lanes -> per-channel (1, O)
        return lax.dot_general(v, gt, (((1,), (1,)), ((), ())),
                               preferred_element_type=f32)

    def conv_bn_lrelu(act_b, sel_ref, wt_ref, g_ref, b_ref, gt_ref, h_out, w_out):
        """One downBlock: stride-2 4x4 conv + BatchNorm(batch stats) + LeakyReLU.

        act_b : (B*H_in, W_in*C_in) bf16, rows ordered (b, h), lanes (w, c).
        sel_ref: (4, B*H_out, B*H_in) 0/1 row-selection per kernel tap ki.
        wt_ref : (4, W_in*C_in, W_out*O) banded conv weights per tap ki.
        Returns (B*H_out, W_out*O) f32, rows (b, i), lanes (j, o).
        """
        gt = gt_ref[...]
        y = None
        for ki in range(4):
            tap = jnp.dot(sel_ref[ki], act_b,
                          preferred_element_type=f32).astype(bf16)
            p = jnp.dot(tap, wt_ref[ki], preferred_element_type=f32)
            y = p if y is None else y + p
        cnt = float(B * h_out * w_out)
        mean_o = group_sum(jnp.sum(y, axis=0, keepdims=True), gt) / cnt   # (1, O)
        mean_l = jnp.dot(mean_o, gt, preferred_element_type=f32)          # (1, N)
        d = y - mean_l
        var_o = group_sum(jnp.sum(d * d, axis=0, keepdims=True), gt) / cnt
        scale_l = jnp.dot(g_ref[...] * lax.rsqrt(var_o + eps), gt,
                          preferred_element_type=f32)
        beta_l = jnp.dot(b_ref[...], gt, preferred_element_type=f32)
        z = d * scale_l + beta_l
        return jnp.where(z >= 0.0, z, slope * z)

    # self.from_64: downBlock(3->c8) -> downBlock(c8->c4) -> downBlock(c4->c2)
    a1 = conv_bn_lrelu(x_ref[...], sel1_ref, wt1_ref, g1_ref, b1_ref, gt1_ref, 32, 32)
    a2 = conv_bn_lrelu(a1.astype(bf16), sel2_ref, wt2_ref, g2_ref, b2_ref, gt2_ref, 16, 16)
    a3 = conv_bn_lrelu(a2.astype(bf16), sel3_ref, wt3_ref, g3_ref, b3_ref, gt3_ref, 8, 8)
    # a3 = feat_64 in layout rows=(b, i), lanes=(j, c)

    # WordLevelDiscriminator FC (block-diagonal over the 8 W positions)
    fc = jnp.dot(a3.astype(bf16), wfc_ref[...],
                 preferred_element_type=f32) + fcb_ref[...]
    fc_ref[...] = fc.astype(bf16)

    # self.rf_64: downBlock(c2->channel) + Conv2d(channel, 1, 4, 1, 0, bias=True)
    a4 = conv_bn_lrelu(a3.astype(bf16), sel4_ref, wt4_ref, g4_ref, b4_ref, gt4_ref, 4, 4)
    contrib = jnp.sum(a4 * whead_ref[...], axis=1, keepdims=True)          # (B*4, 1)
    for b in range(B):
        lb = jnp.sum(contrib[b * 4:(b + 1) * 4, :], axis=0, keepdims=True)
        logit_ref[b:b + 1, :] = lb + rfb_ref[...]


# ----------------------------------------------------------------------------
# Kernel B: WordLevelDiscriminator attention for all (feat, word) pairings
# ----------------------------------------------------------------------------

def _wld_kernel(feat_ref, we_ref, o_ref, *, pairs, eps):
    f32 = jnp.float32
    bf16 = jnp.bfloat16
    for g, (fb, wb) in enumerate(pairs):                     # static unroll
        feat = feat_ref[fb]                                  # (HW, D) bf16
        we_f = we_ref[wb]                                    # (L, D) f32
        we_b = we_f.astype(bf16)
        s = lax.dot_general(we_b, feat, (((1,), (1,)), ((), ())),
                            preferred_element_type=f32)      # (L, HW)
        s = s - jnp.max(s, axis=-1, keepdims=True)
        e = jnp.exp(s)
        att = e * pl.reciprocal(jnp.sum(e, axis=-1, keepdims=True), approx=True)
        att_feat_t = jnp.dot(att.astype(bf16), feat,
                             preferred_element_type=f32)     # (L, D) = att_feat^T
        avg = jnp.mean(we_f, axis=0, keepdims=True)          # (1, D)
        swa = jnp.sum(we_f * avg, axis=1, keepdims=True)     # (L, 1) = self_word_att^T
        nft = att_feat_t * swa                               # (L, D) = new_feat^T
        dot = jnp.sum(nft * we_f, axis=0, keepdims=True)     # cosine over L
        nx = jnp.sqrt(jnp.sum(nft * nft, axis=0, keepdims=True))
        ny = jnp.sqrt(jnp.sum(we_f * we_f, axis=0, keepdims=True))
        cos = dot / jnp.maximum(nx * ny, eps)
        sig = 1.0 / (1.0 + jnp.exp(-cos))
        o_ref[g:g + 1, :] = jnp.mean(sig, axis=1, keepdims=True)


# ----------------------------------------------------------------------------
# Host-side constant / weight preparation
# ----------------------------------------------------------------------------

def _band_weight(w, w_in, stride=2, ksize=4):
    """(O, C, kH, kW) conv weight -> (kH, W_in*C, (W_in//stride)*O) banded mats."""
    o_dim, c_dim = w.shape[0], w.shape[1]
    w_out = w_in // stride
    wpos = np.arange(w_in)
    j = np.arange(w_out)
    kj = np.arange(ksize)
    ind = (wpos[None, :, None] ==
           (stride * j[None, None, :] + kj[:, None, None] - 1)).astype(np.float32)
    ind = jnp.asarray(ind)                                   # (kW, W_in, W_out)
    wt = jnp.einsum('kwj,ocik->iwcjo', ind, w)               # (kH, W_in, C, W_out, O)
    return wt.reshape(ksize, w_in * c_dim, w_out * o_dim)


def _row_select(batch, h_in, h_out, stride=2, ksize=4):
    """0/1 matrices (kH, batch*h_out, batch*h_in) selecting rows 2*i + k - 1."""
    i = np.arange(h_out)
    h = np.arange(h_in)
    k = np.arange(ksize)
    sel = (h[None, None, :] ==
           (stride * i[None, :, None] + k[:, None, None] - 1)).astype(np.float32)
    sel = np.einsum('bc,kih->kbich', np.eye(batch, dtype=np.float32), sel)
    return sel.reshape(ksize, batch * h_out, batch * h_in)


def _group_expand(o_dim, n_dim):
    """(O, N) matrix with 1 where lane n belongs to channel o (n % O == o)."""
    n = np.arange(n_dim)
    return (n[None, :] % o_dim == np.arange(o_dim)[:, None]).astype(np.float32)


# ----------------------------------------------------------------------------
# Forward pass (mirrors D.forward(imgs, sentence, word_emb, train_perm))
# ----------------------------------------------------------------------------

def d_forward(params, img_nchw, word_emb, train_perm=True):
    B, _, H, W = img_nchw.shape
    assert H == 64 and W == 64, "the conv pyramid requires 64x64 inputs"
    c8 = params["db1"]["w"].shape[0]
    c4 = params["db2"]["w"].shape[0]
    c2 = params["db3"]["w"].shape[0]
    ch = params["rf_db"]["w"].shape[0]
    word_dim = params["wld"]["fc_w"].shape[0]

    # NHWC with (W, C) folded into lanes, rows ordered (b, h)
    x2d = jnp.transpose(img_nchw, (0, 2, 3, 1)).reshape(B * H, W * 3).astype(jnp.bfloat16)

    # TODO(synk): spectral_norm is a weight reparameterization (power iteration);
    # with synthetic deterministic weights it is folded / ignored here.
    wts = [_band_weight(params[k]["w"], win).astype(jnp.bfloat16)
           for k, win in (("db1", 64), ("db2", 32), ("db3", 16), ("rf_db", 8))]
    sels = [jnp.asarray(_row_select(B, hin, hin // 2), dtype=jnp.bfloat16)
            for hin in (64, 32, 16, 8)]
    gts = [jnp.asarray(_group_expand(o, (w_ // 2) * o), dtype=jnp.float32)
           for o, w_ in ((c8, 64), (c4, 32), (c2, 16), (ch, 8))]
    gammas = [params[k]["gamma"].reshape(1, -1).astype(jnp.float32)
              for k in ("db1", "db2", "db3", "rf_db")]
    betas = [params[k]["beta"].reshape(1, -1).astype(jnp.float32)
             for k in ("db1", "db2", "db3", "rf_db")]

    # rf head: Conv2d(ch, 1, 4, 1, 0, bias=True); weight (1, ch, 4, 4)
    whead = jnp.transpose(params["rf_conv_w"][0], (1, 2, 0)).reshape(4, 4 * ch)
    whead_big = jnp.tile(whead, (B, 1)).astype(jnp.float32)               # (B*4, 4*ch)
    rfb = params["rf_conv_b"].reshape(1, 1).astype(jnp.float32)

    # WLD FC: Linear(c2 -> word_dim), block-diagonal over the 8 W positions
    wfc_big = jnp.kron(jnp.eye(8, dtype=jnp.float32),
                       params["wld"]["fc_w"].T).astype(jnp.bfloat16)      # (8*c2, 8*wd)
    fcb = jnp.tile(params["wld"]["fc_b"], (8,)).reshape(1, 8 * word_dim).astype(jnp.float32)

    logit, fc_out = pl.pallas_call(
        functools.partial(_d_stack_kernel, B=B, eps=1e-5, slope=0.2),
        out_shape=(jax.ShapeDtypeStruct((B, 1), jnp.float32),
                   jax.ShapeDtypeStruct((B * 8, 8 * word_dim), jnp.bfloat16)),
    )(x2d,
      sels[0], sels[1], sels[2], sels[3],
      wts[0], wts[1], wts[2], wts[3],
      gammas[0], betas[0], gammas[1], betas[1],
      gammas[2], betas[2], gammas[3], betas[3],
      gts[0], gts[1], gts[2], gts[3],
      whead_big, rfb, wfc_big, fcb)

    logit_1 = logit.reshape(-1)                          # self.rf_64(feat_64).view(-1)
    fc_feat = fc_out.reshape(B, 64, word_dim)            # (b, h*w, word_dim)

    if train_perm:
        # TODO(synk): true_randperm() draws a random fixed-point-free permutation;
        # a deterministic cyclic shift (a derangement for B > 1) is used here.
        perm = [(b + 1) % B for b in range(B)]
        pairs = tuple([(b, b) for b in range(B)] + [(perm[b], b) for b in range(B)])
    else:
        pairs = tuple((b, b) for b in range(B))

    scores = pl.pallas_call(
        functools.partial(_wld_kernel, pairs=pairs, eps=1e-6),
        out_shape=jax.ShapeDtypeStruct((len(pairs), 1), jnp.float32),
    )(fc_feat, word_emb.astype(jnp.float32)).reshape(-1)

    match_word = scores[:B]
    match_perm_word = scores[B:] if train_perm else None
    # matcher_1 / matcher_2 (sentence path) are unused by the reference forward.
    return (logit_1, None, None, match_word, match_perm_word)


# ----------------------------------------------------------------------------
# Deterministic synthetic parameters (shapes follow D.__init__)
# ----------------------------------------------------------------------------

def init_params(key, channel=64, word_dim=64):
    c8, c4, c2 = channel // 8, channel // 4, channel // 2
    keys = jax.random.split(key, 12)

    def conv_w(k, o, i, ks=4):
        return 0.02 * jax.random.normal(k, (o, i, ks, ks), jnp.float32)

    def bn(k, o):
        return {"gamma": 1.0 + 0.02 * jax.random.normal(k, (o,), jnp.float32),
                "beta": jnp.zeros((o,), jnp.float32)}

    return {
        "db1": {"w": conv_w(keys[0], c8, 3), **bn(keys[1], c8)},
        "db2": {"w": conv_w(keys[2], c4, c8), **bn(keys[3], c4)},
        "db3": {"w": conv_w(keys[4], c2, c4), **bn(keys[5], c2)},
        "rf_db": {"w": conv_w(keys[6], channel, c2), **bn(keys[7], channel)},
        "rf_conv_w": conv_w(keys[8], 1, channel),
        "rf_conv_b": jnp.zeros((1,), jnp.float32),
        "wld": {"fc_w": 0.02 * jax.random.normal(keys[9], (word_dim, c2), jnp.float32),
                "fc_b": 0.02 * jax.random.normal(keys[10], (word_dim,), jnp.float32)},
    }


if __name__ == "__main__":
    # Small config consistent with the module: the conv stack (4 stride-2 convs +
    # a 4x4 valid conv) requires 64x64 inputs; channel / word_dim / seq are shrunk.
    B, channel, word_dim, L = 2, 64, 64, 8
    key = jax.random.PRNGKey(0)
    pkey, ikey, wkey = jax.random.split(key, 3)

    params = init_params(pkey, channel=channel, word_dim=word_dim)
    img = jax.random.normal(ikey, (B, 3, 64, 64), jnp.float32)       # imgs[0], NCHW
    word_emb = jax.random.normal(wkey, (B, L, word_dim), jnp.float32)

    fwd = jax.jit(functools.partial(d_forward, train_perm=True))
    logit_1, match, match_perm, match_word, match_perm_word = fwd(
        params, img, word_emb)
    jax.block_until_ready((logit_1, match_word, match_perm_word))

    assert logit_1.shape == (B,)
    assert match is None and match_perm is None
    assert match_word.shape == (B,)
    assert match_perm_word.shape == (B,)
    assert bool(jnp.all(jnp.isfinite(logit_1)))
    assert bool(jnp.all(jnp.isfinite(match_word)))
    assert bool(jnp.all(jnp.isfinite(match_perm_word)))
    print("KERNEL_OK")
</pallas_src>

<mosaic_0001>
module attributes {stable_mosaic.version = 11 : i64} {
  func.func @_d_stack_kernel(%arg0: memref<128x192xbf16, #tpu.memory_space<vmem>>, %arg1: memref<4x64x128xbf16, #tpu.memory_space<vmem>>, %arg2: memref<4x32x64xbf16, #tpu.memory_space<vmem>>, %arg3: memref<4x16x32xbf16, #tpu.memory_space<vmem>>, %arg4: memref<4x8x16xbf16, #tpu.memory_space<vmem>>, %arg5: memref<4x192x256xbf16, #tpu.memory_space<vmem>>, %arg6: memref<4x256x256xbf16, #tpu.memory_space<vmem>>, %arg7: memref<4x256x256xbf16, #tpu.memory_space<vmem>>, %arg8: memref<4x256x256xbf16, #tpu.memory_space<vmem>>, %arg9: memref<1x8xf32, #tpu.memory_space<vmem>>, %arg10: memref<1x8xf32, #tpu.memory_space<vmem>>, %arg11: memref<1x16xf32, #tpu.memory_space<vmem>>, %arg12: memref<1x16xf32, #tpu.memory_space<vmem>>, %arg13: memref<1x32xf32, #tpu.memory_space<vmem>>, %arg14: memref<1x32xf32, #tpu.memory_space<vmem>>, %arg15: memref<1x64xf32, #tpu.memory_space<vmem>>, %arg16: memref<1x64xf32, #tpu.memory_space<vmem>>, %arg17: memref<8x256xf32, #tpu.memory_space<vmem>>, %arg18: memref<16x256xf32, #tpu.memory_space<vmem>>, %arg19: memref<32x256xf32, #tpu.memory_space<vmem>>, %arg20: memref<64x256xf32, #tpu.memory_space<vmem>>, %arg21: memref<8x256xf32, #tpu.memory_space<vmem>>, %arg22: memref<1x1xf32, #tpu.memory_space<vmem>>, %arg23: memref<256x512xbf16, #tpu.memory_space<vmem>>, %arg24: memref<1x512xf32, #tpu.memory_space<vmem>>, %arg25: memref<2x1xf32, #tpu.memory_space<vmem>>, %arg26: memref<16x512xbf16, #tpu.memory_space<vmem>>) attributes {dimension_semantics = [], scalar_prefetch = 0 : i64, scratch_operands = 0 : i64, tpu.core_type = #tpu.core_type<tc>} {
    %c0 = arith.constant 0 : index
    %c0_0 = arith.constant 0 : index
    %0 = vector.load %arg0[%c0, %c0_0] : memref<128x192xbf16, #tpu.memory_space<vmem>>, vector<128x192xbf16>
    %c0_1 = arith.constant 0 : index
    %c0_2 = arith.constant 0 : index
    %1 = vector.load %arg17[%c0_1, %c0_2] : memref<8x256xf32, #tpu.memory_space<vmem>>, vector<8x256xf32>
    %c0_3 = arith.constant 0 : index
    %c0_4 = arith.constant 0 : index
    %c0_5 = arith.constant 0 : index
    %2 = vector.load %arg1[%c0_3, %c0_4, %c0_5] : memref<4x64x128xbf16, #tpu.memory_space<vmem>>, vector<1x64x128xbf16>
    %3 = vector.shape_cast %2 : vector<1x64x128xbf16> to vector<64x128xbf16>
    %cst = arith.constant dense<0.000000e+00> : vector<64x192xf32>
    %4 = tpu.matmul %3, %0, %cst {dimension_numbers = #tpu.dot_dimension_numbers<[1], [0], [0], [1], [0, 0, 1, 1], [], []>} : vector<64x128xbf16>, vector<128x192xbf16>, vector<64x192xf32> -> vector<64x192xf32>
    %5 = arith.truncf %4 : vector<64x192xf32> to vector<64x192xbf16>
    %c0_6 = arith.constant 0 : index
    %c0_7 = arith.constant 0 : index
    %c0_8 = arith.constant 0 : index
    %6 = vector.load %arg5[%c0_6, %c0_7, %c0_8] : memref<4x192x256xbf16, #tpu.memory_space<vmem>>, vector<1x192x256xbf16>
    %7 = vector.shape_cast %6 : vector<1x192x256xbf16> to vector<192x256xbf16>
    %cst_9 = arith.constant dense<0.000000e+00> : vector<64x256xf32>
    %8 = tpu.matmul %5, %7, %cst_9 {dimension_numbers = #tpu.dot_dimension_numbers<[1], [0], [0], [1], [0, 0, 1, 1], [], []>} : vector<64x192xbf16>, vector<192x256xbf16>, vector<64x256xf32> -> vector<64x256xf32>
    %c1 = arith.constant 1 : index
    %c0_10 = arith.constant 0 : index
    %c0_11 = arith.constant 0 : index
    %9 = vector.load %arg1[%c1, %c0_10, %c0_11] : memref<4x64x128xbf16, #tpu.memory_space<vmem>>, vector<1x64x128xbf16>
    %10 = vector.shape_cast %9 : vector<1x64x128xbf16> to vector<64x128xbf16>
    %cst_12 = arith.constant dense<0.000000e+00> : vector<64x192xf32>
    %11 = tpu.matmul %10, %0, %cst_12 {dimension_numbers = #tpu.dot_dimension_numbers<[1], [0], [0], [1], [0, 0, 1, 1], [], []>} : vector<64x128xbf16>, vector<128x192xbf16>, vector<64x192xf32> -> vector<64x192xf32>
    %12 = arith.truncf %11 : vector<64x192xf32> to vector<64x192xbf16>
    %c1_13 = arith.constant 1 : index
    %c0_14 = arith.constant 0 : index
    %c0_15 = arith.constant 0 : index
    %13 = vector.load %arg5[%c1_13, %c0_14, %c0_15] : memref<4x192x256xbf16, #tpu.memory_space<vmem>>, vector<1x192x256xbf16>
    %14 = vector.shape_cast %13 : vector<1x192x256xbf16> to vector<192x256xbf16>
    %cst_16 = arith.constant dense<0.000000e+00> : vector<64x256xf32>
    %15 = tpu.matmul %12, %14, %cst_16 {dimension_numbers = #tpu.dot_dimension_numbers<[1], [0], [0], [1], [0, 0, 1, 1], [], []>} : vector<64x192xbf16>, vector<192x256xbf16>, vector<64x256xf32> -> vector<64x256xf32>
    %16 = arith.addf %8, %15 : vector<64x256xf32>
    %c2 = arith.constant 2 : index
    %c0_17 = arith.constant 0 : index
    %c0_18 = arith.constant 0 : index
    %17 = vector.load %arg1[%c2, %c0_17, %c0_18] : memref<4x64x128xbf16, #tpu.memory_space<vmem>>, vector<1x64x128xbf16>
    %18 = vector.shape_cast %17 : vector<1x64x128xbf16> to vector<64x128xbf16>
    %cst_19 = arith.constant dense<0.000000e+00> : vector<64x192xf32>
    %19 = tpu.matmul %18, %0, %cst_19 {dimension_numbers = #tpu.dot_dimension_numbers<[1], [0], [0], [1], [0, 0, 1, 1], [], []>} : vector<64x128xbf16>, vector<128x192xbf16>, vector<64x192xf32> -> vector<64x192xf32>
    %20 = arith.truncf %19 : vector<64x192xf32> to vector<64x192xbf16>
    %c2_20 = arith.constant 2 : index
    %c0_21 = arith.constant 0 : index
    %c0_22 = arith.constant 0 : index
    %21 = vector.load %arg5[%c2_20, %c0_21, %c0_22] : memref<4x192x256xbf16, #tpu.memory_space<vmem>>, vector<1x192x256xbf16>
    %22 = vector.shape_cast %21 : vector<1x192x256xbf16> to vector<192x256xbf16>
    %cst_23 = arith.constant dense<0.000000e+00> : vector<64x256xf32>
    %23 = tpu.matmul %20, %22, %cst_23 {dimension_numbers = #tpu.dot_dimension_numbers<[1], [0], [0], [1], [0, 0, 1, 1], [], []>} : vector<64x192xbf16>, vector<192x256xbf16>, vector<64x256xf32> -> vector<64x256xf32>
    %24 = arith.addf %16, %23 : vector<64x256xf32>
    %c3 = arith.constant 3 : index
    %c0_24 = arith.constant 0 : index
    %c0_25 = arith.constant 0 : index
    %25 = vector.load %arg1[%c3, %c0_24, %c0_25] : memref<4x64x128xbf16, #tpu.memory_space<vmem>>, vector<1x64x128xbf16>
    %26 = vector.shape_cast %25 : vector<1x64x128xbf16> to vector<64x128xbf16>
    %cst_26 = arith.constant dense<0.000000e+00> : vector<64x192xf32>
    %27 = tpu.matmul %26, %0, %cst_26 {dimension_numbers = #tpu.dot_dimension_numbers<[1], [0], [0], [1], [0, 0, 1, 1], [], []>} : vector<64x128xbf16>, vector<128x192xbf16>, vector<64x192xf32> -> vector<64x192xf32>
    %28 = arith.truncf %27 : vector<64x192xf32> to vector<64x192xbf16>
    %c3_27 = arith.constant 3 : index
    %c0_28 = arith.constant 0 : index
    %c0_29 = arith.constant 0 : index
    %29 = vector.load %arg5[%c3_27, %c0_28, %c0_29] : memref<4x192x256xbf16, #tpu.memory_space<vmem>>, vector<1x192x256xbf16>
    %30 = vector.shape_cast %29 : vector<1x192x256xbf16> to vector<192x256xbf16>
    %cst_30 = arith.constant dense<0.000000e+00> : vector<64x256xf32>
    %31 = tpu.matmul %28, %30, %cst_30 {dimension_numbers = #tpu.dot_dimension_numbers<[1], [0], [0], [1], [0, 0, 1, 1], [], []>} : vector<64x192xbf16>, vector<192x256xbf16>, vector<64x256xf32> -> vector<64x256xf32>
    %32 = arith.addf %24, %31 : vector<64x256xf32>
    %cst_31 = arith.constant dense<0.000000e+00> : vector<256xf32>
    %33 = vector.multi_reduction <add>, %32, %cst_31 [0] : vector<64x256xf32> to vector<256xf32>
    %34 = vector.shape_cast %33 : vector<256xf32> to vector<1x256xf32>
    %cst_32 = arith.constant dense<0.000000e+00> : vector<1x8xf32>
    %35 = tpu.matmul %34, %1, %cst_32 {dimension_numbers = #tpu.dot_dimension_numbers<[1], [1], [0], [0], [0, 0, 1, 0], [], []>} : vector<1x256xf32>, vector<8x256xf32>, vector<1x8xf32> -> vector<1x8xf32>
    %cst_33 = arith.constant 2.048000e+03 : f32
    %36 = vector.broadcast %cst_33 : f32 to vector<1x8xf32>
    %37 = arith.divf %35, %36 : vector<1x8xf32>
    %cst_34 = arith.constant dense<0.000000e+00> : vector<1x256xf32>
    %38 = tpu.matmul %37, %1, %cst_34 {dimension_numbers = #tpu.dot_dimension_numbers<[1], [0], [0], [1], [0, 0, 1, 1], [], []>} : vector<1x8xf32>, vector<8x256xf32>, vector<1x256xf32> -> vector<1x256xf32>
    %39 = vector.broadcast %38 : vector<1x256xf32> to vector<64x256xf32>
    %40 = arith.subf %32, %39 : vector<64x256xf32>
    %41 = arith.mulf %40, %40 : vector<64x256xf32>
    %cst_35 = arith.constant dense<0.000000e+00> : vector<256xf32>
    %42 = vector.multi_reduction <add>, %41, %cst_35 [0] : vector<64x256xf32> to vector<256xf32>
    %43 = vector.shape_cast %42 : vector<256xf32> to vector<1x256xf32>
    %cst_36 = arith.constant dense<0.000000e+00> : vector<1x8xf32>
    %44 = tpu.matmul %43, %1, %cst_36 {dimension_numbers = #tpu.dot_dimension_numbers<[1], [1], [0], [0], [0, 0, 1, 0], [], []>} : vector<1x256xf32>, vector<8x256xf32>, vector<1x8xf32> -> vector<1x8xf32>
    %cst_37 = arith.constant 2.048000e+03 : f32
    %45 = vector.broadcast %cst_37 : f32 to vector<1x8xf32>
    %46 = arith.divf %44, %45 : vector<1x8xf32>
    %c0_38 = arith.constant 0 : index
    %c0_39 = arith.constant 0 : index
    %47 = vector.load %arg9[%c0_38, %c0_39] : memref<1x8xf32, #tpu.memory_space<vmem>>, vector<1x8xf32>
    %cst_40 = arith.constant 9.99999974E-6 : f32
    %48 = vector.broadcast %cst_40 : f32 to vector<1x8xf32>
    %49 = arith.addf %46, %48 : vector<1x8xf32>
    %50 = math.rsqrt %49 : vector<1x8xf32>
    %51 = arith.mulf %47, %50 : vector<1x8xf32>
    %cst_41 = arith.constant dense<0.000000e+00> : vector<1x256xf32>
    %52 = tpu.matmul %51, %1, %cst_41 {dimension_numbers = #tpu.dot_dimension_numbers<[1], [0], [0], [1], [0, 0, 1, 1], [], []>} : vector<1x8xf32>, vector<8x256xf32>, vector<1x256xf32> -> vector<1x256xf32>
    %c0_42 = arith.constant 0 : index
    %c0_43 = arith.constant 0 : index
    %53 = vector.load %arg10[%c0_42, %c0_43] : memref<1x8xf32, #tpu.memory_space<vmem>>, vector<1x8xf32>
    %cst_44 = arith.constant dense<0.000000e+00> : vector<1x256xf32>
    %54 = tpu.matmul %53, %1, %cst_44 {dimension_numbers = #tpu.dot_dimension_numbers<[1], [0], [0], [1], [0, 0, 1, 1], [], []>} : vector<1x8xf32>, vector<8x256xf32>, vector<1x256xf32> -> vector<1x256xf32>
    %55 = vector.broadcast %52 : vector<1x256xf32> to vector<64x256xf32>
    %56 = arith.mulf %40, %55 : vector<64x256xf32>
    %57 = vector.broadcast %54 : vector<1x256xf32> to vector<64x256xf32>
    %58 = arith.addf %56, %57 : vector<64x256xf32>
    %cst_45 = arith.constant 0.000000e+00 : f32
    %59 = vector.broadcast %cst_45 : f32 to vector<64x256xf32>
    %60 = arith.cmpf oge, %58, %59 : vector<64x256xf32>
    %cst_46 = arith.constant 2.000000e-01 : f32
    %61 = vector.broadcast %cst_46 : f32 to vector<64x256xf32>
    %62 = arith.mulf %61, %58 : vector<64x256xf32>
    %63 = arith.select %60, %58, %62 : vector<64x256xi1>, vector<64x256xf32>
    %64 = arith.truncf %63 : vector<64x256xf32> to vector<64x256xbf16>
    %c0_47 = arith.constant 0 : index
    %c0_48 = arith.constant 0 : index
    %65 = vector.load %arg18[%c0_47, %c0_48] : memref<16x256xf32, #tpu.memory_space<vmem>>, vector<16x256xf32>
    %c0_49 = arith.constant 0 : index
    %c0_50 = arith.constant 0 : index
    %c0_51 = arith.constant 0 : index
    %66 = vector.load %arg2[%c0_49, %c0_50, %c0_51] : memref<4x32x64xbf16, #tpu.memory_space<vmem>>, vector<1x32x64xbf16>
    %67 = vector.shape_cast %66 : vector<1x32x64xbf16> to vector<32x64xbf16>
    %cst_52 = arith.constant dense<0.000000e+00> : vector<32x256xf32>
    %68 = tpu.matmul %67, %64, %cst_52 {dimension_numbers = #tpu.dot_dimension_numbers<[1], [0], [0], [1], [0, 0, 1, 1], [], []>} : vector<32x64xbf16>, vector<64x256xbf16>, vector<32x256xf32> -> vector<32x256xf32>
    %69 = arith.truncf %68 : vector<32x256xf32> to vector<32x256xbf16>
    %c0_53 = arith.constant 0 : index
    %c0_54 = arith.constant 0 : index
    %c0_55 = arith.constant 0 : index
    %70 = vector.load %arg6[%c0_53, %c0_54, %c0_55] : memref<4x256x256xbf16, #tpu.memory_space<vmem>>, vector<1x256x256xbf16>
    %71 = vector.shape_cast %70 : vector<1x256x256xbf16> to vector<256x256xbf16>
    %cst_56 = arith.constant dense<0.000000e+00> : vector<32x256xf32>
    %72 = tpu.matmul %69, %71, %cst_56 {dimension_numbers = #tpu.dot_dimension_numbers<[1], [0], [0], [1], [0, 0, 1, 1], [], []>} : vector<32x256xbf16>, vector<256x256xbf16>, vector<32x256xf32> -> vector<32x256xf32>
    %c1_57 = arith.constant 1 : index
    %c0_58 = arith.constant 0 : index
    %c0_59 = arith.constant 0 : index
    %73 = vector.load %arg2[%c1_57, %c0_58, %c0_59] : memref<4x32x64xbf16, #tpu.memory_space<vmem>>, vector<1x32x64xbf16>
    %74 = vector.shape_cast %73 : vector<1x32x64xbf16> to vector<32x64xbf16>
    %cst_60 = arith.constant dense<0.000000e+00> : vector<32x256xf32>
    %75 = tpu.matmul %74, %64, %cst_60 {dimension_numbers = #tpu.dot_dimension_numbers<[1], [0], [0], [1], [0, 0, 1, 1], [], []>} : vector<32x64xbf16>, vector<64x256xbf16>, vector<32x256xf32> -> vector<32x256xf32>
    %76 = arith.truncf %75 : vector<32x256xf32> to vector<32x256xbf16>
    %c1_61 = arith.constant 1 : index
    %c0_62 = arith.constant 0 : index
    %c0_63 = arith.constant 0 : index
    %77 = vector.load %arg6[%c1_61, %c0_62, %c0_63] : memref<4x256x256xbf16, #tpu.memory_space<vmem>>, vector<1x256x256xbf16>
    %78 = vector.shape_cast %77 : vector<1x256x256xbf16> to vector<256x256xbf16>
    %cst_64 = arith.constant dense<0.000000e+00> : vector<32x256xf32>
    %79 = tpu.matmul %76, %78, %cst_64 {dimension_numbers = #tpu.dot_dimension_numbers<[1], [0], [0], [1], [0, 0, 1, 1], [], []>} : vector<32x256xbf16>, vector<256x256xbf16>, vector<32x256xf32> -> vector<32x256xf32>
    %80 = arith.addf %72, %79 : vector<32x256xf32>
    %c2_65 = arith.constant 2 : index
    %c0_66 = arith.constant 0 : index
    %c0_67 = arith.constant 0 : index
    %81 = vector.load %arg2[%c2_65, %c0_66, %c0_67] : memref<4x32x64xbf16, #tpu.memory_space<vmem>>, vector<1x32x64xbf16>
    %82 = vector.shape_cast %81 : vector<1x32x64xbf16> to vector<32x64xbf16>
    %cst_68 = arith.constant dense<0.000000e+00> : vector<32x256xf32>
    %83 = tpu.matmul %82, %64, %cst_68 {dimension_numbers = #tpu.dot_dimension_numbers<[1], [0], [0], [1], [0, 0, 1, 1], [], []>} : vector<32x64xbf16>, vector<64x256xbf16>, vector<32x256xf32> -> vector<32x256xf32>
    %84 = arith.truncf %83 : vector<32x256xf32> to vector<32x256xbf16>
    %c2_69 = arith.constant 2 : index
    %c0_70 = arith.constant 0 : index
    %c0_71 = arith.constant 0 : index
    %85 = vector.load %arg6[%c2_69, %c0_70, %c0_71] : memref<4x256x256xbf16, #tpu.memory_space<vmem>>, vector<1x256x256xbf16>
    %86 = vector.shape_cast %85 : vector<1x256x256xbf16> to vector<256x256xbf16>
    %cst_72 = arith.constant dense<0.000000e+00> : vector<32x256xf32>
    %87 = tpu.matmul %84, %86, %cst_72 {dimension_numbers = #tpu.dot_dimension_numbers<[1], [0], [0], [1], [0, 0, 1, 1], [], []>} : vector<32x256xbf16>, vector<256x256xbf16>, vector<32x256xf32> -> vector<32x256xf32>
    %88 = arith.addf %80, %87 : vector<32x256xf32>
    %c3_73 = arith.constant 3 : index
    %c0_74 = arith.constant 0 : index
    %c0_75 = arith.constant 0 : index
    %89 = vector.load %arg2[%c3_73, %c0_74, %c0_75] : memref<4x32x64xbf16, #tpu.memory_space<vmem>>, vector<1x32x64xbf16>
    %90 = vector.shape_cast %89 : vector<1x32x64xbf16> to vector<32x64xbf16>
    %cst_76 = arith.constant dense<0.000000e+00> : vector<32x256xf32>
    %91 = tpu.matmul %90, %64, %cst_76 {dimension_numbers = #tpu.dot_dimension_numbers<[1], [0], [0], [1], [0, 0, 1, 1], [], []>} : vector<32x64xbf16>, vector<64x256xbf16>, vector<32x256xf32> -> vector<32x256xf32>
    %92 = arith.truncf %91 : vector<32x256xf32> to vector<32x256xbf16>
    %c3_77 = arith.constant 3 : index
    %c0_78 = arith.constant 0 : index
    %c0_79 = arith.constant 0 : index
    %93 = vector.load %arg6[%c3_77, %c0_78, %c0_79] : memref<4x256x256xbf16, #tpu.memory_space<vmem>>, vector<1x256x256xbf16>
    %94 = vector.shape_cast %93 : vector<1x256x256xbf16> to vector<256x256xbf16>
    %cst_80 = arith.constant dense<0.000000e+00> : vector<32x256xf32>
    %95 = tpu.matmul %92, %94, %cst_80 {dimension_numbers = #tpu.dot_dimension_numbers<[1], [0], [0], [1], [0, 0, 1, 1], [], []>} : vector<32x256xbf16>, vector<256x256xbf16>, vector<32x256xf32> -> vector<32x256xf32>
    %96 = arith.addf %88, %95 : vector<32x256xf32>
    %cst_81 = arith.constant dense<0.000000e+00> : vector<256xf32>
    %97 = vector.multi_reduction <add>, %96, %cst_81 [0] : vector<32x256xf32> to vector<256xf32>
    %98 = vector.shape_cast %97 : vector<256xf32> to vector<1x256xf32>
    %cst_82 = arith.constant dense<0.000000e+00> : vector<1x16xf32>
    %99 = tpu.matmul %98, %65, %cst_82 {dimension_numbers = #tpu.dot_dimension_numbers<[1], [1], [0], [0], [0, 0, 1, 0], [], []>} : vector<1x256xf32>, vector<16x256xf32>, vector<1x16xf32> -> vector<1x16xf32>
    %cst_83 = arith.constant 5.120000e+02 : f32
    %100 = vector.broadcast %cst_83 : f32 to vector<1x16xf32>
    %101 = arith.divf %99, %100 : vector<1x16xf32>
    %cst_84 = arith.constant dense<0.000000e+00> : vector<1x256xf32>
    %102 = tpu.matmul %101, %65, %cst_84 {dimension_numbers = #tpu.dot_dimension_numbers<[1], [0], [0], [1], [0, 0, 1, 1], [], []>} : vector<1x16xf32>, vector<16x256xf32>, vector<1x256xf32> -> vector<1x256xf32>
    %103 = vector.broadcast %102 : vector<1x256xf32> to vector<32x256xf32>
    %104 = arith.subf %96, %103 : vector<32x256xf32>
    %105 = arith.mulf %104, %104 : vector<32x256xf32>
    %cst_85 = arith.constant dense<0.000000e+00> : vector<256xf32>
    %106 = vector.multi_reduction <add>, %105, %cst_85 [0] : vector<32x256xf32> to vector<256xf32>
    %107 = vector.shape_cast %106 : vector<256xf32> to vector<1x256xf32>
    %cst_86 = arith.constant dense<0.000000e+00> : vector<1x16xf32>
    %108 = tpu.matmul %107, %65, %cst_86 {dimension_numbers = #tpu.dot_dimension_numbers<[1], [1], [0], [0], [0, 0, 1, 0], [], []>} : vector<1x256xf32>, vector<16x256xf32>, vector<1x16xf32> -> vector<1x16xf32>
    %cst_87 = arith.constant 5.120000e+02 : f32
    %109 = vector.broadcast %cst_87 : f32 to vector<1x16xf32>
    %110 = arith.divf %108, %109 : vector<1x16xf32>
    %c0_88 = arith.constant 0 : index
    %c0_89 = arith.constant 0 : index
    %111 = vector.load %arg11[%c0_88, %c0_89] : memref<1x16xf32, #tpu.memory_space<vmem>>, vector<1x16xf32>
    %cst_90 = arith.constant 9.99999974E-6 : f32
    %112 = vector.broadcast %cst_90 : f32 to vector<1x16xf32>
    %113 = arith.addf %110, %112 : vector<1x16xf32>
    %114 = math.rsqrt %113 : vector<1x16xf32>
    %115 = arith.mulf %111, %114 : vector<1x16xf32>
    %cst_91 = arith.constant dense<0.000000e+00> : vector<1x256xf32>
    %116 = tpu.matmul %115, %65, %cst_91 {dimension_numbers = #tpu.dot_dimension_numbers<[1], [0], [0], [1], [0, 0, 1, 1], [], []>} : vector<1x16xf32>, vector<16x256xf32>, vector<1x256xf32> -> vector<1x256xf32>
    %c0_92 = arith.constant 0 : index
    %c0_93 = arith.constant 0 : index
    %117 = vector.load %arg12[%c0_92, %c0_93] : memref<1x16xf32, #tpu.memory_space<vmem>>, vector<1x16xf32>
    %cst_94 = arith.constant dense<0.000000e+00> : vector<1x256xf32>
    %118 = tpu.matmul %117, %65, %cst_94 {dimension_numbers = #tpu.dot_dimension_numbers<[1], [0], [0], [1], [0, 0, 1, 1], [], []>} : vector<1x16xf32>, vector<16x256xf32>, vector<1x256xf32> -> vector<1x256xf32>
    %119 = vector.broadcast %116 : vector<1x256xf32> to vector<32x256xf32>
    %120 = arith.mulf %104, %119 : vector<32x256xf32>
    %121 = vector.broadcast %118 : vector<1x256xf32> to vector<32x256xf32>
    %122 = arith.addf %120, %121 : vector<32x256xf32>
    %cst_95 = arith.constant 0.000000e+00 : f32
    %123 = vector.broadcast %cst_95 : f32 to vector<32x256xf32>
    %124 = arith.cmpf oge, %122, %123 : vector<32x256xf32>
    %cst_96 = arith.constant 2.000000e-01 : f32
    %125 = vector.broadcast %cst_96 : f32 to vector<32x256xf32>
    %126 = arith.mulf %125, %122 : vector<32x256xf32>
    %127 = arith.select %124, %122, %126 : vector<32x256xi1>, vector<32x256xf32>
    %128 = arith.truncf %127 : vector<32x256xf32> to vector<32x256xbf16>
    %c0_97 = arith.constant 0 : index
    %c0_98 = arith.constant 0 : index
    %129 = vector.load %arg19[%c0_97, %c0_98] : memref<32x256xf32, #tpu.memory_space<vmem>>, vector<32x256xf32>
    %c0_99 = arith.constant 0 : index
    %c0_100 = arith.constant 0 : index
    %c0_101 = arith.constant 0 : index
    %130 = vector.load %arg3[%c0_99, %c0_100, %c0_101] : memref<4x16x32xbf16, #tpu.memory_space<vmem>>, vector<1x16x32xbf16>
    %131 = vector.shape_cast %130 : vector<1x16x32xbf16> to vector<16x32xbf16>
    %cst_102 = arith.constant dense<0.000000e+00> : vector<16x256xf32>
    %132 = tpu.matmul %131, %128, %cst_102 {dimension_numbers = #tpu.dot_dimension_numbers<[1], [0], [0], [1], [0, 0, 1, 1], [], []>} : vector<16x32xbf16>, vector<32x256xbf16>, vector<16x256xf32> -> vector<16x256xf32>
    %133 = arith.truncf %132 : vector<16x256xf32> to vector<16x256xbf16>
    %c0_103 = arith.constant 0 : index
    %c0_104 = arith.constant 0 : index
    %c0_105 = arith.constant 0 : index
    %134 = vector.load %arg7[%c0_103, %c0_104, %c0_105] : memref<4x256x256xbf16, #tpu.memory_space<vmem>>, vector<1x256x256xbf16>
    %135 = vector.shape_cast %134 : vector<1x256x256xbf16> to vector<256x256xbf16>
    %cst_106 = arith.constant dense<0.000000e+00> : vector<16x256xf32>
    %136 = tpu.matmul %133, %135, %cst_106 {dimension_numbers = #tpu.dot_dimension_numbers<[1], [0], [0], [1], [0, 0, 1, 1], [], []>} : vector<16x256xbf16>, vector<256x256xbf16>, vector<16x256xf32> -> vector<16x256xf32>
    %c1_107 = arith.constant 1 : index
    %c0_108 = arith.constant 0 : index
    %c0_109 = arith.constant 0 : index
    %137 = vector.load %arg3[%c1_107, %c0_108, %c0_109] : memref<4x16x32xbf16, #tpu.memory_space<vmem>>, vector<1x16x32xbf16>
    %138 = vector.shape_cast %137 : vector<1x16x32xbf16> to vector<16x32xbf16>
    %cst_110 = arith.constant dense<0.000000e+00> : vector<16x256xf32>
    %139 = tpu.matmul %138, %128, %cst_110 {dimension_numbers = #tpu.dot_dimension_numbers<[1], [0], [0], [1], [0, 0, 1, 1], [], []>} : vector<16x32xbf16>, vector<32x256xbf16>, vector<16x256xf32> -> vector<16x256xf32>
    %140 = arith.truncf %139 : vector<16x256xf32> to vector<16x256xbf16>
    %c1_111 = arith.constant 1 : index
    %c0_112 = arith.constant 0 : index
    %c0_113 = arith.constant 0 : index
    %141 = vector.load %arg7[%c1_111, %c0_112, %c0_113] : memref<4x256x256xbf16, #tpu.memory_space<vmem>>, vector<1x256x256xbf16>
    %142 = vector.shape_cast %141 : vector<1x256x256xbf16> to vector<256x256xbf16>
    %cst_114 = arith.constant dense<0.000000e+00> : vector<16x256xf32>
    %143 = tpu.matmul %140, %142, %cst_114 {dimension_numbers = #tpu.dot_dimension_numbers<[1], [0], [0], [1], [0, 0, 1, 1], [], []>} : vector<16x256xbf16>, vector<256x256xbf16>, vector<16x256xf32> -> vector<16x256xf32>
    %144 = arith.addf %136, %143 : vector<16x256xf32>
    %c2_115 = arith.constant 2 : index
    %c0_116 = arith.constant 0 : index
    %c0_117 = arith.constant 0 : index
    %145 = vector.load %arg3[%c2_115, %c0_116, %c0_117] : memref<4x16x32xbf16, #tpu.memory_space<vmem>>, vector<1x16x32xbf16>
    %146 = vector.shape_cast %145 : vector<1x16x32xbf16> to vector<16x32xbf16>
    %cst_118 = arith.constant dense<0.000000e+00> : vector<16x256xf32>
    %147 = tpu.matmul %146, %128, %cst_118 {dimension_numbers = #tpu.dot_dimension_numbers<[1], [0], [0], [1], [0, 0, 1, 1], [], []>} : vector<16x32xbf16>, vector<32x256xbf16>, vector<16x256xf32> -> vector<16x256xf32>
    %148 = arith.truncf %147 : vector<16x256xf32> to vector<16x256xbf16>
    %c2_119 = arith.constant 2 : index
    %c0_120 = arith.constant 0 : index
    %c0_121 = arith.constant 0 : index
    %149 = vector.load %arg7[%c2_119, %c0_120, %c0_121] : memref<4x256x256xbf16, #tpu.memory_space<vmem>>, vector<1x256x256xbf16>
    %150 = vector.shape_cast %149 : vector<1x256x256xbf16> to vector<256x256xbf16>
    %cst_122 = arith.constant dense<0.000000e+00> : vector<16x256xf32>
    %151 = tpu.matmul %148, %150, %cst_122 {dimension_numbers = #tpu.dot_dimension_numbers<[1], [0], [0], [1], [0, 0, 1, 1], [], []>} : vector<16x256xbf16>, vector<256x256xbf16>, vector<16x256xf32> -> vector<16x256xf32>
    %152 = arith.addf %144, %151 : vector<16x256xf32>
    %c3_123 = arith.constant 3 : index
    %c0_124 = arith.constant 0 : index
    %c0_125 = arith.constant 0 : index
    %153 = vector.load %arg3[%c3_123, %c0_124, %c0_125] : memref<4x16x32xbf16, #tpu.memory_space<vmem>>, vector<1x16x32xbf16>
    %154 = vector.shape_cast %153 : vector<1x16x32xbf16> to vector<16x32xbf16>
    %cst_126 = arith.constant dense<0.000000e+00> : vector<16x256xf32>
    %155 = tpu.matmul %154, %128, %cst_126 {dimension_numbers = #tpu.dot_dimension_numbers<[1], [0], [0], [1], [0, 0, 1, 1], [], []>} : vector<16x32xbf16>, vector<32x256xbf16>, vector<16x256xf32> -> vector<16x256xf32>
    %156 = arith.truncf %155 : vector<16x256xf32> to vector<16x256xbf16>
    %c3_127 = arith.constant 3 : index
    %c0_128 = arith.constant 0 : index
    %c0_129 = arith.constant 0 : index
    %157 = vector.load %arg7[%c3_127, %c0_128, %c0_129] : memref<4x256x256xbf16, #tpu.memory_space<vmem>>, vector<1x256x256xbf16>
    %158 = vector.shape_cast %157 : vector<1x256x256xbf16> to vector<256x256xbf16>
    %cst_130 = arith.constant dense<0.000000e+00> : vector<16x256xf32>
    %159 = tpu.matmul %156, %158, %cst_130 {dimension_numbers = #tpu.dot_dimension_numbers<[1], [0], [0], [1], [0, 0, 1, 1], [], []>} : vector<16x256xbf16>, vector<256x256xbf16>, vector<16x256xf32> -> vector<16x256xf32>
    %160 = arith.addf %152, %159 : vector<16x256xf32>
    %cst_131 = arith.constant dense<0.000000e+00> : vector<256xf32>
    %161 = vector.multi_reduction <add>, %160, %cst_131 [0] : vector<16x256xf32> to vector<256xf32>
    %162 = vector.shape_cast %161 : vector<256xf32> to vector<1x256xf32>
    %cst_132 = arith.constant dense<0.000000e+00> : vector<1x32xf32>
    %163 = tpu.matmul %162, %129, %cst_132 {dimension_numbers = #tpu.dot_dimension_numbers<[1], [1], [0], [0], [0, 0, 1, 0], [], []>} : vector<1x256xf32>, vector<32x256xf32>, vector<1x32xf32> -> vector<1x32xf32>
    %cst_133 = arith.constant 1.280000e+02 : f32
    %164 = vector.broadcast %cst_133 : f32 to vector<1x32xf32>
    %165 = arith.divf %163, %164 : vector<1x32xf32>
    %cst_134 = arith.constant dense<0.000000e+00> : vector<1x256xf32>
    %166 = tpu.matmul %165, %129, %cst_134 {dimension_numbers = #tpu.dot_dimension_numbers<[1], [0], [0], [1], [0, 0, 1, 1], [], []>} : vector<1x32xf32>, vector<32x256xf32>, vector<1x256xf32> -> vector<1x256xf32>
    %167 = vector.broadcast %166 : vector<1x256xf32> to vector<16x256xf32>
    %168 = arith.subf %160, %167 : vector<16x256xf32>
    %169 = arith.mulf %168, %168 : vector<16x256xf32>
    %cst_135 = arith.constant dense<0.000000e+00> : vector<256xf32>
    %170 = vector.multi_reduction <add>, %169, %cst_135 [0] : vector<16x256xf32> to vector<256xf32>
    %171 = vector.shape_cast %170 : vector<256xf32> to vector<1x256xf32>
    %cst_136 = arith.constant dense<0.000000e+00> : vector<1x32xf32>
    %172 = tpu.matmul %171, %129, %cst_136 {dimension_numbers = #tpu.dot_dimension_numbers<[1], [1], [0], [0], [0, 0, 1, 0], [], []>} : vector<1x256xf32>, vector<32x256xf32>, vector<1x32xf32> -> vector<1x32xf32>
    %cst_137 = arith.constant 1.280000e+02 : f32
    %173 = vector.broadcast %cst_137 : f32 to vector<1x32xf32>
    %174 = arith.divf %172, %173 : vector<1x32xf32>
    %c0_138 = arith.constant 0 : index
    %c0_139 = arith.constant 0 : index
    %175 = vector.load %arg13[%c0_138, %c0_139] : memref<1x32xf32, #tpu.memory_space<vmem>>, vector<1x32xf32>
    %cst_140 = arith.constant 9.99999974E-6 : f32
    %176 = vector.broadcast %cst_140 : f32 to vector<1x32xf32>
    %177 = arith.addf %174, %176 : vector<1x32xf32>
    %178 = math.rsqrt %177 : vector<1x32xf32>
    %179 = arith.mulf %175, %178 : vector<1x32xf32>
    %cst_141 = arith.constant dense<0.000000e+00> : vector<1x256xf32>
    %180 = tpu.matmul %179, %129, %cst_141 {dimension_numbers = #tpu.dot_dimension_numbers<[1], [0], [0], [1], [0, 0, 1, 1], [], []>} : vector<1x32xf32>, vector<32x256xf32>, vector<1x256xf32> -> vector<1x256xf32>
    %c0_142 = arith.constant 0 : index
    %c0_143 = arith.constant 0 : index
    %181 = vector.load %arg14[%c0_142, %c0_143] : memref<1x32xf32, #tpu.memory_space<vmem>>, vector<1x32xf32>
    %cst_144 = arith.constant dense<0.000000e+00> : vector<1x256xf32>
    %182 = tpu.matmul %181, %129, %cst_144 {dimension_numbers = #tpu.dot_dimension_numbers<[1], [0], [0], [1], [0, 0, 1, 1], [], []>} : vector<1x32xf32>, vector<32x256xf32>, vector<1x256xf32> -> vector<1x256xf32>
    %183 = vector.broadcast %180 : vector<1x256xf32> to vector<16x256xf32>
    %184 = arith.mulf %168, %183 : vector<16x256xf32>
    %185 = vector.broadcast %182 : vector<1x256xf32> to vector<16x256xf32>
    %186 = arith.addf %184, %185 : vector<16x256xf32>
    %cst_145 = arith.constant 0.000000e+00 : f32
    %187 = vector.broadcast %cst_145 : f32 to vector<16x256xf32>
    %188 = arith.cmpf oge, %186, %187 : vector<16x256xf32>
    %cst_146 = arith.constant 2.000000e-01 : f32
    %189 = vector.broadcast %cst_146 : f32 to vector<16x256xf32>
    %190 = arith.mulf %189, %186 : vector<16x256xf32>
    %191 = arith.select %188, %186, %190 : vector<16x256xi1>, vector<16x256xf32>
    %192 = arith.truncf %191 : vector<16x256xf32> to vector<16x256xbf16>
    %c0_147 = arith.constant 0 : index
    %c0_148 = arith.constant 0 : index
    %193 = vector.load %arg23[%c0_147, %c0_148] : memref<256x512xbf16, #tpu.memory_space<vmem>>, vector<256x512xbf16>
    %cst_149 = arith.constant dense<0.000000e+00> : vector<16x512xf32>
    %194 = tpu.matmul %192, %193, %cst_149 {dimension_numbers = #tpu.dot_dimension_numbers<[1], [0], [0], [1], [0, 0, 1, 1], [], []>} : vector<16x256xbf16>, vector<256x512xbf16>, vector<16x512xf32> -> vector<16x512xf32>
    %c0_150 = arith.constant 0 : index
    %c0_151 = arith.constant 0 : index
    %195 = vector.load %arg24[%c0_150, %c0_151] : memref<1x512xf32, #tpu.memory_space<vmem>>, vector<1x512xf32>
    %196 = vector.broadcast %195 : vector<1x512xf32> to vector<16x512xf32>
    %197 = arith.addf %194, %196 : vector<16x512xf32>
    %198 = arith.truncf %197 : vector<16x512xf32> to vector<16x512xbf16>
    %c0_152 = arith.constant 0 : index
    %c0_153 = arith.constant 0 : index
    %199 = vector.load %arg26[%c0_152, %c0_153] : memref<16x512xbf16, #tpu.memory_space<vmem>>, vector<16x512xbf16>
    tpu.vector_store %arg26[%c0_152, %c0_153], %198 {strides = array<i32>} : memref<16x512xbf16, #tpu.memory_space<vmem>>, vector<16x512xbf16>,
    %200 = arith.truncf %191 : vector<16x256xf32> to vector<16x256xbf16>
    %c0_154 = arith.constant 0 : index
    %c0_155 = arith.constant 0 : index
    %201 = vector.load %arg20[%c0_154, %c0_155] : memref<64x256xf32, #tpu.memory_space<vmem>>, vector<64x256xf32>
    %c0_156 = arith.constant 0 : index
    %c0_157 = arith.constant 0 : index
    %c0_158 = arith.constant 0 : index
    %202 = vector.load %arg4[%c0_156, %c0_157, %c0_158] : memref<4x8x16xbf16, #tpu.memory_space<vmem>>, vector<1x8x16xbf16>
    %203 = vector.shape_cast %202 : vector<1x8x16xbf16> to vector<8x16xbf16>
    %cst_159 = arith.constant dense<0.000000e+00> : vector<8x256xf32>
    %204 = tpu.matmul %203, %200, %cst_159 {dimension_numbers = #tpu.dot_dimension_numbers<[1], [0], [0], [1], [0, 0, 1, 1], [], []>} : vector<8x16xbf16>, vector<16x256xbf16>, vector<8x256xf32> -> vector<8x256xf32>
    %205 = arith.truncf %204 : vector<8x256xf32> to vector<8x256xbf16>
    %c0_160 = arith.constant 0 : index
    %c0_161 = arith.constant 0 : index
    %c0_162 = arith.constant 0 : index
    %206 = vector.load %arg8[%c0_160, %c0_161, %c0_162] : memref<4x256x256xbf16, #tpu.memory_space<vmem>>, vector<1x256x256xbf16>
    %207 = vector.shape_cast %206 : vector<1x256x256xbf16> to vector<256x256xbf16>
    %cst_163 = arith.constant dense<0.000000e+00> : vector<8x256xf32>
    %208 = tpu.matmul %205, %207, %cst_163 {dimension_numbers = #tpu.dot_dimension_numbers<[1], [0], [0], [1], [0, 0, 1, 1], [], []>} : vector<8x256xbf16>, vector<256x256xbf16>, vector<8x256xf32> -> vector<8x256xf32>
    %c1_164 = arith.constant 1 : index
    %c0_165 = arith.constant 0 : index
    %c0_166 = arith.constant 0 : index
    %209 = vector.load %arg4[%c1_164, %c0_165, %c0_166] : memref<4x8x16xbf16, #tpu.memory_space<vmem>>, vector<1x8x16xbf16>
    %210 = vector.shape_cast %209 : vector<1x8x16xbf16> to vector<8x16xbf16>
    %cst_167 = arith.constant dense<0.000000e+00> : vector<8x256xf32>
    %211 = tpu.matmul %210, %200, %cst_167 {dimension_numbers = #tpu.dot_dimension_numbers<[1], [0], [0], [1], [0, 0, 1, 1], [], []>} : vector<8x16xbf16>, vector<16x256xbf16>, vector<8x256xf32> -> vector<8x256xf32>
    %212 = arith.truncf %211 : vector<8x256xf32> to vector<8x256xbf16>
    %c1_168 = arith.constant 1 : index
    %c0_169 = arith.constant 0 : index
    %c0_170 = arith.constant 0 : index
    %213 = vector.load %arg8[%c1_168, %c0_169, %c0_170] : memref<4x256x256xbf16, #tpu.memory_space<vmem>>, vector<1x256x256xbf16>
    %214 = vector.shape_cast %213 : vector<1x256x256xbf16> to vector<256x256xbf16>
    %cst_171 = arith.constant dense<0.000000e+00> : vector<8x256xf32>
    %215 = tpu.matmul %212, %214, %cst_171 {dimension_numbers = #tpu.dot_dimension_numbers<[1], [0], [0], [1], [0, 0, 1, 1], [], []>} : vector<8x256xbf16>, vector<256x256xbf16>, vector<8x256xf32> -> vector<8x256xf32>
    %216 = arith.addf %208, %215 : vector<8x256xf32>
    %c2_172 = arith.constant 2 : index
    %c0_173 = arith.constant 0 : index
    %c0_174 = arith.constant 0 : index
    %217 = vector.load %arg4[%c2_172, %c0_173, %c0_174] : memref<4x8x16xbf16, #tpu.memory_space<vmem>>, vector<1x8x16xbf16>
    %218 = vector.shape_cast %217 : vector<1x8x16xbf16> to vector<8x16xbf16>
    %cst_175 = arith.constant dense<0.000000e+00> : vector<8x256xf32>
    %219 = tpu.matmul %218, %200, %cst_175 {dimension_numbers = #tpu.dot_dimension_numbers<[1], [0], [0], [1], [0, 0, 1, 1], [], []>} : vector<8x16xbf16>, vector<16x256xbf16>, vector<8x256xf32> -> vector<8x256xf32>
    %220 = arith.truncf %219 : vector<8x256xf32> to vector<8x256xbf16>
    %c2_176 = arith.constant 2 : index
    %c0_177 = arith.constant 0 : index
    %c0_178 = arith.constant 0 : index
    %221 = vector.load %arg8[%c2_176, %c0_177, %c0_178] : memref<4x256x256xbf16, #tpu.memory_space<vmem>>, vector<1x256x256xbf16>
    %222 = vector.shape_cast %221 : vector<1x256x256xbf16> to vector<256x256xbf16>
    %cst_179 = arith.constant dense<0.000000e+00> : vector<8x256xf32>
    %223 = tpu.matmul %220, %222, %cst_179 {dimension_numbers = #tpu.dot_dimension_numbers<[1], [0], [0], [1], [0, 0, 1, 1], [], []>} : vector<8x256xbf16>, vector<256x256xbf16>, vector<8x256xf32> -> vector<8x256xf32>
    %224 = arith.addf %216, %223 : vector<8x256xf32>
    %c3_180 = arith.constant 3 : index
    %c0_181 = arith.constant 0 : index
    %c0_182 = arith.constant 0 : index
    %225 = vector.load %arg4[%c3_180, %c0_181, %c0_182] : memref<4x8x16xbf16, #tpu.memory_space<vmem>>, vector<1x8x16xbf16>
    %226 = vector.shape_cast %225 : vector<1x8x16xbf16> to vector<8x16xbf16>
    %cst_183 = arith.constant dense<0.000000e+00> : vector<8x256xf32>
    %227 = tpu.matmul %226, %200, %cst_183 {dimension_numbers = #tpu.dot_dimension_numbers<[1], [0], [0], [1], [0, 0, 1, 1], [], []>} : vector<8x16xbf16>, vector<16x256xbf16>, vector<8x256xf32> -> vector<8x256xf32>
    %228 = arith.truncf %227 : vector<8x256xf32> to vector<8x256xbf16>
    %c3_184 = arith.constant 3 : index
    %c0_185 = arith.constant 0 : index
    %c0_186 = arith.constant 0 : index
    %229 = vector.load %arg8[%c3_184, %c0_185, %c0_186] : memref<4x256x256xbf16, #tpu.memory_space<vmem>>, vector<1x256x256xbf16>
    %230 = vector.shape_cast %229 : vector<1x256x256xbf16> to vector<256x256xbf16>
    %cst_187 = arith.constant dense<0.000000e+00> : vector<8x256xf32>
    %231 = tpu.matmul %228, %230, %cst_187 {dimension_numbers = #tpu.dot_dimension_numbers<[1], [0], [0], [1], [0, 0, 1, 1], [], []>} : vector<8x256xbf16>, vector<256x256xbf16>, vector<8x256xf32> -> vector<8x256xf32>
    %232 = arith.addf %224, %231 : vector<8x256xf32>
    %cst_188 = arith.constant dense<0.000000e+00> : vector<256xf32>
    %233 = vector.multi_reduction <add>, %232, %cst_188 [0] : vector<8x256xf32> to vector<256xf32>
    %234 = vector.shape_cast %233 : vector<256xf32> to vector<1x256xf32>
    %cst_189 = arith.constant dense<0.000000e+00> : vector<1x64xf32>
    %235 = tpu.matmul %234, %201, %cst_189 {dimension_numbers = #tpu.dot_dimension_numbers<[1], [1], [0], [0], [0, 0, 1, 0], [], []>} : vector<1x256xf32>, vector<64x256xf32>, vector<1x64xf32> -> vector<1x64xf32>
    %cst_190 = arith.constant 3.200000e+01 : f32
    %236 = vector.broadcast %cst_190 : f32 to vector<1x64xf32>
    %237 = arith.divf %235, %236 : vector<1x64xf32>
    %cst_191 = arith.constant dense<0.000000e+00> : vector<1x256xf32>
    %238 = tpu.matmul %237, %201, %cst_191 {dimension_numbers = #tpu.dot_dimension_numbers<[1], [0], [0], [1], [0, 0, 1, 1], [], []>} : vector<1x64xf32>, vector<64x256xf32>, vector<1x256xf32> -> vector<1x256xf32>
    %239 = vector.broadcast %238 : vector<1x256xf32> to vector<8x256xf32>
    %240 = arith.subf %232, %239 : vector<8x256xf32>
    %241 = arith.mulf %240, %240 : vector<8x256xf32>
    %cst_192 = arith.constant dense<0.000000e+00> : vector<256xf32>
    %242 = vector.multi_reduction <add>, %241, %cst_192 [0] : vector<8x256xf32> to vector<256xf32>
    %243 = vector.shape_cast %242 : vector<256xf32> to vector<1x256xf32>
    %cst_193 = arith.constant dense<0.000000e+00> : vector<1x64xf32>
    %244 = tpu.matmul %243, %201, %cst_193 {dimension_numbers = #tpu.dot_dimension_numbers<[1], [1], [0], [0], [0, 0, 1, 0], [], []>} : vector<1x256xf32>, vector<64x256xf32>, vector<1x64xf32> -> vector<1x64xf32>
    %cst_194 = arith.constant 3.200000e+01 : f32
    %245 = vector.broadcast %cst_194 : f32 to vector<1x64xf32>
    %246 = arith.divf %244, %245 : vector<1x64xf32>
    %c0_195 = arith.constant 0 : index
    %c0_196 = arith.constant 0 : index
    %247 = vector.load %arg15[%c0_195, %c0_196] : memref<1x64xf32, #tpu.memory_space<vmem>>, vector<1x64xf32>
    %cst_197 = arith.constant 9.99999974E-6 : f32
    %248 = vector.broadcast %cst_197 : f32 to vector<1x64xf32>
    %249 = arith.addf %246, %248 : vector<1x64xf32>
    %250 = math.rsqrt %249 : vector<1x64xf32>
    %251 = arith.mulf %247, %250 : vector<1x64xf32>
    %cst_198 = arith.constant dense<0.000000e+00> : vector<1x256xf32>
    %252 = tpu.matmul %251, %201, %cst_198 {dimension_numbers = #tpu.dot_dimension_numbers<[1], [0], [0], [1], [0, 0, 1, 1], [], []>} : vector<1x64xf32>, vector<64x256xf32>, vector<1x256xf32> -> vector<1x256xf32>
    %c0_199 = arith.constant 0 : index
    %c0_200 = arith.constant 0 : index
    %253 = vector.load %arg16[%c0_199, %c0_200] : memref<1x64xf32, #tpu.memory_space<vmem>>, vector<1x64xf32>
    %cst_201 = arith.constant dense<0.000000e+00> : vector<1x256xf32>
    %254 = tpu.matmul %253, %201, %cst_201 {dimension_numbers = #tpu.dot_dimension_numbers<[1], [0], [0], [1], [0, 0, 1, 1], [], []>} : vector<1x64xf32>, vector<64x256xf32>, vector<1x256xf32> -> vector<1x256xf32>
    %255 = vector.broadcast %252 : vector<1x256xf32> to vector<8x256xf32>
    %256 = arith.mulf %240, %255 : vector<8x256xf32>
    %257 = vector.broadcast %254 : vector<1x256xf32> to vector<8x256xf32>
    %258 = arith.addf %256, %257 : vector<8x256xf32>
    %cst_202 = arith.constant 0.000000e+00 : f32
    %259 = vector.broadcast %cst_202 : f32 to vector<8x256xf32>
    %260 = arith.cmpf oge, %258, %259 : vector<8x256xf32>
    %cst_203 = arith.constant 2.000000e-01 : f32
    %261 = vector.broadcast %cst_203 : f32 to vector<8x256xf32>
    %262 = arith.mulf %261, %258 : vector<8x256xf32>
    %263 = arith.select %260, %258, %262 : vector<8x256xi1>, vector<8x256xf32>
    %c0_204 = arith.constant 0 : index
    %c0_205 = arith.constant 0 : index
    %264 = vector.load %arg21[%c0_204, %c0_205] : memref<8x256xf32, #tpu.memory_space<vmem>>, vector<8x256xf32>
    %265 = arith.mulf %263, %264 : vector<8x256xf32>
    %cst_206 = arith.constant dense<0.000000e+00> : vector<8xf32>
    %266 = vector.multi_reduction <add>, %265, %cst_206 [1] : vector<8x256xf32> to vector<8xf32>
    %267 = vector.shape_cast %266 : vector<8xf32> to vector<8x1xf32>
    %268 = vector.extract_strided_slice %267 {offsets = [0, 0], sizes = [4, 1], strides = [1, 1]} : vector<8x1xf32> to vector<4x1xf32>
    %cst_207 = arith.constant dense<0.000000e+00> : vector<1xf32>
    %269 = vector.multi_reduction <add>, %268, %cst_207 [0] : vector<4x1xf32> to vector<1xf32>
    %270 = vector.shape_cast %269 : vector<1xf32> to vector<1x1xf32>
    %c0_208 = arith.constant 0 : index
    %c0_209 = arith.constant 0 : index
    %271 = vector.load %arg22[%c0_208, %c0_209] : memref<1x1xf32, #tpu.memory_space<vmem>>, vector<1x1xf32>
    %272 = arith.addf %270, %271 : vector<1x1xf32>
    %c0_210 = arith.constant 0 : index
    %c0_211 = arith.constant 0 : index
    %273 = vector.load %arg25[%c0_210, %c0_211] : memref<2x1xf32, #tpu.memory_space<vmem>>, vector<1x1xf32>
    tpu.vector_store %arg25[%c0_210, %c0_211], %272 {strides = array<i32>} : memref<2x1xf32, #tpu.memory_space<vmem>>, vector<1x1xf32>,
    %274 = vector.extract_strided_slice %267 {offsets = [4, 0], sizes = [4, 1], strides = [1, 1]} : vector<8x1xf32> to vector<4x1xf32>
    %cst_212 = arith.constant dense<0.000000e+00> : vector<1xf32>
    %275 = vector.multi_reduction <add>, %274, %cst_212 [0] : vector<4x1xf32> to vector<1xf32>
    %276 = vector.shape_cast %275 : vector<1xf32> to vector<1x1xf32>
    %c0_213 = arith.constant 0 : index
    %c0_214 = arith.constant 0 : index
    %277 = vector.load %arg22[%c0_213, %c0_214] : memref<1x1xf32, #tpu.memory_space<vmem>>, vector<1x1xf32>
    %278 = arith.addf %276, %277 : vector<1x1xf32>
    %c1_215 = arith.constant 1 : index
    %c0_216 = arith.constant 0 : index
    %279 = vector.load %arg25[%c1_215, %c0_216] : memref<2x1xf32, #tpu.memory_space<vmem>>, vector<1x1xf32>
    tpu.vector_store %arg25[%c1_215, %c0_216], %278 {strides = array<i32>} : memref<2x1xf32, #tpu.memory_space<vmem>>, vector<1x1xf32>,
    return
  }
}

module attributes {stable_mosaic.version = 11 : i64} {
  func.func @_wld_kernel(%arg0: memref<2x64x64xbf16, #tpu.memory_space<vmem>>, %arg1: memref<2x8x64xf32, #tpu.memory_space<vmem>>, %arg2: memref<4x1xf32, #tpu.memory_space<vmem>>) attributes {dimension_semantics = [], scalar_prefetch = 0 : i64, scratch_operands = 0 : i64, tpu.core_type = #tpu.core_type<tc>} {
    %c0 = arith.constant 0 : index
    %c0_0 = arith.constant 0 : index
    %c0_1 = arith.constant 0 : index
    %0 = vector.load %arg0[%c0, %c0_0, %c0_1] : memref<2x64x64xbf16, #tpu.memory_space<vmem>>, vector<1x64x64xbf16>
    %1 = vector.shape_cast %0 : vector<1x64x64xbf16> to vector<64x64xbf16>
    %c0_2 = arith.constant 0 : index
    %c0_3 = arith.constant 0 : index
    %c0_4 = arith.constant 0 : index
    %2 = vector.load %arg1[%c0_2, %c0_3, %c0_4] : memref<2x8x64xf32, #tpu.memory_space<vmem>>, vector<1x8x64xf32>
    %3 = vector.shape_cast %2 : vector<1x8x64xf32> to vector<8x64xf32>
    %4 = arith.truncf %3 : vector<8x64xf32> to vector<8x64xbf16>
    %cst = arith.constant dense<0.000000e+00> : vector<8x64xf32>
    %5 = tpu.matmul %4, %1, %cst {dimension_numbers = #tpu.dot_dimension_numbers<[1], [1], [0], [0], [0, 0, 1, 0], [], []>} : vector<8x64xbf16>, vector<64x64xbf16>, vector<8x64xf32> -> vector<8x64xf32>
    %cst_5 = arith.constant dense<0xFF800000> : vector<8xf32>
    %6 = vector.multi_reduction <maximumf>, %5, %cst_5 [1] : vector<8x64xf32> to vector<8xf32>
    %7 = vector.shape_cast %6 : vector<8xf32> to vector<8x1xf32>
    %8 = vector.broadcast %7 : vector<8x1xf32> to vector<8x64xf32>
    %9 = arith.subf %5, %8 : vector<8x64xf32>
    %10 = math.exp %9 : vector<8x64xf32>
    %cst_6 = arith.constant dense<0.000000e+00> : vector<8xf32>
    %11 = vector.multi_reduction <add>, %10, %cst_6 [1] : vector<8x64xf32> to vector<8xf32>
    %12 = vector.shape_cast %11 : vector<8xf32> to vector<8x1xf32>
    %13 = tpu.reciprocal %12 {approx = true} : vector<8x1xf32> -> vector<8x1xf32>
    %14 = vector.broadcast %13 : vector<8x1xf32> to vector<8x64xf32>
    %15 = arith.mulf %10, %14 : vector<8x64xf32>
    %16 = arith.truncf %15 : vector<8x64xf32> to vector<8x64xbf16>
    %cst_7 = arith.constant dense<0.000000e+00> : vector<8x64xf32>
    %17 = tpu.matmul %16, %1, %cst_7 {dimension_numbers = #tpu.dot_dimension_numbers<[1], [0], [0], [1], [0, 0, 1, 1], [], []>} : vector<8x64xbf16>, vector<64x64xbf16>, vector<8x64xf32> -> vector<8x64xf32>
    %cst_8 = arith.constant dense<0.000000e+00> : vector<64xf32>
    %18 = vector.multi_reduction <add>, %3, %cst_8 [0] : vector<8x64xf32> to vector<64xf32>
    %19 = vector.shape_cast %18 : vector<64xf32> to vector<1x64xf32>
    %cst_9 = arith.constant 8.000000e+00 : f32
    %20 = vector.broadcast %cst_9 : f32 to vector<1x64xf32>
    %21 = arith.divf %19, %20 : vector<1x64xf32>
    %22 = vector.broadcast %21 : vector<1x64xf32> to vector<8x64xf32>
    %23 = arith.mulf %3, %22 : vector<8x64xf32>
    %cst_10 = arith.constant dense<0.000000e+00> : vector<8xf32>
    %24 = vector.multi_reduction <add>, %23, %cst_10 [1] : vector<8x64xf32> to vector<8xf32>
    %25 = vector.shape_cast %24 : vector<8xf32> to vector<8x1xf32>
    %26 = vector.broadcast %25 : vector<8x1xf32> to vector<8x64xf32>
    %27 = arith.mulf %17, %26 : vector<8x64xf32>
    %28 = arith.mulf %27, %3 : vector<8x64xf32>
    %cst_11 = arith.constant dense<0.000000e+00> : vector<64xf32>
    %29 = vector.multi_reduction <add>, %28, %cst_11 [0] : vector<8x64xf32> to vector<64xf32>
    %30 = vector.shape_cast %29 : vector<64xf32> to vector<1x64xf32>
    %31 = arith.mulf %27, %27 : vector<8x64xf32>
    %cst_12 = arith.constant dense<0.000000e+00> : vector<64xf32>
    %32 = vector.multi_reduction <add>, %31, %cst_12 [0] : vector<8x64xf32> to vector<64xf32>
    %33 = vector.shape_cast %32 : vector<64xf32> to vector<1x64xf32>
    %34 = math.sqrt %33 : vector<1x64xf32>
    %35 = arith.mulf %3, %3 : vector<8x64xf32>
    %cst_13 = arith.constant dense<0.000000e+00> : vector<64xf32>
    %36 = vector.multi_reduction <add>, %35, %cst_13 [0] : vector<8x64xf32> to vector<64xf32>
    %37 = vector.shape_cast %36 : vector<64xf32> to vector<1x64xf32>
    %38 = math.sqrt %37 : vector<1x64xf32>
    %39 = arith.mulf %34, %38 : vector<1x64xf32>
    %cst_14 = arith.constant 9.99999997E-7 : f32
    %40 = vector.broadcast %cst_14 : f32 to vector<1x64xf32>
    %41 = arith.maximumf %39, %40 : vector<1x64xf32>
    %42 = arith.divf %30, %41 : vector<1x64xf32>
    %cst_15 = arith.constant 0.000000e+00 : f32
    %43 = vector.broadcast %cst_15 : f32 to vector<1x64xf32>
    %44 = arith.subf %43, %42 : vector<1x64xf32>
    %45 = math.exp %44 : vector<1x64xf32>
    %cst_16 = arith.constant 1.000000e+00 : f32
    %46 = vector.broadcast %cst_16 : f32 to vector<1x64xf32>
    %47 = arith.addf %46, %45 : vector<1x64xf32>
    %cst_17 = arith.constant 1.000000e+00 : f32
    %48 = vector.broadcast %cst_17 : f32 to vector<1x64xf32>
    %49 = arith.divf %48, %47 : vector<1x64xf32>
    %cst_18 = arith.constant dense<0.000000e+00> : vector<1xf32>
    %50 = vector.multi_reduction <add>, %49, %cst_18 [1] : vector<1x64xf32> to vector<1xf32>
    %51 = vector.shape_cast %50 : vector<1xf32> to vector<1x1xf32>
    %cst_19 = arith.constant 6.400000e+01 : f32
    %52 = vector.broadcast %cst_19 : f32 to vector<1x1xf32>
    %53 = arith.divf %51, %52 : vector<1x1xf32>
    %c0_20 = arith.constant 0 : index
    %c0_21 = arith.constant 0 : index
    %54 = vector.load %arg2[%c0_20, %c0_21] : memref<4x1xf32, #tpu.memory_space<vmem>>, vector<1x1xf32>
    tpu.vector_store %arg2[%c0_20, %c0_21], %53 {strides = array<i32>} : memref<4x1xf32, #tpu.memory_space<vmem>>, vector<1x1xf32>,
    %c1 = arith.constant 1 : index
    %c0_22 = arith.constant 0 : index
    %c0_23 = arith.constant 0 : index
    %55 = vector.load %arg0[%c1, %c0_22, %c0_23] : memref<2x64x64xbf16, #tpu.memory_space<vmem>>, vector<1x64x64xbf16>
    %56 = vector.shape_cast %55 : vector<1x64x64xbf16> to vector<64x64xbf16>
    %c1_24 = arith.constant 1 : index
    %c0_25 = arith.constant 0 : index
    %c0_26 = arith.constant 0 : index
    %57 = vector.load %arg1[%c1_24, %c0_25, %c0_26] : memref<2x8x64xf32, #tpu.memory_space<vmem>>, vector<1x8x64xf32>
    %58 = vector.shape_cast %57 : vector<1x8x64xf32> to vector<8x64xf32>
    %59 = arith.truncf %58 : vector<8x64xf32> to vector<8x64xbf16>
    %cst_27 = arith.constant dense<0.000000e+00> : vector<8x64xf32>
    %60 = tpu.matmul %59, %56, %cst_27 {dimension_numbers = #tpu.dot_dimension_numbers<[1], [1], [0], [0], [0, 0, 1, 0], [], []>} : vector<8x64xbf16>, vector<64x64xbf16>, vector<8x64xf32> -> vector<8x64xf32>
    %cst_28 = arith.constant dense<0xFF800000> : vector<8xf32>
    %61 = vector.multi_reduction <maximumf>, %60, %cst_28 [1] : vector<8x64xf32> to vector<8xf32>
    %62 = vector.shape_cast %61 : vector<8xf32> to vector<8x1xf32>
    %63 = vector.broadcast %62 : vector<8x1xf32> to vector<8x64xf32>
    %64 = arith.subf %60, %63 : vector<8x64xf32>
    %65 = math.exp %64 : vector<8x64xf32>
    %cst_29 = arith.constant dense<0.000000e+00> : vector<8xf32>
    %66 = vector.multi_reduction <add>, %65, %cst_29 [1] : vector<8x64xf32> to vector<8xf32>
    %67 = vector.shape_cast %66 : vector<8xf32> to vector<8x1xf32>
    %68 = tpu.reciprocal %67 {approx = true} : vector<8x1xf32> -> vector<8x1xf32>
    %69 = vector.broadcast %68 : vector<8x1xf32> to vector<8x64xf32>
    %70 = arith.mulf %65, %69 : vector<8x64xf32>
    %71 = arith.truncf %70 : vector<8x64xf32> to vector<8x64xbf16>
    %cst_30 = arith.constant dense<0.000000e+00> : vector<8x64xf32>
    %72 = tpu.matmul %71, %56, %cst_30 {dimension_numbers = #tpu.dot_dimension_numbers<[1], [0], [0], [1], [0, 0, 1, 1], [], []>} : vector<8x64xbf16>, vector<64x64xbf16>, vector<8x64xf32> -> vector<8x64xf32>
    %cst_31 = arith.constant dense<0.000000e+00> : vector<64xf32>
    %73 = vector.multi_reduction <add>, %58, %cst_31 [0] : vector<8x64xf32> to vector<64xf32>
    %74 = vector.shape_cast %73 : vector<64xf32> to vector<1x64xf32>
    %cst_32 = arith.constant 8.000000e+00 : f32
    %75 = vector.broadcast %cst_32 : f32 to vector<1x64xf32>
    %76 = arith.divf %74, %75 : vector<1x64xf32>
    %77 = vector.broadcast %76 : vector<1x64xf32> to vector<8x64xf32>
    %78 = arith.mulf %58, %77 : vector<8x64xf32>
    %cst_33 = arith.constant dense<0.000000e+00> : vector<8xf32>
    %79 = vector.multi_reduction <add>, %78, %cst_33 [1] : vector<8x64xf32> to vector<8xf32>
    %80 = vector.shape_cast %79 : vector<8xf32> to vector<8x1xf32>
    %81 = vector.broadcast %80 : vector<8x1xf32> to vector<8x64xf32>
    %82 = arith.mulf %72, %81 : vector<8x64xf32>
    %83 = arith.mulf %82, %58 : vector<8x64xf32>
    %cst_34 = arith.constant dense<0.000000e+00> : vector<64xf32>
    %84 = vector.multi_reduction <add>, %83, %cst_34 [0] : vector<8x64xf32> to vector<64xf32>
    %85 = vector.shape_cast %84 : vector<64xf32> to vector<1x64xf32>
    %86 = arith.mulf %82, %82 : vector<8x64xf32>
    %cst_35 = arith.constant dense<0.000000e+00> : vector<64xf32>
    %87 = vector.multi_reduction <add>, %86, %cst_35 [0] : vector<8x64xf32> to vector<64xf32>
    %88 = vector.shape_cast %87 : vector<64xf32> to vector<1x64xf32>
    %89 = math.sqrt %88 : vector<1x64xf32>
    %90 = arith.mulf %58, %58 : vector<8x64xf32>
    %cst_36 = arith.constant dense<0.000000e+00> : vector<64xf32>
    %91 = vector.multi_reduction <add>, %90, %cst_36 [0] : vector<8x64xf32> to vector<64xf32>
    %92 = vector.shape_cast %91 : vector<64xf32> to vector<1x64xf32>
    %93 = math.sqrt %92 : vector<1x64xf32>
    %94 = arith.mulf %89, %93 : vector<1x64xf32>
    %cst_37 = arith.constant 9.99999997E-7 : f32
    %95 = vector.broadcast %cst_37 : f32 to vector<1x64xf32>
    %96 = arith.maximumf %94, %95 : vector<1x64xf32>
    %97 = arith.divf %85, %96 : vector<1x64xf32>
    %cst_38 = arith.constant 0.000000e+00 : f32
    %98 = vector.broadcast %cst_38 : f32 to vector<1x64xf32>
    %99 = arith.subf %98, %97 : vector<1x64xf32>
    %100 = math.exp %99 : vector<1x64xf32>
    %cst_39 = arith.constant 1.000000e+00 : f32
    %101 = vector.broadcast %cst_39 : f32 to vector<1x64xf32>
    %102 = arith.addf %101, %100 : vector<1x64xf32>
    %cst_40 = arith.constant 1.000000e+00 : f32
    %103 = vector.broadcast %cst_40 : f32 to vector<1x64xf32>
    %104 = arith.divf %103, %102 : vector<1x64xf32>
    %cst_41 = arith.constant dense<0.000000e+00> : vector<1xf32>
    %105 = vector.multi_reduction <add>, %104, %cst_41 [1] : vector<1x64xf32> to vector<1xf32>
    %106 = vector.shape_cast %105 : vector<1xf32> to vector<1x1xf32>
    %cst_42 = arith.constant 6.400000e+01 : f32
    %107 = vector.broadcast %cst_42 : f32 to vector<1x1xf32>
    %108 = arith.divf %106, %107 : vector<1x1xf32>
    %c1_43 = arith.constant 1 : index
    %c0_44 = arith.constant 0 : index
    %109 = vector.load %arg2[%c1_43, %c0_44] : memref<4x1xf32, #tpu.memory_space<vmem>>, vector<1x1xf32>
    tpu.vector_store %arg2[%c1_43, %c0_44], %108 {strides = array<i32>} : memref<4x1xf32, #tpu.memory_space<vmem>>, vector<1x1xf32>,
    %c1_45 = arith.constant 1 : index
    %c0_46 = arith.constant 0 : index
    %c0_47 = arith.constant 0 : index
    %110 = vector.load %arg0[%c1_45, %c0_46, %c0_47] : memref<2x64x64xbf16, #tpu.memory_space<vmem>>, vector<1x64x64xbf16>
    %111 = vector.shape_cast %110 : vector<1x64x64xbf16> to vector<64x64xbf16>
    %c0_48 = arith.constant 0 : index
    %c0_49 = arith.constant 0 : index
    %c0_50 = arith.constant 0 : index
    %112 = vector.load %arg1[%c0_48, %c0_49, %c0_50] : memref<2x8x64xf32, #tpu.memory_space<vmem>>, vector<1x8x64xf32>
    %113 = vector.shape_cast %112 : vector<1x8x64xf32> to vector<8x64xf32>
    %114 = arith.truncf %113 : vector<8x64xf32> to vector<8x64xbf16>
    %cst_51 = arith.constant dense<0.000000e+00> : vector<8x64xf32>
    %115 = tpu.matmul %114, %111, %cst_51 {dimension_numbers = #tpu.dot_dimension_numbers<[1], [1], [0], [0], [0, 0, 1, 0], [], []>} : vector<8x64xbf16>, vector<64x64xbf16>, vector<8x64xf32> -> vector<8x64xf32>
    %cst_52 = arith.constant dense<0xFF800000> : vector<8xf32>
    %116 = vector.multi_reduction <maximumf>, %115, %cst_52 [1] : vector<8x64xf32> to vector<8xf32>
    %117 = vector.shape_cast %116 : vector<8xf32> to vector<8x1xf32>
    %118 = vector.broadcast %117 : vector<8x1xf32> to vector<8x64xf32>
    %119 = arith.subf %115, %118 : vector<8x64xf32>
    %120 = math.exp %119 : vector<8x64xf32>
    %cst_53 = arith.constant dense<0.000000e+00> : vector<8xf32>
    %121 = vector.multi_reduction <add>, %120, %cst_53 [1] : vector<8x64xf32> to vector<8xf32>
    %122 = vector.shape_cast %121 : vector<8xf32> to vector<8x1xf32>
    %123 = tpu.reciprocal %122 {approx = true} : vector<8x1xf32> -> vector<8x1xf32>
    %124 = vector.broadcast %123 : vector<8x1xf32> to vector<8x64xf32>
    %125 = arith.mulf %120, %124 : vector<8x64xf32>
    %126 = arith.truncf %125 : vector<8x64xf32> to vector<8x64xbf16>
    %cst_54 = arith.constant dense<0.000000e+00> : vector<8x64xf32>
    %127 = tpu.matmul %126, %111, %cst_54 {dimension_numbers = #tpu.dot_dimension_numbers<[1], [0], [0], [1], [0, 0, 1, 1], [], []>} : vector<8x64xbf16>, vector<64x64xbf16>, vector<8x64xf32> -> vector<8x64xf32>
    %cst_55 = arith.constant dense<0.000000e+00> : vector<64xf32>
    %128 = vector.multi_reduction <add>, %113, %cst_55 [0] : vector<8x64xf32> to vector<64xf32>
    %129 = vector.shape_cast %128 : vector<64xf32> to vector<1x64xf32>
    %cst_56 = arith.constant 8.000000e+00 : f32
    %130 = vector.broadcast %cst_56 : f32 to vector<1x64xf32>
    %131 = arith.divf %129, %130 : vector<1x64xf32>
    %132 = vector.broadcast %131 : vector<1x64xf32> to vector<8x64xf32>
    %133 = arith.mulf %113, %132 : vector<8x64xf32>
    %cst_57 = arith.constant dense<0.000000e+00> : vector<8xf32>
    %134 = vector.multi_reduction <add>, %133, %cst_57 [1] : vector<8x64xf32> to vector<8xf32>
    %135 = vector.shape_cast %134 : vector<8xf32> to vector<8x1xf32>
    %136 = vector.broadcast %135 : vector<8x1xf32> to vector<8x64xf32>
    %137 = arith.mulf %127, %136 : vector<8x64xf32>
    %138 = arith.mulf %137, %113 : vector<8x64xf32>
    %cst_58 = arith.constant dense<0.000000e+00> : vector<64xf32>
    %139 = vector.multi_reduction <add>, %138, %cst_58 [0] : vector<8x64xf32> to vector<64xf32>
    %140 = vector.shape_cast %139 : vector<64xf32> to vector<1x64xf32>
    %141 = arith.mulf %137, %137 : vector<8x64xf32>
    %cst_59 = arith.constant dense<0.000000e+00> : vector<64xf32>
    %142 = vector.multi_reduction <add>, %141, %cst_59 [0] : vector<8x64xf32> to vector<64xf32>
    %143 = vector.shape_cast %142 : vector<64xf32> to vector<1x64xf32>
    %144 = math.sqrt %143 : vector<1x64xf32>
    %145 = arith.mulf %113, %113 : vector<8x64xf32>
    %cst_60 = arith.constant dense<0.000000e+00> : vector<64xf32>
    %146 = vector.multi_reduction <add>, %145, %cst_60 [0] : vector<8x64xf32> to vector<64xf32>
    %147 = vector.shape_cast %146 : vector<64xf32> to vector<1x64xf32>
    %148 = math.sqrt %147 : vector<1x64xf32>
    %149 = arith.mulf %144, %148 : vector<1x64xf32>
    %cst_61 = arith.constant 9.99999997E-7 : f32
    %150 = vector.broadcast %cst_61 : f32 to vector<1x64xf32>
    %151 = arith.maximumf %149, %150 : vector<1x64xf32>
    %152 = arith.divf %140, %151 : vector<1x64xf32>
    %cst_62 = arith.constant 0.000000e+00 : f32
    %153 = vector.broadcast %cst_62 : f32 to vector<1x64xf32>
    %154 = arith.subf %153, %152 : vector<1x64xf32>
    %155 = math.exp %154 : vector<1x64xf32>
    %cst_63 = arith.constant 1.000000e+00 : f32
    %156 = vector.broadcast %cst_63 : f32 to vector<1x64xf32>
    %157 = arith.addf %156, %155 : vector<1x64xf32>
    %cst_64 = arith.constant 1.000000e+00 : f32
    %158 = vector.broadcast %cst_64 : f32 to vector<1x64xf32>
    %159 = arith.divf %158, %157 : vector<1x64xf32>
    %cst_65 = arith.constant dense<0.000000e+00> : vector<1xf32>
    %160 = vector.multi_reduction <add>, %159, %cst_65 [1] : vector<1x64xf32> to vector<1xf32>
    %161 = vector.shape_cast %160 : vector<1xf32> to vector<1x1xf32>
    %cst_66 = arith.constant 6.400000e+01 : f32
    %162 = vector.broadcast %cst_66 : f32 to vector<1x1xf32>
    %163 = arith.divf %161, %162 : vector<1x1xf32>
    %c2 = arith.constant 2 : index
    %c0_67 = arith.constant 0 : index
    %164 = vector.load %arg2[%c2, %c0_67] : memref<4x1xf32, #tpu.memory_space<vmem>>, vector<1x1xf32>
    tpu.vector_store %arg2[%c2, %c0_67], %163 {strides = array<i32>} : memref<4x1xf32, #tpu.memory_space<vmem>>, vector<1x1xf32>,
    %c0_68 = arith.constant 0 : index
    %c0_69 = arith.constant 0 : index
    %c0_70 = arith.constant 0 : index
    %165 = vector.load %arg0[%c0_68, %c0_69, %c0_70] : memref<2x64x64xbf16, #tpu.memory_space<vmem>>, vector<1x64x64xbf16>
    %166 = vector.shape_cast %165 : vector<1x64x64xbf16> to vector<64x64xbf16>
    %c1_71 = arith.constant 1 : index
    %c0_72 = arith.constant 0 : index
    %c0_73 = arith.constant 0 : index
    %167 = vector.load %arg1[%c1_71, %c0_72, %c0_73] : memref<2x8x64xf32, #tpu.memory_space<vmem>>, vector<1x8x64xf32>
    %168 = vector.shape_cast %167 : vector<1x8x64xf32> to vector<8x64xf32>
    %169 = arith.truncf %168 : vector<8x64xf32> to vector<8x64xbf16>
    %cst_74 = arith.constant dense<0.000000e+00> : vector<8x64xf32>
    %170 = tpu.matmul %169, %166, %cst_74 {dimension_numbers = #tpu.dot_dimension_numbers<[1], [1], [0], [0], [0, 0, 1, 0], [], []>} : vector<8x64xbf16>, vector<64x64xbf16>, vector<8x64xf32> -> vector<8x64xf32>
    %cst_75 = arith.constant dense<0xFF800000> : vector<8xf32>
    %171 = vector.multi_reduction <maximumf>, %170, %cst_75 [1] : vector<8x64xf32> to vector<8xf32>
    %172 = vector.shape_cast %171 : vector<8xf32> to vector<8x1xf32>
    %173 = vector.broadcast %172 : vector<8x1xf32> to vector<8x64xf32>
    %174 = arith.subf %170, %173 : vector<8x64xf32>
    %175 = math.exp %174 : vector<8x64xf32>
    %cst_76 = arith.constant dense<0.000000e+00> : vector<8xf32>
    %176 = vector.multi_reduction <add>, %175, %cst_76 [1] : vector<8x64xf32> to vector<8xf32>
    %177 = vector.shape_cast %176 : vector<8xf32> to vector<8x1xf32>
    %178 = tpu.reciprocal %177 {approx = true} : vector<8x1xf32> -> vector<8x1xf32>
    %179 = vector.broadcast %178 : vector<8x1xf32> to vector<8x64xf32>
    %180 = arith.mulf %175, %179 : vector<8x64xf32>
    %181 = arith.truncf %180 : vector<8x64xf32> to vector<8x64xbf16>
    %cst_77 = arith.constant dense<0.000000e+00> : vector<8x64xf32>
    %182 = tpu.matmul %181, %166, %cst_77 {dimension_numbers = #tpu.dot_dimension_numbers<[1], [0], [0], [1], [0, 0, 1, 1], [], []>} : vector<8x64xbf16>, vector<64x64xbf16>, vector<8x64xf32> -> vector<8x64xf32>
    %cst_78 = arith.constant dense<0.000000e+00> : vector<64xf32>
    %183 = vector.multi_reduction <add>, %168, %cst_78 [0] : vector<8x64xf32> to vector<64xf32>
    %184 = vector.shape_cast %183 : vector<64xf32> to vector<1x64xf32>
    %cst_79 = arith.constant 8.000000e+00 : f32
    %185 = vector.broadcast %cst_79 : f32 to vector<1x64xf32>
    %186 = arith.divf %184, %185 : vector<1x64xf32>
    %187 = vector.broadcast %186 : vector<1x64xf32> to vector<8x64xf32>
    %188 = arith.mulf %168, %187 : vector<8x64xf32>
    %cst_80 = arith.constant dense<0.000000e+00> : vector<8xf32>
    %189 = vector.multi_reduction <add>, %188, %cst_80 [1] : vector<8x64xf32> to vector<8xf32>
    %190 = vector.shape_cast %189 : vector<8xf32> to vector<8x1xf32>
    %191 = vector.broadcast %190 : vector<8x1xf32> to vector<8x64xf32>
    %192 = arith.mulf %182, %191 : vector<8x64xf32>
    %193 = arith.mulf %192, %168 : vector<8x64xf32>
    %cst_81 = arith.constant dense<0.000000e+00> : vector<64xf32>
    %194 = vector.multi_reduction <add>, %193, %cst_81 [0] : vector<8x64xf32> to vector<64xf32>
    %195 = vector.shape_cast %194 : vector<64xf32> to vector<1x64xf32>
    %196 = arith.mulf %192, %192 : vector<8x64xf32>
    %cst_82 = arith.constant dense<0.000000e+00> : vector<64xf32>
    %197 = vector.multi_reduction <add>, %196, %cst_82 [0] : vector<8x64xf32> to vector<64xf32>
    %198 = vector.shape_cast %197 : vector<64xf32> to vector<1x64xf32>
    %199 = math.sqrt %198 : vector<1x64xf32>
    %200 = arith.mulf %168, %168 : vector<8x64xf32>
    %cst_83 = arith.constant dense<0.000000e+00> : vector<64xf32>
    %201 = vector.multi_reduction <add>, %200, %cst_83 [0] : vector<8x64xf32> to vector<64xf32>
    %202 = vector.shape_cast %201 : vector<64xf32> to vector<1x64xf32>
    %203 = math.sqrt %202 : vector<1x64xf32>
    %204 = arith.mulf %199, %203 : vector<1x64xf32>
    %cst_84 = arith.constant 9.99999997E-7 : f32
    %205 = vector.broadcast %cst_84 : f32 to vector<1x64xf32>
    %206 = arith.maximumf %204, %205 : vector<1x64xf32>
    %207 = arith.divf %195, %206 : vector<1x64xf32>
    %cst_85 = arith.constant 0.000000e+00 : f32
    %208 = vector.broadcast %cst_85 : f32 to vector<1x64xf32>
    %209 = arith.subf %208, %207 : vector<1x64xf32>
    %210 = math.exp %209 : vector<1x64xf32>
    %cst_86 = arith.constant 1.000000e+00 : f32
    %211 = vector.broadcast %cst_86 : f32 to vector<1x64xf32>
    %212 = arith.addf %211, %210 : vector<1x64xf32>
    %cst_87 = arith.constant 1.000000e+00 : f32
    %213 = vector.broadcast %cst_87 : f32 to vector<1x64xf32>
    %214 = arith.divf %213, %212 : vector<1x64xf32>
    %cst_88 = arith.constant dense<0.000000e+00> : vector<1xf32>
    %215 = vector.multi_reduction <add>, %214, %cst_88 [1] : vector<1x64xf32> to vector<1xf32>
    %216 = vector.shape_cast %215 : vector<1xf32> to vector<1x1xf32>
    %cst_89 = arith.constant 6.400000e+01 : f32
    %217 = vector.broadcast %cst_89 : f32 to vector<1x1xf32>
    %218 = arith.divf %216, %217 : vector<1x1xf32>
    %c3 = arith.constant 3 : index
    %c0_90 = arith.constant 0 : index
    %219 = vector.load %arg2[%c3, %c0_90] : memref<4x1xf32, #tpu.memory_space<vmem>>, vector<1x1xf32>
    tpu.vector_store %arg2[%c3, %c0_90], %218 {strides = array<i32>} : memref<4x1xf32, #tpu.memory_space<vmem>>, vector<1x1xf32>,
    return
  }
}

</mosaic_0001>

<bundles_post_ra>
// kernel: tile.12
= control target key start
LH: loop header
LB: loop body
LE: loop exit
PB: predicated region body
PF: predicated region fallthrough
CT: control target
= control target key end

     0   :  { %s72_s0 = inlined_call_operand.vmem [shape: f32[2,4,256], index: 0, kind: input, shape index: {}]   ;;  %s73_s1 = inlined_call_operand.vmem [shape: f32[8,256], index: 1, kind: output, shape index: {}]  }
   0x1   :  { %v32_v0 = vld [vmem:[%s72_s0 + $0xc] sm:$0xf]  ;;  %v33_v1 = vld [vmem:[%s72_s0 + $0x8] sm:$0xf]  ;;  %v34_v2 = vld [vmem:[%s72_s0 + $0x4] sm:$0xf] }
   0x2   :  { %7 = vst [vmem:[#allocation0 + $0x8] sm:$0xf] %v32_v0  ;;  %v16_v3 = vld [vmem:[%s72_s0] sm:$0xf] }
   0x3   :  { %11 = vst [vmem:[#allocation0 + $0x18] sm:$0xf] %v33_v1 }
   0x4   :  { %15 = vst [vmem:[#allocation0] sm:$0xf] %v34_v2 }
   0x5   :  { %17 = vst [vmem:[#allocation0 + $0x10] sm:$0xf] %v16_v3 }
   0x9   :  { %v29_v4 = vld [vmem:[#allocation0 + $0x8] sm:$0xf]  }
   0xa   :  { %v25_v5 = vld [vmem:[#allocation0 + $0x18] sm:$0xf]   ;;  %37 = vst [vmem:[%s73_s1 + $0xc] sm:$0xf] %v29_v4  }
   0xb   :  { %v21_v6 = vld [vmem:[#allocation0] sm:$0xf]   ;;  %36 = vst [vmem:[%s73_s1 + $0x4] sm:$0xf] %v25_v5  }
   0xc   :  { %v18_v7 = vld [vmem:[#allocation0 + $0x10] sm:$0xf]   ;;  %35 = vst [vmem:[%s73_s1 + $0x8] sm:$0xf] %v21_v6  }
   0xd   :  { %19 = vst [vmem:[%s73_s1] sm:$0xf] %v18_v7  }

// kernel: tile.16
= control target key start
LH: loop header
LB: loop body
LE: loop exit
PB: predicated region body
PF: predicated region fallthrough
CT: control target
= control target key end

     0   :  { %s22_s0 = inlined_call_operand.vmem [shape: f32[64], index: 0, kind: input, shape index: {}]   ;;  %s23_s1 = inlined_call_operand.vmem [shape: f32[8,64], index: 1, kind: output, shape index: {}]  }
   0x1   :  { %v4_v0 = vld [vmem:[%s22_s0] ss:$0 sm:$0xff] }
   0x2   :  { %5 = vst [vmem:[%s23_s1] sm:$0xff] %v4_v0 }

// kernel: tile.17
= control target key start
LH: loop header
LB: loop body
LE: loop exit
PB: predicated region body
PF: predicated region fallthrough
CT: control target
= control target key end

     0   :  { %vm3_vm0 = vcmask 523264   ;;  %s40_s8 = smov 64   ;;  %vm9_vm1 = vcmask 1048064   ;;  %s69_s0 = inlined_call_operand.vmem [shape: f32[8,64], index: 0, kind: input, shape index: {}]   ;;  %s70_s1 = inlined_call_operand.vmem [shape: f32[1,512], index: 1, kind: output, shape index: {}]  }
   0x1   :  { %v35_v0 = vld [vmem:[%s69_s0 + $0x1] ss:$2 sm:$0xf]   ;;  %v2_v1 = vld [vmem:[%s69_s0] ss:$2 sm:$0xf]  }
   0x2   :  { %7 = vrot.lane.b32.xlu0 %v35_v0, %s40_s8  ;;  %4 = vst.msk [vmem:[#allocation0] ss:$8 sm:$0xf] %vm3_vm0, %v2_v1  }
  0x74   :  { %v8_v2 = vpop.permute.xlu0 %7  }
  0x75   :  { %10 = vst.msk [vmem:[#allocation0] ss:$8 sm:$0xf] %vm9_vm1, %v8_v2  }
  0x7c   :  { %v13_v3 = vld [vmem:[#allocation0] sm:$0x1]  ;;  %v18_v4 = vld [vmem:[#allocation0 + $0x8] sm:$0x1]  ;;  %v24_v5 = vld [vmem:[#allocation0 + $0x10] sm:$0x1] }
  0x7d   :  { %16 = vst [vmem:[%s70_s1] sm:$0x1] %v13_v3  ;;  %v30_v6 = vld [vmem:[#allocation0 + $0x18] sm:$0x1] }
  0x7e   :  { %36 = vst [vmem:[%s70_s1 + $0x1] sm:$0x1] %v18_v4 }
  0x7f   :  { %37 = vst [vmem:[%s70_s1 + $0x2] sm:$0x1] %v24_v5 }
  0x80   :  { %38 = vst [vmem:[%s70_s1 + $0x3] sm:$0x1] %v30_v6 }

// kernel: d_forward.3
= control target key start
LH: loop header
LB: loop body
LE: loop exit
PB: predicated region body
PF: predicated region fallthrough
CT: control target
= control target key end

     0   :  { %vm42_vm0 = vcmask 523264   ;;  %v966_v44 = vmov 8.0   ;;  %vm218_vm15 = vcmask 0   ;;  %s1160_s0 = inlined_call_operand.vmem [shape: bf16[2,64,64], index: 0, kind: input, shape index: {}]   ;;  %s1161_s1 = inlined_call_operand.vmem [shape: f32[2,8,64], index: 1, kind: input, shape index: {}]   ;;  %s1162_s2 = inlined_call_operand.vmem [shape: f32[4,1], index: 2, kind: output, shape index: {}]  }
   0x1   :  { %v895_v0 = vld [vmem:[%s1160_s0 + $0x18] sm:$0xff]  ;;  %v894_v3 = vld [vmem:[%s1160_s0 + $0x10] sm:$0xff]  ;;  %v893_v7 = vld [vmem:[%s1160_s0 + $0x8] sm:$0xff] }
   0x2   :  { %v56_v1 = vsel %vm42_vm0, %v895_v0, 0  ;;  %v899_v2 = vld [vmem:[%s1160_s0 + $0x38] sm:$0xff]  ;;  %94 = vmatpush.bf16.msra.mxu1 %v895_v0  ;;  %v898_v5 = vld [vmem:[%s1160_s0 + $0x30] sm:$0xff]  ;;  %v53_v6 = vsel %vm42_vm0, %v894_v3, 0  ;;  %v897_v9 = vld [vmem:[%s1160_s0 + $0x28] sm:$0xff]  ;;  %v50_v12 = vsel %vm42_vm0, %v893_v7, 0 }
   0x3   :  { %62 = vmatpush.bf16.xpose.msra.mxu0 %v56_v1  ;;  %v265_v4 = vsel %vm42_vm0, %v899_v2, 0  ;;  %303 = vmatpush.bf16.msra.mxu3 %v899_v2  ;;  %v262_v8 = vsel %vm42_vm0, %v898_v5, 0  ;;  %v892_v10 = vld [vmem:[%s1160_s0] sm:$0xff]  ;;  %v259_v13 = vsel %vm42_vm0, %v897_v9, 0  ;;  %v1023_v17 = vld [vmem:[%s1161_s1 + $0x8] sm:$0xff]  ;;  %v907_v20 = vld [vmem:[%s1160_s0 + $0x18] sm:$0xff] }
   0x4   :  { %271 = vmatpush.bf16.xpose.msra.mxu2 %v265_v4  ;;  %v896_v11 = vld [vmem:[%s1160_s0 + $0x20] sm:$0xff]  ;;  %v47_v14 = vsel %vm42_vm0, %v892_v10, 0  ;;  %v231_v19 = vpack.c.bf16 %v1023_v17, %v1023_v17  ;;  %v649_v21 = vsel %vm42_vm0, %v907_v20, 0  ;;  %v906_v22 = vld [vmem:[%s1160_s0 + $0x10] sm:$0xff]  ;;  %v905_v24 = vld [vmem:[%s1160_s0 + $0x8] sm:$0xff] }
   0x5   :  { %v256_v15 = vsel %vm42_vm0, %v896_v11, 0  ;;  %v1018_v16 = vld [vmem:[%s1161_s1] sm:$0xff]  ;;  %v646_v23 = vsel %vm42_vm0, %v906_v22, 0  ;;  %v643_v26 = vsel %vm42_vm0, %v905_v24, 0  ;;  %v903_v33 = vld [vmem:[%s1160_s0 + $0x38] sm:$0xff]  ;;  %v902_v43 = vld [vmem:[%s1160_s0 + $0x30] sm:$0xff] }
   0x6   :  { %95 = vmatpush.bf16.msra.mxu1 %v894_v3  ;;  %v1027_v18 = vpack.c.bf16 %v1018_v16, %v1018_v16  ;;  %v904_v25 = vld [vmem:[%s1160_s0] sm:$0xff]  ;;  %v457_v35 = vsel %vm42_vm0, %v903_v33, 0  ;;  %v454_v47 = vsel %vm42_vm0, %v902_v43, 0  ;;  %v103_v49 = vsel %vm42_vm0, %v1018_v16, 0.0  ;;  %v901_v56 = vld [vmem:[%s1160_s0 + $0x28] sm:$0xff] }
   0x7   :  { %304 = vmatpush.bf16.msra.mxu3 %v898_v5  ;;  %v640_v28 = vsel %vm42_vm0, %v904_v25, 0  ;;  %v104_v50 = vrot.slane %v103_v49, 4  ;;  %v451_v60 = vsel %vm42_vm0, %v901_v56, 0  ;;  %v900_v0 = vld [vmem:[%s1160_s0 + $0x20] sm:$0xff] }
   0x8   :  { %v448_v5 = vsel %vm42_vm0, %v900_v0, 0 }
   0x9   :  { %v105_v52 = vadd.f32 %v104_v50, %v103_v49 }
   0xa   :  { %96 = vmatpush.bf16.msra.mxu1 %v893_v7 }
   0xb   :  { %63 = vmatpush.bf16.xpose.msra.mxu0 %v53_v6  ;;  %305 = vmatpush.bf16.msra.mxu3 %v897_v9  ;;  %v106_v54 = vrot.slane %v105_v52, 2 }
   0xc   :  { %272 = vmatpush.bf16.xpose.msra.mxu2 %v262_v8 }
   0xd   :  { %v107_v58 = vadd.f32 %v106_v54, %v105_v52 }
   0xe   :  { %97 = vmatpush.bf16.msra.mxu1 %v892_v10 }
   0xf   :  { %306 = vmatpush.bf16.msra.mxu3 %v896_v11  ;;  %v108_v63 = vrot.slane %v107_v58, 1 }
  0x11   :  { %v109_v2 = vadd.f32 %v108_v63, %v107_v58 }
  0x12   :  { %463 = vmatpush.bf16.xpose.msrb.mxu1 %v457_v35 }
  0x13   :  { %64 = vmatpush.bf16.xpose.msra.mxu0 %v50_v12  ;;  %495 = vmatpush.bf16.msrb.mxu3 %v903_v33 }
  0x14   :  { %273 = vmatpush.bf16.xpose.msra.mxu2 %v259_v13 }
  0x17   :  { %496 = vmatpush.bf16.msrb.mxu3 %v902_v43 }
  0x1a   :  { %464 = vmatpush.bf16.xpose.msrb.mxu1 %v454_v47 }
  0x1b   :  { %65 = vmatpush.bf16.xpose.msra.mxu0 %v47_v14  ;;  %497 = vmatpush.bf16.msrb.mxu3 %v901_v56 }
  0x1c   :  { %274 = vmatpush.bf16.xpose.msra.mxu2 %v256_v15 }
  0x1f   :  { %498 = vmatpush.bf16.msrb.mxu3 %v900_v0 }
  0x22   :  { %818 = vmatmul.msk.bf16.vlgmr.msra.gmra.mxu0 %vm42_vm0, %v1027_v18  ;;  %465 = vmatpush.bf16.xpose.msrb.mxu1 %v451_v60 }
  0x23   :  { %845 = vmatmul.msk.bf16.vlgmr.msra.gmra.mxu2 %vm42_vm0, %v231_v19  ;;  %655 = vmatpush.bf16.xpose.msrb.mxu0 %v649_v21 }
  0x24   :  { %687 = vmatpush.bf16.msrb.mxu2 %v907_v20  ;;  %v151_v20 = vmul.f32 %v1018_v16, %v1018_v16 }
  0x28   :  { %688 = vmatpush.bf16.msrb.mxu2 %v906_v22  ;;  %v152_v22 = vsel %vm42_vm0, %v151_v20, 0.0 }
  0x2a   :  { %466 = vmatpush.bf16.xpose.msrb.mxu1 %v448_v5 }
  0x2b   :  { %656 = vmatpush.bf16.xpose.msrb.mxu0 %v646_v23 }
  0x2c   :  { %689 = vmatpush.bf16.msrb.mxu2 %v905_v24 }
  0x30   :  { %690 = vmatpush.bf16.msrb.mxu2 %v904_v25  ;;  %v153_v25 = vrot.slane %v152_v22, 4 }
  0x33   :  { %657 = vmatpush.bf16.xpose.msrb.mxu0 %v643_v26 }
  0x3b   :  { %658 = vmatpush.bf16.xpose.msrb.mxu0 %v640_v28 }
  0x42   :  { %890 = vmatmul.msk.bf16.vlgmr.msrb.gmra.mxu0 %vm42_vm0, %v231_v19 }
  0x9f   :  { %v67_v27 = vpop.f32.mrf.mxu0 }
  0xa0   :  { %v71_v29 = vsel %vm42_vm0, %v67_v27, -inf }
  0xa1   :  { %72 = vmax.xlane.f32.xlu0 %v71_v29 }
  0xa6   :  { %v276_v31 = vpop.f32.mrf.mxu2 }
  0xa7   :  { %v69_v30 = vpop.f32.mrf.mxu0  ;;  %v280_v32 = vsel %vm42_vm0, %v276_v31, -inf }
  0xa8   :  { %281 = vmax.xlane.f32.xlu1 %v280_v32 }
  0xae   :  { %v278_v34 = vpop.f32.mrf.mxu2 }
  0xbf   :  { %v1058_v42 = vpop.f32.mrf.mxu0 }
  0xc0   :  { %v664_v46 = vsel %vm42_vm0, %v1058_v42, -inf }
  0xc1   :  { %665 = vmax.xlane.f32.xlu2 %v664_v46 }
  0xc7   :  { %v662_v55 = vpop.f32.mrf.mxu0 }
 0x114   :  { %v73_v36 = vpop.xlane.xlu0 %72 }
 0x115   :  { %v74_v37 = vsub.f32 %v67_v27, %v73_v36  ;;  %v154_v27 = vadd.f32 %v153_v25, %v152_v22 }
 0x117   :  { %v75_v38 = vmul.f32 1.442695, %v74_v37  ;;  %v155_v32 = vrot.slane %v154_v27, 2 }
 0x119   :  { %910 = vpow2.f32 %v75_v38  ;;  %v156_v35 = vadd.f32 %v155_v32, %v154_v27 }
 0x11a   :  { %912 = vrcp.f32 %v966_v44 }
 0x11b   :  { %v282_v41 = vpop.xlane.xlu1 %281 }
 0x11c   :  { %v283_v45 = vsub.f32 %v276_v31, %v282_v41 }
 0x11e   :  { %v284_v48 = vmul.f32 1.442695, %v283_v45 }
 0x11f   :  { %v911_v39 = vpop.eup %910 }
 0x120   :  { %v77_v40 = vsel %vm42_vm0, %v911_v39, 0.0  ;;  %914 = vpow2.f32 %v284_v48  ;;  %v913_v51 = vpop.eup %912 }
 0x121   :  { %78 = vadd.xlane.f32.xlu0 %v77_v40  ;;  %v111_v53 = vmul.f32 8.0, %v913_v51  ;;  %vm115_vm1 = vweird.f32 %v913_v51 }
 0x123   :  { %v112_v57 = vsub.f32 1.0, %v111_v53 }
 0x125   :  { %v113_v61 = vmul.f32 %v913_v51, %v112_v57 }
 0x126   :  { %v915_v59 = vpop.eup %914 }
 0x127   :  { %v286_v62 = vsel %vm42_vm0, %v915_v59, 0.0  ;;  %v114_v1 = vadd.f32 %v913_v51, %v113_v61 }
 0x128   :  { %287 = vadd.xlane.f32.xlu2 %v286_v62 }
 0x129   :  { %v1076_v3 = vsel %vm115_vm1, %v913_v51, %v114_v1 }
 0x12a   :  { %v117_v4 = vmul.f32 %v1076_v3, %v109_v2 }
 0x12c   :  { %v118_v6 = vmul.f32 %v117_v4, %v1018_v16 }
 0x12e   :  { %v1082_v7 = vsel %vm42_vm0, %v118_v6, 0.0 }
 0x130   :  { %120 = vadd.xlane.f32.xlu2 %v1082_v7 }
 0x134   :  { %v666_v12 = vpop.xlane.xlu2 %665 }
 0x135   :  { %v667_v28 = vsub.f32 %v1058_v42, %v666_v12 }
 0x137   :  { %v668_v33 = vmul.f32 1.442695, %v667_v28 }
 0x194   :  { %v79_v8 = vpop.xlane.xlu0 %78 }
 0x195   :  { %916 = vrcp.f32 %v79_v8 }
 0x19b   :  { %v917_v9 = vpop.eup %916  ;;  %v288_v13 = vpop.xlane.xlu2 %287 }
 0x19c   :  { %v81_v10 = vmul.f32 %v917_v9, %v911_v39  ;;  %918 = vrcp.f32 %v288_v13  ;;  %v157_v39 = vrot.slane %v156_v35, 1 }
 0x19d   :  { %920 = vpow2.f32 %v668_v33 }
 0x19e   :  { %v82_v11 = vpack.c.bf16 %v81_v10, %v81_v10  ;;  %v158_v42 = vadd.f32 %v157_v39, %v156_v35 }
 0x1a0   :  { %819 = vmatmul.msk.bf16.vlgmr.msra.gmra.mxu1 %vm42_vm0, %v82_v11  ;;  %922 = vrsqrt.f32 %v158_v42  ;;  %vm166_vm2 = vcmp.eq.f32.partialorder %v158_v42, inf  ;;  %v169_v60 = vand.u32 2147483648, %v158_v42  ;;  %vm168_vm4 = vcmp.eq.f32.partialorder %v158_v42, 0.0 }
 0x1a2   :  { %v919_v14 = vpop.eup %918 }
 0x1a3   :  { %v290_v15 = vmul.f32 %v919_v14, %v915_v59  ;;  %v121_v21 = vpop.xlane.xlu2 %120  ;;  %v1098_v41 = vpop.eup %920 }
 0x1a4   :  { %v670_v44 = vsel %vm42_vm0, %v1098_v41, 0.0 }
 0x1a5   :  { %v291_v19 = vpack.c.bf16 %v290_v15, %v290_v15 }
 0x1a6   :  { %v923_v46 = vpop.eup %922 }
 0x1a7   :  { %846 = vmatmul.msk.bf16.vlgmr.msra.gmra.mxu3 %vm42_vm0, %v291_v19  ;;  %v160_v48 = vmul.f32 %v923_v46, %v158_v42 }
 0x1a9   :  { %v161_v50 = vmul.f32 %v923_v46, %v160_v48 }
 0x1ab   :  { %v162_v52 = vmul.f32 0.5, %v161_v50 }
 0x1ad   :  { %v163_v54 = vsub.f32 1.5, %v162_v52 }
 0x1af   :  { %v164_v56 = vmul.f32 %v923_v46, %v163_v54 }
 0x1b0   :  { %871 = vmatmul.msk.bf16.vlgmr.msrb.gmra.mxu1 %vm42_vm0, %v1027_v18 }
 0x1b1   :  { %v165_v58 = vmul.f32 %v164_v56, %v158_v42 }
 0x1b3   :  { %v167_v61 = vsel %vm166_vm2, %v158_v42, %v165_v58 }
 0x1b4   :  { %v1102_v0 = vsel %vm168_vm4, %v169_v60, %v167_v61 }
 0x21d   :  { %v99_v23 = vpop.f32.mrf.mxu1 }
 0x21e   :  { %v122_v24 = vmul.f32 %v121_v21, %v99_v23 }
 0x220   :  { %v131_v26 = vmul.f32 %v122_v24, %v122_v24  ;;  %v123_v5 = vmul.f32 %v122_v24, %v1018_v16 }
 0x222   :  { %v132_v18 = vsel %vm42_vm0, %v131_v26, 0.0  ;;  %v124_v8 = vsel %vm42_vm0, %v123_v5, 0.0 }
 0x223   :  { %v133_v29 = vrot.slane %v132_v18, 4  ;;  %v125_v9 = vrot.slane %v124_v8, 4 }
 0x225   :  { %v134_v30 = vadd.f32 %v133_v29, %v132_v18  ;;  %v101_v31 = vpop.f32.mrf.mxu1  ;;  %v126_v11 = vadd.f32 %v125_v9, %v124_v8  ;;  %v312_v18 = vsel %vm42_vm0, %v1023_v17, 0.0 }
 0x226   :  { %v313_v28 = vrot.slane %v312_v18, 4 }
 0x227   :  { %v135_v34 = vrot.slane %v134_v30, 2  ;;  %v127_v13 = vrot.slane %v126_v11, 2 }
 0x229   :  { %v136_v36 = vadd.f32 %v135_v34, %v134_v30  ;;  %v128_v15 = vadd.f32 %v127_v13, %v126_v11  ;;  %v314_v30 = vadd.f32 %v313_v28, %v312_v18 }
 0x22a   :  { %v1109_v29 = vpop.f32.mrf.mxu3 }
 0x22b   :  { %v137_v40 = vrot.slane %v136_v36, 1  ;;  %v129_v22 = vrot.slane %v128_v15, 1  ;;  %v315_v32 = vrot.slane %v314_v30, 2 }
 0x22d   :  { %v1094_v37 = vpop.f32.mrf.mxu1  ;;  %v138_v43 = vadd.f32 %v137_v40, %v136_v36  ;;  %v130_v26 = vadd.f32 %v129_v22, %v128_v15  ;;  %v316_v33 = vadd.f32 %v315_v32, %v314_v30 }
 0x22e   :  { %v472_v38 = vsel %vm42_vm0, %v1094_v37, -inf }
 0x22f   :  { %473 = vmax.xlane.f32.xlu1 %v472_v38  ;;  %924 = vrsqrt.f32 %v138_v43  ;;  %vm146_vm3 = vcmp.eq.f32.partialorder %v138_v43, inf  ;;  %v149_v63 = vand.u32 2147483648, %v138_v43  ;;  %vm148_vm5 = vcmp.eq.f32.partialorder %v138_v43, 0.0 }
 0x230   :  { %v317_v35 = vrot.slane %v316_v33, 1 }
 0x232   :  { %v310_v36 = vpop.f32.mrf.mxu3  ;;  %v318_v38 = vadd.f32 %v317_v35, %v316_v33 }
 0x234   :  { %v319_v39 = vmul.f32 %v318_v38, %v1076_v3 }
 0x235   :  { %v470_v45 = vpop.f32.mrf.mxu1  ;;  %v925_v47 = vpop.eup %924 }
 0x236   :  { %v140_v49 = vmul.f32 %v925_v47, %v138_v43  ;;  %v320_v40 = vmul.f32 %v1023_v17, %v319_v39 }
 0x237   :  { %671 = vadd.xlane.f32.xlu1 %v670_v44 }
 0x238   :  { %v141_v51 = vmul.f32 %v925_v47, %v140_v49  ;;  %v321_v42 = vsel %vm42_vm0, %v320_v40, 0.0 }
 0x239   :  { %706 = vadd.xlane.f32.xlu2 %v321_v42 }
 0x23a   :  { %v142_v53 = vmul.f32 0.5, %v141_v51 }
 0x23c   :  { %v143_v55 = vsub.f32 1.5, %v142_v53 }
 0x23e   :  { %v144_v57 = vmul.f32 %v925_v47, %v143_v55 }
 0x23f   :  { %514 = vadd.xlane.f32.xlu1 %v1082_v7 }
 0x240   :  { %v145_v59 = vmul.f32 %v144_v57, %v138_v43 }
 0x242   :  { %v147_v62 = vsel %vm146_vm3, %v138_v43, %v145_v59 }
 0x243   :  { %v150_v1 = vsel %vm148_vm5, %v149_v63, %v147_v62 }
 0x244   :  { %v171_v2 = vmul.f32 %v1102_v0, %v150_v1 }
 0x246   :  { %v172_v4 = vmax.f32 %v171_v2, 1e-06 }
 0x248   :  { %926 = vrcp.f32 %v172_v4  ;;  %v184_v20 = vand.u32 2147483648, %v172_v4  ;;  %vm178_vm7 = vweird.f32 %v172_v4  ;;  %v182_v21 = vand.u32 2147483647, %v172_v4 }
 0x24a   :  { %v185_v25 = vor.u32 1.1754944e-38, %v184_v20  ;;  %vm183_vm9 = vcmp.eq.f32.partialorder %v182_v21, 8.507059e+37 }
 0x24e   :  { %v927_v6 = vpop.eup %926 }
 0x24f   :  { %v174_v10 = vmul.f32 %v927_v6, %v172_v4  ;;  %vm179_vm6 = vweird.f32 %v927_v6  ;;  %v967_v4 = vmov 64.0  }
 0x250   :  { %vm180_vm8 = vmor %vm178_vm7, %vm179_vm6 }
 0x251   :  { %v175_v12 = vsub.f32 1.0, %v174_v10 }
 0x253   :  { %v176_v14 = vmul.f32 %v927_v6, %v175_v12 }
 0x255   :  { %v177_v19 = vadd.f32 %v927_v6, %v176_v14 }
 0x257   :  { %v181_v23 = vsel %vm180_vm8, %v927_v6, %v177_v19 }
 0x258   :  { %v186_v24 = vsel %vm183_vm9, %v185_v25, %v181_v23 }
 0x259   :  { %v187_v27 = vmul.f32 %v186_v24, %v130_v26 }
 0x25b   :  { %v188_v31 = vsub.f32 0.0, %v187_v27 }
 0x25d   :  { %v189_v34 = vmul.f32 1.442695, %v188_v31 }
 0x25f   :  { %928 = vpow2.f32 %v189_v34 }
 0x265   :  { %v929_v43 = vpop.eup %928 }
 0x266   :  { %v191_v44 = vadd.f32 1.0, %v929_v43 }
 0x268   :  { %930 = vrcp.f32 %v191_v44  ;;  %v203_v58 = vand.u32 2147483648, %v191_v44  ;;  %vm197_vm11 = vweird.f32 %v191_v44 }
 0x26a   :  { %v204_v60 = vor.u32 1.1754944e-38, %v203_v58 }
 0x26e   :  { %v931_v47 = vpop.eup %930 }
 0x26f   :  { %v193_v49 = vmul.f32 %v931_v47, %v191_v44  ;;  %vm198_vm10 = vweird.f32 %v931_v47 }
 0x270   :  { %vm199_vm12 = vmor %vm197_vm11, %vm198_vm10 }
 0x271   :  { %v194_v51 = vsub.f32 1.0, %v193_v49 }
 0x273   :  { %v195_v53 = vmul.f32 %v931_v47, %v194_v51 }
 0x275   :  { %v196_v57 = vadd.f32 %v931_v47, %v195_v53 }
 0x277   :  { %v200_v59 = vsel %vm199_vm12, %v931_v47, %v196_v57 }
 0x2a2   :  { %v474_v45 = vpop.xlane.xlu1 %473 }
 0x2a3   :  { %v475_v46 = vsub.f32 %v1094_v37, %v474_v45  ;;  %v201_v37 = vand.u32 2147483647, %v191_v44 }
 0x2a5   :  { %v476_v48 = vmul.f32 1.442695, %v475_v46  ;;  %vm202_vm13 = vcmp.eq.f32.partialorder %v201_v37, 8.507059e+37 }
 0x2a6   :  { %v205_v61 = vsel %vm202_vm13, %v204_v60, %v200_v59 }
 0x2a7   :  { %932 = vpow2.f32 %v476_v48  ;;  %v207_v62 = vsel %vm42_vm0, %v205_v61, 0.0 }
 0x2aa   :  { %v672_v50 = vpop.xlane.xlu1 %671 }
 0x2ab   :  { %934 = vrcp.f32 %v672_v50 }
 0x2ac   :  { %936 = vrcp.f32 %v967_v4  ;;  %v707_v34 = vpop.xlane.xlu2 %706 }
 0x2ad   :  { %v933_v52 = vpop.eup %932 }
 0x2ae   :  { %v478_v3 = vsel %vm42_vm0, %v933_v52, 0.0 }
 0x2af   :  { %479 = vadd.xlane.f32.xlu0 %v478_v3 }
 0x2b1   :  { %v935_v54 = vpop.eup %934 }
 0x2b2   :  { %v674_v55 = vmul.f32 %v935_v54, %v1098_v41  ;;  %v353_v41 = vmul.f32 %v1023_v17, %v1023_v17  ;;  %v937_v6 = vpop.eup %936 }
 0x2b3   :  { %v211_v9 = vmul.f32 64.0, %v937_v6  ;;  %vm215_vm14 = vweird.f32 %v937_v6 }
 0x2b4   :  { %v675_v56 = vpack.c.bf16 %v674_v55, %v674_v55  ;;  %v354_v63 = vsel %vm42_vm0, %v353_v41, 0.0 }
 0x2b5   :  { %v355_v1 = vrot.slane %v354_v63, 4  ;;  %v212_v12 = vsub.f32 1.0, %v211_v9 }
 0x2b6   :  { %891 = vmatmul.msk.bf16.vlgmr.msrb.gmra.mxu2 %vm42_vm0, %v675_v56 }
 0x2b7   :  { %322 = vadd.xlane.f32.xlu0 %v321_v42  ;;  %v356_v2 = vadd.f32 %v355_v1, %v354_v63  ;;  %v213_v14 = vmul.f32 %v937_v6, %v212_v12 }
 0x2b9   :  { %v357_v5 = vrot.slane %v356_v2, 2  ;;  %v214_v23 = vadd.f32 %v937_v6, %v213_v14 }
 0x2bb   :  { %v358_v8 = vadd.f32 %v357_v5, %v356_v2  ;;  %v1126_v18 = vsel %vm215_vm14, %v937_v6, %v214_v23 }
 0x2bd   :  { %v359_v10 = vrot.slane %v358_v8, 1 }
 0x2bf   :  { %208 = vadd.xlane.f32.xlu0 %v207_v62  ;;  %v360_v13 = vadd.f32 %v359_v10, %v358_v8 }
 0x2c1   :  { %vm368_vm1 = vcmp.eq.f32.partialorder %v360_v13, inf  ;;  %v371_v58 = vand.u32 2147483648, %v360_v13  ;;  %vm370_vm2 = vcmp.eq.f32.partialorder %v360_v13, 0.0 }
 0x322   :  { %v480_v11 = vpop.xlane.xlu0 %479 }
 0x323   :  { %938 = vrcp.f32 %v480_v11 }
 0x324   :  { %940 = vrsqrt.f32 %v360_v13 }
 0x329   :  { %v939_v15 = vpop.eup %938 }
 0x32a   :  { %v482_v19 = vmul.f32 %v939_v15, %v933_v52  ;;  %v323_v20 = vpop.xlane.xlu0 %322  ;;  %v941_v24 = vpop.eup %940 }
 0x32b   :  { %v324_v21 = vmul.f32 %v323_v20, %v1109_v29  ;;  %v362_v30 = vmul.f32 %v941_v24, %v360_v13 }
 0x32c   :  { %v483_v22 = vpack.c.bf16 %v482_v19, %v482_v19 }
 0x32d   :  { %v333_v25 = vmul.f32 %v324_v21, %v324_v21  ;;  %v363_v33 = vmul.f32 %v941_v24, %v362_v30  ;;  %v325_v54 = vmul.f32 %v1023_v17, %v324_v21 }
 0x32e   :  { %872 = vmatmul.msk.bf16.vlgmr.msrb.gmra.mxu3 %vm42_vm0, %v483_v22 }
 0x32f   :  { %v334_v7 = vsel %vm42_vm0, %v333_v25, 0.0  ;;  %v364_v40 = vmul.f32 0.5, %v363_v33  ;;  %v326_v60 = vsel %vm42_vm0, %v325_v54, 0.0 }
 0x330   :  { %v335_v26 = vrot.slane %v334_v7, 4  ;;  %v327_v63 = vrot.slane %v326_v60, 4 }
 0x331   :  { %v365_v43 = vsub.f32 1.5, %v364_v40 }
 0x332   :  { %v336_v27 = vadd.f32 %v335_v26, %v334_v7  ;;  %v209_v28 = vpop.xlane.xlu0 %208  ;;  %v328_v8 = vadd.f32 %v327_v63, %v326_v60 }
 0x333   :  { %v217_v31 = vmul.f32 %v1126_v18, %v209_v28  ;;  %v366_v49 = vmul.f32 %v941_v24, %v365_v43 }
 0x334   :  { %v337_v32 = vrot.slane %v336_v27, 2  ;;  %v329_v11 = vrot.slane %v328_v8, 2 }
 0x335   :  { %219 = vst.msk [vmem:[%s1162_s2] sm:$0x1] %vm218_vm15, %v217_v31  ;;  %v367_v53 = vmul.f32 %v366_v49, %v360_v13 }
 0x336   :  { %v338_v29 = vadd.f32 %v337_v32, %v336_v27  ;;  %v330_v14 = vadd.f32 %v329_v11, %v328_v8 }
 0x337   :  { %v369_v59 = vsel %vm368_vm1, %v360_v13, %v367_v53 }
 0x338   :  { %v339_v35 = vrot.slane %v338_v29, 1  ;;  %v372_v41 = vsel %vm370_vm2, %v371_v58, %v369_v59  ;;  %v331_v23 = vrot.slane %v330_v14, 1 }
 0x339   :  { %v692_v36 = vpop.f32.mrf.mxu2 }
 0x33a   :  { %v340_v38 = vadd.f32 %v339_v35, %v338_v29  ;;  %v708_v39 = vmul.f32 %v707_v34, %v692_v36  ;;  %v332_v35 = vadd.f32 %v331_v23, %v330_v14 }
 0x33c   :  { %942 = vrsqrt.f32 %v340_v38  ;;  %v717_v42 = vmul.f32 %v708_v39, %v708_v39  ;;  %vm348_vm3 = vcmp.eq.f32.partialorder %v340_v38, inf  ;;  %v351_v1 = vand.u32 2147483648, %v340_v38 }
 0x33d   :  { %vm350_vm4 = vcmp.eq.f32.partialorder %v340_v38, 0.0  ;;  %v709_v15 = vmul.f32 %v1023_v17, %v708_v39 }
 0x33e   :  { %v718_v44 = vsel %vm42_vm0, %v717_v42, 0.0 }
 0x33f   :  { %v719_v45 = vrot.slane %v718_v44, 4  ;;  %v710_v7 = vsel %vm42_vm0, %v709_v15, 0.0 }
 0x340   :  { %v711_v32 = vrot.slane %v710_v7, 4 }
 0x341   :  { %v694_v46 = vpop.f32.mrf.mxu2  ;;  %v720_v48 = vadd.f32 %v719_v45, %v718_v44 }
 0x342   :  { %v943_v47 = vpop.eup %942  ;;  %v712_v40 = vadd.f32 %v711_v32, %v710_v7 }
 0x343   :  { %v342_v50 = vmul.f32 %v943_v47, %v340_v38  ;;  %v721_v51 = vrot.slane %v720_v48, 2 }
 0x344   :  { %v713_v44 = vrot.slane %v712_v40, 2 }
 0x345   :  { %v343_v52 = vmul.f32 %v943_v47, %v342_v50  ;;  %v722_v3 = vadd.f32 %v721_v51, %v720_v48 }
 0x347   :  { %v344_v55 = vmul.f32 0.5, %v343_v52  ;;  %v723_v56 = vrot.slane %v722_v3, 1 }
 0x349   :  { %v345_v57 = vsub.f32 1.5, %v344_v55  ;;  %v724_v37 = vadd.f32 %v723_v56, %v722_v3 }
 0x34b   :  { %v346_v61 = vmul.f32 %v943_v47, %v345_v57  ;;  %944 = vrsqrt.f32 %v724_v37  ;;  %vm732_vm5 = vcmp.eq.f32.partialorder %v724_v37, inf  ;;  %vm734_vm6 = vcmp.eq.f32.partialorder %v724_v37, 0.0 }
 0x34c   :  { %v735_v27 = vand.u32 2147483648, %v724_v37  ;;  %v714_v47 = vadd.f32 %v713_v44, %v712_v40 }
 0x34d   :  { %v347_v62 = vmul.f32 %v346_v61, %v340_v38 }
 0x34e   :  { %v715_v51 = vrot.slane %v714_v47, 1 }
 0x34f   :  { %v349_v2 = vsel %vm348_vm3, %v340_v38, %v347_v62 }
 0x350   :  { %v352_v4 = vsel %vm350_vm4, %v351_v1, %v349_v2  ;;  %v716_v57 = vadd.f32 %v715_v51, %v714_v47 }
 0x351   :  { %v373_v5 = vmul.f32 %v372_v41, %v352_v4  ;;  %v945_v6 = vpop.eup %944 }
 0x352   :  { %v726_v10 = vmul.f32 %v945_v6, %v724_v37 }
 0x353   :  { %v374_v9 = vmax.f32 %v373_v5, 1e-06 }
 0x354   :  { %v727_v12 = vmul.f32 %v945_v6, %v726_v10 }
 0x355   :  { %946 = vrcp.f32 %v374_v9  ;;  %v386_v26 = vand.u32 2147483648, %v374_v9  ;;  %v384_v30 = vand.u32 2147483647, %v374_v9  ;;  %vm380_vm8 = vweird.f32 %v374_v9 }
 0x356   :  { %v728_v13 = vmul.f32 0.5, %v727_v12 }
 0x357   :  { %v387_v34 = vor.u32 1.1754944e-38, %v386_v26  ;;  %vm385_vm10 = vcmp.eq.f32.partialorder %v384_v30, 8.507059e+37  ;;  %v515_v26 = vpop.xlane.xlu1 %514 }
 0x358   :  { %v729_v19 = vsub.f32 1.5, %v728_v13 }
 0x35a   :  { %v730_v22 = vmul.f32 %v945_v6, %v729_v19 }
 0x35b   :  { %v947_v20 = vpop.eup %946 }
 0x35c   :  { %v376_v21 = vmul.f32 %v947_v20, %v374_v9  ;;  %v731_v24 = vmul.f32 %v730_v22, %v724_v37  ;;  %vm381_vm7 = vweird.f32 %v947_v20 }
 0x35d   :  { %vm382_vm9 = vmor %vm380_vm8, %vm381_vm7 }
 0x35e   :  { %v377_v25 = vsub.f32 1.0, %v376_v21  ;;  %v733_v31 = vsel %vm732_vm5, %v724_v37, %v731_v24 }
 0x35f   :  { %v736_v29 = vsel %vm734_vm6, %v735_v27, %v733_v31 }
 0x360   :  { %v378_v28 = vmul.f32 %v947_v20, %v377_v25  ;;  %v757_v33 = vmul.f32 %v736_v29, %v372_v41 }
 0x362   :  { %v379_v17 = vadd.f32 %v947_v20, %v378_v28  ;;  %v758_v38 = vmax.f32 %v757_v33, 1e-06 }
 0x364   :  { %v383_v36 = vsel %vm382_vm9, %v947_v20, %v379_v17  ;;  %948 = vrcp.f32 %v758_v38  ;;  %v770_v50 = vand.u32 2147483648, %v758_v38  ;;  %v768_v3 = vand.u32 2147483647, %v758_v38 }
 0x365   :  { %v388_v39 = vsel %vm385_vm10, %v387_v34, %v383_v36  ;;  %vm764_vm12 = vweird.f32 %v758_v38 }
 0x366   :  { %v389_v42 = vmul.f32 %v388_v39, %v332_v35  ;;  %v771_v56 = vor.u32 1.1754944e-38, %v770_v50  ;;  %vm769_vm14 = vcmp.eq.f32.partialorder %v768_v3, 8.507059e+37 }
 0x368   :  { %v390_v43 = vsub.f32 0.0, %v389_v42 }
 0x36a   :  { %v391_v45 = vmul.f32 1.442695, %v390_v43  ;;  %v949_v46 = vpop.eup %948 }
 0x36b   :  { %v760_v48 = vmul.f32 %v949_v46, %v758_v38  ;;  %vm765_vm11 = vweird.f32 %v949_v46 }
 0x36c   :  { %950 = vpow2.f32 %v391_v45  ;;  %vm766_vm13 = vmor %vm764_vm12, %vm765_vm11 }
 0x36d   :  { %v761_v49 = vsub.f32 1.0, %v760_v48 }
 0x36f   :  { %v762_v52 = vmul.f32 %v949_v46, %v761_v49 }
 0x371   :  { %v763_v55 = vadd.f32 %v949_v46, %v762_v52 }
 0x372   :  { %v951_v53 = vpop.eup %950 }
 0x373   :  { %v393_v54 = vadd.f32 1.0, %v951_v53  ;;  %v767_v58 = vsel %vm766_vm13, %v949_v46, %v763_v55 }
 0x374   :  { %v772_v37 = vsel %vm769_vm14, %v771_v56, %v767_v58 }
 0x375   :  { %952 = vrcp.f32 %v393_v54  ;;  %v773_v59 = vmul.f32 %v772_v37, %v716_v57  ;;  %v405_v1 = vand.u32 2147483648, %v393_v54  ;;  %v403_v4 = vand.u32 2147483647, %v393_v54 }
 0x376   :  { %vm399_vm2 = vweird.f32 %v393_v54 }
 0x377   :  { %v774_v60 = vsub.f32 0.0, %v773_v59  ;;  %v406_v8 = vor.u32 1.1754944e-38, %v405_v1  ;;  %vm404_vm4 = vcmp.eq.f32.partialorder %v403_v4, 8.507059e+37 }
 0x379   :  { %v775_v62 = vmul.f32 1.442695, %v774_v60 }
 0x37b   :  { %v953_v61 = vpop.eup %952  ;;  %954 = vpow2.f32 %v775_v62 }
 0x37c   :  { %v395_v41 = vmul.f32 %v953_v61, %v393_v54  ;;  %vm400_vm1 = vweird.f32 %v953_v61 }
 0x37d   :  { %vm401_vm3 = vmor %vm399_vm2, %vm400_vm1 }
 0x37e   :  { %v396_v63 = vsub.f32 1.0, %v395_v41 }
 0x380   :  { %v397_v2 = vmul.f32 %v953_v61, %v396_v63 }
 0x381   :  { %v955_v6 = vpop.eup %954 }
 0x382   :  { %v398_v5 = vadd.f32 %v953_v61, %v397_v2  ;;  %v777_v9 = vadd.f32 1.0, %v955_v6 }
 0x384   :  { %v402_v10 = vsel %vm401_vm3, %v953_v61, %v398_v5  ;;  %956 = vrcp.f32 %v777_v9  ;;  %v789_v19 = vand.u32 2147483648, %v777_v9  ;;  %v787_v21 = vand.u32 2147483647, %v777_v9 }
 0x385   :  { %v407_v11 = vsel %vm404_vm4, %v406_v8, %v402_v10  ;;  %vm783_vm6 = vweird.f32 %v777_v9 }
 0x386   :  { %v409_v12 = vsel %vm42_vm0, %v407_v11, 0.0  ;;  %v790_v23 = vor.u32 1.1754944e-38, %v789_v19  ;;  %vm788_vm8 = vcmp.eq.f32.partialorder %v787_v21, 8.507059e+37 }
 0x387   :  { %410 = vadd.xlane.f32.xlu1 %v409_v12 }
 0x38a   :  { %v957_v13 = vpop.eup %956 }
 0x38b   :  { %v779_v14 = vmul.f32 %v957_v13, %v777_v9  ;;  %vm784_vm5 = vweird.f32 %v957_v13 }
 0x38c   :  { %vm785_vm7 = vmor %vm783_vm6, %vm784_vm5 }
 0x38d   :  { %v780_v15 = vsub.f32 1.0, %v779_v14 }
 0x38f   :  { %v781_v20 = vmul.f32 %v957_v13, %v780_v15 }
 0x391   :  { %v782_v22 = vadd.f32 %v957_v13, %v781_v20 }
 0x393   :  { %v786_v25 = vsel %vm785_vm7, %v957_v13, %v782_v22 }
 0x394   :  { %v791_v7 = vsel %vm788_vm8, %v790_v23, %v786_v25 }
 0x395   :  { %v793_v24 = vsel %vm42_vm0, %v791_v7, 0.0 }
 0x396   :  { %794 = vadd.xlane.f32.xlu0 %v793_v24 }
 0x3b1   :  { %v500_v27 = vpop.f32.mrf.mxu3 }
 0x3b2   :  { %v516_v28 = vmul.f32 %v515_v26, %v500_v27 }
 0x3b4   :  { %v525_v30 = vmul.f32 %v516_v28, %v516_v28  ;;  %v517_v43 = vmul.f32 %v516_v28, %v1018_v16 }
 0x3b6   :  { %v526_v31 = vsel %vm42_vm0, %v525_v30, 0.0  ;;  %v518_v46 = vsel %vm42_vm0, %v517_v43, 0.0 }
 0x3b7   :  { %v527_v32 = vrot.slane %v526_v31, 4  ;;  %v519_v50 = vrot.slane %v518_v46, 4 }
 0x3b9   :  { %v528_v29 = vadd.f32 %v527_v32, %v526_v31  ;;  %v502_v17 = vpop.f32.mrf.mxu3  ;;  %v520_v53 = vadd.f32 %v519_v50, %v518_v46 }
 0x3bb   :  { %v529_v33 = vrot.slane %v528_v29, 2  ;;  %v521_v54 = vrot.slane %v520_v53, 2 }
 0x3bd   :  { %v530_v34 = vadd.f32 %v529_v33, %v528_v29  ;;  %v522_v56 = vadd.f32 %v521_v54, %v520_v53 }
 0x3bf   :  { %v531_v35 = vrot.slane %v530_v34, 1  ;;  %v523_v37 = vrot.slane %v522_v56, 1 }
 0x3c1   :  { %v532_v36 = vadd.f32 %v531_v35, %v530_v34  ;;  %v524_v41 = vadd.f32 %v523_v37, %v522_v56 }
 0x3c3   :  { %958 = vrsqrt.f32 %v532_v36  ;;  %vm540_vm9 = vcmp.eq.f32.partialorder %v532_v36, inf  ;;  %v543_v48 = vand.u32 2147483648, %v532_v36  ;;  %vm542_vm10 = vcmp.eq.f32.partialorder %v532_v36, 0.0 }
 0x3c9   :  { %v959_v38 = vpop.eup %958 }
 0x3ca   :  { %v534_v39 = vmul.f32 %v959_v38, %v532_v36 }
 0x3cc   :  { %v535_v40 = vmul.f32 %v959_v38, %v534_v39 }
 0x3ce   :  { %v536_v42 = vmul.f32 0.5, %v535_v40 }
 0x3d0   :  { %v537_v44 = vsub.f32 1.5, %v536_v42 }
 0x3d2   :  { %v538_v45 = vmul.f32 %v959_v38, %v537_v44 }
 0x3d4   :  { %v539_v47 = vmul.f32 %v538_v45, %v532_v36 }
 0x3d6   :  { %v541_v49 = vsel %vm540_vm9, %v532_v36, %v539_v47 }
 0x3d7   :  { %v544_v51 = vsel %vm542_vm10, %v543_v48, %v541_v49 }
 0x3d8   :  { %v565_v52 = vmul.f32 %v544_v51, %v1102_v0 }
 0x3da   :  { %v566_v3 = vmax.f32 %v565_v52, 1e-06 }
 0x3dc   :  { %960 = vrcp.f32 %v566_v3  ;;  %v578_v58 = vand.u32 2147483648, %v566_v3  ;;  %v576_v60 = vand.u32 2147483647, %v566_v3  ;;  %vm572_vm12 = vweird.f32 %v566_v3 }
 0x3de   :  { %v579_v62 = vor.u32 1.1754944e-38, %v578_v58  ;;  %vm577_vm14 = vcmp.eq.f32.partialorder %v576_v60, 8.507059e+37 }
 0x3e2   :  { %v961_v55 = vpop.eup %960 }
 0x3e3   :  { %v568_v16 = vmul.f32 %v961_v55, %v566_v3  ;;  %vm573_vm11 = vweird.f32 %v961_v55 }
 0x3e4   :  { %vm574_vm13 = vmor %vm572_vm12, %vm573_vm11 }
 0x3e5   :  { %v569_v57 = vsub.f32 1.0, %v568_v16 }
 0x3e7   :  { %v570_v59 = vmul.f32 %v961_v55, %v569_v57 }
 0x3e9   :  { %v571_v61 = vadd.f32 %v961_v55, %v570_v59 }
 0x3eb   :  { %v575_v63 = vsel %vm574_vm13, %v961_v55, %v571_v61 }
 0x3ec   :  { %v580_v0 = vsel %vm577_vm14, %v579_v62, %v575_v63 }
 0x3ed   :  { %v581_v1 = vmul.f32 %v580_v0, %v524_v41 }
 0x3ef   :  { %v582_v2 = vsub.f32 0.0, %v581_v1 }
 0x3f1   :  { %v583_v4 = vmul.f32 1.442695, %v582_v2 }
 0x3f3   :  { %962 = vpow2.f32 %v583_v4 }
 0x3f9   :  { %v963_v5 = vpop.eup %962 }
 0x3fa   :  { %v585_v6 = vadd.f32 1.0, %v963_v5  ;;  %v411_v8 = vpop.xlane.xlu1 %410 }
 0x3fb   :  { %v412_v9 = vmul.f32 %v411_v8, %v1126_v18 }
 0x3fc   :  { %964 = vrcp.f32 %v585_v6  ;;  %v597_v13 = vand.u32 2147483648, %v585_v6  ;;  %v595_v15 = vand.u32 2147483647, %v585_v6  ;;  %vm591_vm2 = vweird.f32 %v585_v6 }
 0x3fd   :  { %413 = vst.msk [vmem:[%s1162_s2 + $0x1] sm:$0x1] %vm218_vm15, %v412_v9 }
 0x3fe   :  { %v598_v20 = vor.u32 1.1754944e-38, %v597_v13  ;;  %vm596_vm4 = vcmp.eq.f32.partialorder %v595_v15, 8.507059e+37 }
 0x402   :  { %v965_v10 = vpop.eup %964 }
 0x403   :  { %v587_v11 = vmul.f32 %v965_v10, %v585_v6  ;;  %vm592_vm1 = vweird.f32 %v965_v10 }
 0x404   :  { %vm593_vm3 = vmor %vm591_vm2, %vm592_vm1 }
 0x405   :  { %v588_v12 = vsub.f32 1.0, %v587_v11 }
 0x407   :  { %v589_v14 = vmul.f32 %v965_v10, %v588_v12 }
 0x409   :  { %v590_v19 = vadd.f32 %v965_v10, %v589_v14  ;;  %v795_v21 = vpop.xlane.xlu0 %794 }
 0x40a   :  { %v796_v23 = vmul.f32 %v795_v21, %v1126_v18 }
 0x40b   :  { %v594_v22 = vsel %vm593_vm3, %v965_v10, %v590_v19 }
 0x40c   :  { %v599_v25 = vsel %vm596_vm4, %v598_v20, %v594_v22  ;;  %797 = vst.msk [vmem:[%s1162_s2 + $0x3] sm:$0x1] %vm218_vm15, %v796_v23 }
 0x40d   :  { %v601_v7 = vsel %vm42_vm0, %v599_v25, 0.0 }
 0x40e   :  { %602 = vadd.xlane.f32.xlu2 %v601_v7 }
 0x481   :  { %v603_v24 = vpop.xlane.xlu2 %602 }
 0x482   :  { %v604_v26 = vmul.f32 %v603_v24, %v1126_v18 }
 0x484   :  { %605 = vst.msk [vmem:[%s1162_s2 + $0x2] sm:$0x1] %vm218_vm15, %v604_v26 }

// kernel: d_forward.2
= control target key start
LH: loop header
LB: loop body
LE: loop exit
PB: predicated region body
PF: predicated region fallthrough
CT: control target
= control target key end

     0   :  { %vm549_vm0 = vcmask 523264   ;;  %vm1776_vm2 = vcmask 64512   ;;  %s15545_s0 = inlined_call_operand.vmem [shape: bf16[128,192], index: 0, kind: input, shape index: {}]   ;;  %s15546_s1 = inlined_call_operand.vmem [shape: bf16[4,64,128], index: 1, kind: input, shape index: {}]   ;;  %s15547_s5 = inlined_call_operand.vmem [shape: bf16[4,192,256], index: 5, kind: input, shape index: {}]   ;;  %s15548_s17 = inlined_call_operand.vmem [shape: f32[8,256], index: 17, kind: input, shape index: {}]   ;;  %s15549_s10 = inlined_call_operand.vmem [shape: f32[1,8], index: 10, kind: input, shape index: {}]   ;;  %s15550_s9 = inlined_call_operand.vmem [shape: f32[1,8], index: 9, kind: input, shape index: {}]   ;;  %s15551_s6 = inlined_call_operand.vmem [shape: bf16[4,256,256], index: 6, kind: input, shape index: {}]   ;;  %s15552_s2 = inlined_call_operand.vmem [shape: bf16[4,32,64], index: 2, kind: input, shape index: {}]   ;;  %s15553_s18 = inlined_call_operand.vmem [shape: f32[16,256], index: 18, kind: input, shape index: {}]   ;;  %s15554_s12 = inlined_call_operand.vmem [shape: f32[1,16], index: 12, kind: input, shape index: {}]   ;;  %s15555_s11 = inlined_call_operand.vmem [shape: f32[1,16], index: 11, kind: input, shape index: {}]   ;;  %s15556_s7 = inlined_call_operand.vmem [shape: bf16[4,256,256], index: 7, kind: input, shape index: {}]   ;;  %s15557_s3 = inlined_call_operand.vmem [shape: bf16[4,16,32], index: 3, kind: input, shape index: {}]   ;;  %s15558_s19 = inlined_call_operand.vmem [shape: f32[32,256], index: 19, kind: input, shape index: {}]   ;;  %s15559_s23 = inlined_call_operand.vmem [shape: bf16[256,512], index: 23, kind: input, shape index: {}]   ;;  %s15560_s13 = inlined_call_operand.vmem [shape: f32[1,32], index: 13, kind: input, shape index: {}]   ;;  %s15561_s14 = inlined_call_operand.vmem [shape: f32[1,32], index: 14, kind: input, shape index: {}]   ;;  %s15562_s8 = inlined_call_operand.vmem [shape: bf16[4,256,256], index: 8, kind: input, shape index: {}]   ;;  %s15563_s4 = inlined_call_operand.vmem [shape: bf16[4,8,16], index: 4, kind: input, shape index: {}]   ;;  %s15564_s24 = inlined_call_operand.vmem [shape: f32[1,512], index: 24, kind: input, shape index: {}]   ;;  %s15565_s26 = inlined_call_operand.vmem [shape: bf16[16,512], index: 26, kind: output, shape index: {1}]   ;;  %s15566_s20 = inlined_call_operand.vmem [shape: f32[64,256], index: 20, kind: input, shape index: {}]   ;;  %s15567_s15 = inlined_call_operand.vmem [shape: f32[1,64], index: 15, kind: input, shape index: {}]   ;;  %s15568_s16 = inlined_call_operand.vmem [shape: f32[1,64], index: 16, kind: input, shape index: {}]   ;;  %s15569_s22 = inlined_call_operand.<no memory space> [shape: f32[1,1], index: 22, kind: input, shape index: {}]   ;;  %s15570_s21 = inlined_call_operand.vmem [shape: f32[8,256], index: 21, kind: input, shape index: {}]   ;;  %s15571_s25 = inlined_call_operand.vmem [shape: f32[2,1], index: 25, kind: output, shape index: {0}]  }
   0x1   :  { %15581 = sst [smem:[#allocation29_spill]] %s15545_s0 }
   0x2   :  { %15582 = sst [smem:[#allocation30_spill]] %s15546_s1 }
   0x3   :  { %15583 = sst [smem:[#allocation31_spill]] %s15547_s5 }
   0x4   :  { %15584 = sst [smem:[#allocation32_spill]] %s15548_s17 }
   0x5   :  { %15585 = sst [smem:[#allocation33_spill]] %s15549_s10 }
   0x6   :  { %15586 = sst [smem:[#allocation34_spill]] %s15550_s9 }
   0x7   :  { %15587 = sst [smem:[#allocation35_spill]] %s15551_s6 }
   0x8   :  { %15588 = sst [smem:[#allocation36_spill]] %s15552_s2 }
   0x9   :  { %15589 = sst [smem:[#allocation37_spill]] %s15553_s18 }
   0xa   :  { %15590 = sst [smem:[#allocation38_spill]] %s15554_s12 }
   0xb   :  { %15591 = sst [smem:[#allocation39_spill]] %s15555_s11 }
   0xc   :  { %s15592_s17 = sld [smem:[#allocation29_spill]] }
   0xd   :  { %s15593_s9 = sld [smem:[#allocation30_spill]] }
   0xe   :  { %s15594_s28 = sld [smem:[#allocation31_spill]] }
   0xf   :  { %s15617_s27 = sld [smem:[#allocation32_spill]] }
  0x10   :  { %s15648_s12 = sld [smem:[#allocation33_spill]] }
  0x11   :  { %s15650_s6 = sld [smem:[#allocation35_spill]] }
  0x12   :  { %v7299_v0 = vld [vmem:[%s15592_s17 + $0x70] sm:$0xf]  ;;  %v10085_v1 = vld [vmem:[%s15592_s17 + $0x74] sm:$0xf0]  ;;  %v10084_v2 = vld [vmem:[%s15592_s17 + $0x74] sm:$0xf] }
  0x13   :  { %v10826_v3 = vor.u32 %v10085_v1, %v7299_v0  ;;  %v7301_v4 = vld [vmem:[%s15592_s17 + $0x78] sm:$0xf0]  ;;  %v7291_v5 = vld [vmem:[%s15592_s17 + $0x60] sm:$0xf]  ;;  %v10083_v6 = vld [vmem:[%s15592_s17 + $0x64] sm:$0xf0] }
  0x14   :  { %v10837_v7 = vor.u32 %v10084_v2, %v7301_v4  ;;  %v10082_v8 = vld [vmem:[%s15592_s17 + $0x64] sm:$0xf]  ;;  %v7293_v9 = vld [vmem:[%s15592_s17 + $0x68] sm:$0xf0]  ;;  %v10846_v10 = vor.u32 %v10083_v6, %v7291_v5  ;;  %v7283_v12 = vld [vmem:[%s15592_s17 + $0x50] sm:$0xf] }
  0x15   :  { %338 = vmatpush.bf16.msra.mxu2 %v10826_v3  ;;  %215 = vmatpush.bf16.msra.mxu0 %v10826_v3  ;;  %v10850_v11 = vor.u32 %v10082_v8, %v7293_v9  ;;  %v10081_v13 = vld [vmem:[%s15592_s17 + $0x54] sm:$0xf0]  ;;  %v10080_v14 = vld [vmem:[%s15592_s17 + $0x54] sm:$0xf]  ;;  %v7285_v15 = vld [vmem:[%s15592_s17 + $0x58] sm:$0xf0] }
  0x16   :  { %367 = vmatpush.bf16.msra.mxu3 %v10837_v7  ;;  %244 = vmatpush.bf16.msra.mxu1 %v10837_v7  ;;  %v10866_v16 = vor.u32 %v10081_v13, %v7283_v12  ;;  %v10870_v17 = vor.u32 %v10080_v14, %v7285_v15  ;;  %v7275_v18 = vld [vmem:[%s15592_s17 + $0x40] sm:$0xf]  ;;  %v10079_v19 = vld [vmem:[%s15592_s17 + $0x44] sm:$0xf0]  ;;  %v10078_v20 = vld [vmem:[%s15592_s17 + $0x44] sm:$0xf] }
  0x17   :  { %v7277_v21 = vld [vmem:[%s15592_s17 + $0x48] sm:$0xf0]  ;;  %v10886_v22 = vor.u32 %v10079_v19, %v7275_v18  ;;  %v7267_v24 = vld [vmem:[%s15592_s17 + $0x30] sm:$0xf]  ;;  %v10077_v25 = vld [vmem:[%s15592_s17 + $0x34] sm:$0xf0] }
  0x18   :  { %v10890_v23 = vor.u32 %v10078_v20, %v7277_v21  ;;  %v10076_v26 = vld [vmem:[%s15592_s17 + $0x34] sm:$0xf]  ;;  %v7269_v27 = vld [vmem:[%s15592_s17 + $0x38] sm:$0xf0]  ;;  %v10906_v28 = vor.u32 %v10077_v25, %v7267_v24  ;;  %v7259_v30 = vld [vmem:[%s15592_s17 + $0x20] sm:$0xf] }
  0x19   :  { %339 = vmatpush.bf16.msra.mxu2 %v10846_v10  ;;  %216 = vmatpush.bf16.msra.mxu0 %v10846_v10  ;;  %v10910_v29 = vor.u32 %v10076_v26, %v7269_v27  ;;  %v10075_v31 = vld [vmem:[%s15592_s17 + $0x24] sm:$0xf0]  ;;  %v10074_v32 = vld [vmem:[%s15592_s17 + $0x24] sm:$0xf]  ;;  %v7261_v33 = vld [vmem:[%s15592_s17 + $0x28] sm:$0xf0] }
  0x1a   :  { %368 = vmatpush.bf16.msra.mxu3 %v10850_v11  ;;  %245 = vmatpush.bf16.msra.mxu1 %v10850_v11  ;;  %v10926_v34 = vor.u32 %v10075_v31, %v7259_v30  ;;  %v10930_v35 = vor.u32 %v10074_v32, %v7261_v33  ;;  %v7251_v36 = vld [vmem:[%s15592_s17 + $0x10] sm:$0xf]  ;;  %v10073_v37 = vld [vmem:[%s15592_s17 + $0x14] sm:$0xf0]  ;;  %v10072_v38 = vld [vmem:[%s15592_s17 + $0x14] sm:$0xf] }
  0x1b   :  { %v7253_v39 = vld [vmem:[%s15592_s17 + $0x18] sm:$0xf0]  ;;  %v10946_v40 = vor.u32 %v10073_v37, %v7251_v36  ;;  %v7243_v42 = vld [vmem:[%s15592_s17] sm:$0xf]  ;;  %v10071_v43 = vld [vmem:[%s15592_s17 + $0x4] sm:$0xf0] }
  0x1c   :  { %v10950_v41 = vor.u32 %v10072_v38, %v7253_v39  ;;  %v10070_v44 = vld [vmem:[%s15592_s17 + $0x4] sm:$0xf]  ;;  %v7245_v45 = vld [vmem:[%s15592_s17 + $0x8] sm:$0xf0]  ;;  %v10966_v46 = vor.u32 %v10071_v43, %v7243_v42  ;;  %v7411_v51 = vld [vmem:[%s15594_s28 + $0x130] sm:$0xf] }
  0x1d   :  { %340 = vmatpush.bf16.msra.mxu2 %v10866_v16  ;;  %217 = vmatpush.bf16.msra.mxu0 %v10866_v16  ;;  %v10970_v47 = vor.u32 %v10070_v44, %v7245_v45  ;;  %v10114_v48 = vld [vmem:[%s15593_s9 + $0x20] sm:$0xff]  ;;  %v10115_v49 = vld [vmem:[%s15593_s9 + $0x28] sm:$0xff]  ;;  %v10133_v52 = vld [vmem:[%s15594_s28 + $0x134] sm:$0xf0]  ;;  %s15649_s17 = sld [smem:[#allocation34_spill]] }
  0x1e   :  { %369 = vmatpush.bf16.msra.mxu3 %v10870_v17  ;;  %246 = vmatpush.bf16.msra.mxu1 %v10870_v17  ;;  %v10086_v50 = vld [vmem:[%s15593_s9] sm:$0xff]  ;;  %v7443_v53 = vld [vmem:[%s15594_s28 + $0x170] sm:$0xf]  ;;  %v10141_v54 = vld [vmem:[%s15594_s28 + $0x174] sm:$0xf0]  ;;  %v7412_v55 = vor.u32 %v10133_v52, %v7411_v51  ;;  %s15651_s29 = sld [smem:[#allocation36_spill]] }
  0x1f   :  { %v7444_v56 = vor.u32 %v10141_v54, %v7443_v53  ;;  %v7403_v57 = vld [vmem:[%s15594_s28 + $0x120] sm:$0xf]  ;;  %v10131_v58 = vld [vmem:[%s15594_s28 + $0x124] sm:$0xf0]  ;;  %v7395_v62 = vld [vmem:[%s15594_s28 + $0x110] sm:$0xf] }
  0x20   :  { %v7435_v59 = vld [vmem:[%s15594_s28 + $0x160] sm:$0xf]  ;;  %v7404_v60 = vor.u32 %v10131_v58, %v7403_v57  ;;  %v10139_v61 = vld [vmem:[%s15594_s28 + $0x164] sm:$0xf0]  ;;  %v10129_v63 = vld [vmem:[%s15594_s28 + $0x114] sm:$0xf0] }
  0x21   :  { %341 = vmatpush.bf16.msra.mxu2 %v10886_v22  ;;  %218 = vmatpush.bf16.msra.mxu0 %v10886_v22  ;;  %v7436_v0 = vor.u32 %v10139_v61, %v7435_v59  ;;  %v7396_v1 = vor.u32 %v10129_v63, %v7395_v62  ;;  %v7387_v2 = vld [vmem:[%s15594_s28 + $0x100] sm:$0xf]  ;;  %v10127_v4 = vld [vmem:[%s15594_s28 + $0x104] sm:$0xf0]  ;;  %v10116_v5 = vld [vmem:[%s15593_s9 + $0x30] sm:$0xff]  ;;  %s15653_s10 = sld [smem:[#allocation38_spill]] }
  0x22   :  { %370 = vmatpush.bf16.msra.mxu3 %v10890_v23  ;;  %247 = vmatpush.bf16.msra.mxu1 %v10890_v23  ;;  %v7388_v6 = vor.u32 %v10127_v4, %v7387_v2  ;;  %v10087_v8 = vld [vmem:[%s15593_s9 + $0x8] sm:$0xff]  ;;  %v7379_v9 = vld [vmem:[%s15594_s28 + $0xf0] sm:$0xf]  ;;  %v10125_v12 = vld [vmem:[%s15594_s28 + $0xf4] sm:$0xf0]  ;;  %s15654_s30 = sld [smem:[#allocation39_spill]] }
  0x23   :  { %v7427_v13 = vld [vmem:[%s15594_s28 + $0x150] sm:$0xf]  ;;  %v7380_v14 = vor.u32 %v10125_v12, %v7379_v9  ;;  %v10137_v15 = vld [vmem:[%s15594_s28 + $0x154] sm:$0xf0]  ;;  %v10132_v18 = vld [vmem:[%s15594_s28 + $0x134] sm:$0xf] }
  0x24   :  { %v7413_v19 = vld [vmem:[%s15594_s28 + $0x138] sm:$0xf0]  ;;  %v7428_v20 = vor.u32 %v10137_v15, %v7427_v13  ;;  %v10130_v24 = vld [vmem:[%s15594_s28 + $0x124] sm:$0xf]  ;;  %v7405_v25 = vld [vmem:[%s15594_s28 + $0x128] sm:$0xf0] }
  0x25   :  { %342 = vmatpush.bf16.msra.mxu2 %v10906_v28  ;;  %219 = vmatpush.bf16.msra.mxu0 %v10906_v28  ;;  %v7416_v21 = vor.u32 %v10132_v18, %v7413_v19  ;;  %v7371_v26 = vld [vmem:[%s15594_s28 + $0xe0] sm:$0xf]  ;;  %v10123_v27 = vld [vmem:[%s15594_s28 + $0xe4] sm:$0xf0]  ;;  %v7408_v30 = vor.u32 %v10130_v24, %v7405_v25  ;;  %v10128_v32 = vld [vmem:[%s15594_s28 + $0x114] sm:$0xf] }
  0x26   :  { %371 = vmatpush.bf16.msra.mxu3 %v10910_v29  ;;  %248 = vmatpush.bf16.msra.mxu1 %v10910_v29  ;;  %v7372_v31 = vor.u32 %v10123_v27, %v7371_v26  ;;  %v7397_v33 = vld [vmem:[%s15594_s28 + $0x118] sm:$0xf0]  ;;  %v7363_v36 = vld [vmem:[%s15594_s28 + $0xd0] sm:$0xf]  ;;  %v10121_v37 = vld [vmem:[%s15594_s28 + $0xd4] sm:$0xf0] }
  0x27   :  { %v7419_v38 = vld [vmem:[%s15594_s28 + $0x140] sm:$0xf]  ;;  %v10135_v39 = vld [vmem:[%s15594_s28 + $0x144] sm:$0xf0]  ;;  %v10140_v43 = vld [vmem:[%s15594_s28 + $0x174] sm:$0xf]  ;;  %v7364_v44 = vor.u32 %v10121_v37, %v7363_v36 }
  0x28   :  { %v7420_v42 = vor.u32 %v10135_v39, %v7419_v38  ;;  %v7445_v45 = vld [vmem:[%s15594_s28 + $0x178] sm:$0xf0]  ;;  %v10126_v51 = vld [vmem:[%s15594_s28 + $0x104] sm:$0xf]  ;;  %v7389_v52 = vld [vmem:[%s15594_s28 + $0x108] sm:$0xf0] }
  0x29   :  { %343 = vmatpush.bf16.msra.mxu2 %v10926_v34  ;;  %220 = vmatpush.bf16.msra.mxu0 %v10926_v34  ;;  %v10088_v53 = vld [vmem:[%s15593_s9 + $0x10] sm:$0xff]  ;;  %v7392_v54 = vor.u32 %v10126_v51, %v7389_v52  ;;  %v10089_v58 = vld [vmem:[%s15593_s9 + $0x18] sm:$0xff]  ;;  %v10122_v59 = vld [vmem:[%s15594_s28 + $0xe4] sm:$0xf] }
  0x2a   :  { %372 = vmatpush.bf16.msra.mxu3 %v10930_v35  ;;  %249 = vmatpush.bf16.msra.mxu1 %v10930_v35  ;;  %v10138_v61 = vld [vmem:[%s15594_s28 + $0x164] sm:$0xf]  ;;  %v7437_v63 = vld [vmem:[%s15594_s28 + $0x168] sm:$0xf0]  ;;  %v10119_v2 = vld [vmem:[%s15594_s28 + $0xc4] sm:$0xf0] }
  0x2b   :  { %v10120_v4 = vld [vmem:[%s15594_s28 + $0xd4] sm:$0xf]  ;;  %v7429_v9 = vld [vmem:[%s15594_s28 + $0x158] sm:$0xf0]  ;;  %v7357_v15 = vld [vmem:[%s15594_s28 + $0xc8] sm:$0xf0] }
  0x2c   :  { %v10134_v18 = vld [vmem:[%s15594_s28 + $0x144] sm:$0xf]  ;;  %v7515_v24 = vld [vmem:[%s15594_s28 + $0x70] sm:$0xf]  ;;  %v10105_v25 = vld [vmem:[%s15594_s28 + $0x74] sm:$0xf0] }
  0x2d   :  { %344 = vmatpush.bf16.msra.mxu2 %v10946_v40  ;;  %221 = vmatpush.bf16.msra.mxu0 %v10946_v40  ;;  %v7547_v26 = vld [vmem:[%s15594_s28 + $0xb0] sm:$0xf]  ;;  %v7516_v27 = vor.u32 %v10105_v25, %v7515_v24  ;;  %v10101_v38 = vld [vmem:[%s15594_s28 + $0x54] sm:$0xf0]  ;;  %v7539_v39 = vld [vmem:[%s15594_s28 + $0xa0] sm:$0xf] }
  0x2e   :  { %373 = vmatpush.bf16.msra.mxu3 %v10950_v41  ;;  %250 = vmatpush.bf16.msra.mxu1 %v10950_v41  ;;  %v7499_v37 = vld [vmem:[%s15594_s28 + $0x50] sm:$0xf] }
  0x31   :  { %345 = vmatpush.bf16.msra.mxu2 %v10966_v46  ;;  %222 = vmatpush.bf16.msra.mxu0 %v10966_v46 }
  0x32   :  { %374 = vmatpush.bf16.msra.mxu3 %v10970_v47  ;;  %251 = vmatpush.bf16.msra.mxu1 %v10970_v47 }
  0x34   :  { %346 = vmatmul.bf16.vlgmr.msra.gmra.mxu2 %v10114_v48  ;;  %223 = vmatmul.bf16.vlgmr.msra.gmra.mxu0 %v10086_v50 }
  0x35   :  { %375 = vmatmul.bf16.vlgmr.msra.gmra.mxu3 %v10114_v48  ;;  %252 = vmatmul.bf16.vlgmr.msra.gmra.mxu1 %v10086_v50  ;;  %v7400_v48 = vor.u32 %v10128_v32, %v7397_v33  ;;  %v10117_v50 = vld [vmem:[%s15593_s9 + $0x38] sm:$0xff]  ;;  %v7507_v32 = vld [vmem:[%s15594_s28 + $0x60] sm:$0xf]  ;;  %v10103_v33 = vld [vmem:[%s15594_s28 + $0x64] sm:$0xf0] }
  0x36   :  { %562 = vmatpush.bf16.msrb.mxu0 %v7412_v55  ;;  %595 = vmatpush.bf16.msrb.mxu1 %v7444_v56  ;;  %v10124_v55 = vld [vmem:[%s15594_s28 + $0xf4] sm:$0xf]  ;;  %v7381_v56 = vld [vmem:[%s15594_s28 + $0xf8] sm:$0xf0]  ;;  %v7508_v36 = vor.u32 %v10103_v33, %v7507_v32 }
  0x37   :  { %620 = vmatpush.bf16.msrb.mxu2 %v7416_v21  ;;  %v7384_v57 = vor.u32 %v10124_v55, %v7381_v56  ;;  %v10104_v56 = vld [vmem:[%s15594_s28 + $0x74] sm:$0xf]  ;;  %v7549_v33 = vld [vmem:[%s15594_s28 + $0xb8] sm:$0xf0] }
  0x3a   :  { %563 = vmatpush.bf16.msrb.mxu0 %v7404_v60  ;;  %596 = vmatpush.bf16.msrb.mxu1 %v7436_v0  ;;  %v7373_v60 = vld [vmem:[%s15594_s28 + $0xe8] sm:$0xf0]  ;;  %v7440_v0 = vor.u32 %v10138_v61, %v7437_v63  ;;  %v7531_v61 = vld [vmem:[%s15594_s28 + $0x90] sm:$0xf]  ;;  %v10109_v63 = vld [vmem:[%s15594_s28 + $0x94] sm:$0xf0] }
  0x3b   :  { %621 = vmatpush.bf16.msrb.mxu2 %v7408_v30  ;;  %v7376_v62 = vor.u32 %v10122_v59, %v7373_v60  ;;  %v10113_v30 = vld [vmem:[%s15594_s28 + $0xb4] sm:$0xf0]  ;;  %v7483_v59 = vld [vmem:[%s15594_s28 + $0x30] sm:$0xf] }
  0x3c   :  { %v10097_v60 = vld [vmem:[%s15594_s28 + $0x34] sm:$0xf0] }
  0x3e   :  { %564 = vmatpush.bf16.msrb.mxu0 %v7396_v1  ;;  %597 = vmatpush.bf16.msrb.mxu1 %v7428_v20  ;;  %v7355_v1 = vld [vmem:[%s15594_s28 + $0xc0] sm:$0xf]  ;;  %v7421_v20 = vld [vmem:[%s15594_s28 + $0x148] sm:$0xf0] }
  0x3f   :  { %622 = vmatpush.bf16.msrb.mxu2 %v7400_v48  ;;  %v7424_v21 = vor.u32 %v10134_v18, %v7421_v20  ;;  %v10098_v18 = vld [vmem:[%s15594_s28 + $0x44] sm:$0xf] }
  0x42   :  { %565 = vmatpush.bf16.msrb.mxu0 %v7388_v6  ;;  %598 = vmatpush.bf16.msrb.mxu1 %v7420_v42  ;;  %v7365_v6 = vld [vmem:[%s15594_s28 + $0xd8] sm:$0xf0]  ;;  %v7500_v42 = vor.u32 %v10101_v38, %v7499_v37  ;;  %v10093_v37 = vld [vmem:[%s15594_s28 + $0x14] sm:$0xf0]  ;;  %v7523_v38 = vld [vmem:[%s15594_s28 + $0x80] sm:$0xf] }
  0x43   :  { %623 = vmatpush.bf16.msrb.mxu2 %v7392_v54  ;;  %v7368_v12 = vor.u32 %v10120_v4, %v7365_v6 }
  0x44   :  { %351 = vmatmul.bf16.gmra.mxu2 %v10115_v49  ;;  %228 = vmatmul.bf16.gmra.mxu0 %v10087_v8 }
  0x45   :  { %380 = vmatmul.bf16.gmra.mxu3 %v10115_v49  ;;  %257 = vmatmul.bf16.gmra.mxu1 %v10087_v8  ;;  %v7448_v49 = vor.u32 %v10140_v43, %v7445_v45  ;;  %v10136_v8 = vld [vmem:[%s15594_s28 + $0x154] sm:$0xf]  ;;  %v10111_v43 = vld [vmem:[%s15594_s28 + $0xa4] sm:$0xf0] }
  0x46   :  { %566 = vmatpush.bf16.msrb.mxu0 %v7380_v14  ;;  %v7432_v13 = vor.u32 %v10136_v8, %v7429_v9  ;;  %v10118_v14 = vld [vmem:[%s15594_s28 + $0xc4] sm:$0xf]  ;;  %v7475_v8 = vld [vmem:[%s15594_s28 + $0x20] sm:$0xf]  ;;  %v10095_v9 = vld [vmem:[%s15594_s28 + $0x24] sm:$0xf0] }
  0x47   :  { %653 = vmatpush.bf16.msrb.mxu3 %v7448_v49  ;;  %624 = vmatpush.bf16.msrb.mxu2 %v7384_v57  ;;  %v7360_v19 = vor.u32 %v10118_v14, %v7357_v15  ;;  %v7491_v49 = vld [vmem:[%s15594_s28 + $0x40] sm:$0xf]  ;;  %v7517_v57 = vld [vmem:[%s15594_s28 + $0x78] sm:$0xf0] }
  0x48   :  { %v7501_v14 = vld [vmem:[%s15594_s28 + $0x58] sm:$0xf0] }
  0x4a   :  { %567 = vmatpush.bf16.msrb.mxu0 %v7372_v31  ;;  %v7548_v31 = vor.u32 %v10113_v30, %v7547_v26  ;;  %v7485_v30 = vld [vmem:[%s15594_s28 + $0x38] sm:$0xf0] }
  0x4b   :  { %625 = vmatpush.bf16.msrb.mxu2 %v7376_v62  ;;  %654 = vmatpush.bf16.msrb.mxu3 %v7440_v0  ;;  %v7484_v62 = vor.u32 %v10097_v60, %v7483_v59  ;;  %v7532_v0 = vor.u32 %v10109_v63, %v7531_v61  ;;  %v10108_v59 = vld [vmem:[%s15594_s28 + $0x94] sm:$0xf]  ;;  %v7533_v60 = vld [vmem:[%s15594_s28 + $0x98] sm:$0xf0] }
  0x4c   :  { %843 = vmatpush.bf16.msra.mxu1 %v7548_v31  ;;  %v10112_v31 = vld [vmem:[%s15594_s28 + $0xb4] sm:$0xf]  ;;  %v7536_v63 = vor.u32 %v10108_v59, %v7533_v60 }
  0x4e   :  { %568 = vmatpush.bf16.msrb.mxu0 %v7364_v44  ;;  %v7540_v44 = vor.u32 %v10111_v43, %v7539_v39  ;;  %v7552_v39 = vor.u32 %v10112_v31, %v7549_v33  ;;  %v10107_v43 = vld [vmem:[%s15594_s28 + $0x84] sm:$0xf0] }
  0x4f   :  { %626 = vmatpush.bf16.msrb.mxu2 %v7368_v12  ;;  %655 = vmatpush.bf16.msrb.mxu3 %v7432_v13  ;;  %v10100_v12 = vld [vmem:[%s15594_s28 + $0x54] sm:$0xf]  ;;  %v7476_v13 = vor.u32 %v10095_v9, %v7475_v8 }
  0x50   :  { %844 = vmatpush.bf16.msra.mxu1 %v7540_v44  ;;  %v7504_v15 = vor.u32 %v10100_v12, %v7501_v14  ;;  %v10094_v44 = vld [vmem:[%s15594_s28 + $0x24] sm:$0xf] }
  0x53   :  { %627 = vmatpush.bf16.msrb.mxu2 %v7360_v19  ;;  %656 = vmatpush.bf16.msrb.mxu3 %v7424_v21  ;;  %v7493_v19 = vld [vmem:[%s15594_s28 + $0x48] sm:$0xf0] }
  0x54   :  { %356 = vmatmul.bf16.gmra.mxu2 %v10116_v5  ;;  %233 = vmatmul.bf16.gmra.mxu0 %v10088_v53  ;;  %v7496_v20 = vor.u32 %v10098_v18, %v7493_v19 }
  0x55   :  { %385 = vmatmul.bf16.gmra.mxu3 %v10116_v5  ;;  %262 = vmatmul.bf16.gmra.mxu1 %v10088_v53  ;;  %v7356_v5 = vor.u32 %v10119_v2, %v7355_v1  ;;  %v10102_v1 = vld [vmem:[%s15594_s28 + $0x64] sm:$0xf]  ;;  %v7509_v2 = vld [vmem:[%s15594_s28 + $0x68] sm:$0xf0] }
  0x56   :  { %v7512_v4 = vor.u32 %v10102_v1, %v7509_v2  ;;  %845 = vmatpush.bf16.msra.mxu1 %v7532_v0  ;;  %v10090_v0 = vld [vmem:[%s15594_s28 + $0x4] sm:$0xf]  ;;  %v7461_v1 = vld [vmem:[%s15594_s28 + $0x8] sm:$0xf0] }
  0x57   :  { %569 = vmatpush.bf16.msrb.mxu0 %v7356_v5  ;;  %901 = vmatpush.bf16.msra.mxu3 %v7552_v39  ;;  %v10106_v2 = vld [vmem:[%s15594_s28 + $0x84] sm:$0xf] }
  0x5b   :  { %810 = vmatpush.bf16.msra.mxu0 %v7516_v27  ;;  %v10096_v27 = vld [vmem:[%s15594_s28 + $0x34] sm:$0xf] }
  0x5c   :  { %v7488_v32 = vor.u32 %v10096_v27, %v7485_v30 }
  0x5f   :  { %811 = vmatpush.bf16.msra.mxu0 %v7508_v36  ;;  %v7467_v36 = vld [vmem:[%s15594_s28 + $0x10] sm:$0xf] }
  0x63   :  { %812 = vmatpush.bf16.msra.mxu0 %v7500_v42  ;;  %v7468_v42 = vor.u32 %v10093_v37, %v7467_v36 }
  0x64   :  { %361 = vmatmul.bf16.gmra.mxu2 %v10117_v50  ;;  %238 = vmatmul.bf16.gmra.mxu0 %v10089_v58 }
  0x65   :  { %390 = vmatmul.bf16.gmra.mxu3 %v10117_v50  ;;  %267 = vmatmul.bf16.gmra.mxu1 %v10089_v58  ;;  %v10099_v50 = vld [vmem:[%s15594_s28 + $0x44] sm:$0xf0]  ;;  %v7520_v58 = vor.u32 %v10104_v56, %v7517_v57  ;;  %v7469_v56 = vld [vmem:[%s15594_s28 + $0x18] sm:$0xf0] }
  0x66   :  { %v7492_v51 = vor.u32 %v10099_v50, %v7491_v49  ;;  %v10110_v50 = vld [vmem:[%s15594_s28 + $0xa4] sm:$0xf] }
  0x67   :  { %868 = vmatpush.bf16.msra.mxu2 %v7520_v58 }
  0x68   :  { %813 = vmatpush.bf16.msra.mxu0 %v7492_v51  ;;  %v7541_v51 = vld [vmem:[%s15594_s28 + $0xa8] sm:$0xf0] }
  0x6b   :  { %869 = vmatpush.bf16.msra.mxu2 %v7512_v4  ;;  %v7525_v4 = vld [vmem:[%s15594_s28 + $0x88] sm:$0xf0] }
  0x6c   :  { %814 = vmatpush.bf16.msra.mxu0 %v7484_v62 }
  0x6f   :  { %870 = vmatpush.bf16.msra.mxu2 %v7504_v15 }
  0x70   :  { %815 = vmatpush.bf16.msra.mxu0 %v7476_v13 }
  0x73   :  { %871 = vmatpush.bf16.msra.mxu2 %v7496_v20 }
  0x74   :  { %816 = vmatpush.bf16.msra.mxu0 %v7468_v42 }
  0x77   :  { %872 = vmatpush.bf16.msra.mxu2 %v7488_v32 }
  0xb1   :  { %v224_v15 = vpop.f32.mrf.mxu0 }
  0xb2   :  { %v253_v19 = vpop.f32.mrf.mxu1 }
  0xb7   :  { %v347_v45 = vpop.f32.mrf.mxu2 }
  0xb8   :  { %v376_v48 = vpop.f32.mrf.mxu3 }
  0xba   :  { %v255_v27 = vpop.f32.mrf.mxu1 }
  0xbb   :  { %v274_v33 = vpack.c.bf16 %v255_v27, %v253_v19 }
  0xbf   :  { %v349_v52 = vpop.f32.mrf.mxu2 }
  0xc0   :  { %v396_v53 = vpack.c.bf16 %v349_v52, %v347_v45  ;;  %v378_v54 = vpop.f32.mrf.mxu3  ;;  %v7477_v45 = vld [vmem:[%s15594_s28 + $0x28] sm:$0xf0]  ;;  %v7459_v52 = vld [vmem:[%s15594_s28] sm:$0xf] }
  0xc1   :  { %v397_v55 = vpack.c.bf16 %v378_v54, %v376_v48  ;;  %v7524_v48 = vor.u32 %v10107_v43, %v7523_v38  ;;  %v7480_v49 = vor.u32 %v10094_v44, %v7477_v45  ;;  %v10091_v54 = vld [vmem:[%s15594_s28 + $0x4] sm:$0xf0] }
  0xc2   :  { %570 = vmatmul.bf16.vlgmr.msrb.gmra.mxu0 %v396_v53  ;;  %628 = vmatmul.bf16.vlgmr.msrb.gmra.mxu2 %v396_v53  ;;  %v7544_v53 = vor.u32 %v10110_v50, %v7541_v51  ;;  %v7460_v58 = vor.u32 %v10091_v54, %v7459_v52  ;;  %v258_v31 = vpop.f32.mrf.mxu1 }
  0xc3   :  { %7449 = vmatmul.msk.bf16.vlgmr.msrb.gmra.mxu1 %vm549_vm0, %v397_v55  ;;  %7453 = vmatmul.msk.bf16.vlgmr.msrb.gmra.mxu3 %vm549_vm0, %v397_v55  ;;  %v10092_v55 = vld [vmem:[%s15594_s28 + $0x14] sm:$0xf] }
  0xc4   :  { %846 = vmatpush.bf16.msra.mxu1 %v7524_v48  ;;  %873 = vmatpush.bf16.msra.mxu2 %v7480_v49  ;;  %v7472_v62 = vor.u32 %v10092_v55, %v7469_v56  ;;  %v10142_v56 = vld [vmem:[%s15593_s9 + $0x40] sm:$0xff] }
  0xc5   :  { %902 = vmatpush.bf16.msra.mxu3 %v7544_v53  ;;  %817 = vmatpush.bf16.msra.mxu0 %v7460_v58 }
  0xc7   :  { %v352_v5 = vpop.f32.mrf.mxu2 }
  0xc8   :  { %v381_v6 = vpop.f32.mrf.mxu3  ;;  %988 = vmatpush.bf16.msrb.mxu1 %v10837_v7  ;;  %874 = vmatpush.bf16.msra.mxu2 %v7472_v62 }
  0xc9   :  { %959 = vmatpush.bf16.msrb.mxu0 %v10826_v3  ;;  %903 = vmatpush.bf16.msra.mxu3 %v7536_v63 }
  0xca   :  { %v260_v37 = vpop.f32.mrf.mxu1 }
  0xcb   :  { %v276_v43 = vpack.c.bf16 %v260_v37, %v258_v31  ;;  %v7699_v37 = vld [vmem:[%s15594_s28 + $0x230] sm:$0xf] }
  0xcc   :  { %989 = vmatpush.bf16.msrb.mxu1 %v10850_v11 }
  0xcd   :  { %960 = vmatpush.bf16.msrb.mxu0 %v10846_v10 }
  0xcf   :  { %v354_v21 = vpop.f32.mrf.mxu2 }
  0xd0   :  { %v383_v24 = vpop.f32.mrf.mxu3  ;;  %v398_v25 = vpack.c.bf16 %v354_v21, %v352_v5  ;;  %v7464_v5 = vor.u32 %v10090_v0, %v7461_v1  ;;  %990 = vmatpush.bf16.msrb.mxu1 %v10870_v17 }
  0xd1   :  { %v399_v26 = vpack.c.bf16 %v383_v24, %v381_v6  ;;  %v7528_v6 = vor.u32 %v10106_v2, %v7525_v4  ;;  %961 = vmatpush.bf16.msrb.mxu0 %v10866_v16  ;;  %v10143_v4 = vld [vmem:[%s15593_s9 + $0x48] sm:$0xff] }
  0xd2   :  { %575 = vmatmul.bf16.gmra.mxu0 %v398_v25  ;;  %633 = vmatmul.bf16.gmra.mxu2 %v398_v25  ;;  %v263_v39 = vpop.f32.mrf.mxu1 }
  0xd3   :  { %7450 = vmatmul.msk.bf16.gmra.mxu1 %vm549_vm0, %v399_v26  ;;  %7454 = vmatmul.msk.bf16.gmra.mxu3 %vm549_vm0, %v399_v26  ;;  %v226_v26 = vpop.f32.mrf.mxu0 }
  0xd4   :  { %875 = vmatpush.bf16.msra.mxu2 %v7464_v5  ;;  %904 = vmatpush.bf16.msra.mxu3 %v7528_v6  ;;  %v273_v32 = vpack.c.bf16 %v226_v26, %v224_v15 }
  0xd5   :  { %991 = vmatpush.bf16.msrb.mxu1 %v10890_v23  ;;  %962 = vmatpush.bf16.msrb.mxu0 %v10886_v22 }
  0xd7   :  { %v357_v57 = vpop.f32.mrf.mxu2 }
  0xd8   :  { %v386_v61 = vpop.f32.mrf.mxu3 }
  0xd9   :  { %992 = vmatpush.bf16.msrb.mxu1 %v10910_v29  ;;  %963 = vmatpush.bf16.msrb.mxu0 %v10906_v28 }
  0xda   :  { %v265_v45 = vpop.f32.mrf.mxu1 }
  0xdb   :  { %v229_v30 = vpop.f32.mrf.mxu0  ;;  %v278_v49 = vpack.c.bf16 %v265_v45, %v263_v39  ;;  %v10169_v39 = vld [vmem:[%s15594_s28 + $0x234] sm:$0xf0] }
  0xdc   :  { %v10145_v45 = vld [vmem:[%s15593_s9 + $0x58] sm:$0xff] }
  0xdd   :  { %993 = vmatpush.bf16.msrb.mxu1 %v10930_v35  ;;  %964 = vmatpush.bf16.msrb.mxu0 %v10926_v34 }
  0xdf   :  { %v359_v8 = vpop.f32.mrf.mxu2 }
  0xe0   :  { %v388_v9 = vpop.f32.mrf.mxu3  ;;  %v400_v12 = vpack.c.bf16 %v359_v8, %v357_v57 }
  0xe1   :  { %v401_v13 = vpack.c.bf16 %v388_v9, %v386_v61  ;;  %994 = vmatpush.bf16.msrb.mxu1 %v10950_v41  ;;  %965 = vmatpush.bf16.msrb.mxu0 %v10946_v40 }
  0xe2   :  { %580 = vmatmul.bf16.gmra.mxu0 %v400_v12  ;;  %638 = vmatmul.bf16.gmra.mxu2 %v400_v12  ;;  %v268_v51 = vpop.f32.mrf.mxu1 }
  0xe3   :  { %7451 = vmatmul.msk.bf16.gmra.mxu1 %vm549_vm0, %v401_v13  ;;  %7455 = vmatmul.msk.bf16.gmra.mxu3 %vm549_vm0, %v401_v13  ;;  %v231_v36 = vpop.f32.mrf.mxu0 }
  0xe4   :  { %v275_v42 = vpack.c.bf16 %v231_v36, %v229_v30  ;;  %v10161_v36 = vld [vmem:[%s15594_s28 + $0x1f4] sm:$0xf0] }
  0xe5   :  { %995 = vmatpush.bf16.msrb.mxu1 %v10970_v47  ;;  %966 = vmatpush.bf16.msrb.mxu0 %v10966_v46 }
  0xe7   :  { %v362_v14 = vpop.f32.mrf.mxu2 }
  0xe8   :  { %v391_v18 = vpop.f32.mrf.mxu3 }
  0xea   :  { %v270_v53 = vpop.f32.mrf.mxu1 }
  0xeb   :  { %v234_v38 = vpop.f32.mrf.mxu0  ;;  %v280_v55 = vpack.c.bf16 %v270_v53, %v268_v51  ;;  %v7659_v51 = vld [vmem:[%s15594_s28 + $0x1e0] sm:$0xf] }
  0xef   :  { %v364_v20 = vpop.f32.mrf.mxu2 }
  0xf0   :  { %v393_v21 = vpop.f32.mrf.mxu3  ;;  %v402_v24 = vpack.c.bf16 %v364_v20, %v362_v14  ;;  %v10144_v20 = vld [vmem:[%s15593_s9 + $0x50] sm:$0xff] }
  0xf1   :  { %v403_v25 = vpack.c.bf16 %v393_v21, %v391_v18 }
  0xf2   :  { %585 = vmatmul.bf16.gmra.mxu0 %v402_v24  ;;  %643 = vmatmul.bf16.gmra.mxu2 %v402_v24 }
  0xf3   :  { %7452 = vmatmul.msk.bf16.gmra.mxu1 %vm549_vm0, %v403_v25  ;;  %7456 = vmatmul.msk.bf16.gmra.mxu3 %vm549_vm0, %v403_v25  ;;  %v236_v44 = vpop.f32.mrf.mxu0 }
  0xf4   :  { %v277_v48 = vpack.c.bf16 %v236_v44, %v234_v38 }
  0xfb   :  { %v239_v50 = vpop.f32.mrf.mxu0 }
 0x102   :  { %818 = vmatmul.bf16.vlgmr.msra.gmra.mxu0 %v273_v32  ;;  %876 = vmatmul.bf16.vlgmr.msra.gmra.mxu2 %v273_v32 }
 0x103   :  { %7553 = vmatmul.msk.bf16.vlgmr.msra.gmra.mxu1 %vm549_vm0, %v274_v33  ;;  %7557 = vmatmul.msk.bf16.vlgmr.msra.gmra.mxu3 %vm549_vm0, %v274_v33  ;;  %v241_v52 = vpop.f32.mrf.mxu0  ;;  %v7667_v33 = vld [vmem:[%s15594_s28 + $0x1f0] sm:$0xf] }
 0x104   :  { %v279_v54 = vpack.c.bf16 %v241_v52, %v239_v50  ;;  %v7668_v38 = vor.u32 %v10161_v36, %v7667_v33  ;;  %v10159_v52 = vld [vmem:[%s15594_s28 + $0x1e4] sm:$0xf0]  ;;  %v7643_v33 = vld [vmem:[%s15594_s28 + $0x1c0] sm:$0xf] }
 0x105   :  { %v7660_v53 = vor.u32 %v10159_v52, %v7659_v51  ;;  %v10155_v36 = vld [vmem:[%s15594_s28 + $0x1c4] sm:$0xf0]  ;;  %v7669_v51 = vld [vmem:[%s15594_s28 + $0x1f8] sm:$0xf0]  ;;  %v7635_v52 = vld [vmem:[%s15594_s28 + $0x1b0] sm:$0xf] }
 0x106   :  { %1182 = vmatpush.bf16.msrb.mxu2 %v7668_v38 }
 0x10a   :  { %1183 = vmatpush.bf16.msrb.mxu2 %v7660_v53  ;;  %v7683_v53 = vld [vmem:[%s15594_s28 + $0x210] sm:$0xf] }
 0x112   :  { %823 = vmatmul.bf16.gmra.mxu0 %v275_v42  ;;  %881 = vmatmul.bf16.gmra.mxu2 %v275_v42  ;;  %v7700_v42 = vor.u32 %v10169_v39, %v7699_v37  ;;  %v7644_v37 = vor.u32 %v10155_v36, %v7643_v33  ;;  %v10156_v36 = vld [vmem:[%s15594_s28 + $0x1d4] sm:$0xf] }
 0x113   :  { %7554 = vmatmul.msk.bf16.gmra.mxu1 %vm549_vm0, %v276_v43  ;;  %7558 = vmatmul.msk.bf16.gmra.mxu3 %vm549_vm0, %v276_v43 }
 0x114   :  { %1215 = vmatpush.bf16.msrb.mxu3 %v7700_v42 }
 0x122   :  { %828 = vmatmul.bf16.gmra.mxu0 %v277_v48  ;;  %886 = vmatmul.bf16.gmra.mxu2 %v277_v48 }
 0x123   :  { %7555 = vmatmul.msk.bf16.gmra.mxu1 %vm549_vm0, %v278_v49  ;;  %7559 = vmatmul.msk.bf16.gmra.mxu3 %vm549_vm0, %v278_v49 }
 0x132   :  { %833 = vmatmul.bf16.gmra.mxu0 %v279_v54  ;;  %891 = vmatmul.bf16.gmra.mxu2 %v279_v54 }
 0x133   :  { %7556 = vmatmul.msk.bf16.gmra.mxu1 %vm549_vm0, %v280_v55  ;;  %7560 = vmatmul.msk.bf16.gmra.mxu3 %vm549_vm0, %v280_v55 }
 0x13f   :  { %v571_v57 = vpop.f32.mrf.mxu0 }
 0x140   :  { %v600_v58 = vpop.f32.mrf.mxu1 }
 0x141   :  { %v11324_v59 = vadd.f32 %v600_v58, %v571_v57 }
 0x142   :  { %967 = vmatmul.bf16.vlgmr.msrb.gmra.mxu0 %v10142_v56 }
 0x143   :  { %996 = vmatmul.bf16.vlgmr.msrb.gmra.mxu1 %v10142_v56 }
 0x145   :  { %v629_v60 = vpop.f32.mrf.mxu2 }
 0x146   :  { %v658_v61 = vpop.f32.mrf.mxu3 }
 0x147   :  { %v11326_v62 = vadd.f32 %v658_v61, %v629_v60  ;;  %v11328_v63 = vpop.f32.mrf.mxu0  ;;  %v7651_v60 = vld [vmem:[%s15594_s28 + $0x1d0] sm:$0xf]  ;;  %v10157_v61 = vld [vmem:[%s15594_s28 + $0x1d4] sm:$0xf0] }
 0x148   :  { %v11330_v0 = vpop.f32.mrf.mxu1 }
 0x14d   :  { %v11332_v1 = vpop.f32.mrf.mxu2 }
 0x14e   :  { %v11334_v2 = vpop.f32.mrf.mxu3 }
 0x14f   :  { %v576_v5 = vpop.f32.mrf.mxu0 }
 0x150   :  { %v605_v6 = vpop.f32.mrf.mxu1 }
 0x151   :  { %v11339_v8 = vadd.f32 %v605_v6, %v576_v5  ;;  %v7652_v5 = vor.u32 %v10157_v61, %v7651_v60  ;;  %v10167_v6 = vld [vmem:[%s15594_s28 + $0x224] sm:$0xf0]  ;;  %v10165_v60 = vld [vmem:[%s15594_s28 + $0x214] sm:$0xf0] }
 0x152   :  { %972 = vmatmul.bf16.gmra.mxu0 %v10143_v4  ;;  %v7684_v61 = vor.u32 %v10165_v60, %v7683_v53 }
 0x153   :  { %1001 = vmatmul.bf16.gmra.mxu1 %v10143_v4  ;;  %v7691_v4 = vld [vmem:[%s15594_s28 + $0x220] sm:$0xf]  ;;  %1184 = vmatpush.bf16.msrb.mxu2 %v7652_v5  ;;  %v10158_v5 = vld [vmem:[%s15594_s28 + $0x1e4] sm:$0xf] }
 0x155   :  { %v634_v9 = vpop.f32.mrf.mxu2 }
 0x156   :  { %v663_v12 = vpop.f32.mrf.mxu3 }
 0x157   :  { %v11341_v13 = vadd.f32 %v663_v12, %v634_v9  ;;  %v11343_v14 = vpop.f32.mrf.mxu0  ;;  %v7692_v9 = vor.u32 %v10167_v6, %v7691_v4  ;;  %1185 = vmatpush.bf16.msrb.mxu2 %v7644_v37  ;;  %v7661_v6 = vld [vmem:[%s15594_s28 + $0x1e8] sm:$0xf0]  ;;  %v7653_v37 = vld [vmem:[%s15594_s28 + $0x1d8] sm:$0xf0] }
 0x158   :  { %v11345_v15 = vpop.f32.mrf.mxu1 }
 0x159   :  { %1216 = vmatpush.bf16.msrb.mxu3 %v7692_v9 }
 0x15d   :  { %v11347_v18 = vpop.f32.mrf.mxu2  ;;  %1217 = vmatpush.bf16.msrb.mxu3 %v7684_v61 }
 0x15e   :  { %v11349_v19 = vpop.f32.mrf.mxu3 }
 0x15f   :  { %v581_v21 = vpop.f32.mrf.mxu0 }
 0x160   :  { %v610_v24 = vpop.f32.mrf.mxu1 }
 0x161   :  { %v11354_v25 = vadd.f32 %v610_v24, %v581_v21 }
 0x162   :  { %977 = vmatmul.bf16.gmra.mxu0 %v10144_v20 }
 0x163   :  { %1006 = vmatmul.bf16.gmra.mxu1 %v10144_v20 }
 0x165   :  { %v639_v26 = vpop.f32.mrf.mxu2 }
 0x166   :  { %v668_v27 = vpop.f32.mrf.mxu3 }
 0x167   :  { %v11356_v30 = vadd.f32 %v668_v27, %v639_v26  ;;  %v11358_v31 = vpop.f32.mrf.mxu0 }
 0x168   :  { %v11360_v32 = vpop.f32.mrf.mxu1 }
 0x16d   :  { %v11374_v43 = vpop.f32.mrf.mxu2 }
 0x16e   :  { %v11376_v44 = vpop.f32.mrf.mxu3 }
 0x16f   :  { %v586_v48 = vpop.f32.mrf.mxu0 }
 0x170   :  { %v615_v49 = vpop.f32.mrf.mxu1 }
 0x171   :  { %v11381_v50 = vadd.f32 %v615_v49, %v586_v48  ;;  %v10160_v49 = vld [vmem:[%s15594_s28 + $0x1f4] sm:$0xf] }
 0x172   :  { %982 = vmatmul.bf16.gmra.mxu0 %v10145_v45 }
 0x173   :  { %1011 = vmatmul.bf16.gmra.mxu1 %v10145_v45 }
 0x175   :  { %v644_v54 = vpop.f32.mrf.mxu2 }
 0x176   :  { %v673_v55 = vpop.f32.mrf.mxu3 }
 0x177   :  { %v11389_v56 = vadd.f32 %v673_v55, %v644_v54  ;;  %v11391_v57 = vpop.f32.mrf.mxu0  ;;  %v7672_v54 = vor.u32 %v10160_v49, %v7669_v51 }
 0x178   :  { %v11393_v58 = vpop.f32.mrf.mxu1 }
 0x179   :  { %1240 = vmatpush.bf16.msra.mxu0 %v7672_v54 }
 0x17d   :  { %v11407_v12 = vpop.f32.mrf.mxu2 }
 0x17e   :  { %15595 = vst [vmem:[#allocation3_spill] sm:$0xff] %v11407_v12  ;;  %v11409_v20 = vpop.f32.mrf.mxu3 }
 0x17f   :  { %15596 = vst [vmem:[#allocation4_spill] sm:$0xff] %v11409_v20  ;;  %v819_v21 = vpop.f32.mrf.mxu0 }
 0x180   :  { %v820_v24 = vadd.f32 %v819_v21, %v11324_v59  ;;  %v848_v26 = vpop.f32.mrf.mxu1  ;;  %v7664_v21 = vor.u32 %v10158_v5, %v7661_v6  ;;  %v10152_v6 = vld [vmem:[%s15594_s28 + $0x1b4] sm:$0xf] }
 0x182   :  { %v11412_v27 = vadd.f32 %v848_v26, %v820_v24  ;;  %1241 = vmatpush.bf16.msra.mxu0 %v7664_v21  ;;  %v7637_v21 = vld [vmem:[%s15594_s28 + $0x1b8] sm:$0xf0] }
 0x185   :  { %v877_v38 = vpop.f32.mrf.mxu2 }
 0x186   :  { %v878_v39 = vadd.f32 %v877_v38, %v11326_v62  ;;  %v906_v42 = vpop.f32.mrf.mxu3  ;;  %v10153_v62 = vld [vmem:[%s15594_s28 + $0x1b4] sm:$0xf0] }
 0x187   :  { %v11421_v45 = vpop.f32.mrf.mxu0  ;;  %v7636_v55 = vor.u32 %v10153_v62, %v7635_v52  ;;  %v10154_v52 = vld [vmem:[%s15594_s28 + $0x1c4] sm:$0xf]  ;;  %v7645_v62 = vld [vmem:[%s15594_s28 + $0x1c8] sm:$0xf0] }
 0x188   :  { %v11423_v59 = vadd.f32 %v906_v42, %v878_v39  ;;  %v11425_v48 = vpop.f32.mrf.mxu1  ;;  %v7627_v39 = vld [vmem:[%s15594_s28 + $0x1a0] sm:$0xf]  ;;  %v7656_v42 = vor.u32 %v10156_v36, %v7653_v37  ;;  %v7640_v36 = vor.u32 %v10152_v6, %v7637_v21  ;;  %v7693_v6 = vld [vmem:[%s15594_s28 + $0x228] sm:$0xf0] }
 0x189   :  { %1186 = vmatpush.bf16.msrb.mxu2 %v7636_v55  ;;  %v7648_v55 = vor.u32 %v10154_v52, %v7645_v62  ;;  %v10150_v52 = vld [vmem:[%s15594_s28 + $0x1a4] sm:$0xf]  ;;  %v7629_v62 = vld [vmem:[%s15594_s28 + $0x1a8] sm:$0xf0] }
 0x18a   :  { %1242 = vmatpush.bf16.msra.mxu0 %v7656_v42 }
 0x18d   :  { %v11445_v4 = vpop.f32.mrf.mxu2 }
 0x18e   :  { %v11453_v9 = vpop.f32.mrf.mxu3  ;;  %1243 = vmatpush.bf16.msra.mxu0 %v7648_v55  ;;  %v7632_v55 = vor.u32 %v10150_v52, %v7629_v62 }
 0x18f   :  { %v824_v24 = vpop.f32.mrf.mxu0 }
 0x190   :  { %v825_v26 = vadd.f32 %v824_v24, %v11339_v8  ;;  %v853_v33 = vpop.f32.mrf.mxu1  ;;  %v10151_v8 = vld [vmem:[%s15594_s28 + $0x1a4] sm:$0xf0]  ;;  %v7619_v24 = vld [vmem:[%s15594_s28 + $0x190] sm:$0xf] }
 0x191   :  { %v7628_v49 = vor.u32 %v10151_v8, %v7627_v39  ;;  %v10163_v39 = vld [vmem:[%s15594_s28 + $0x204] sm:$0xf0]  ;;  %v7701_v8 = vld [vmem:[%s15594_s28 + $0x238] sm:$0xf0] }
 0x192   :  { %v11462_v38 = vadd.f32 %v853_v33, %v825_v26  ;;  %v10149_v26 = vld [vmem:[%s15594_s28 + $0x194] sm:$0xf0]  ;;  %v7675_v33 = vld [vmem:[%s15594_s28 + $0x200] sm:$0xf]  ;;  %1244 = vmatpush.bf16.msra.mxu0 %v7640_v36  ;;  %v10147_v36 = vld [vmem:[%s15594_s28 + $0x184] sm:$0xf0] }
 0x193   :  { %1187 = vmatpush.bf16.msrb.mxu2 %v7628_v49  ;;  %v7620_v37 = vor.u32 %v10149_v26, %v7619_v24  ;;  %v7676_v42 = vor.u32 %v10163_v39, %v7675_v33  ;;  %v7611_v33 = vld [vmem:[%s15594_s28 + $0x180] sm:$0xf] }
 0x194   :  { %v7612_v39 = vor.u32 %v10147_v36, %v7611_v33 }
 0x195   :  { %v882_v51 = vpop.f32.mrf.mxu2  ;;  %1218 = vmatpush.bf16.msrb.mxu3 %v7676_v42 }
 0x196   :  { %v883_v53 = vadd.f32 %v882_v51, %v11341_v13  ;;  %v911_v54 = vpop.f32.mrf.mxu3  ;;  %v10168_v13 = vld [vmem:[%s15594_s28 + $0x234] sm:$0xf]  ;;  %1245 = vmatpush.bf16.msra.mxu0 %v7632_v55  ;;  %v7613_v55 = vld [vmem:[%s15594_s28 + $0x188] sm:$0xf0] }
 0x197   :  { %v11477_v60 = vpop.f32.mrf.mxu0  ;;  %v7704_v49 = vor.u32 %v10168_v13, %v7701_v8  ;;  %1188 = vmatpush.bf16.msrb.mxu2 %v7620_v37  ;;  %v10148_v37 = vld [vmem:[%s15594_s28 + $0x194] sm:$0xf]  ;;  %v7685_v8 = vld [vmem:[%s15594_s28 + $0x218] sm:$0xf0] }
 0x198   :  { %v11479_v61 = vadd.f32 %v911_v54, %v883_v53  ;;  %v11481_v5 = vpop.f32.mrf.mxu1  ;;  %v10166_v53 = vld [vmem:[%s15594_s28 + $0x224] sm:$0xf] }
 0x199   :  { %1273 = vmatpush.bf16.msra.mxu1 %v7704_v49  ;;  %v7696_v13 = vor.u32 %v10166_v53, %v7693_v6  ;;  %1376 = vmatpush.bf16.msra.mxu3 %v10837_v7  ;;  %v7621_v7 = vld [vmem:[%s15594_s28 + $0x198] sm:$0xf0]  ;;  %v10146_v53 = vld [vmem:[%s15594_s28 + $0x184] sm:$0xf] }
 0x19a   :  { %v7624_v49 = vor.u32 %v10148_v37, %v7621_v7  ;;  %v10162_v6 = vld [vmem:[%s15594_s28 + $0x204] sm:$0xf] }
 0x19b   :  { %1189 = vmatpush.bf16.msrb.mxu2 %v7612_v39 }
 0x19c   :  { %1246 = vmatpush.bf16.msra.mxu0 %v7624_v49 }
 0x19d   :  { %v11507_v51 = vpop.f32.mrf.mxu2  ;;  %1274 = vmatpush.bf16.msra.mxu1 %v7696_v13  ;;  %1377 = vmatpush.bf16.msra.mxu3 %v10850_v11  ;;  %v7616_v11 = vor.u32 %v10146_v53, %v7613_v55 }
 0x19e   :  { %v11518_v54 = vpop.f32.mrf.mxu3 }
 0x19f   :  { %v829_v21 = vpop.f32.mrf.mxu0  ;;  %1347 = vmatpush.bf16.msra.mxu2 %v10826_v3  ;;  %v7677_v3 = vld [vmem:[%s15594_s28 + $0x208] sm:$0xf0] }
 0x1a0   :  { %v830_v24 = vadd.f32 %v829_v21, %v11354_v25  ;;  %v858_v26 = vpop.f32.mrf.mxu1  ;;  %v10164_v25 = vld [vmem:[%s15594_s28 + $0x214] sm:$0xf]  ;;  %1247 = vmatpush.bf16.msra.mxu0 %v7616_v11 }
 0x1a1   :  { %v7688_v52 = vor.u32 %v10164_v25, %v7685_v8  ;;  %1378 = vmatpush.bf16.msra.mxu3 %v10870_v17 }
 0x1a2   :  { %v11543_v42 = vadd.f32 %v858_v26, %v830_v24  ;;  %v7680_v26 = vor.u32 %v10162_v6, %v7677_v3 }
 0x1a3   :  { %1275 = vmatpush.bf16.msra.mxu1 %v7688_v52  ;;  %1348 = vmatpush.bf16.msra.mxu2 %v10846_v10 }
 0x1a4   :  { %15597 = vst [vmem:[#allocation5_spill] sm:$0xff] %v11543_v42 }
 0x1a5   :  { %v887_v62 = vpop.f32.mrf.mxu2  ;;  %1379 = vmatpush.bf16.msra.mxu3 %v10890_v23 }
 0x1a6   :  { %v888_v21 = vadd.f32 %v887_v62, %v11356_v30  ;;  %v916_v13 = vpop.f32.mrf.mxu3 }
 0x1a7   :  { %v11560_v24 = vpop.f32.mrf.mxu0  ;;  %1276 = vmatpush.bf16.msra.mxu1 %v7680_v26  ;;  %1349 = vmatpush.bf16.msra.mxu2 %v10866_v16 }
 0x1a8   :  { %v11563_v33 = vadd.f32 %v916_v13, %v888_v21  ;;  %v11565_v36 = vpop.f32.mrf.mxu1 }
 0x1a9   :  { %1380 = vmatpush.bf16.msra.mxu3 %v10910_v29 }
 0x1ab   :  { %1350 = vmatpush.bf16.msra.mxu2 %v10886_v22 }
 0x1ad   :  { %v11570_v30 = vpop.f32.mrf.mxu2  ;;  %1381 = vmatpush.bf16.msra.mxu3 %v10930_v35 }
 0x1ae   :  { %15598 = vst [vmem:[#allocation6_spill] sm:$0xff] %v11570_v30  ;;  %v11572_v37 = vpop.f32.mrf.mxu3  ;;  %v661_v30 = vadd.f32 %v11334_v2, %v11332_v1 }
 0x1af   :  { %15599 = vst [vmem:[#allocation7_spill] sm:$0xff] %v11572_v37  ;;  %v834_v39 = vpop.f32.mrf.mxu0  ;;  %1351 = vmatpush.bf16.msra.mxu2 %v10906_v28 }
 0x1b0   :  { %v835_v17 = vadd.f32 %v834_v39, %v11381_v50  ;;  %v863_v7 = vpop.f32.mrf.mxu1 }
 0x1b1   :  { %1382 = vmatpush.bf16.msra.mxu3 %v10950_v41 }
 0x1b2   :  { %v11577_v25 = vadd.f32 %v863_v7, %v835_v17 }
 0x1b3   :  { %1352 = vmatpush.bf16.msra.mxu2 %v10926_v34 }
 0x1b4   :  { %15600 = vst [vmem:[#allocation8_spill] sm:$0xff] %v11577_v25 }
 0x1b5   :  { %v892_v10 = vpop.f32.mrf.mxu2  ;;  %1383 = vmatpush.bf16.msra.mxu3 %v10970_v47 }
 0x1b6   :  { %v893_v16 = vadd.f32 %v892_v10, %v11389_v56  ;;  %v921_v23 = vpop.f32.mrf.mxu3 }
 0x1b7   :  { %v11582_v8 = vpop.f32.mrf.mxu0  ;;  %1353 = vmatpush.bf16.msra.mxu2 %v10946_v40 }
 0x1b8   :  { %15601 = vst [vmem:[#allocation9_spill] sm:$0xff] %v11582_v8  ;;  %v11585_v29 = vadd.f32 %v921_v23, %v893_v16  ;;  %v11587_v50 = vpop.f32.mrf.mxu1  ;;  %v10170_v16 = vld [vmem:[%s15593_s9 + $0x60] sm:$0xff]  ;;  %v10171_v23 = vld [vmem:[%s15593_s9 + $0x68] sm:$0xff] }
 0x1b9   :  { %15602 = vst [vmem:[#allocation10_spill] sm:$0xff] %v11587_v50 }
 0x1bb   :  { %1354 = vmatpush.bf16.msra.mxu2 %v10966_v46 }
 0x1bf   :  { %v968_v22 = vpop.f32.mrf.mxu0 }
 0x1c0   :  { %v997_v28 = vpop.f32.mrf.mxu1 }
 0x1c7   :  { %v970_v35 = vpop.f32.mrf.mxu0 }
 0x1c8   :  { %v1017_v56 = vpack.c.bf16 %v970_v35, %v968_v22  ;;  %v999_v49 = vpop.f32.mrf.mxu1  ;;  %v10172_v22 = vld [vmem:[%s15593_s9 + $0x70] sm:$0xff] }
 0x1c9   :  { %v1018_v52 = vpack.c.bf16 %v999_v49, %v997_v28  ;;  %v10173_v28 = vld [vmem:[%s15593_s9 + $0x78] sm:$0xff]  ;;  %v10188_v35 = vld [vmem:[%s15594_s28 + $0x2b4] sm:$0xf] }
 0x1ca   :  { %1190 = vmatmul.bf16.vlgmr.msrb.gmra.mxu2 %v1017_v56  ;;  %1248 = vmatmul.bf16.vlgmr.msra.gmra.mxu0 %v1017_v56  ;;  %v7821_v56 = vld [vmem:[%s15594_s28 + $0x2b8] sm:$0xf0]  ;;  %v10196_v49 = vld [vmem:[%s15594_s28 + $0x2f4] sm:$0xf] }
 0x1cb   :  { %7705 = vmatmul.msk.bf16.vlgmr.msrb.gmra.mxu3 %vm549_vm0, %v1018_v52  ;;  %7709 = vmatmul.msk.bf16.vlgmr.msra.gmra.mxu1 %vm549_vm0, %v1018_v52  ;;  %v7824_v52 = vor.u32 %v10188_v35, %v7821_v56  ;;  %v7845_v35 = vld [vmem:[%s15594_s28 + $0x2e8] sm:$0xf0] }
 0x1cd   :  { %1628 = vmatpush.bf16.msrb.mxu2 %v7824_v52 }
 0x1cf   :  { %v973_v41 = vpop.f32.mrf.mxu0 }
 0x1d0   :  { %v1002_v34 = vpop.f32.mrf.mxu1 }
 0x1d7   :  { %v975_v62 = vpop.f32.mrf.mxu0 }
 0x1d8   :  { %v1019_v47 = vpack.c.bf16 %v975_v62, %v973_v41  ;;  %v1004_v53 = vpop.f32.mrf.mxu1  ;;  %v7853_v41 = vld [vmem:[%s15594_s28 + $0x2f8] sm:$0xf0]  ;;  %v7819_v62 = vld [vmem:[%s15594_s28 + $0x2b0] sm:$0xf] }
 0x1d9   :  { %v1020_v40 = vpack.c.bf16 %v1004_v53, %v1002_v34  ;;  %v7856_v34 = vor.u32 %v10196_v49, %v7853_v41  ;;  %v7851_v53 = vld [vmem:[%s15594_s28 + $0x2f0] sm:$0xf] }
 0x1da   :  { %1195 = vmatmul.bf16.gmra.mxu2 %v1019_v47  ;;  %1253 = vmatmul.bf16.gmra.mxu0 %v1019_v47  ;;  %v10189_v47 = vld [vmem:[%s15594_s28 + $0x2b4] sm:$0xf0] }
 0x1db   :  { %7706 = vmatmul.msk.bf16.gmra.mxu3 %vm549_vm0, %v1020_v40  ;;  %7710 = vmatmul.msk.bf16.gmra.mxu1 %vm549_vm0, %v1020_v40  ;;  %v7820_v40 = vor.u32 %v10189_v47, %v7819_v62  ;;  %v7803_v47 = vld [vmem:[%s15594_s28 + $0x290] sm:$0xf] }
 0x1dc   :  { %1661 = vmatpush.bf16.msrb.mxu3 %v7856_v34 }
 0x1dd   :  { %1570 = vmatpush.bf16.msrb.mxu0 %v7820_v40  ;;  %v7843_v40 = vld [vmem:[%s15594_s28 + $0x2e0] sm:$0xf] }
 0x1df   :  { %v978_v46 = vpop.f32.mrf.mxu0 }
 0x1e0   :  { %v1007_v55 = vpop.f32.mrf.mxu1 }
 0x1e7   :  { %v980_v6 = vpop.f32.mrf.mxu0 }
 0x1e8   :  { %v1021_v21 = vpack.c.bf16 %v980_v6, %v978_v46  ;;  %v1009_v13 = vpop.f32.mrf.mxu1  ;;  %v10197_v46 = vld [vmem:[%s15594_s28 + $0x2f4] sm:$0xf0]  ;;  %v7813_v6 = vld [vmem:[%s15594_s28 + $0x2a8] sm:$0xf0] }
 0x1e9   :  { %v1022_v11 = vpack.c.bf16 %v1009_v13, %v1007_v55  ;;  %v10186_v55 = vld [vmem:[%s15594_s28 + $0x2a4] sm:$0xf]  ;;  %v7852_v13 = vor.u32 %v10197_v46, %v7851_v53  ;;  %v10185_v53 = vld [vmem:[%s15594_s28 + $0x294] sm:$0xf0] }
 0x1ea   :  { %1200 = vmatmul.bf16.gmra.mxu2 %v1021_v21  ;;  %1258 = vmatmul.bf16.gmra.mxu0 %v1021_v21  ;;  %v11643_v21 = vpop.f32.mrf.mxu2  ;;  %v7804_v46 = vor.u32 %v10185_v53, %v7803_v47  ;;  %v7837_v47 = vld [vmem:[%s15594_s28 + $0x2d8] sm:$0xf0] }
 0x1eb   :  { %7707 = vmatmul.msk.bf16.gmra.mxu3 %vm549_vm0, %v1022_v11  ;;  %7711 = vmatmul.msk.bf16.gmra.mxu1 %vm549_vm0, %v1022_v11  ;;  %15603 = vst [vmem:[#allocation11_spill] sm:$0xff] %v11643_v21  ;;  %v7816_v11 = vor.u32 %v10186_v55, %v7813_v6  ;;  %v10195_v55 = vld [vmem:[%s15594_s28 + $0x2e4] sm:$0xf0]  ;;  %v10182_v6 = vld [vmem:[%s15594_s28 + $0x284] sm:$0xf] }
 0x1ec   :  { %1603 = vmatpush.bf16.msrb.mxu1 %v7852_v13  ;;  %v7797_v13 = vld [vmem:[%s15594_s28 + $0x288] sm:$0xf0] }
 0x1ed   :  { %1629 = vmatpush.bf16.msrb.mxu2 %v7816_v11 }
 0x1ef   :  { %v983_v3 = vpop.f32.mrf.mxu0 }
 0x1f0   :  { %v1012_v26 = vpop.f32.mrf.mxu1 }
 0x1f7   :  { %v985_v39 = vpop.f32.mrf.mxu0 }
 0x1f8   :  { %v1023_v17 = vpack.c.bf16 %v985_v39, %v983_v3  ;;  %v1014_v7 = vpop.f32.mrf.mxu1  ;;  %v11645_v3 = vpop.f32.mrf.mxu3 }
 0x1f9   :  { %v1024_v10 = vpack.c.bf16 %v1014_v7, %v1012_v26  ;;  %15604 = vst [vmem:[#allocation12_spill] sm:$0xff] %v11645_v3  ;;  %v10179_v3 = vld [vmem:[%s15594_s28 + $0x264] sm:$0xf0] }
 0x1fa   :  { %1205 = vmatmul.bf16.gmra.mxu2 %v1023_v17  ;;  %1263 = vmatmul.bf16.gmra.mxu0 %v1023_v17 }
 0x1fb   :  { %7708 = vmatmul.msk.bf16.gmra.mxu3 %vm549_vm0, %v1024_v10  ;;  %7712 = vmatmul.msk.bf16.gmra.mxu1 %vm549_vm0, %v1024_v10  ;;  %v7811_v10 = vld [vmem:[%s15594_s28 + $0x2a0] sm:$0xf] }
 0x20a   :  { %1355 = vmatmul.bf16.vlgmr.msra.gmra.mxu2 %v10170_v16 }
 0x20b   :  { %1384 = vmatmul.bf16.vlgmr.msra.gmra.mxu3 %v10170_v16  ;;  %v10187_v16 = vld [vmem:[%s15594_s28 + $0x2a4] sm:$0xf0] }
 0x21a   :  { %1360 = vmatmul.bf16.gmra.mxu2 %v10171_v23 }
 0x21b   :  { %1389 = vmatmul.bf16.gmra.mxu3 %v10171_v23  ;;  %v10184_v23 = vld [vmem:[%s15594_s28 + $0x294] sm:$0xf] }
 0x22a   :  { %1365 = vmatmul.bf16.gmra.mxu2 %v10172_v22 }
 0x22b   :  { %1394 = vmatmul.bf16.gmra.mxu3 %v10172_v22  ;;  %v7812_v22 = vor.u32 %v10187_v16, %v7811_v10 }
 0x22d   :  { %1571 = vmatpush.bf16.msrb.mxu0 %v7812_v22 }
 0x231   :  { %1572 = vmatpush.bf16.msrb.mxu0 %v7804_v46 }
 0x23a   :  { %1370 = vmatmul.bf16.gmra.mxu2 %v10173_v28 }
 0x23b   :  { %1399 = vmatmul.bf16.gmra.mxu3 %v10173_v28  ;;  %v7805_v28 = vld [vmem:[%s15594_s28 + $0x298] sm:$0xf0] }
 0x23c   :  { %v7808_v49 = vor.u32 %v10184_v23, %v7805_v28  ;;  %v7795_v28 = vld [vmem:[%s15594_s28 + $0x280] sm:$0xf] }
 0x23e   :  { %1630 = vmatpush.bf16.msrb.mxu2 %v7808_v49 }
 0x247   :  { %v1249_v26 = vpop.f32.mrf.mxu0 }
 0x248   :  { %v1278_v39 = vpop.f32.mrf.mxu1 }
 0x249   :  { %v1279_v17 = vadd.f32 %v1278_v39, %v1249_v26  ;;  %v7844_v26 = vor.u32 %v10195_v55, %v7843_v40  ;;  %v7800_v39 = vor.u32 %v10182_v6, %v7797_v13 }
 0x24b   :  { %v11648_v7 = vadd.f32 %v1279_v17, %v11423_v59  ;;  %v10194_v59 = vld [vmem:[%s15594_s28 + $0x2e4] sm:$0xf]  ;;  %1604 = vmatpush.bf16.msrb.mxu1 %v7844_v26  ;;  %1631 = vmatpush.bf16.msrb.mxu2 %v7800_v39  ;;  %v7787_v26 = vld [vmem:[%s15594_s28 + $0x270] sm:$0xf]  ;;  %v10181_v39 = vld [vmem:[%s15594_s28 + $0x274] sm:$0xf0] }
 0x24c   :  { %v7848_v52 = vor.u32 %v10194_v59, %v7845_v35  ;;  %v10183_v59 = vld [vmem:[%s15594_s28 + $0x284] sm:$0xf0]  ;;  %v10180_v35 = vld [vmem:[%s15594_s28 + $0x274] sm:$0xf] }
 0x24d   :  { %15605 = vst [vmem:[#allocation13_spill] sm:$0xff] %v11648_v7  ;;  %v11668_v56 = vpop.f32.mrf.mxu2  ;;  %v7796_v49 = vor.u32 %v10183_v59, %v7795_v28  ;;  %v10178_v28 = vld [vmem:[%s15594_s28 + $0x264] sm:$0xf]  ;;  %v7781_v59 = vld [vmem:[%s15594_s28 + $0x268] sm:$0xf0] }
 0x24e   :  { %v11670_v41 = vpop.f32.mrf.mxu3  ;;  %1662 = vmatpush.bf16.msrb.mxu3 %v7848_v52  ;;  %v7789_v52 = vld [vmem:[%s15594_s28 + $0x278] sm:$0xf0] }
 0x24f   :  { %v11672_v34 = vpop.f32.mrf.mxu0  ;;  %v7792_v40 = vor.u32 %v10180_v35, %v7789_v52  ;;  %1573 = vmatpush.bf16.msrb.mxu0 %v7796_v49  ;;  %v7784_v52 = vor.u32 %v10178_v28, %v7781_v59  ;;  %v10190_v28 = vld [vmem:[%s15594_s28 + $0x2c4] sm:$0xf]  ;;  %v7829_v59 = vld [vmem:[%s15594_s28 + $0x2c8] sm:$0xf0]  ;;  %v1221_v2 = vadd.f32 %v11670_v41, %v11668_v56 }
 0x250   :  { %v11674_v62 = vpop.f32.mrf.mxu1 }
 0x251   :  { %1632 = vmatpush.bf16.msrb.mxu2 %v7792_v40 }
 0x255   :  { %v11694_v11 = vpop.f32.mrf.mxu2  ;;  %1633 = vmatpush.bf16.msrb.mxu2 %v7784_v52  ;;  %v7832_v52 = vor.u32 %v10190_v28, %v7829_v59 }
 0x256   :  { %v11696_v17 = vpop.f32.mrf.mxu3 }
 0x257   :  { %v1254_v10 = vpop.f32.mrf.mxu0  ;;  %v1223_v42 = vadd.f32 %v11696_v17, %v11694_v11 }
 0x258   :  { %v1283_v16 = vpop.f32.mrf.mxu1 }
 0x259   :  { %v1284_v23 = vadd.f32 %v1283_v16, %v1254_v10  ;;  %v7835_v10 = vld [vmem:[%s15594_s28 + $0x2d0] sm:$0xf]  ;;  %v7788_v16 = vor.u32 %v10181_v39, %v7787_v26  ;;  %v7779_v39 = vld [vmem:[%s15594_s28 + $0x260] sm:$0xf] }
 0x25b   :  { %v11699_v22 = vadd.f32 %v1284_v23, %v11479_v61  ;;  %v10192_v61 = vld [vmem:[%s15594_s28 + $0x2d4] sm:$0xf]  ;;  %v10193_v23 = vld [vmem:[%s15594_s28 + $0x2d4] sm:$0xf0]  ;;  %1574 = vmatpush.bf16.msrb.mxu0 %v7788_v16  ;;  %v7780_v16 = vor.u32 %v10179_v3, %v7779_v39 }
 0x25c   :  { %v7840_v46 = vor.u32 %v10192_v61, %v7837_v47  ;;  %v7836_v49 = vor.u32 %v10193_v23, %v7835_v10  ;;  %v10176_v10 = vld [vmem:[%s15594_s28 + $0x254] sm:$0xf]  ;;  %v7773_v23 = vld [vmem:[%s15594_s28 + $0x258] sm:$0xf0] }
 0x25d   :  { %15606 = vst [vmem:[#allocation14_spill] sm:$0xff] %v11699_v22  ;;  %v11719_v53 = vpop.f32.mrf.mxu2 }
 0x25e   :  { %v11721_v55 = vpop.f32.mrf.mxu3  ;;  %1663 = vmatpush.bf16.msrb.mxu3 %v7840_v46  ;;  %1605 = vmatpush.bf16.msrb.mxu1 %v7836_v49  ;;  %v7776_v49 = vor.u32 %v10176_v10, %v7773_v23  ;;  %v10191_v10 = vld [vmem:[%s15594_s28 + $0x2c4] sm:$0xf0]  ;;  %v7765_v23 = vld [vmem:[%s15594_s28 + $0x248] sm:$0xf0] }
 0x25f   :  { %v11723_v6 = vpop.f32.mrf.mxu0  ;;  %1575 = vmatpush.bf16.msrb.mxu0 %v7780_v16  ;;  %v10174_v16 = vld [vmem:[%s15594_s28 + $0x244] sm:$0xf] }
 0x260   :  { %15607 = vst [vmem:[#allocation15_spill] sm:$0xff] %v11723_v6  ;;  %v11725_v13 = vpop.f32.mrf.mxu1  ;;  %1634 = vmatpush.bf16.msrb.mxu2 %v7776_v49  ;;  %v7768_v49 = vor.u32 %v10174_v16, %v7765_v23  ;;  %v666_v6 = vadd.f32 %v11349_v19, %v11347_v18  ;;  %v1281_v19 = vadd.f32 %v11674_v62, %v11672_v34 }
 0x261   :  { %15608 = vst [vmem:[#allocation16_spill] sm:$0xff] %v11725_v13 }
 0x262   :  { %1664 = vmatpush.bf16.msrb.mxu3 %v7832_v52  ;;  %v7763_v52 = vld [vmem:[%s15594_s28 + $0x240] sm:$0xf]  ;;  %v885_v11 = vadd.f32 %v11507_v51, %v666_v6 }
 0x264   :  { %1635 = vmatpush.bf16.msrb.mxu2 %v7768_v49 }
 0x265   :  { %v1198_v35 = vpop.f32.mrf.mxu2 }
 0x266   :  { %v1227_v61 = vpop.f32.mrf.mxu3 }
 0x267   :  { %v11745_v47 = vadd.f32 %v1227_v61, %v1198_v35  ;;  %v1259_v40 = vpop.f32.mrf.mxu0 }
 0x268   :  { %v1288_v46 = vpop.f32.mrf.mxu1 }
 0x269   :  { %v1289_v26 = vadd.f32 %v1288_v46, %v1259_v40  ;;  %v7771_v40 = vld [vmem:[%s15594_s28 + $0x250] sm:$0xf]  ;;  %v10177_v46 = vld [vmem:[%s15594_s28 + $0x254] sm:$0xf0] }
 0x26a   :  { %v7772_v39 = vor.u32 %v10177_v46, %v7771_v40  ;;  %v10175_v40 = vld [vmem:[%s15594_s28 + $0x244] sm:$0xf0] }
 0x26b   :  { %v11766_v35 = vadd.f32 %v1289_v26, %v11563_v33  ;;  %v7827_v33 = vld [vmem:[%s15594_s28 + $0x2c0] sm:$0xf]  ;;  %v7764_v46 = vor.u32 %v10175_v40, %v7763_v52 }
 0x26c   :  { %v7828_v59 = vor.u32 %v10191_v10, %v7827_v33  ;;  %1576 = vmatpush.bf16.msrb.mxu0 %v7772_v39 }
 0x26d   :  { %15609 = vst [vmem:[#allocation17_spill] sm:$0xff] %v11766_v35  ;;  %v11768_v61 = vpop.f32.mrf.mxu2 }
 0x26e   :  { %v11770_v3 = vpop.f32.mrf.mxu3  ;;  %1606 = vmatpush.bf16.msrb.mxu1 %v7828_v59 }
 0x26f   :  { %v11781_v26 = vpop.f32.mrf.mxu0  ;;  %v1231_v51 = vadd.f32 %v11770_v3, %v11768_v61 }
 0x270   :  { %15610 = vst [vmem:[#allocation18_spill] sm:$0xff] %v11781_v26  ;;  %v11792_v28 = vpop.f32.mrf.mxu1  ;;  %1577 = vmatpush.bf16.msrb.mxu0 %v7764_v46 }
 0x271   :  { %15611 = vst [vmem:[#allocation19_spill] sm:$0xff] %v11792_v28 }
 0x275   :  { %v1203_v35 = vpop.f32.mrf.mxu2 }
 0x276   :  { %v1232_v21 = vpop.f32.mrf.mxu3 }
 0x277   :  { %v11800_v50 = vadd.f32 %v1232_v21, %v1203_v35  ;;  %v1264_v37 = vpop.f32.mrf.mxu0 }
 0x278   :  { %v1293_v33 = vpop.f32.mrf.mxu1 }
 0x279   :  { %15612 = vst [vmem:[#allocation20_spill] sm:$0xff] %v11800_v50  ;;  %v1294_v10 = vadd.f32 %v1293_v33, %v1264_v37 }
 0x27b   :  { %v11803_v39 = vadd.f32 %v1294_v10, %v11585_v29 }
 0x27d   :  { %15613 = vst [vmem:[#allocation21_spill] sm:$0xff] %v11803_v39  ;;  %v11805_v16 = vpop.f32.mrf.mxu2 }
 0x27e   :  { %15614 = vst [vmem:[#allocation22_spill] sm:$0xff] %v11805_v16  ;;  %v11807_v23 = vpop.f32.mrf.mxu3 }
 0x27f   :  { %15615 = vst [vmem:[#allocation23_spill] sm:$0xff] %v11807_v23  ;;  %v608_v23 = vadd.f32 %v11345_v15, %v11343_v14  ;;  %v1226_v14 = vadd.f32 %v11721_v55, %v11719_v53  ;;  %v15623_v55 = vld [vmem:[#allocation16_spill] sm:$0xff] }
 0x281   :  { %v1302_v56 = vadd.f32 %v1226_v14, %v11462_v38  ;;  %v15622_v38 = vld [vmem:[#allocation15_spill] sm:$0xff] }
 0x282   :  { %v1286_v6 = vadd.f32 %v15623_v55, %v15622_v38  ;;  %v15641_v55 = vld [vmem:[#allocation17_spill] sm:$0xff] }
 0x285   :  { %v1208_v59 = vpop.f32.mrf.mxu2 }
 0x286   :  { %v1237_v49 = vpop.f32.mrf.mxu3 }
 0x287   :  { %v11809_v20 = vadd.f32 %v1237_v49, %v1208_v59 }
 0x289   :  { %15616 = vst [vmem:[#allocation24_spill] sm:$0xff] %v11809_v20 }
 0x28d   :  { %v1356_v52 = vpop.f32.mrf.mxu2 }
 0x28e   :  { %v1385_v40 = vpop.f32.mrf.mxu3 }
 0x295   :  { %v1358_v12 = vpop.f32.mrf.mxu2 }
 0x296   :  { %v1405_v46 = vpack.c.bf16 %v1358_v12, %v1356_v52  ;;  %v1387_v21 = vpop.f32.mrf.mxu3 }
 0x297   :  { %v1406_v35 = vpack.c.bf16 %v1387_v21, %v1385_v40 }
 0x298   :  { %1578 = vmatmul.bf16.vlgmr.msrb.gmra.mxu0 %v1405_v46  ;;  %1636 = vmatmul.bf16.vlgmr.msrb.gmra.mxu2 %v1405_v46 }
 0x299   :  { %7857 = vmatmul.msk.bf16.vlgmr.msrb.gmra.mxu1 %vm549_vm0, %v1406_v35  ;;  %7861 = vmatmul.msk.bf16.vlgmr.msrb.gmra.mxu3 %vm549_vm0, %v1406_v35 }
 0x29d   :  { %v1361_v37 = vpop.f32.mrf.mxu2 }
 0x29e   :  { %v1390_v29 = vpop.f32.mrf.mxu3 }
 0x2a5   :  { %v1363_v33 = vpop.f32.mrf.mxu2 }
 0x2a6   :  { %v1407_v10 = vpack.c.bf16 %v1363_v33, %v1361_v37  ;;  %v1392_v39 = vpop.f32.mrf.mxu3 }
 0x2a7   :  { %v1408_v25 = vpack.c.bf16 %v1392_v39, %v1390_v29 }
 0x2a8   :  { %1583 = vmatmul.bf16.gmra.mxu0 %v1407_v10  ;;  %1641 = vmatmul.bf16.gmra.mxu2 %v1407_v10  ;;  %v11827_v10 = vld [vmem:[%s15617_s27 + $0x8] sm:$0xff] }
 0x2a9   :  { %7858 = vmatmul.msk.bf16.gmra.mxu1 %vm549_vm0, %v1408_v25  ;;  %7862 = vmatmul.msk.bf16.gmra.mxu3 %vm549_vm0, %v1408_v25  ;;  %v11822_v25 = vld [vmem:[%s15617_s27] sm:$0xff]  ;;  %15619 = vst [vmem:[#allocation26_spill] sm:$0xff] %v11827_v10 }
 0x2aa   :  { %15618 = vst [vmem:[#allocation25_spill] sm:$0xff] %v11822_v25  ;;  %1743 = vmatpush.xpose.msra.mxu2 %v11822_v25  ;;  %1763 = vmatpush.xpose.msra.mxu3 %v11827_v10 }
 0x2ab   :  { %1895 = vmatpush.xpose.msra.mxu0 %v11822_v25  ;;  %1915 = vmatpush.xpose.msra.mxu1 %v11827_v10 }
 0x2ad   :  { %v1366_v12 = vpop.f32.mrf.mxu2 }
 0x2ae   :  { %v1395_v59 = vpop.f32.mrf.mxu3  ;;  %1795 = vmatpush.msrb.mxu2 %v11822_v25  ;;  %1815 = vmatpush.msrb.mxu3 %v11827_v10 }
 0x2af   :  { %1996 = vmatpush.msrb.mxu0 %v11822_v25  ;;  %2016 = vmatpush.msrb.mxu1 %v11827_v10  ;;  %v603_v10 = vadd.f32 %v11330_v0, %v11328_v63  ;;  %v613_v63 = vadd.f32 %v11360_v32, %v11358_v31  ;;  %v880_v0 = vadd.f32 %v11445_v4, %v661_v30 }
 0x2b0   :  { %v671_v31 = vadd.f32 %v11376_v44, %v11374_v43 }
 0x2b1   :  { %v822_v50 = vadd.f32 %v11421_v45, %v603_v10  ;;  %v827_v45 = vadd.f32 %v11477_v60, %v608_v23  ;;  %v832_v18 = vadd.f32 %v11560_v24, %v613_v63  ;;  %v618_v60 = vadd.f32 %v11393_v58, %v11391_v57  ;;  %v15626_v23 = vld [vmem:[#allocation23_spill] sm:$0xff] }
 0x2b2   :  { %v909_v30 = vadd.f32 %v11453_v9, %v880_v0  ;;  %v1298_v24 = vadd.f32 %v1221_v2, %v11412_v27  ;;  %v15630_v0 = vld [vmem:[#allocation18_spill] sm:$0xff]  ;;  %v15632_v2 = vld [vmem:[#allocation13_spill] sm:$0xff] }
 0x2b3   :  { %v851_v1 = vadd.f32 %v11425_v48, %v822_v50  ;;  %v856_v50 = vadd.f32 %v11481_v5, %v827_v45  ;;  %v861_v34 = vadd.f32 %v11565_v36, %v832_v18  ;;  %v15625_v36 = vld [vmem:[#allocation22_spill] sm:$0xff]  ;;  %v15631_v45 = vld [vmem:[#allocation19_spill] sm:$0xff] }
 0x2b4   :  { %v1301_v57 = vadd.f32 %v1281_v19, %v909_v30  ;;  %v15638_v30 = vld [vmem:[#allocation10_spill] sm:$0xff] }
 0x2b5   :  { %v1368_v49 = vpop.f32.mrf.mxu2  ;;  %v1300_v32 = vadd.f32 %v1223_v42, %v851_v1  ;;  %v914_v42 = vadd.f32 %v11518_v54, %v885_v11  ;;  %v1304_v5 = vadd.f32 %v11745_v47, %v856_v50  ;;  %v1291_v1 = vadd.f32 %v15631_v45, %v15630_v0 }
 0x2b6   :  { %v1409_v52 = vpack.c.bf16 %v1368_v49, %v1366_v12  ;;  %v1397_v40 = vpop.f32.mrf.mxu3  ;;  %v11831_v12 = vpop.f32.mrf.mxu0 }
 0x2b7   :  { %v1410_v46 = vpack.c.bf16 %v1397_v40, %v1395_v59  ;;  %15620 = vst [vmem:[#allocation27_spill] sm:$0xff] %v11831_v12  ;;  %v11835_v59 = vpop.f32.mrf.mxu1  ;;  %v1305_v63 = vadd.f32 %v1286_v6, %v914_v42 }
 0x2b8   :  { %1588 = vmatmul.bf16.gmra.mxu0 %v1409_v52  ;;  %1646 = vmatmul.bf16.gmra.mxu2 %v1409_v52  ;;  %15621 = vst [vmem:[#allocation28_spill] sm:$0xff] %v11835_v59 }
 0x2b9   :  { %7859 = vmatmul.msk.bf16.gmra.mxu1 %vm549_vm0, %v1410_v46  ;;  %7863 = vmatmul.msk.bf16.gmra.mxu3 %vm549_vm0, %v1410_v46 }
 0x2bd   :  { %v1371_v21 = vpop.f32.mrf.mxu2 }
 0x2be   :  { %v1400_v39 = vpop.f32.mrf.mxu3 }
 0x2c5   :  { %v1373_v35 = vpop.f32.mrf.mxu2 }
 0x2c6   :  { %v1411_v37 = vpack.c.bf16 %v1373_v35, %v1371_v21  ;;  %v1402_v29 = vpop.f32.mrf.mxu3 }
 0x2c7   :  { %v1412_v33 = vpack.c.bf16 %v1402_v29, %v1400_v39 }
 0x2c8   :  { %1593 = vmatmul.bf16.gmra.mxu0 %v1411_v37  ;;  %1651 = vmatmul.bf16.gmra.mxu2 %v1411_v37 }
 0x2c9   :  { %7860 = vmatmul.msk.bf16.gmra.mxu1 %vm549_vm0, %v1412_v33  ;;  %7864 = vmatmul.msk.bf16.gmra.mxu3 %vm549_vm0, %v1412_v33 }
 0x315   :  { %v1579_v49 = vpop.f32.mrf.mxu0 }
 0x316   :  { %v1608_v52 = vpop.f32.mrf.mxu1 }
 0x317   :  { %v1609_v4 = vadd.f32 %v1608_v52, %v1579_v49  ;;  %v1236_v49 = vadd.f32 %v15626_v23, %v15625_v36 }
 0x319   :  { %v11882_v62 = vadd.f32 %v1609_v4, %v1298_v24 }
 0x31b   :  { %v1637_v40 = vpop.f32.mrf.mxu2 }
 0x31c   :  { %v1666_v46 = vpop.f32.mrf.mxu3 }
 0x31d   :  { %v1581_v21 = vpop.f32.mrf.mxu0  ;;  %v1667_v61 = vadd.f32 %v1666_v46, %v1637_v40 }
 0x31e   :  { %v1610_v39 = vpop.f32.mrf.mxu1 }
 0x31f   :  { %v1611_v15 = vadd.f32 %v1610_v39, %v1581_v21  ;;  %v15627_v39 = vld [vmem:[#allocation6_spill] sm:$0xff] }
 0x321   :  { %v11877_v41 = vadd.f32 %v1611_v15, %v1300_v32  ;;  %v15634_v15 = vld [vmem:[#allocation8_spill] sm:$0xff] }
 0x322   :  { %v1310_v11 = vadd.f32 %v1236_v49, %v15634_v15  ;;  %v15636_v32 = vld [vmem:[#allocation4_spill] sm:$0xff] }
 0x323   :  { %v1639_v35 = vpop.f32.mrf.mxu2  ;;  %v1702_v47 = vadd.f32 %v11877_v41, %v11882_v62 }
 0x324   :  { %v1668_v37 = vpop.f32.mrf.mxu3 }
 0x325   :  { %v1584_v29 = vpop.f32.mrf.mxu0  ;;  %v1669_v58 = vadd.f32 %v1668_v37, %v1639_v35  ;;  %v15629_v37 = vld [vmem:[#allocation20_spill] sm:$0xff] }
 0x326   :  { %v1613_v33 = vpop.f32.mrf.mxu1 }
 0x327   :  { %v1614_v48 = vadd.f32 %v1613_v33, %v1584_v29  ;;  %v1308_v29 = vadd.f32 %v15629_v37, %v861_v34  ;;  %v11898_v33 = vadd.f32 %v1669_v58, %v1301_v57  ;;  %v15639_v34 = vld [vmem:[#allocation11_spill] sm:$0xff] }
 0x329   :  { %v11884_v17 = vadd.f32 %v1614_v48, %v1302_v56  ;;  %v15637_v48 = vld [vmem:[#allocation7_spill] sm:$0xff] }
 0x32b   :  { %v1642_v12 = vpop.f32.mrf.mxu2 }
 0x32c   :  { %v1671_v59 = vpop.f32.mrf.mxu3 }
 0x32d   :  { %v1586_v20 = vpop.f32.mrf.mxu0  ;;  %v1672_v54 = vadd.f32 %v1671_v59, %v1642_v12  ;;  %v1703_v12 = vadd.f32 %v1702_v47, %v11884_v17  ;;  %v15644_v47 = vld [vmem:[#allocation12_spill] sm:$0xff] }
 0x32e   :  { %v1615_v22 = vpop.f32.mrf.mxu1 }
 0x32f   :  { %v1616_v43 = vadd.f32 %v1615_v22, %v1586_v20  ;;  %v15624_v20 = vld [vmem:[#allocation5_spill] sm:$0xff] }
 0x330   :  { %v1306_v22 = vadd.f32 %v1231_v51, %v15624_v20 }
 0x331   :  { %v11893_v52 = vadd.f32 %v1616_v43, %v1304_v5  ;;  %v15640_v5 = vld [vmem:[#allocation24_spill] sm:$0xff] }
 0x333   :  { %v1644_v7 = vpop.f32.mrf.mxu2  ;;  %v1704_v18 = vadd.f32 %v1703_v12, %v11893_v52 }
 0x334   :  { %v1673_v28 = vpop.f32.mrf.mxu3 }
 0x335   :  { %v1589_v26 = vpop.f32.mrf.mxu0  ;;  %v1674_v59 = vadd.f32 %v1673_v28, %v1644_v7 }
 0x336   :  { %v1618_v25 = vpop.f32.mrf.mxu1 }
 0x337   :  { %v1619_v27 = vadd.f32 %v1618_v25, %v1589_v26  ;;  %v890_v26 = vadd.f32 %v15627_v39, %v671_v31  ;;  %v15628_v25 = vld [vmem:[#allocation9_spill] sm:$0xff]  ;;  %v15635_v31 = vld [vmem:[#allocation3_spill] sm:$0xff]  ;;  %v11922_v56 = vadd.f32 %v1674_v59, %v1305_v63 }
 0x338   :  { %v837_v35 = vadd.f32 %v15628_v25, %v618_v60  ;;  %v676_v4 = vadd.f32 %v15636_v32, %v15635_v31 }
 0x339   :  { %v11901_v40 = vadd.f32 %v1619_v27, %v1306_v22  ;;  %v919_v60 = vadd.f32 %v15637_v48, %v890_v26  ;;  %v15645_v26 = vld [vmem:[#allocation21_spill] sm:$0xff] }
 0x33a   :  { %v866_v50 = vadd.f32 %v15638_v30, %v837_v35  ;;  %v895_v57 = vadd.f32 %v15639_v34, %v676_v4  ;;  %v15646_v4 = vld [vmem:[#allocation25_spill] sm:$0xff]  ;;  %v15647_v30 = vld [vmem:[#allocation26_spill] sm:$0xff] }
 0x33b   :  { %v11844_v8 = vpop.f32.mrf.mxu2  ;;  %v1705_v43 = vadd.f32 %v1704_v18, %v11901_v40  ;;  %v1309_v58 = vadd.f32 %v1291_v1, %v919_v60 }
 0x33c   :  { %v1676_v16 = vpop.f32.mrf.mxu3  ;;  %v1312_v27 = vadd.f32 %v15640_v5, %v866_v50  ;;  %v10678_v50 = vmov 2048.0  }
 0x33d   :  { %v1591_v13 = vpop.f32.mrf.mxu0  ;;  %v1677_v19 = vadd.f32 %v1676_v16, %v11844_v8  ;;  %10662 = vrcp.f32 %v10678_v50 }
 0x33e   :  { %v1620_v10 = vpop.f32.mrf.mxu1 }
 0x33f   :  { %v1621_v21 = vadd.f32 %v1620_v10, %v1591_v13  ;;  %v11906_v13 = vadd.f32 %v1667_v61, %v15632_v2  ;;  %v15633_v10 = vld [vmem:[#allocation14_spill] sm:$0xff]  ;;  %v11931_v6 = vadd.f32 %v1677_v19, %v15641_v55 }
 0x340   :  { %v11909_v14 = vadd.f32 %v1672_v54, %v15633_v10  ;;  %v15642_v54 = vld [vmem:[#allocation27_spill] sm:$0xff] }
 0x341   :  { %v11914_v7 = vadd.f32 %v1621_v21, %v1308_v29  ;;  %v1715_v51 = vadd.f32 %v11898_v33, %v11906_v13  ;;  %v924_v21 = vadd.f32 %v15644_v47, %v895_v57 }
 0x343   :  { %v1649_v44 = vpop.f32.mrf.mxu2  ;;  %v1706_v20 = vadd.f32 %v1705_v43, %v11914_v7 }
 0x344   :  { %v1678_v9 = vpop.f32.mrf.mxu3 }
 0x345   :  { %v1594_v53 = vpop.f32.mrf.mxu0  ;;  %v1679_v42 = vadd.f32 %v1678_v9, %v1649_v44  ;;  %v15643_v44 = vld [vmem:[#allocation28_spill] sm:$0xff] }
 0x346   :  { %v1623_v3 = vpop.f32.mrf.mxu1  ;;  %v1296_v9 = vadd.f32 %v15643_v44, %v15642_v54 }
 0x347   :  { %v1624_v46 = vadd.f32 %v1623_v3, %v1594_v53  ;;  %v1716_v53 = vadd.f32 %v1715_v51, %v11909_v14  ;;  %v11937_v36 = vadd.f32 %v1679_v42, %v1309_v58  ;;  %v10663_v51 = vpop.eup %10662 }
 0x348   :  { %v1313_v12 = vadd.f32 %v1296_v9, %v924_v21  ;;  %vm1773_vm1 = vweird.f32 %v10663_v51 }
 0x349   :  { %v11925_v8 = vadd.f32 %v1624_v46, %v1310_v11  ;;  %v1717_v3 = vadd.f32 %v1716_v53, %v11922_v56 }
 0x34b   :  { %v1652_v28 = vpop.f32.mrf.mxu2  ;;  %v1707_v23 = vadd.f32 %v1706_v20, %v11925_v8  ;;  %v1718_v39 = vadd.f32 %v1717_v3, %v11931_v6 }
 0x34c   :  { %v1681_v24 = vpop.f32.mrf.mxu3 }
 0x34d   :  { %v1596_v16 = vpop.f32.mrf.mxu0  ;;  %v1682_v22 = vadd.f32 %v1681_v24, %v1652_v28  ;;  %v1719_v59 = vadd.f32 %v1718_v39, %v11937_v36  ;;  %v1769_v24 = vmul.f32 2048.0, %v10663_v51 }
 0x34e   :  { %v1625_v38 = vpop.f32.mrf.mxu1 }
 0x34f   :  { %v1626_v61 = vadd.f32 %v1625_v38, %v1596_v16  ;;  %v11945_v25 = vadd.f32 %v1682_v22, %v15645_v26  ;;  %v1770_v43 = vsub.f32 1.0, %v1769_v24 }
 0x351   :  { %v11940_v49 = vadd.f32 %v1626_v61, %v1312_v27  ;;  %v1720_v0 = vadd.f32 %v1719_v59, %v11945_v25  ;;  %v1771_v42 = vmul.f32 %v10663_v51, %v1770_v43 }
 0x353   :  { %v1708_v35 = vadd.f32 %v1707_v23, %v11940_v49  ;;  %v1654_v37 = vpop.f32.mrf.mxu2  ;;  %v1772_v16 = vadd.f32 %v10663_v51, %v1771_v42 }
 0x354   :  { %v1683_v29 = vpop.f32.mrf.mxu3 }
 0x355   :  { %v1709_v46 = vrot.slane %v1708_v35, 4  ;;  %v1684_v63 = vadd.f32 %v1683_v29, %v1654_v37  ;;  %v11955_v58 = vsel %vm1773_vm1, %v10663_v51, %v1772_v16 }
 0x357   :  { %v1710_v45 = vadd.f32 %v1709_v46, %v1708_v35  ;;  %v11950_v1 = vadd.f32 %v1684_v63, %v1313_v12 }
 0x359   :  { %v1711_v2 = vrot.slane %v1710_v45, 2  ;;  %v1721_v10 = vadd.f32 %v1720_v0, %v11950_v1 }
 0x35b   :  { %v1712_v15 = vadd.f32 %v1711_v2, %v1710_v45  ;;  %v1722_v11 = vrot.slane %v1721_v10, 4 }
 0x35d   :  { %v1713_v18 = vrot.slane %v1712_v15, 1  ;;  %v1723_v19 = vadd.f32 %v1722_v11, %v1721_v10 }
 0x35f   :  { %v1714_v28 = vadd.f32 %v1713_v18, %v1712_v15  ;;  %v1724_v31 = vrot.slane %v1723_v19, 2 }
 0x361   :  { %v1725_v32 = vadd.f32 %v1724_v31, %v1723_v19  ;;  %1744 = vmatmul.f32.vlgmr.msra.gmra.mxu2 %v1714_v28 }
 0x362   :  { %1952 = vmatpush.msra.mxu2 %v15646_v4 }
 0x363   :  { %v1726_v48 = vrot.slane %v1725_v32, 1 }
 0x365   :  { %v1727_v60 = vadd.f32 %v1726_v48, %v1725_v32 }
 0x367   :  { %1764 = vmatmul.f32.vlgmr.msra.gmra.mxu3 %v1727_v60 }
 0x368   :  { %1972 = vmatpush.msra.mxu3 %v15647_v30 }
 0x3e4   :  { %v1745_v34 = vpop.f32.mrf.mxu2 }
 0x3ea   :  { %v1765_v57 = vpop.f32.mrf.mxu3 }
 0x3eb   :  { %v1766_v5 = vadd.f32 %v1765_v57, %v1745_v34 }
 0x3ed   :  { %v1775_v27 = vmul.f32 %v11955_v58, %v1766_v5 }
 0x3ef   :  { %7865 = vmatmul.msk.f32.vlgmr.msrb.gmra.mxu2 %vm1776_vm2, %v1775_v27  ;;  %7866 = vmatmul.msk.f32.vlgmr.msrb.gmra.mxu3 %vm1776_vm2, %v1775_v27  ;;  %v1977_v27 = vld [vmem:[%s15648_s12] sm:$0x1] }
 0x472   :  { %v1797_v53 = vpop.f32.mrf.mxu2  ;;  %v1817_v38 = vpop.f32.mrf.mxu3 }
 0x473   :  { %v1820_v55 = vperm.slane %v1797_v53, 0  ;;  %v1821_v20 = vperm.slane %v1817_v38, 0 }
 0x475   :  { %v11961_v22 = vsub.f32 %v11882_v62, %v1820_v55  ;;  %v11964_v61 = vsub.f32 %v11877_v41, %v1820_v55  ;;  %v11967_v54 = vsub.f32 %v11884_v17, %v1820_v55  ;;  %v11970_v44 = vsub.f32 %v11893_v52, %v1820_v55 }
 0x476   :  { %v11973_v9 = vsub.f32 %v11906_v13, %v1821_v20  ;;  %v11976_v3 = vsub.f32 %v11898_v33, %v1821_v20  ;;  %v11983_v41 = vsub.f32 %v11901_v40, %v1820_v55  ;;  %v11988_v47 = vsub.f32 %v11909_v14, %v1821_v20 }
 0x477   :  { %v1838_v23 = vmul.f32 %v11961_v22, %v11961_v22  ;;  %v1840_v62 = vmul.f32 %v11964_v61, %v11964_v61  ;;  %v1842_v17 = vmul.f32 %v11967_v54, %v11967_v54  ;;  %v11991_v13 = vsub.f32 %v11914_v7, %v1820_v55 }
 0x478   :  { %v1844_v33 = vmul.f32 %v11970_v44, %v11970_v44  ;;  %v11996_v39 = vsub.f32 %v11922_v56, %v1821_v20  ;;  %v1839_v40 = vmul.f32 %v11973_v9, %v11973_v9  ;;  %v1841_v26 = vmul.f32 %v11976_v3, %v11976_v3 }
 0x479   :  { %v1854_v52 = vadd.f32 %v1840_v62, %v1838_v23  ;;  %v12003_v35 = vsub.f32 %v11925_v8, %v1820_v55  ;;  %v1846_v14 = vmul.f32 %v11983_v41, %v11983_v41  ;;  %v12008_v37 = vsub.f32 %v11931_v6, %v1821_v20 }
 0x47a   :  { %v1843_v56 = vmul.f32 %v11988_v47, %v11988_v47  ;;  %v1867_v29 = vadd.f32 %v1841_v26, %v1839_v40  ;;  %v12013_v12 = vsub.f32 %v11940_v49, %v1820_v55  ;;  %v1848_v59 = vmul.f32 %v11991_v13, %v11991_v13  ;;  %v1921_v40 = vld [vmem:[%s15649_s17] sm:$0x1]  ;;  %s15652_s17 = sld [smem:[#allocation37_spill]] }
 0x47b   :  { %v1855_v21 = vadd.f32 %v1854_v52, %v1842_v17  ;;  %v12018_v8 = vsub.f32 %v11937_v36, %v1821_v20  ;;  %v1845_v63 = vmul.f32 %v11996_v39, %v11996_v39  ;;  %v1850_v6 = vmul.f32 %v12003_v35, %v12003_v35 }
 0x47c   :  { %v1868_v0 = vadd.f32 %v1867_v29, %v1843_v56  ;;  %v12025_v2 = vsub.f32 %v11945_v25, %v1821_v20  ;;  %v1847_v49 = vmul.f32 %v12008_v37, %v12008_v37  ;;  %v1852_v15 = vmul.f32 %v12013_v12, %v12013_v12 }
 0x47d   :  { %v1856_v7 = vadd.f32 %v1855_v21, %v1844_v33  ;;  %v1837_v11 = vsub.f32 %v11950_v1, %v1821_v20  ;;  %v1849_v18 = vmul.f32 %v12018_v8, %v12018_v8 }
 0x47e   :  { %v1869_v10 = vadd.f32 %v1868_v0, %v1845_v63  ;;  %v1851_v31 = vmul.f32 %v12025_v2, %v12025_v2 }
 0x47f   :  { %v1857_v46 = vadd.f32 %v1856_v7, %v1846_v14  ;;  %v1853_v4 = vmul.f32 %v1837_v11, %v1837_v11 }
 0x480   :  { %v1870_v19 = vadd.f32 %v1869_v10, %v1847_v49 }
 0x481   :  { %v1858_v45 = vadd.f32 %v1857_v46, %v1848_v59 }
 0x482   :  { %v1871_v25 = vadd.f32 %v1870_v19, %v1849_v18 }
 0x483   :  { %v1859_v36 = vadd.f32 %v1858_v45, %v1850_v6 }
 0x484   :  { %v1872_v48 = vadd.f32 %v1871_v25, %v1851_v31 }
 0x485   :  { %v1860_v28 = vadd.f32 %v1859_v36, %v1852_v15 }
 0x486   :  { %v1873_v30 = vadd.f32 %v1872_v48, %v1853_v4 }
 0x487   :  { %v1861_v32 = vrot.slane %v1860_v28, 4 }
 0x488   :  { %v1874_v51 = vrot.slane %v1873_v30, 4 }
 0x489   :  { %v1862_v60 = vadd.f32 %v1861_v32, %v1860_v28 }
 0x48a   :  { %v1875_v43 = vadd.f32 %v1874_v51, %v1873_v30 }
 0x48b   :  { %v1863_v50 = vrot.slane %v1862_v60, 2 }
 0x48c   :  { %v1876_v1 = vrot.slane %v1875_v43, 2 }
 0x48d   :  { %v1864_v24 = vadd.f32 %v1863_v50, %v1862_v60 }
 0x48e   :  { %v1877_v34 = vadd.f32 %v1876_v1, %v1875_v43 }
 0x48f   :  { %v1865_v42 = vrot.slane %v1864_v24, 1 }
 0x490   :  { %v1878_v57 = vrot.slane %v1877_v34, 1 }
 0x491   :  { %v1866_v16 = vadd.f32 %v1865_v42, %v1864_v24 }
 0x492   :  { %v1879_v5 = vadd.f32 %v1878_v57, %v1877_v34 }
 0x493   :  { %1896 = vmatmul.f32.vlgmr.msra.gmra.mxu0 %v1866_v16 }
 0x494   :  { %1916 = vmatmul.f32.vlgmr.msra.gmra.mxu1 %v1879_v5 }
 0x49b   :  { %7869 = vmatmul.msk.f32.vlgmr.msrb.gmra.mxu0 %vm1776_vm2, %v1977_v27 }
 0x49c   :  { %7870 = vmatmul.msk.f32.vlgmr.msrb.gmra.mxu1 %vm1776_vm2, %v1977_v27 }
 0x510   :  { %v1897_v53 = vpop.f32.mrf.mxu0 }
 0x511   :  { %v1917_v38 = vpop.f32.mrf.mxu1 }
 0x512   :  { %v1918_v55 = vadd.f32 %v1917_v38, %v1897_v53 }
 0x514   :  { %v1920_v20 = vmul.f32 %v1918_v55, %v11955_v58 }
 0x516   :  { %v1922_v23 = vadd.f32 1e-05, %v1920_v20 }
 0x518   :  { %10664 = vrsqrt.f32 %v1922_v23  ;;  %vm1929_vm4 = vweird.f32 %v1922_v23  ;;  %v1998_v58 = vpop.f32.mrf.mxu0 }
 0x519   :  { %v2018_v56 = vpop.f32.mrf.mxu1  ;;  %v12051_v0 = vperm.slane %v1998_v58, 0 }
 0x51a   :  { %v12053_v6 = vperm.slane %v2018_v56, 0  ;;  %v7989_v56 = vld [vmem:[%s15650_s6 + $0x170] sm:$0xf] }
 0x51e   :  { %v10665_v62 = vpop.eup %10664 }
 0x51f   :  { %v1924_v17 = vmul.f32 %v10665_v62, %v1922_v23  ;;  %vm1930_vm3 = vweird.f32 %v10665_v62 }
 0x520   :  { %vm1931_vm5 = vmor %vm1929_vm4, %vm1930_vm3 }
 0x521   :  { %v1925_v52 = vmul.f32 %v10665_v62, %v1924_v17 }
 0x523   :  { %v1926_v33 = vmul.f32 0.5, %v1925_v52 }
 0x525   :  { %v1927_v21 = vsub.f32 1.5, %v1926_v33 }
 0x527   :  { %v1928_v26 = vmul.f32 %v10665_v62, %v1927_v21 }
 0x529   :  { %v1932_v14 = vsel %vm1931_vm5, %v10665_v62, %v1928_v26 }
 0x52a   :  { %v1933_v7 = vmul.f32 %v1932_v14, %v1921_v40 }
 0x52c   :  { %7867 = vmatmul.msk.f32.vlgmr.msra.gmra.mxu2 %vm1776_vm2, %v1933_v7  ;;  %7868 = vmatmul.msk.f32.vlgmr.msra.gmra.mxu3 %vm1776_vm2, %v1933_v7 }
 0x5af   :  { %v1954_v29 = vpop.f32.mrf.mxu2  ;;  %v1974_v59 = vpop.f32.mrf.mxu3 }
 0x5b0   :  { %v12047_v46 = vperm.slane %v1954_v29, 0  ;;  %v12049_v63 = vperm.slane %v1974_v59, 0 }
 0x5b2   :  { %v2035_v45 = vmul.f32 %v12047_v46, %v12003_v35  ;;  %v2037_v49 = vmul.f32 %v12047_v46, %v12013_v12  ;;  %v2036_v10 = vmul.f32 %v12049_v63, %v12025_v2  ;;  %v2038_v15 = vmul.f32 %v12049_v63, %v1837_v11 }
 0x5b3   :  { %v2031_v36 = vmul.f32 %v12047_v46, %v11983_v41  ;;  %v2033_v18 = vmul.f32 %v12047_v46, %v11991_v13  ;;  %v2032_v19 = vmul.f32 %v12049_v63, %v12008_v37  ;;  %v2034_v35 = vmul.f32 %v12049_v63, %v12018_v8 }
 0x5b4   :  { %v2053_v28 = vadd.f32 %v12051_v0, %v2035_v45  ;;  %v2055_v12 = vadd.f32 %v12051_v0, %v2037_v49  ;;  %v2054_v2 = vadd.f32 %v12053_v6, %v2036_v10  ;;  %v2056_v11 = vadd.f32 %v12053_v6, %v2038_v15  ;;  %v7991_v15 = vld [vmem:[%s15650_s6 + $0x178] sm:$0xf0] }
 0x5b5   :  { %v2049_v31 = vadd.f32 %v12051_v0, %v2031_v36  ;;  %v2051_v41 = vadd.f32 %v12051_v0, %v2033_v18  ;;  %v2050_v13 = vadd.f32 %v12053_v6, %v2032_v19  ;;  %v2052_v25 = vadd.f32 %v12053_v6, %v2034_v35  ;;  %v8053_v19 = vld [vmem:[%s15650_s6 + $0x1f0] sm:$0xf] }
 0x5b6   :  { %vm2069_vm6 = vcmp.ge.f32.partialorder %v2053_v28, 0.0  ;;  %vm2071_vm7 = vcmp.ge.f32.partialorder %v2055_v12, 0.0  ;;  %v2085_v37 = vmul.f32 0.2, %v2053_v28  ;;  %v2087_v8 = vmul.f32 0.2, %v2055_v12 }
 0x5b7   :  { %vm2070_vm8 = vcmp.ge.f32.partialorder %v2054_v2, 0.0  ;;  %vm2072_vm9 = vcmp.ge.f32.partialorder %v2056_v11, 0.0  ;;  %v2086_v32 = vmul.f32 0.2, %v2054_v2  ;;  %v2088_v4 = vmul.f32 0.2, %v2056_v11 }
 0x5b8   :  { %v2101_v48 = vsel %vm2069_vm6, %v2053_v28, %v2085_v37  ;;  %v2103_v60 = vsel %vm2071_vm7, %v2055_v12, %v2087_v8  ;;  %vm2065_vm10 = vcmp.ge.f32.partialorder %v2049_v31, 0.0  ;;  %vm2067_vm11 = vcmp.ge.f32.partialorder %v2051_v41, 0.0  ;;  %v10246_v8 = vld [vmem:[%s15650_s6 + $0x164] sm:$0xf] }
 0x5b9   :  { %v12078_v30 = vpack.c.bf16 %v2103_v60, %v2101_v48  ;;  %v2102_v50 = vsel %vm2070_vm8, %v2054_v2, %v2086_v32  ;;  %v2104_v51 = vsel %vm2072_vm9, %v2056_v11, %v2088_v4  ;;  %v2081_v24 = vmul.f32 0.2, %v2049_v31  ;;  %v8055_v11 = vld [vmem:[%s15650_s6 + $0x1f8] sm:$0xf0]  ;;  %v10198_v4 = vld [vmem:[%s15651_s29] sm:$0xff] }
 0x5ba   :  { %v12080_v43 = vpack.c.bf16 %v2104_v51, %v2102_v50  ;;  %v2083_v42 = vmul.f32 0.2, %v2051_v41  ;;  %vm2066_vm12 = vcmp.ge.f32.partialorder %v2050_v13, 0.0  ;;  %vm2068_vm13 = vcmp.ge.f32.partialorder %v2052_v25, 0.0  ;;  %v7983_v48 = vld [vmem:[%s15650_s6 + $0x168] sm:$0xf0] }
 0x5bb   :  { %2141 = vmatpush.bf16.msrb.mxu2 %v12078_v30  ;;  %2236 = vmatpush.bf16.msra.mxu0 %v12078_v30  ;;  %v2097_v1 = vsel %vm2065_vm10, %v2049_v31, %v2081_v24  ;;  %v2082_v16 = vmul.f32 0.2, %v2050_v13  ;;  %v2084_v34 = vmul.f32 0.2, %v2052_v25  ;;  %v2027_v57 = vmul.f32 %v12047_v46, %v11967_v54  ;;  %v7981_v31 = vld [vmem:[%s15650_s6 + $0x160] sm:$0xf] }
 0x5bc   :  { %2160 = vmatpush.bf16.msrb.mxu3 %v12080_v43  ;;  %2255 = vmatpush.bf16.msra.mxu1 %v12080_v43  ;;  %v2099_v5 = vsel %vm2067_vm11, %v2051_v41, %v2083_v42  ;;  %v2029_v27 = vmul.f32 %v12047_v46, %v11970_v44  ;;  %v2028_v53 = vmul.f32 %v12049_v63, %v11988_v47  ;;  %v10247_v41 = vld [vmem:[%s15650_s6 + $0x164] sm:$0xf0]  ;;  %v8045_v42 = vld [vmem:[%s15650_s6 + $0x1e0] sm:$0xf]  ;;  %vm3525_vm8 = vcmask 130048  }
 0x5bd   :  { %v12093_v38 = vpack.c.bf16 %v2099_v5, %v2097_v1  ;;  %v2098_v55 = vsel %vm2066_vm12, %v2050_v13, %v2082_v16  ;;  %v2100_v20 = vsel %vm2068_vm13, %v2052_v25, %v2084_v34  ;;  %v2045_v23 = vadd.f32 %v12051_v0, %v2027_v57  ;;  %v10232_v25 = vld [vmem:[%s15651_s29 + $0x10] sm:$0xff]  ;;  %v10263_v1 = vld [vmem:[%s15650_s6 + $0x1e4] sm:$0xf0]  ;;  %v10262_v5 = vld [vmem:[%s15650_s6 + $0x1e4] sm:$0xf] }
 0x5be   :  { %v12096_v62 = vpack.c.bf16 %v2100_v20, %v2098_v55  ;;  %v2047_v54 = vadd.f32 %v12051_v0, %v2029_v27  ;;  %v2030_v17 = vmul.f32 %v12049_v63, %v11996_v39  ;;  %v2046_v52 = vadd.f32 %v12053_v6, %v2028_v53  ;;  %v8047_v27 = vld [vmem:[%s15650_s6 + $0x1e8] sm:$0xf0]  ;;  %v7973_v53 = vld [vmem:[%s15650_s6 + $0x150] sm:$0xf]  ;;  %v10245_v55 = vld [vmem:[%s15650_s6 + $0x154] sm:$0xf0] }
 0x5bf   :  { %2142 = vmatpush.bf16.msrb.mxu2 %v12093_v38  ;;  %2237 = vmatpush.bf16.msra.mxu0 %v12093_v38  ;;  %vm2061_vm14 = vcmp.ge.f32.partialorder %v2045_v23, 0.0  ;;  %v2077_v44 = vmul.f32 0.2, %v2045_v23  ;;  %v2023_v47 = vmul.f32 %v12047_v46, %v11961_v22  ;;  %v2025_v33 = vmul.f32 %v12047_v46, %v11964_v61  ;;  %v10249_v46 = vld [vmem:[%s15650_s6 + $0x174] sm:$0xf0] }
 0x5c0   :  { %2161 = vmatpush.bf16.msrb.mxu3 %v12096_v62  ;;  %2256 = vmatpush.bf16.msra.mxu1 %v12096_v62  ;;  %vm2063_vm15 = vcmp.ge.f32.partialorder %v2047_v54, 0.0  ;;  %v2079_v39 = vmul.f32 0.2, %v2047_v54  ;;  %v2048_v21 = vadd.f32 %v12053_v6, %v2030_v17  ;;  %vm2062_vm1 = vcmp.ge.f32.partialorder %v2046_v52, 0.0  ;;  %v10244_v20 = vld [vmem:[%s15650_s6 + $0x154] sm:$0xf] }
 0x5c1   :  { %v2093_v40 = vsel %vm2061_vm14, %v2045_v23, %v2077_v44  ;;  %v2078_v26 = vmul.f32 0.2, %v2046_v52  ;;  %v2041_v14 = vadd.f32 %v12051_v0, %v2023_v47  ;;  %v2043_v7 = vadd.f32 %v12051_v0, %v2025_v33  ;;  %v10248_v0 = vld [vmem:[%s15650_s6 + $0x174] sm:$0xf]  ;;  %v7975_v23 = vld [vmem:[%s15650_s6 + $0x158] sm:$0xf0] }
 0x5c2   :  { %v2095_v58 = vsel %vm2063_vm15, %v2047_v54, %v2079_v39  ;;  %vm2064_vm2 = vcmp.ge.f32.partialorder %v2048_v21, 0.0  ;;  %v2080_v22 = vmul.f32 0.2, %v2048_v21  ;;  %v2024_v61 = vmul.f32 %v12049_v63, %v11973_v9  ;;  %v10261_v44 = vld [vmem:[%s15650_s6 + $0x1d4] sm:$0xf0] }
 0x5c3   :  { %v12118_v29 = vpack.c.bf16 %v2095_v58, %v2093_v40  ;;  %v2094_v59 = vsel %vm2062_vm1, %v2046_v52, %v2078_v26  ;;  %vm2057_vm3 = vcmp.ge.f32.partialorder %v2041_v14, 0.0  ;;  %vm2059_vm4 = vcmp.ge.f32.partialorder %v2043_v7, 0.0  ;;  %v8037_v52 = vld [vmem:[%s15650_s6 + $0x1d0] sm:$0xf]  ;;  %v10260_v39 = vld [vmem:[%s15650_s6 + $0x1d4] sm:$0xf] }
 0x5c4   :  { %v2096_v45 = vsel %vm2064_vm2, %v2048_v21, %v2080_v22  ;;  %v2073_v49 = vmul.f32 0.2, %v2041_v14  ;;  %v2075_v9 = vmul.f32 0.2, %v2043_v7  ;;  %v2026_v10 = vmul.f32 %v12049_v63, %v11976_v3  ;;  %v10265_v3 = vld [vmem:[%s15650_s6 + $0x1f4] sm:$0xf0] }
 0x5c5   :  { %2143 = vmatpush.bf16.msrb.mxu2 %v12118_v29  ;;  %v12132_v36 = vpack.c.bf16 %v2096_v45, %v2094_v59  ;;  %2238 = vmatpush.bf16.msra.mxu0 %v12118_v29  ;;  %v2042_v18 = vadd.f32 %v12053_v6, %v2024_v61  ;;  %v10264_v63 = vld [vmem:[%s15650_s6 + $0x1f4] sm:$0xf]  ;;  %v7990_v2 = vor.u32 %v10249_v46, %v7989_v56  ;;  %v8039_v21 = vld [vmem:[%s15650_s6 + $0x1d8] sm:$0xf0]  ;;  %v7965_v40 = vld [vmem:[%s15650_s6 + $0x140] sm:$0xf] }
 0x5c6   :  { %v2089_v35 = vsel %vm2057_vm3, %v2041_v14, %v2073_v49  ;;  %v2091_v28 = vsel %vm2059_vm4, %v2043_v7, %v2075_v9  ;;  %v2044_v12 = vadd.f32 %v12053_v6, %v2026_v10  ;;  %v7994_v37 = vor.u32 %v10248_v0, %v7991_v15  ;;  %v10243_v26 = vld [vmem:[%s15650_s6 + $0x144] sm:$0xf0]  ;;  %v10242_v14 = vld [vmem:[%s15650_s6 + $0x144] sm:$0xf]  ;;  %v7967_v7 = vld [vmem:[%s15650_s6 + $0x148] sm:$0xf0] }
 0x5c7   :  { %2162 = vmatpush.bf16.msrb.mxu3 %v12132_v36  ;;  %2257 = vmatpush.bf16.msra.mxu1 %v12132_v36  ;;  %v12159_v13 = vpack.c.bf16 %v2091_v28, %v2089_v35  ;;  %vm2058_vm5 = vcmp.ge.f32.partialorder %v2042_v18, 0.0  ;;  %v2074_v6 = vmul.f32 0.2, %v2042_v18  ;;  %v8054_v51 = vor.u32 %v10265_v3, %v8053_v19  ;;  %v8029_v61 = vld [vmem:[%s15650_s6 + $0x1c0] sm:$0xf]  ;;  %v10199_v19 = vld [vmem:[%s15651_s29 + $0x8] sm:$0xff] }
 0x5c8   :  { %vm2060_vm6 = vcmp.ge.f32.partialorder %v2044_v12, 0.0  ;;  %v2076_v32 = vmul.f32 0.2, %v2044_v12  ;;  %v8058_v24 = vor.u32 %v10264_v63, %v8055_v11  ;;  %v7982_v34 = vor.u32 %v10247_v41, %v7981_v31  ;;  %v10259_v56 = vld [vmem:[%s15650_s6 + $0x1c4] sm:$0xf0] }
 0x5c9   :  { %2144 = vmatpush.bf16.msrb.mxu2 %v12159_v13  ;;  %v2090_v60 = vsel %vm2058_vm5, %v2042_v18, %v2074_v6  ;;  %2239 = vmatpush.bf16.msra.mxu0 %v12159_v13  ;;  %v7986_v57 = vor.u32 %v10246_v8, %v7983_v48  ;;  %v8046_v54 = vor.u32 %v10263_v1, %v8045_v42  ;;  %v10258_v0 = vld [vmem:[%s15650_s6 + $0x1c4] sm:$0xf]  ;;  %v8031_v45 = vld [vmem:[%s15650_s6 + $0x1c8] sm:$0xf0]  ;;  %v7957_v49 = vld [vmem:[%s15650_s6 + $0x130] sm:$0xf] }
 0x5ca   :  { %v2092_v50 = vsel %vm2060_vm6, %v2044_v12, %v2076_v32  ;;  %v8050_v17 = vor.u32 %v10262_v5, %v8047_v27  ;;  %v7974_v47 = vor.u32 %v10245_v55, %v7973_v53  ;;  %v7978_v33 = vor.u32 %v10244_v20, %v7975_v23  ;;  %v10241_v9 = vld [vmem:[%s15650_s6 + $0x134] sm:$0xf0]  ;;  %v10240_v10 = vld [vmem:[%s15650_s6 + $0x134] sm:$0xf]  ;;  %v7959_v15 = vld [vmem:[%s15650_s6 + $0x138] sm:$0xf0] }
 0x5cb   :  { %v12181_v16 = vpack.c.bf16 %v2092_v50, %v2090_v60  ;;  %v8038_v58 = vor.u32 %v10261_v44, %v8037_v52  ;;  %v8042_v22 = vor.u32 %v10260_v39, %v8039_v21  ;;  %v7966_v59 = vor.u32 %v10243_v26, %v7965_v40  ;;  %v10233_v18 = vld [vmem:[%s15651_s29 + $0x18] sm:$0xff]  ;;  %v8021_v35 = vld [vmem:[%s15650_s6 + $0x1b0] sm:$0xf]  ;;  %v10256_v11 = vld [vmem:[%s15650_s6 + $0x1b4] sm:$0xf] }
 0x5cc   :  { %7895 = vmatmul.msk.bf16.vlgmr.msra.gmra.mxu0 %vm549_vm0, %v10232_v25  ;;  %7879 = vmatmul.msk.bf16.vlgmr.msrb.gmra.mxu2 %vm549_vm0, %v10198_v4  ;;  %v7970_v46 = vor.u32 %v10242_v14, %v7967_v7  ;;  %v8030_v3 = vor.u32 %v10259_v56, %v8029_v61  ;;  %v8034_v63 = vor.u32 %v10258_v0, %v8031_v45  ;;  %v10257_v28 = vld [vmem:[%s15650_s6 + $0x1b4] sm:$0xf0]  ;;  %v8023_v31 = vld [vmem:[%s15650_s6 + $0x1b8] sm:$0xf0]  ;;  %v7949_v41 = vld [vmem:[%s15650_s6 + $0x120] sm:$0xf] }
 0x5cd   :  { %2467 = vmatpush.bf16.msra.mxu2 %v7990_v2  ;;  %2505 = vmatpush.bf16.msrb.mxu0 %v7994_v37  ;;  %v7958_v12 = vor.u32 %v10241_v9, %v7957_v49  ;;  %v7962_v2 = vor.u32 %v10240_v10, %v7959_v15  ;;  %v10239_v6 = vld [vmem:[%s15650_s6 + $0x124] sm:$0xf0]  ;;  %v7951_v37 = vld [vmem:[%s15650_s6 + $0x128] sm:$0xf0]  ;;  %v8022_v8 = vor.u32 %v10257_v28, %v8021_v35  ;;  %v7941_v42 = vld [vmem:[%s15650_s6 + $0x110] sm:$0xf] }
 0x5ce   :  { %2163 = vmatpush.bf16.msrb.mxu3 %v12181_v16  ;;  %2258 = vmatpush.bf16.msra.mxu1 %v12181_v16  ;;  %v8026_v32 = vor.u32 %v10256_v11, %v8023_v31  ;;  %v10255_v48 = vld [vmem:[%s15650_s6 + $0x1a4] sm:$0xf0]  ;;  %v7950_v60 = vor.u32 %v10239_v6, %v7949_v41  ;;  %v10237_v1 = vld [vmem:[%s15650_s6 + $0x114] sm:$0xf0]  ;;  %v8005_v53 = vld [vmem:[%s15650_s6 + $0x190] sm:$0xf] }
 0x5cf   :  { %v10253_v55 = vld [vmem:[%s15650_s6 + $0x194] sm:$0xf0]  ;;  %v10252_v20 = vld [vmem:[%s15650_s6 + $0x194] sm:$0xf]  ;;  %v7942_v23 = vor.u32 %v10237_v1, %v7941_v42  ;;  %v7933_v52 = vld [vmem:[%s15650_s6 + $0x100] sm:$0xf] }
 0x5d0   :  { %v10235_v44 = vld [vmem:[%s15650_s6 + $0x104] sm:$0xf0]  ;;  %v7935_v39 = vld [vmem:[%s15650_s6 + $0x108] sm:$0xf0]  ;;  %v10215_v21 = vld [vmem:[%s15650_s6 + $0x74] sm:$0xf0]  ;;  %v8006_v14 = vor.u32 %v10253_v55, %v8005_v53 }
 0x5d1   :  { %2468 = vmatpush.bf16.msra.mxu2 %v7982_v34  ;;  %2506 = vmatpush.bf16.msrb.mxu0 %v7986_v57  ;;  %v10236_v34 = vld [vmem:[%s15650_s6 + $0x114] sm:$0xf]  ;;  %v7943_v57 = vld [vmem:[%s15650_s6 + $0x118] sm:$0xf0]  ;;  %v8181_v61 = vld [vmem:[%s15650_s6 + $0xf0] sm:$0xf]  ;;  %v7934_v56 = vor.u32 %v10235_v44, %v7933_v52 }
 0x5d2   :  { %2486 = vmatpush.bf16.msra.mxu3 %v8054_v51  ;;  %2524 = vmatpush.bf16.msrb.mxu1 %v8058_v24  ;;  %v10254_v51 = vld [vmem:[%s15650_s6 + $0x1a4] sm:$0xf]  ;;  %v8015_v24 = vld [vmem:[%s15650_s6 + $0x1a8] sm:$0xf0]  ;;  %v10214_v40 = vld [vmem:[%s15650_s6 + $0x74] sm:$0xf] }
 0x5d3   :  { %7897 = vmatmul.msk.bf16.vlgmr.msra.gmra.mxu1 %vm549_vm0, %v10232_v25  ;;  %7881 = vmatmul.msk.bf16.vlgmr.msrb.gmra.mxu3 %vm549_vm0, %v10198_v4  ;;  %v10238_v25 = vld [vmem:[%s15650_s6 + $0x124] sm:$0xf]  ;;  %v8013_v4 = vld [vmem:[%s15650_s6 + $0x1a0] sm:$0xf]  ;;  %v8018_v27 = vor.u32 %v10254_v51, %v8015_v24  ;;  %v8119_v26 = vld [vmem:[%s15650_s6 + $0x78] sm:$0xf0] }
 0x5d4   :  { %v7954_v50 = vor.u32 %v10238_v25, %v7951_v37  ;;  %v8014_v5 = vor.u32 %v10255_v48, %v8013_v4  ;;  %v10250_v0 = vld [vmem:[%s15650_s6 + $0x184] sm:$0xf]  ;;  %v7999_v45 = vld [vmem:[%s15650_s6 + $0x188] sm:$0xf0]  ;;  %v8122_v9 = vor.u32 %v10214_v40, %v8119_v26  ;;  %v10230_v10 = vld [vmem:[%s15650_s6 + $0xf4] sm:$0xf] }
 0x5d5   :  { %2469 = vmatpush.bf16.msra.mxu2 %v7974_v47  ;;  %2507 = vmatpush.bf16.msrb.mxu0 %v7978_v33  ;;  %v8117_v47 = vld [vmem:[%s15650_s6 + $0x70] sm:$0xf]  ;;  %v10234_v33 = vld [vmem:[%s15650_s6 + $0x104] sm:$0xf]  ;;  %v8183_v15 = vld [vmem:[%s15650_s6 + $0xf8] sm:$0xf0]  ;;  %v8002_v28 = vor.u32 %v10250_v0, %v7999_v45 }
 0x5d6   :  { %2487 = vmatpush.bf16.msra.mxu3 %v8046_v54  ;;  %2525 = vmatpush.bf16.msrb.mxu1 %v8050_v17  ;;  %v7946_v54 = vor.u32 %v10236_v34, %v7943_v57  ;;  %v8007_v17 = vld [vmem:[%s15650_s6 + $0x198] sm:$0xf0]  ;;  %v8118_v49 = vor.u32 %v10215_v21, %v8117_v47  ;;  %v8173_v11 = vld [vmem:[%s15650_s6 + $0xe0] sm:$0xf]  ;;  %v10229_v31 = vld [vmem:[%s15650_s6 + $0xe4] sm:$0xf0] }
 0x5d7   :  { %v8010_v7 = vor.u32 %v10252_v20, %v8007_v17  ;;  %v10228_v25 = vld [vmem:[%s15650_s6 + $0xe4] sm:$0xf]  ;;  %v8175_v37 = vld [vmem:[%s15650_s6 + $0xe8] sm:$0xf0]  ;;  %v10210_v4 = vld [vmem:[%s15650_s6 + $0x54] sm:$0xf] }
 0x5d8   :  { %v8103_v48 = vld [vmem:[%s15650_s6 + $0x58] sm:$0xf0]  ;;  %v8165_v51 = vld [vmem:[%s15650_s6 + $0xd0] sm:$0xf]  ;;  %v10227_v24 = vld [vmem:[%s15650_s6 + $0xd4] sm:$0xf0] }
 0x5d9   :  { %2470 = vmatpush.bf16.msra.mxu2 %v7966_v59  ;;  %2508 = vmatpush.bf16.msrb.mxu0 %v7970_v46  ;;  %v10231_v59 = vld [vmem:[%s15650_s6 + $0xf4] sm:$0xf0]  ;;  %v7938_v46 = vor.u32 %v10234_v33, %v7935_v39  ;;  %v8106_v1 = vor.u32 %v10210_v4, %v8103_v48  ;;  %v10226_v34 = vld [vmem:[%s15650_s6 + $0xd4] sm:$0xf]  ;;  %v8167_v57 = vld [vmem:[%s15650_s6 + $0xd8] sm:$0xf0]  ;;  %v8166_v20 = vor.u32 %v10227_v24, %v8165_v51 }
 0x5da   :  { %2488 = vmatpush.bf16.msra.mxu3 %v8038_v58  ;;  %2526 = vmatpush.bf16.msrb.mxu1 %v8042_v22  ;;  %v7997_v58 = vld [vmem:[%s15650_s6 + $0x180] sm:$0xf]  ;;  %v10251_v22 = vld [vmem:[%s15650_s6 + $0x184] sm:$0xf0]  ;;  %v10208_v53 = vld [vmem:[%s15650_s6 + $0x44] sm:$0xf] }
 0x5db   :  { %v7998_v35 = vor.u32 %v10251_v22, %v7997_v58  ;;  %v8095_v55 = vld [vmem:[%s15650_s6 + $0x48] sm:$0xf0]  ;;  %v10225_v52 = vld [vmem:[%s15650_s6 + $0xc4] sm:$0xf0]  ;;  %v10224_v47 = vld [vmem:[%s15650_s6 + $0xc4] sm:$0xf] }
 0x5dc   :  { %7896 = vmatmul.msk.bf16.gmra.mxu0 %vm549_vm0, %v10233_v18  ;;  %7880 = vmatmul.msk.bf16.gmra.mxu2 %vm549_vm0, %v10199_v19  ;;  %v8098_v44 = vor.u32 %v10208_v53, %v8095_v55  ;;  %v8159_v33 = vld [vmem:[%s15650_s6 + $0xc8] sm:$0xf0]  ;;  %v8085_v39 = vld [vmem:[%s15650_s6 + $0x30] sm:$0xf]  ;;  %v10207_v21 = vld [vmem:[%s15650_s6 + $0x34] sm:$0xf0] }
 0x5dd   :  { %2471 = vmatpush.bf16.msra.mxu2 %v7958_v12  ;;  %2509 = vmatpush.bf16.msrb.mxu0 %v7962_v2  ;;  %v8182_v12 = vor.u32 %v10231_v59, %v8181_v61  ;;  %v8186_v2 = vor.u32 %v10230_v10, %v8183_v15  ;;  %v8162_v26 = vor.u32 %v10224_v47, %v8159_v33  ;;  %v10223_v58 = vld [vmem:[%s15650_s6 + $0xb4] sm:$0xf0]  ;;  %v10206_v61 = vld [vmem:[%s15650_s6 + $0x34] sm:$0xf]  ;;  %v8151_v0 = vld [vmem:[%s15650_s6 + $0xb8] sm:$0xf0] }
 0x5de   :  { %2489 = vmatpush.bf16.msra.mxu3 %v8030_v3  ;;  %2527 = vmatpush.bf16.msrb.mxu1 %v8034_v63  ;;  %v10212_v3 = vld [vmem:[%s15650_s6 + $0x64] sm:$0xf]  ;;  %v8111_v63 = vld [vmem:[%s15650_s6 + $0x68] sm:$0xf0]  ;;  %v10222_v59 = vld [vmem:[%s15650_s6 + $0xb4] sm:$0xf] }
 0x5df   :  { %v8114_v6 = vor.u32 %v10212_v3, %v8111_v63  ;;  %v8077_v45 = vld [vmem:[%s15650_s6 + $0x20] sm:$0xf]  ;;  %v8079_v63 = vld [vmem:[%s15650_s6 + $0x28] sm:$0xf0]  ;;  %v10218_v4 = vld [vmem:[%s15650_s6 + $0x94] sm:$0xf] }
 0x5e0   :  { %v8141_v15 = vld [vmem:[%s15650_s6 + $0xa0] sm:$0xf]  ;;  %v10201_v51 = vld [vmem:[%s15650_s6 + $0x4] sm:$0xf0]  ;;  %v10216_v53 = vld [vmem:[%s15650_s6 + $0x84] sm:$0xf] }
 0x5e1   :  { %2472 = vmatpush.bf16.msra.mxu2 %v7950_v60  ;;  %2510 = vmatpush.bf16.msrb.mxu0 %v7954_v50  ;;  %v8174_v60 = vor.u32 %v10229_v31, %v8173_v11  ;;  %v8178_v50 = vor.u32 %v10228_v25, %v8175_v37  ;;  %v8069_v11 = vld [vmem:[%s15650_s6 + $0x10] sm:$0xf]  ;;  %v10203_v31 = vld [vmem:[%s15650_s6 + $0x14] sm:$0xf0]  ;;  %vm3809_vm5 = vcmask 261120  }
 0x5e2   :  { %2490 = vmatpush.bf16.msra.mxu3 %v8022_v8  ;;  %2528 = vmatpush.bf16.msrb.mxu1 %v8026_v32  ;;  %v8101_v8 = vld [vmem:[%s15650_s6 + $0x50] sm:$0xf]  ;;  %v10211_v32 = vld [vmem:[%s15650_s6 + $0x54] sm:$0xf0] }
 0x5e3   :  { %7898 = vmatmul.msk.bf16.gmra.mxu1 %vm549_vm0, %v10233_v18  ;;  %7882 = vmatmul.msk.bf16.gmra.mxu3 %vm549_vm0, %v10199_v19  ;;  %v8109_v18 = vld [vmem:[%s15650_s6 + $0x60] sm:$0xf]  ;;  %v10213_v19 = vld [vmem:[%s15650_s6 + $0x64] sm:$0xf0]  ;;  %v8102_v42 = vor.u32 %v10211_v32, %v8101_v8  ;;  %v10219_v25 = vld [vmem:[%s15650_s6 + $0x94] sm:$0xf0] }
 0x5e4   :  { %v8110_v41 = vor.u32 %v10213_v19, %v8109_v18  ;;  %v10221_v18 = vld [vmem:[%s15650_s6 + $0xa4] sm:$0xf0]  ;;  %v10204_v19 = vld [vmem:[%s15650_s6 + $0x24] sm:$0xf]  ;;  %v10202_v8 = vld [vmem:[%s15650_s6 + $0x14] sm:$0xf] }
 0x5e5   :  { %2473 = vmatpush.bf16.msra.mxu2 %v7942_v23  ;;  %2511 = vmatpush.bf16.msrb.mxu0 %v7946_v54  ;;  %v8170_v23 = vor.u32 %v10226_v34, %v8167_v57  ;;  %v8157_v54 = vld [vmem:[%s15650_s6 + $0xc0] sm:$0xf]  ;;  %v8142_v3 = vor.u32 %v10221_v18, %v8141_v15  ;;  %v8071_v32 = vld [vmem:[%s15650_s6 + $0x18] sm:$0xf0]  ;;  %v10217_v34 = vld [vmem:[%s15650_s6 + $0x84] sm:$0xf0] }
 0x5e6   :  { %2491 = vmatpush.bf16.msra.mxu3 %v8014_v5  ;;  %2529 = vmatpush.bf16.msrb.mxu1 %v8018_v27  ;;  %v8093_v5 = vld [vmem:[%s15650_s6 + $0x40] sm:$0xf]  ;;  %v10209_v27 = vld [vmem:[%s15650_s6 + $0x44] sm:$0xf0]  ;;  %v8158_v40 = vor.u32 %v10225_v52, %v8157_v54  ;;  %v8074_v48 = vor.u32 %v10202_v8, %v8071_v32  ;;  %v8293_v52 = vld [vmem:[%s15650_s6 + $0x270] sm:$0xf] }
 0x5e7   :  { %v8094_v17 = vor.u32 %v10209_v27, %v8093_v5  ;;  %v10200_v5 = vld [vmem:[%s15650_s6 + $0x4] sm:$0xf]  ;;  %v8063_v27 = vld [vmem:[%s15650_s6 + $0x8] sm:$0xf0]  ;;  %v10295_v15 = vld [vmem:[%s15650_s6 + $0x2d4] sm:$0xf0] }
 0x5e8   :  { %v8066_v55 = vor.u32 %v10200_v5, %v8063_v27  ;;  %v8269_v18 = vld [vmem:[%s15650_s6 + $0x240] sm:$0xf]  ;;  %v8325_v8 = vld [vmem:[%s15650_s6 + $0x2b0] sm:$0xf]  ;;  %v10291_v32 = vld [vmem:[%s15650_s6 + $0x2b4] sm:$0xf0] }
 0x5e9   :  { %2474 = vmatpush.bf16.msra.mxu2 %v7934_v56  ;;  %2512 = vmatpush.bf16.msrb.mxu0 %v7938_v46  ;;  %v8087_v56 = vld [vmem:[%s15650_s6 + $0x38] sm:$0xf0]  ;;  %v10271_v5 = vld [vmem:[%s15650_s6 + $0x214] sm:$0xf0] }
 0x5ea   :  { %2492 = vmatpush.bf16.msra.mxu3 %v8006_v14  ;;  %2530 = vmatpush.bf16.msrb.mxu1 %v8010_v7  ;;  %v8086_v14 = vor.u32 %v10207_v21, %v8085_v39  ;;  %v8149_v7 = vld [vmem:[%s15650_s6 + $0xb0] sm:$0xf]  ;;  %v8090_v46 = vor.u32 %v10206_v61, %v8087_v56  ;;  %v8349_v56 = vld [vmem:[%s15650_s6 + $0x2e0] sm:$0xf] }
 0x5eb   :  { %v8150_v22 = vor.u32 %v10223_v58, %v8149_v7  ;;  %v8357_v21 = vld [vmem:[%s15650_s6 + $0x2f0] sm:$0xf] }
 0x5ed   :  { %2703 = vmatpush.bf16.msrb.mxu2 %v8118_v49  ;;  %2741 = vmatpush.bf16.msra.mxu0 %v8122_v9  ;;  %v10205_v49 = vld [vmem:[%s15650_s6 + $0x24] sm:$0xf0]  ;;  %v8154_v9 = vor.u32 %v10222_v59, %v8151_v0  ;;  %v10279_v0 = vld [vmem:[%s15650_s6 + $0x254] sm:$0xf0] }
 0x5ee   :  { %2493 = vmatpush.bf16.msra.mxu3 %v7998_v35  ;;  %2531 = vmatpush.bf16.msrb.mxu1 %v8002_v28  ;;  %v8078_v10 = vor.u32 %v10205_v49, %v8077_v45  ;;  %v10220_v35 = vld [vmem:[%s15650_s6 + $0xa4] sm:$0xf]  ;;  %v8143_v28 = vld [vmem:[%s15650_s6 + $0xa8] sm:$0xf0]  ;;  %v10297_v59 = vld [vmem:[%s15650_s6 + $0x2e4] sm:$0xf0] }
 0x5ef   :  { %v8350_v49 = vor.u32 %v10297_v59, %v8349_v56 }
 0x5f1   :  { %2704 = vmatpush.bf16.msrb.mxu2 %v8110_v41  ;;  %2742 = vmatpush.bf16.msra.mxu0 %v8114_v6  ;;  %v8133_v41 = vld [vmem:[%s15650_s6 + $0x90] sm:$0xf]  ;;  %v8070_v6 = vor.u32 %v10203_v31, %v8069_v11  ;;  %v10275_v11 = vld [vmem:[%s15650_s6 + $0x234] sm:$0xf0] }
 0x5f2   :  { %2722 = vmatpush.bf16.msrb.mxu3 %v8182_v12  ;;  %2760 = vmatpush.bf16.msra.mxu1 %v8186_v2  ;;  %v8082_v12 = vor.u32 %v10204_v19, %v8079_v63  ;;  %v8146_v2 = vor.u32 %v10220_v35, %v8143_v28  ;;  %v8134_v37 = vor.u32 %v10219_v25, %v8133_v41  ;;  %v10277_v19 = vld [vmem:[%s15650_s6 + $0x244] sm:$0xf0]  ;;  %v8333_v28 = vld [vmem:[%s15650_s6 + $0x2c0] sm:$0xf] }
 0x5f3   :  { %v8270_v35 = vor.u32 %v10277_v19, %v8269_v18  ;;  %v8295_v18 = vld [vmem:[%s15650_s6 + $0x278] sm:$0xf0]  ;;  %v10298_v19 = vld [vmem:[%s15650_s6 + $0x2f4] sm:$0xf] }
 0x5f5   :  { %2705 = vmatpush.bf16.msrb.mxu2 %v8102_v42  ;;  %2743 = vmatpush.bf16.msra.mxu0 %v8106_v1  ;;  %v8125_v1 = vld [vmem:[%s15650_s6 + $0x80] sm:$0xf] }
 0x5f6   :  { %2723 = vmatpush.bf16.msrb.mxu3 %v8174_v60  ;;  %2761 = vmatpush.bf16.msra.mxu1 %v8178_v50  ;;  %v8135_v60 = vld [vmem:[%s15650_s6 + $0x98] sm:$0xf0]  ;;  %v8061_v50 = vld [vmem:[%s15650_s6] sm:$0xf]  ;;  %v8126_v57 = vor.u32 %v10217_v34, %v8125_v1  ;;  %v10289_v34 = vld [vmem:[%s15650_s6 + $0x2a4] sm:$0xf0] }
 0x5f7   :  { %v8138_v24 = vor.u32 %v10218_v4, %v8135_v60  ;;  %v8062_v42 = vor.u32 %v10201_v51, %v8061_v50  ;;  %v8253_v4 = vld [vmem:[%s15650_s6 + $0x220] sm:$0xf]  ;;  %v8326_v51 = vor.u32 %v10291_v32, %v8325_v8  ;;  %v10278_v32 = vld [vmem:[%s15650_s6 + $0x254] sm:$0xf] }
 0x5f8   :  { %v8317_v1 = vld [vmem:[%s15650_s6 + $0x2a0] sm:$0xf] }
 0x5f9   :  { %2706 = vmatpush.bf16.msrb.mxu2 %v8094_v17  ;;  %2744 = vmatpush.bf16.msra.mxu0 %v8098_v44  ;;  %v10283_v44 = vld [vmem:[%s15650_s6 + $0x274] sm:$0xf0]  ;;  %v8318_v27 = vor.u32 %v10289_v34, %v8317_v1 }
 0x5fa   :  { %2724 = vmatpush.bf16.msrb.mxu3 %v8166_v20  ;;  %2762 = vmatpush.bf16.msra.mxu1 %v8170_v23  ;;  %v8127_v20 = vld [vmem:[%s15650_s6 + $0x88] sm:$0xf0]  ;;  %v8294_v33 = vor.u32 %v10283_v44, %v8293_v52 }
 0x5fb   :  { %v8130_v23 = vor.u32 %v10216_v53, %v8127_v20  ;;  %v10287_v20 = vld [vmem:[%s15650_s6 + $0x294] sm:$0xf0] }
 0x5fd   :  { %2707 = vmatpush.bf16.msrb.mxu2 %v8086_v14  ;;  %2745 = vmatpush.bf16.msra.mxu0 %v8090_v46  ;;  %v10281_v14 = vld [vmem:[%s15650_s6 + $0x264] sm:$0xf0]  ;;  %v8277_v46 = vld [vmem:[%s15650_s6 + $0x250] sm:$0xf] }
 0x5fe   :  { %2725 = vmatpush.bf16.msrb.mxu3 %v8158_v40  ;;  %2763 = vmatpush.bf16.msra.mxu1 %v8162_v26  ;;  %v10299_v40 = vld [vmem:[%s15650_s6 + $0x2f4] sm:$0xf0]  ;;  %v8285_v26 = vld [vmem:[%s15650_s6 + $0x260] sm:$0xf] }
 0x5ff   :  { %v8358_v58 = vor.u32 %v10299_v40, %v8357_v21  ;;  %v8286_v61 = vor.u32 %v10281_v14, %v8285_v26 }
 0x601   :  { %2708 = vmatpush.bf16.msrb.mxu2 %v8078_v10  ;;  %2746 = vmatpush.bf16.msra.mxu0 %v8082_v12  ;;  %v8341_v10 = vld [vmem:[%s15650_s6 + $0x2d0] sm:$0xf]  ;;  %v10293_v12 = vld [vmem:[%s15650_s6 + $0x2c4] sm:$0xf0] }
 0x602   :  { %2726 = vmatpush.bf16.msrb.mxu3 %v8150_v22  ;;  %2764 = vmatpush.bf16.msra.mxu1 %v8154_v9  ;;  %v8278_v9 = vor.u32 %v10279_v0, %v8277_v46  ;;  %v8342_v63 = vor.u32 %v10295_v15, %v8341_v10  ;;  %v10282_v15 = vld [vmem:[%s15650_s6 + $0x274] sm:$0xf] }
 0x605   :  { %2709 = vmatpush.bf16.msrb.mxu2 %v8070_v6  ;;  %2747 = vmatpush.bf16.msra.mxu0 %v8074_v48  ;;  %v8334_v6 = vor.u32 %v10293_v12, %v8333_v28  ;;  %v10273_v48 = vld [vmem:[%s15650_s6 + $0x224] sm:$0xf0] }
 0x606   :  { %2727 = vmatpush.bf16.msrb.mxu3 %v8142_v3  ;;  %2765 = vmatpush.bf16.msra.mxu1 %v8146_v2  ;;  %v8261_v2 = vld [vmem:[%s15650_s6 + $0x230] sm:$0xf] }
 0x609   :  { %2710 = vmatpush.bf16.msrb.mxu2 %v8062_v42  ;;  %2748 = vmatpush.bf16.msra.mxu0 %v8066_v55  ;;  %v8254_v42 = vor.u32 %v10273_v48, %v8253_v4  ;;  %v8309_v55 = vld [vmem:[%s15650_s6 + $0x290] sm:$0xf]  ;;  %v8279_v4 = vld [vmem:[%s15650_s6 + $0x258] sm:$0xf0]  ;;  %v10294_v48 = vld [vmem:[%s15650_s6 + $0x2d4] sm:$0xf] }
 0x60a   :  { %2728 = vmatpush.bf16.msrb.mxu3 %v8134_v37  ;;  %2766 = vmatpush.bf16.msra.mxu1 %v8138_v24  ;;  %v8262_v37 = vor.u32 %v10275_v11, %v8261_v2  ;;  %v8310_v52 = vor.u32 %v10287_v20, %v8309_v55  ;;  %v10280_v11 = vld [vmem:[%s15650_s6 + $0x264] sm:$0xf] }
 0x60e   :  { %2729 = vmatpush.bf16.msrb.mxu3 %v8126_v57  ;;  %2767 = vmatpush.bf16.msra.mxu1 %v8130_v23  ;;  %v8245_v57 = vld [vmem:[%s15650_s6 + $0x210] sm:$0xf] }
 0x60f   :  { %v8246_v53 = vor.u32 %v10271_v5, %v8245_v57  ;;  %v10276_v5 = vld [vmem:[%s15650_s6 + $0x244] sm:$0xf] }
 0x649   :  { %v2241_v54 = vpop.f32.mrf.mxu0 }
 0x64f   :  { %v2146_v31 = vpop.f32.mrf.mxu2 }
 0x650   :  { %v2260_v17 = vpop.f32.mrf.mxu1 }
 0x651   :  { %v2243_v47 = vpop.f32.mrf.mxu0 }
 0x652   :  { %v2270_v39 = vpack.c.bf16 %v2243_v47, %v2241_v54  ;;  %v8237_v54 = vld [vmem:[%s15650_s6 + $0x200] sm:$0xf] }
 0x653   :  { %v8301_v47 = vld [vmem:[%s15650_s6 + $0x280] sm:$0xf] }
 0x654   :  { %2475 = vmatmul.bf16.vlgmr.msra.gmra.mxu2 %v2270_v39  ;;  %2513 = vmatmul.bf16.vlgmr.msrb.gmra.mxu0 %v2270_v39 }
 0x655   :  { %2804 = vmatpush.bf16.msra.mxu2 %v12078_v30  ;;  %3035 = vmatpush.bf16.msrb.mxu0 %v8294_v33  ;;  %v10285_v33 = vld [vmem:[%s15650_s6 + $0x284] sm:$0xf0] }
 0x656   :  { %v2165_v60 = vpop.f32.mrf.mxu3  ;;  %v8302_v21 = vor.u32 %v10285_v33, %v8301_v47  ;;  %v10290_v47 = vld [vmem:[%s15650_s6 + $0x2b4] sm:$0xf]  ;;  %v8327_v33 = vld [vmem:[%s15650_s6 + $0x2b8] sm:$0xf0] }
 0x657   :  { %v2148_v23 = vpop.f32.mrf.mxu2 }
 0x658   :  { %v2262_v7 = vpop.f32.mrf.mxu1  ;;  %v2175_v40 = vpack.c.bf16 %v2148_v23, %v2146_v31  ;;  %v8287_v31 = vld [vmem:[%s15650_s6 + $0x268] sm:$0xf0] }
 0x659   :  { %v2271_v22 = vpack.c.bf16 %v2262_v7, %v2260_v17  ;;  %v2246_v45 = vpop.f32.mrf.mxu0  ;;  %2805 = vmatpush.bf16.msra.mxu2 %v12093_v38  ;;  %3036 = vmatpush.bf16.msrb.mxu0 %v8286_v61  ;;  %v10269_v17 = vld [vmem:[%s15650_s6 + $0x204] sm:$0xf0]  ;;  %v8335_v23 = vld [vmem:[%s15650_s6 + $0x2c8] sm:$0xf0] }
 0x65a   :  { %v8238_v44 = vor.u32 %v10269_v17, %v8237_v54  ;;  %v10274_v54 = vld [vmem:[%s15650_s6 + $0x234] sm:$0xf]  ;;  %v8263_v17 = vld [vmem:[%s15650_s6 + $0x238] sm:$0xf0] }
 0x65b   :  { %2494 = vmatmul.bf16.vlgmr.msra.gmra.mxu3 %v2271_v22  ;;  %2532 = vmatmul.bf16.vlgmr.msrb.gmra.mxu1 %v2271_v22 }
 0x65c   :  { %2823 = vmatpush.bf16.msra.mxu3 %v12080_v43  ;;  %3054 = vmatpush.bf16.msrb.mxu1 %v8358_v58 }
 0x65d   :  { %2806 = vmatpush.bf16.msra.mxu2 %v12118_v29  ;;  %3037 = vmatpush.bf16.msrb.mxu0 %v8278_v9 }
 0x65e   :  { %v2167_v39 = vpop.f32.mrf.mxu3 }
 0x65f   :  { %v2151_v26 = vpop.f32.mrf.mxu2  ;;  %v2176_v14 = vpack.c.bf16 %v2167_v39, %v2165_v60 }
 0x660   :  { %2824 = vmatpush.bf16.msra.mxu3 %v12096_v62  ;;  %v2265_v3 = vpop.f32.mrf.mxu1  ;;  %3055 = vmatpush.bf16.msrb.mxu1 %v8350_v49 }
 0x661   :  { %v2248_v41 = vpop.f32.mrf.mxu0  ;;  %2807 = vmatpush.bf16.msra.mxu2 %v12159_v13  ;;  %3038 = vmatpush.bf16.msrb.mxu0 %v8270_v35  ;;  %v8359_v35 = vld [vmem:[%s15650_s6 + $0x2f8] sm:$0xf0] }
 0x662   :  { %v2272_v25 = vpack.c.bf16 %v2248_v41, %v2246_v45  ;;  %v8362_v28 = vor.u32 %v10298_v19, %v8359_v35  ;;  %v10296_v41 = vld [vmem:[%s15650_s6 + $0x2e4] sm:$0xf] }
 0x664   :  { %2825 = vmatpush.bf16.msra.mxu3 %v12132_v36  ;;  %3056 = vmatpush.bf16.msrb.mxu1 %v8342_v63  ;;  %v8298_v63 = vor.u32 %v10282_v15, %v8295_v18 }
 0x665   :  { %2480 = vmatmul.bf16.gmra.mxu2 %v2272_v25  ;;  %2518 = vmatmul.bf16.gmra.mxu0 %v2272_v25  ;;  %v8290_v25 = vor.u32 %v10280_v11, %v8287_v31  ;;  %v8239_v11 = vld [vmem:[%s15650_s6 + $0x208] sm:$0xf0] }
 0x666   :  { %3039 = vmatpush.bf16.msrb.mxu0 %v8262_v37  ;;  %v2170_v7 = vpop.f32.mrf.mxu3  ;;  %v8351_v37 = vld [vmem:[%s15650_s6 + $0x2e8] sm:$0xf0] }
 0x667   :  { %v2153_v58 = vpop.f32.mrf.mxu2  ;;  %v8354_v8 = vor.u32 %v10296_v41, %v8351_v37 }
 0x668   :  { %2826 = vmatpush.bf16.msra.mxu3 %v12181_v16  ;;  %v2267_v50 = vpop.f32.mrf.mxu1  ;;  %3057 = vmatpush.bf16.msrb.mxu1 %v8334_v6  ;;  %v2177_v22 = vpack.c.bf16 %v2153_v58, %v2151_v26  ;;  %v8255_v58 = vld [vmem:[%s15650_s6 + $0x228] sm:$0xf0] }
 0x669   :  { %v2273_v24 = vpack.c.bf16 %v2267_v50, %v2265_v3  ;;  %v8282_v50 = vor.u32 %v10278_v32, %v8279_v4 }
 0x66a   :  { %3040 = vmatpush.bf16.msrb.mxu0 %v8254_v42 }
 0x66b   :  { %2499 = vmatmul.bf16.gmra.mxu3 %v2273_v24  ;;  %2537 = vmatmul.bf16.gmra.mxu1 %v2273_v24 }
 0x66c   :  { %3058 = vmatpush.bf16.msrb.mxu1 %v8326_v51  ;;  %v8343_v51 = vld [vmem:[%s15650_s6 + $0x2d8] sm:$0xf0] }
 0x66d   :  { %v8346_v24 = vor.u32 %v10294_v48, %v8343_v51 }
 0x66e   :  { %3041 = vmatpush.bf16.msrb.mxu0 %v8246_v53  ;;  %v2172_v61 = vpop.f32.mrf.mxu3  ;;  %v10292_v53 = vld [vmem:[%s15650_s6 + $0x2c4] sm:$0xf] }
 0x670   :  { %3059 = vmatpush.bf16.msrb.mxu1 %v8318_v27  ;;  %v8271_v27 = vld [vmem:[%s15650_s6 + $0x248] sm:$0xf0] }
 0x671   :  { %v8274_v20 = vor.u32 %v10276_v5, %v8271_v27 }
 0x672   :  { %3042 = vmatpush.bf16.msrb.mxu0 %v8238_v44  ;;  %v8338_v44 = vor.u32 %v10292_v53, %v8335_v23 }
 0x674   :  { %3060 = vmatpush.bf16.msrb.mxu1 %v8310_v52 }
 0x675   :  { %2711 = vmatmul.bf16.vlgmr.msrb.gmra.mxu2 %v2175_v40  ;;  %2749 = vmatmul.bf16.vlgmr.msra.gmra.mxu0 %v2175_v40  ;;  %v8330_v40 = vor.u32 %v10290_v47, %v8327_v33  ;;  %v10317_v47 = vld [vmem:[%s15650_s6 + $0x374] sm:$0xf0]  ;;  %v8533_v33 = vld [vmem:[%s15650_s6 + $0x3f0] sm:$0xf] }
 0x676   :  { %3144 = vmatpush.bf16.msra.mxu0 %v12078_v30  ;;  %v2178_v30 = vpack.c.bf16 %v2172_v61, %v2170_v7  ;;  %3073 = vmatpush.bf16.msrb.mxu2 %v8298_v63  ;;  %v10272_v7 = vld [vmem:[%s15650_s6 + $0x224] sm:$0xf] }
 0x677   :  { %v8258_v61 = vor.u32 %v10272_v7, %v8255_v58  ;;  %v10316_v7 = vld [vmem:[%s15650_s6 + $0x374] sm:$0xf]  ;;  %v8471_v58 = vld [vmem:[%s15650_s6 + $0x378] sm:$0xf0] }
 0x678   :  { %3061 = vmatpush.bf16.msrb.mxu1 %v8302_v21  ;;  %v8266_v21 = vor.u32 %v10274_v54, %v8263_v17  ;;  %v10300_v54 = vld [vmem:[%s15651_s29 + $0x30] sm:$0xff]  ;;  %v10301_v17 = vld [vmem:[%s15651_s29 + $0x38] sm:$0xff] }
 0x67a   :  { %3145 = vmatpush.bf16.msra.mxu0 %v12093_v38  ;;  %v10267_v38 = vld [vmem:[%s15651_s29 + $0x28] sm:$0xff]  ;;  %3074 = vmatpush.bf16.msrb.mxu2 %v8290_v25 }
 0x67b   :  { %2730 = vmatmul.bf16.vlgmr.msrb.gmra.mxu3 %v2176_v14  ;;  %2768 = vmatmul.bf16.vlgmr.msra.gmra.mxu1 %v2176_v14 }
 0x67c   :  { %3163 = vmatpush.bf16.msra.mxu1 %v12080_v43  ;;  %v10266_v43 = vld [vmem:[%s15651_s29 + $0x20] sm:$0xff]  ;;  %3092 = vmatpush.bf16.msrb.mxu3 %v8362_v28 }
 0x67d   :  { %v10268_v28 = vld [vmem:[%s15650_s6 + $0x204] sm:$0xf] }
 0x67e   :  { %3146 = vmatpush.bf16.msra.mxu0 %v12118_v29  ;;  %3075 = vmatpush.bf16.msrb.mxu2 %v8282_v50  ;;  %v8242_v41 = vor.u32 %v10268_v28, %v8239_v11  ;;  %v10330_v28 = vld [vmem:[%s15650_s6 + $0x3e4] sm:$0xf]  ;;  %v8527_v11 = vld [vmem:[%s15650_s6 + $0x3e8] sm:$0xf0] }
 0x680   :  { %3164 = vmatpush.bf16.msra.mxu1 %v12096_v62  ;;  %3093 = vmatpush.bf16.msrb.mxu3 %v8354_v8 }
 0x682   :  { %3147 = vmatpush.bf16.msra.mxu0 %v12159_v13  ;;  %3076 = vmatpush.bf16.msrb.mxu2 %v8274_v20 }
 0x684   :  { %3165 = vmatpush.bf16.msra.mxu1 %v12132_v36  ;;  %3094 = vmatpush.bf16.msrb.mxu3 %v8346_v24 }
 0x685   :  { %2716 = vmatmul.bf16.gmra.mxu2 %v2177_v22  ;;  %2754 = vmatmul.bf16.gmra.mxu0 %v2177_v22  ;;  %v10288_v22 = vld [vmem:[%s15650_s6 + $0x2a4] sm:$0xf] }
 0x686   :  { %3077 = vmatpush.bf16.msrb.mxu2 %v8266_v21 }
 0x688   :  { %3166 = vmatpush.bf16.msra.mxu1 %v12181_v16  ;;  %3095 = vmatpush.bf16.msrb.mxu3 %v8338_v44  ;;  %v8469_v44 = vld [vmem:[%s15650_s6 + $0x370] sm:$0xf] }
 0x689   :  { %v8470_v21 = vor.u32 %v10317_v47, %v8469_v44 }
 0x68a   :  { %3078 = vmatpush.bf16.msrb.mxu2 %v8258_v61  ;;  %v8474_v61 = vor.u32 %v10316_v7, %v8471_v58  ;;  %v10309_v58 = vld [vmem:[%s15650_s6 + $0x334] sm:$0xf0] }
 0x68b   :  { %2735 = vmatmul.bf16.gmra.mxu3 %v2178_v30  ;;  %2773 = vmatmul.bf16.gmra.mxu1 %v2178_v30  ;;  %v8319_v30 = vld [vmem:[%s15650_s6 + $0x2a8] sm:$0xf0] }
 0x68c   :  { %3096 = vmatpush.bf16.msrb.mxu3 %v8330_v40  ;;  %v10333_v40 = vld [vmem:[%s15650_s6 + $0x3f4] sm:$0xf0] }
 0x695   :  { %8199 = vmatmul.msk.bf16.vlgmr.msra.gmra.mxu2 %vm549_vm0, %v10266_v43 }
 0x69b   :  { %8201 = vmatmul.msk.bf16.vlgmr.msra.gmra.mxu3 %vm549_vm0, %v10266_v43  ;;  %v10270_v43 = vld [vmem:[%s15650_s6 + $0x214] sm:$0xf] }
 0x6a5   :  { %8200 = vmatmul.msk.bf16.gmra.mxu2 %vm549_vm0, %v10267_v38 }
 0x6ab   :  { %8202 = vmatmul.msk.bf16.gmra.mxu3 %vm549_vm0, %v10267_v38  ;;  %v8247_v38 = vld [vmem:[%s15650_s6 + $0x218] sm:$0xf0] }
 0x6d1   :  { %v2514_v62 = vpop.f32.mrf.mxu0 }
 0x6d7   :  { %v12663_v13 = vpop.f32.mrf.mxu2 }
 0x6d8   :  { %v2533_v29 = vpop.f32.mrf.mxu1 }
 0x6d9   :  { %v2534_v36 = vadd.f32 %v2533_v29, %v2514_v62  ;;  %v12665_v16 = vpop.f32.mrf.mxu0  ;;  %v8322_v29 = vor.u32 %v10288_v22, %v8319_v30  ;;  %v8534_v22 = vor.u32 %v10333_v40, %v8533_v33  ;;  %v10332_v30 = vld [vmem:[%s15650_s6 + $0x3f4] sm:$0xf]  ;;  %v10326_v33 = vld [vmem:[%s15650_s6 + $0x3c4] sm:$0xf]  ;;  %v8437_v40 = vld [vmem:[%s15650_s6 + $0x330] sm:$0xf] }
 0x6db   :  { %3097 = vmatpush.bf16.msrb.mxu3 %v8322_v29  ;;  %v8461_v29 = vld [vmem:[%s15650_s6 + $0x360] sm:$0xf] }
 0x6de   :  { %v12667_v56 = vpop.f32.mrf.mxu3 }
 0x6df   :  { %v2478_v46 = vpop.f32.mrf.mxu2 }
 0x6e0   :  { %v12669_v59 = vpop.f32.mrf.mxu1 }
 0x6e2   :  { %v2519_v0 = vpop.f32.mrf.mxu0 }
 0x6e6   :  { %v2497_v45 = vpop.f32.mrf.mxu3 }
 0x6e7   :  { %v12671_v49 = vadd.f32 %v2497_v45, %v2478_v46  ;;  %v8311_v46 = vld [vmem:[%s15650_s6 + $0x298] sm:$0xf0]  ;;  %v8250_v45 = vor.u32 %v10270_v43, %v8247_v38 }
 0x6e8   :  { %v2538_v9 = vpop.f32.mrf.mxu1  ;;  %v12684_v3 = vpop.f32.mrf.mxu2  ;;  %v8535_v43 = vld [vmem:[%s15650_s6 + $0x3f8] sm:$0xf0] }
 0x6e9   :  { %v12673_v10 = vadd.f32 %v2538_v9, %v2519_v0  ;;  %3079 = vmatpush.bf16.msrb.mxu2 %v8250_v45  ;;  %v8538_v38 = vor.u32 %v10332_v30, %v8535_v43  ;;  %v8438_v30 = vor.u32 %v10309_v58, %v8437_v40  ;;  %v10302_v58 = vld [vmem:[%s15650_s6 + $0x304] sm:$0xf] }
 0x6ea   :  { %v12689_v12 = vpop.f32.mrf.mxu0 }
 0x6ed   :  { %3080 = vmatpush.bf16.msrb.mxu2 %v8242_v41  ;;  %v10313_v41 = vld [vmem:[%s15650_s6 + $0x354] sm:$0xf0] }
 0x6ee   :  { %v12691_v2 = vpop.f32.mrf.mxu3 }
 0x6f0   :  { %v12702_v6 = vpop.f32.mrf.mxu1  ;;  %v2483_v60 = vpop.f32.mrf.mxu2 }
 0x6f1   :  { %3375 = vmatpush.bf16.msra.mxu2 %v8470_v21  ;;  %v8511_v21 = vld [vmem:[%s15650_s6 + $0x3c8] sm:$0xf0] }
 0x6f2   :  { %v2750_v42 = vpop.f32.mrf.mxu0  ;;  %v8514_v7 = vor.u32 %v10326_v33, %v8511_v21  ;;  %v10303_v33 = vld [vmem:[%s15650_s6 + $0x304] sm:$0xf0]  ;;  %v8477_v21 = vld [vmem:[%s15650_s6 + $0x380] sm:$0xf] }
 0x6f3   :  { %v2751_v1 = vadd.f32 %v2750_v42, %v2534_v36  ;;  %v10286_v36 = vld [vmem:[%s15650_s6 + $0x294] sm:$0xf] }
 0x6f4   :  { %v8314_v15 = vor.u32 %v10286_v36, %v8311_v46  ;;  %v10315_v36 = vld [vmem:[%s15650_s6 + $0x364] sm:$0xf0]  ;;  %v8525_v46 = vld [vmem:[%s15650_s6 + $0x3e0] sm:$0xf] }
 0x6f5   :  { %v8462_v45 = vor.u32 %v10315_v36, %v8461_v29  ;;  %v8439_v29 = vld [vmem:[%s15650_s6 + $0x338] sm:$0xf0]  ;;  %v10324_v36 = vld [vmem:[%s15650_s6 + $0x3b4] sm:$0xf] }
 0x6f6   :  { %v2502_v34 = vpop.f32.mrf.mxu3  ;;  %3098 = vmatpush.bf16.msrb.mxu3 %v8314_v15  ;;  %v10314_v15 = vld [vmem:[%s15650_s6 + $0x364] sm:$0xf] }
 0x6f7   :  { %v2503_v57 = vadd.f32 %v2502_v34, %v2483_v60  ;;  %3376 = vmatpush.bf16.msra.mxu2 %v8462_v45 }
 0x6f8   :  { %v2769_v55 = vpop.f32.mrf.mxu1  ;;  %v12745_v39 = vpop.f32.mrf.mxu2 }
 0x6f9   :  { %v12737_v52 = vadd.f32 %v2769_v55, %v2751_v1 }
 0x6fa   :  { %v12747_v26 = vpop.f32.mrf.mxu0 }
 0x6fe   :  { %v12749_v14 = vpop.f32.mrf.mxu3 }
 0x700   :  { %v12769_v62 = vpop.f32.mrf.mxu1  ;;  %v2714_v0 = vpop.f32.mrf.mxu2 }
 0x701   :  { %v2715_v9 = vadd.f32 %v2714_v0, %v12671_v49  ;;  %v10284_v49 = vld [vmem:[%s15650_s6 + $0x284] sm:$0xf] }
 0x702   :  { %v2755_v18 = vpop.f32.mrf.mxu0 }
 0x703   :  { %v2756_v19 = vadd.f32 %v2755_v18, %v12673_v10  ;;  %v8303_v10 = vld [vmem:[%s15650_s6 + $0x288] sm:$0xf0] }
 0x704   :  { %v8306_v37 = vor.u32 %v10284_v49, %v8303_v10  ;;  %v8463_v18 = vld [vmem:[%s15650_s6 + $0x368] sm:$0xf0]  ;;  %v8453_v49 = vld [vmem:[%s15650_s6 + $0x350] sm:$0xf] }
 0x705   :  { %v8517_v10 = vld [vmem:[%s15650_s6 + $0x3d0] sm:$0xf] }
 0x706   :  { %v2733_v63 = vpop.f32.mrf.mxu3  ;;  %3099 = vmatpush.bf16.msrb.mxu3 %v8306_v37  ;;  %v10329_v37 = vld [vmem:[%s15650_s6 + $0x3d4] sm:$0xf0] }
 0x707   :  { %v12779_v35 = vadd.f32 %v2733_v63, %v2715_v9  ;;  %v10331_v9 = vld [vmem:[%s15650_s6 + $0x3e4] sm:$0xf0]  ;;  %v8466_v63 = vor.u32 %v10314_v15, %v8463_v18 }
 0x708   :  { %v2774_v31 = vpop.f32.mrf.mxu1  ;;  %v12795_v8 = vpop.f32.mrf.mxu2 }
 0x709   :  { %v12793_v25 = vadd.f32 %v2774_v31, %v2756_v19  ;;  %v8526_v19 = vor.u32 %v10331_v9, %v8525_v46  ;;  %v8530_v31 = vor.u32 %v10330_v28, %v8527_v11  ;;  %v8503_v9 = vld [vmem:[%s15650_s6 + $0x3b8] sm:$0xf0]  ;;  %v8493_v28 = vld [vmem:[%s15650_s6 + $0x3a0] sm:$0xf] }
 0x70a   :  { %3394 = vmatpush.bf16.msra.mxu3 %v8534_v22  ;;  %v12844_v0 = vpop.f32.mrf.mxu0  ;;  %v8501_v22 = vld [vmem:[%s15650_s6 + $0x3b0] sm:$0xf]  ;;  %v8506_v18 = vor.u32 %v10324_v36, %v8503_v9 }
 0x70e   :  { %v12797_v32 = vpop.f32.mrf.mxu3  ;;  %3395 = vmatpush.bf16.msra.mxu3 %v8526_v19  ;;  %v8429_v19 = vld [vmem:[%s15650_s6 + $0x320] sm:$0xf] }
 0x710   :  { %v2719_v4 = vpop.f32.mrf.mxu2 }
 0x711   :  { %v2720_v48 = vadd.f32 %v2719_v4, %v2503_v57  ;;  %v8454_v4 = vor.u32 %v10313_v41, %v8453_v49  ;;  %v10323_v49 = vld [vmem:[%s15650_s6 + $0x3a4] sm:$0xf0]  ;;  %v8431_v41 = vld [vmem:[%s15650_s6 + $0x328] sm:$0xf0] }
 0x713   :  { %3377 = vmatpush.bf16.msra.mxu2 %v8454_v4  ;;  %v10322_v4 = vld [vmem:[%s15650_s6 + $0x3a4] sm:$0xf] }
 0x716   :  { %v2738_v60 = vpop.f32.mrf.mxu3 }
 0x717   :  { %v12799_v50 = vadd.f32 %v2738_v60, %v2720_v48  ;;  %v8518_v48 = vor.u32 %v10329_v37, %v8517_v10  ;;  %v10312_v60 = vld [vmem:[%s15650_s6 + $0x354] sm:$0xf]  ;;  %v8494_v10 = vor.u32 %v10323_v49, %v8493_v28 }
 0x718   :  { %v2809_v51 = vpop.f32.mrf.mxu2 }
 0x719   :  { %3396 = vmatpush.bf16.msra.mxu3 %v8518_v48  ;;  %v8495_v48 = vld [vmem:[%s15650_s6 + $0x3a8] sm:$0xf0] }
 0x71e   :  { %v2828_v24 = vpop.f32.mrf.mxu3 }
 0x720   :  { %v2811_v42 = vpop.f32.mrf.mxu2 }
 0x721   :  { %v2838_v1 = vpack.c.bf16 %v2811_v42, %v2809_v51  ;;  %v8455_v51 = vld [vmem:[%s15650_s6 + $0x358] sm:$0xf0]  ;;  %v12882_v42 = vpop.f32.mrf.mxu1 }
 0x723   :  { %3043 = vmatmul.bf16.vlgmr.msrb.gmra.mxu0 %v2838_v1  ;;  %3081 = vmatmul.bf16.vlgmr.msrb.gmra.mxu2 %v2838_v1  ;;  %v8458_v1 = vor.u32 %v10312_v60, %v8455_v51  ;;  %v8421_v60 = vld [vmem:[%s15650_s6 + $0x310] sm:$0xf] }
 0x724   :  { %3413 = vmatpush.bf16.msrb.mxu0 %v8474_v61  ;;  %v10325_v61 = vld [vmem:[%s15650_s6 + $0x3b4] sm:$0xf0] }
 0x725   :  { %v8502_v43 = vor.u32 %v10325_v61, %v8501_v22  ;;  %v8415_v22 = vld [vmem:[%s15650_s6 + $0x308] sm:$0xf0] }
 0x726   :  { %v2830_v34 = vpop.f32.mrf.mxu3 }
 0x727   :  { %v2839_v5 = vpack.c.bf16 %v2830_v34, %v2828_v24  ;;  %v10328_v24 = vld [vmem:[%s15650_s6 + $0x3d4] sm:$0xf]  ;;  %v8519_v34 = vld [vmem:[%s15650_s6 + $0x3d8] sm:$0xf0] }
 0x728   :  { %v2814_v27 = vpop.f32.mrf.mxu2  ;;  %3414 = vmatpush.bf16.msrb.mxu0 %v8466_v63  ;;  %v10307_v63 = vld [vmem:[%s15650_s6 + $0x324] sm:$0xf0] }
 0x729   :  { %3062 = vmatmul.bf16.vlgmr.msrb.gmra.mxu1 %v2839_v5  ;;  %3100 = vmatmul.bf16.vlgmr.msrb.gmra.mxu3 %v2839_v5  ;;  %v8522_v5 = vor.u32 %v10328_v24, %v8519_v34  ;;  %v8430_v11 = vor.u32 %v10307_v63, %v8429_v19  ;;  %v8498_v24 = vor.u32 %v10322_v4, %v8495_v48  ;;  %v8485_v34 = vld [vmem:[%s15650_s6 + $0x390] sm:$0xf] }
 0x72a   :  { %3432 = vmatpush.bf16.msrb.mxu1 %v8538_v38  ;;  %v10308_v38 = vld [vmem:[%s15650_s6 + $0x334] sm:$0xf] }
 0x72b   :  { %v8442_v45 = vor.u32 %v10308_v38, %v8439_v29  ;;  %v8479_v38 = vld [vmem:[%s15650_s6 + $0x388] sm:$0xf0] }
 0x72c   :  { %3415 = vmatpush.bf16.msrb.mxu0 %v8458_v1  ;;  %v10305_v1 = vld [vmem:[%s15650_s6 + $0x314] sm:$0xf0] }
 0x72e   :  { %v2833_v53 = vpop.f32.mrf.mxu3  ;;  %3433 = vmatpush.bf16.msrb.mxu1 %v8530_v31  ;;  %v10306_v31 = vld [vmem:[%s15650_s6 + $0x324] sm:$0xf] }
 0x72f   :  { %v8434_v37 = vor.u32 %v10306_v31, %v8431_v41 }
 0x730   :  { %v2816_v55 = vpop.f32.mrf.mxu2 }
 0x731   :  { %v2840_v20 = vpack.c.bf16 %v2816_v55, %v2814_v27  ;;  %v8445_v27 = vld [vmem:[%s15650_s6 + $0x340] sm:$0xf] }
 0x732   :  { %v8509_v55 = vld [vmem:[%s15650_s6 + $0x3c0] sm:$0xf]  ;;  %3434 = vmatpush.bf16.msrb.mxu1 %v8522_v5  ;;  %v10321_v5 = vld [vmem:[%s15650_s6 + $0x394] sm:$0xf0] }
 0x733   :  { %3048 = vmatmul.bf16.gmra.mxu0 %v2840_v20  ;;  %3086 = vmatmul.bf16.gmra.mxu2 %v2840_v20 }
 0x736   :  { %v2835_v57 = vpop.f32.mrf.mxu3  ;;  %3435 = vmatpush.bf16.msrb.mxu1 %v8514_v7  ;;  %v10319_v7 = vld [vmem:[%s15650_s6 + $0x384] sm:$0xf0] }
 0x737   :  { %v2841_v23 = vpack.c.bf16 %v2835_v57, %v2833_v53  ;;  %v10311_v53 = vld [vmem:[%s15650_s6 + $0x344] sm:$0xf0]  ;;  %v8478_v61 = vor.u32 %v10319_v7, %v8477_v21 }
 0x738   :  { %v8446_v57 = vor.u32 %v10311_v53, %v8445_v27  ;;  %v10304_v27 = vld [vmem:[%s15650_s6 + $0x314] sm:$0xf]  ;;  %v8423_v53 = vld [vmem:[%s15650_s6 + $0x318] sm:$0xf0] }
 0x739   :  { %3067 = vmatmul.bf16.gmra.mxu1 %v2841_v23  ;;  %3105 = vmatmul.bf16.gmra.mxu3 %v2841_v23  ;;  %v10327_v23 = vld [vmem:[%s15650_s6 + $0x3c4] sm:$0xf0] }
 0x73a   :  { %v8510_v44 = vor.u32 %v10327_v23, %v8509_v55  ;;  %3378 = vmatpush.bf16.msra.mxu2 %v8446_v57  ;;  %3436 = vmatpush.bf16.msrb.mxu1 %v8506_v18  ;;  %v10320_v55 = vld [vmem:[%s15650_s6 + $0x394] sm:$0xf]  ;;  %v8487_v57 = vld [vmem:[%s15650_s6 + $0x398] sm:$0xf0]  ;;  %v8486_v23 = vor.u32 %v10321_v5, %v8485_v34 }
 0x73c   :  { %3397 = vmatpush.bf16.msra.mxu3 %v8510_v44  ;;  %v8490_v44 = vor.u32 %v10320_v55, %v8487_v57  ;;  %v13029_v55 = vld [vmem:[%s15652_s17 + $0x18] sm:$0xff] }
 0x73e   :  { %3379 = vmatpush.bf16.msra.mxu2 %v8438_v30  ;;  %3437 = vmatpush.bf16.msrb.mxu1 %v8498_v24  ;;  %v8418_v30 = vor.u32 %v10302_v58, %v8415_v22 }
 0x740   :  { %3398 = vmatpush.bf16.msra.mxu3 %v8502_v43  ;;  %v10318_v43 = vld [vmem:[%s15650_s6 + $0x384] sm:$0xf] }
 0x741   :  { %v8482_v36 = vor.u32 %v10318_v43, %v8479_v38  ;;  %v13041_v43 = vld [vmem:[%s15652_s17] sm:$0xff]  ;;  %v13046_v38 = vld [vmem:[%s15652_s17 + $0x8] sm:$0xff] }
 0x742   :  { %3380 = vmatpush.bf16.msra.mxu2 %v8430_v11  ;;  %3438 = vmatpush.bf16.msrb.mxu1 %v8490_v44 }
 0x743   :  { %8375 = vmatmul.msk.bf16.vlgmr.msra.gmra.mxu0 %vm549_vm0, %v10300_v54 }
 0x744   :  { %3399 = vmatpush.bf16.msra.mxu3 %v8494_v10 }
 0x746   :  { %3439 = vmatpush.bf16.msrb.mxu1 %v8482_v36  ;;  %v2541_v36 = vadd.f32 %v12702_v6, %v12689_v12  ;;  %v2501_v12 = vadd.f32 %v12691_v2, %v12684_v3 }
 0x748   :  { %3400 = vmatpush.bf16.msra.mxu3 %v8486_v23  ;;  %v2758_v6 = vadd.f32 %v12844_v0, %v2541_v36 }
 0x749   :  { %8377 = vmatmul.msk.bf16.vlgmr.msra.gmra.mxu1 %vm549_vm0, %v10300_v54  ;;  %v10310_v54 = vld [vmem:[%s15650_s6 + $0x344] sm:$0xf] }
 0x74a   :  { %3563 = vmatpush.msra.mxu1 %v13029_v55 }
 0x74c   :  { %3401 = vmatpush.bf16.msra.mxu3 %v8478_v61  ;;  %3564 = vmatpush.msra.mxu1 %v13046_v38 }
 0x750   :  { %3511 = vmatpush.xpose.msrb.mxu3 %v13029_v55 }
 0x753   :  { %8376 = vmatmul.msk.bf16.gmra.mxu0 %vm549_vm0, %v10301_v17 }
 0x754   :  { %3512 = vmatpush.xpose.msrb.mxu3 %v13046_v38 }
 0x759   :  { %8378 = vmatmul.msk.bf16.gmra.mxu1 %vm549_vm0, %v10301_v17  ;;  %v8447_v17 = vld [vmem:[%s15650_s6 + $0x348] sm:$0xf0] }
 0x75a   :  { %v8450_v47 = vor.u32 %v10310_v54, %v8447_v17  ;;  %v8426_v54 = vor.u32 %v10304_v27, %v8423_v53  ;;  %v13024_v53 = vld [vmem:[%s15652_s17 + $0x10] sm:$0xff] }
 0x75c   :  { %3416 = vmatpush.bf16.msrb.mxu0 %v8450_v47  ;;  %v8413_v47 = vld [vmem:[%s15650_s6 + $0x300] sm:$0xf] }
 0x75d   :  { %v8414_v40 = vor.u32 %v10303_v33, %v8413_v47 }
 0x760   :  { %3417 = vmatpush.bf16.msrb.mxu0 %v8442_v45 }
 0x764   :  { %3418 = vmatpush.bf16.msrb.mxu0 %v8434_v37 }
 0x768   :  { %3419 = vmatpush.bf16.msrb.mxu0 %v8426_v54 }
 0x76c   :  { %3420 = vmatpush.bf16.msrb.mxu0 %v8418_v30 }
 0x770   :  { %3543 = vmatpush.msra.mxu0 %v13024_v53 }
 0x772   :  { %3544 = vmatpush.msra.mxu0 %v13041_v43 }
 0x7a0   :  { %v3044_v20 = vpop.f32.mrf.mxu0 }
 0x7a6   :  { %v3063_v46 = vpop.f32.mrf.mxu1 }
 0x7a7   :  { %v12935_v15 = vadd.f32 %v3063_v46, %v3044_v20  ;;  %v8422_v20 = vor.u32 %v10305_v1, %v8421_v60  ;;  %v3082_v60 = vpop.f32.mrf.mxu2 }
 0x7a8   :  { %v12964_v51 = vpop.f32.mrf.mxu0 }
 0x7a9   :  { %3381 = vmatpush.bf16.msra.mxu2 %v8422_v20 }
 0x7ac   :  { %v3101_v24 = vpop.f32.mrf.mxu3 }
 0x7ad   :  { %3382 = vmatpush.bf16.msra.mxu2 %v8414_v40  ;;  %v2536_v40 = vadd.f32 %v12669_v59, %v12665_v16 }
 0x7ae   :  { %v12987_v17 = vpop.f32.mrf.mxu1 }
 0x7af   :  { %v3084_v1 = vpop.f32.mrf.mxu2  ;;  %v2753_v58 = vadd.f32 %v12747_v26, %v2536_v40  ;;  %v3102_v26 = vadd.f32 %v3101_v24, %v3082_v60 }
 0x7b0   :  { %v13013_v29 = vpop.f32.mrf.mxu0 }
 0x7b1   :  { %3491 = vmatpush.xpose.msrb.mxu2 %v13024_v53  ;;  %v2772_v16 = vadd.f32 %v12769_v62, %v2753_v58  ;;  %v3112_v2 = vadd.f32 %v3102_v26, %v12737_v52 }
 0x7b4   :  { %v3103_v34 = vpop.f32.mrf.mxu3 }
 0x7b5   :  { %v3104_v30 = vadd.f32 %v3103_v34, %v3084_v1  ;;  %3492 = vmatpush.xpose.msrb.mxu2 %v13041_v43 }
 0x7b6   :  { %v13015_v46 = vpop.f32.mrf.mxu1 }
 0x7b7   :  { %v3087_v5 = vpop.f32.mrf.mxu2 }
 0x7b8   :  { %v13017_v45 = vpop.f32.mrf.mxu0 }
 0x7bc   :  { %v3106_v27 = vpop.f32.mrf.mxu3 }
 0x7be   :  { %v13019_v9 = vpop.f32.mrf.mxu1 }
 0x7bf   :  { %v3089_v20 = vpop.f32.mrf.mxu2 }
 0x7c0   :  { %v3149_v18 = vpop.f32.mrf.mxu0 }
 0x7c4   :  { %v3108_v23 = vpop.f32.mrf.mxu3 }
 0x7c5   :  { %v3109_v3 = vadd.f32 %v3108_v23, %v3089_v20 }
 0x7c6   :  { %v3168_v19 = vpop.f32.mrf.mxu1 }
 0x7c8   :  { %v3151_v63 = vpop.f32.mrf.mxu0 }
 0x7c9   :  { %v3178_v28 = vpack.c.bf16 %v3151_v63, %v3149_v18  ;;  %v3107_v18 = vadd.f32 %v3106_v27, %v3087_v5  ;;  %v2496_v63 = vadd.f32 %v12667_v56, %v12663_v13  ;;  %v2718_v13 = vadd.f32 %v12795_v8, %v2501_v12 }
 0x7ca   :  { %v3066_v56 = vadd.f32 %v12987_v17, %v12964_v51  ;;  %v3071_v27 = vadd.f32 %v13019_v9, %v13017_v45 }
 0x7cb   :  { %3383 = vmatmul.bf16.vlgmr.msra.gmra.mxu2 %v3178_v28  ;;  %3421 = vmatmul.bf16.vlgmr.msrb.gmra.mxu0 %v3178_v28  ;;  %v3114_v28 = vadd.f32 %v3104_v30, %v2772_v16  ;;  %v3116_v0 = vadd.f32 %v3107_v18, %v12793_v25 }
 0x7cc   :  { %3619 = vmatpush.xpose.msra.mxu2 %v13024_v53  ;;  %3676 = vmatpush.msrb.mxu0 %v13024_v53 }
 0x7ce   :  { %v3170_v11 = vpop.f32.mrf.mxu1  ;;  %3677 = vmatpush.msrb.mxu0 %v13041_v43 }
 0x7cf   :  { %v3179_v49 = vpack.c.bf16 %v3170_v11, %v3168_v19 }
 0x7d0   :  { %v3154_v31 = vpop.f32.mrf.mxu0  ;;  %3620 = vmatpush.xpose.msra.mxu2 %v13041_v43 }
 0x7d1   :  { %3402 = vmatmul.bf16.vlgmr.msra.gmra.mxu3 %v3179_v49  ;;  %3440 = vmatmul.bf16.vlgmr.msrb.gmra.mxu1 %v3179_v49 }
 0x7d2   :  { %3639 = vmatpush.xpose.msra.mxu3 %v13029_v55  ;;  %3696 = vmatpush.msrb.mxu1 %v13029_v55 }
 0x7d4   :  { %3697 = vmatpush.msrb.mxu1 %v13046_v38 }
 0x7d6   :  { %v3173_v41 = vpop.f32.mrf.mxu1  ;;  %3640 = vmatpush.xpose.msra.mxu3 %v13046_v38 }
 0x7d8   :  { %v3156_v10 = vpop.f32.mrf.mxu0 }
 0x7d9   :  { %v3180_v37 = vpack.c.bf16 %v3156_v10, %v3154_v31  ;;  %v2713_v31 = vadd.f32 %v12745_v39, %v2496_v63  ;;  %v2777_v10 = vadd.f32 %v12882_v42, %v2758_v6  ;;  %v3069_v39 = vadd.f32 %v13015_v46, %v13013_v29 }
 0x7da   :  { %v3113_v42 = vadd.f32 %v3066_v56, %v12779_v35 }
 0x7db   :  { %3388 = vmatmul.bf16.gmra.mxu2 %v3180_v37  ;;  %3426 = vmatmul.bf16.gmra.mxu0 %v3180_v37  ;;  %v2732_v17 = vadd.f32 %v12749_v14, %v2713_v31 }
 0x7dd   :  { %v3111_v34 = vadd.f32 %v12935_v15, %v2732_v17 }
 0x7de   :  { %v3175_v4 = vpop.f32.mrf.mxu1 }
 0x7df   :  { %v3181_v48 = vpack.c.bf16 %v3175_v4, %v3173_v41  ;;  %v2737_v4 = vadd.f32 %v12797_v32, %v2718_v13 }
 0x7e1   :  { %3407 = vmatmul.bf16.gmra.mxu3 %v3181_v48  ;;  %3445 = vmatmul.bf16.gmra.mxu1 %v3181_v48  ;;  %v3118_v48 = vadd.f32 %v3109_v3, %v2777_v10  ;;  %v3115_v5 = vadd.f32 %v3069_v39, %v2737_v4 }
 0x848   :  { %v3422_v57 = vpop.f32.mrf.mxu0 }
 0x84e   :  { %v3441_v54 = vpop.f32.mrf.mxu1  ;;  %v3384_v44 = vpop.f32.mrf.mxu2 }
 0x84f   :  { %v3442_v11 = vadd.f32 %v3441_v54, %v3422_v57 }
 0x850   :  { %v3424_v47 = vpop.f32.mrf.mxu0 }
 0x851   :  { %v13079_v52 = vadd.f32 %v3442_v11, %v3112_v2 }
 0x854   :  { %v3403_v33 = vpop.f32.mrf.mxu3 }
 0x855   :  { %v3404_v29 = vadd.f32 %v3403_v33, %v3384_v44 }
 0x856   :  { %v3443_v21 = vpop.f32.mrf.mxu1  ;;  %v3386_v7 = vpop.f32.mrf.mxu2 }
 0x857   :  { %v3444_v19 = vadd.f32 %v3443_v21, %v3424_v47  ;;  %v3451_v35 = vadd.f32 %v3404_v29, %v3111_v34  ;;  %v3117_v47 = vadd.f32 %v3071_v27, %v12799_v50 }
 0x858   :  { %v3427_v22 = vpop.f32.mrf.mxu0 }
 0x859   :  { %v13070_v41 = vadd.f32 %v3444_v19, %v3114_v28  ;;  %v10679_v19 = vmov 512.0  }
 0x85a   :  { %10666 = vrcp.f32 %v10679_v19 }
 0x85b   :  { %v3468_v46 = vadd.f32 %v13070_v41, %v13079_v52 }
 0x85c   :  { %v3405_v61 = vpop.f32.mrf.mxu3 }
 0x85d   :  { %v3406_v25 = vadd.f32 %v3405_v61, %v3386_v7 }
 0x85e   :  { %v3446_v59 = vpop.f32.mrf.mxu1  ;;  %v3389_v62 = vpop.f32.mrf.mxu2 }
 0x85f   :  { %v3447_v49 = vadd.f32 %v3446_v59, %v3427_v22  ;;  %v3453_v20 = vadd.f32 %v3406_v25, %v3113_v42 }
 0x860   :  { %v3429_v37 = vpop.f32.mrf.mxu0  ;;  %v10667_v63 = vpop.eup %10666 }
 0x861   :  { %v13081_v51 = vadd.f32 %v3447_v49, %v3116_v0  ;;  %v3459_v33 = vadd.f32 %v3453_v20, %v3451_v35  ;;  %v3518_v12 = vmul.f32 512.0, %v10667_v63  ;;  %vm3522_vm7 = vweird.f32 %v10667_v63 }
 0x863   :  { %v3469_v14 = vadd.f32 %v3468_v46, %v13081_v51  ;;  %v3519_v6 = vsub.f32 1.0, %v3518_v12 }
 0x864   :  { %v3408_v8 = vpop.f32.mrf.mxu3 }
 0x865   :  { %v3409_v24 = vadd.f32 %v3408_v8, %v3389_v62  ;;  %v3520_v62 = vmul.f32 %v10667_v63, %v3519_v6 }
 0x866   :  { %v3448_v60 = vpop.f32.mrf.mxu1  ;;  %v3391_v57 = vpop.f32.mrf.mxu2 }
 0x867   :  { %v3449_v1 = vadd.f32 %v3448_v60, %v3429_v37  ;;  %v3455_v23 = vadd.f32 %v3409_v24, %v3115_v5  ;;  %v3521_v28 = vadd.f32 %v10667_v63, %v3520_v62 }
 0x869   :  { %v3458_v32 = vadd.f32 %v3449_v1, %v3118_v48  ;;  %v3460_v7 = vadd.f32 %v3459_v33, %v3455_v23 }
 0x86b   :  { %v3470_v54 = vadd.f32 %v3469_v14, %v3458_v32 }
 0x86c   :  { %v3410_v44 = vpop.f32.mrf.mxu3 }
 0x86d   :  { %v3471_v21 = vrot.slane %v3470_v54, 4  ;;  %v3411_v40 = vadd.f32 %v3410_v44, %v3391_v57 }
 0x86f   :  { %v3472_v15 = vadd.f32 %v3471_v21, %v3470_v54  ;;  %v3457_v58 = vadd.f32 %v3411_v40, %v3117_v47  ;;  %v3702_v40 = vld [vmem:[%s15653_s10] sm:$0x1] }
 0x871   :  { %v3473_v22 = vrot.slane %v3472_v15, 2  ;;  %v3461_v61 = vadd.f32 %v3460_v7, %v3457_v58 }
 0x873   :  { %v3474_v45 = vadd.f32 %v3473_v22, %v3472_v15  ;;  %v3462_v9 = vrot.slane %v3461_v61, 4 }
 0x875   :  { %v3475_v30 = vrot.slane %v3474_v45, 1  ;;  %v3463_v36 = vadd.f32 %v3462_v9, %v3461_v61 }
 0x877   :  { %v3476_v16 = vadd.f32 %v3475_v30, %v3474_v45  ;;  %v3464_v59 = vrot.slane %v3463_v36, 2 }
 0x879   :  { %v3465_v26 = vadd.f32 %v3464_v59, %v3463_v36  ;;  %3513 = vmatmul.f32.vlgmr.msrb.gmra.mxu3 %v3476_v16  ;;  %v3646_v59 = vld [vmem:[%s15654_s30] sm:$0x1] }
 0x87a   :  { %3740 = vmatpush.msrb.mxu3 %v13029_v55  ;;  %v3523_v55 = vsel %vm3522_vm7, %v10667_v63, %v3521_v28 }
 0x87b   :  { %v3466_v18 = vrot.slane %v3465_v26, 1 }
 0x87c   :  { %3741 = vmatpush.msrb.mxu3 %v13046_v38 }
 0x87d   :  { %v3467_v50 = vadd.f32 %v3466_v18, %v3465_v26 }
 0x87f   :  { %3493 = vmatmul.f32.vlgmr.msrb.gmra.mxu2 %v3467_v50 }
 0x880   :  { %3720 = vmatpush.msrb.mxu2 %v13024_v53 }
 0x882   :  { %3721 = vmatpush.msrb.mxu2 %v13041_v43 }
 0x8fc   :  { %v3514_v11 = vpop.f32.mrf.mxu3 }
 0x902   :  { %v3494_v49 = vpop.f32.mrf.mxu2 }
 0x903   :  { %v3515_v31 = vadd.f32 %v3514_v11, %v3494_v49 }
 0x905   :  { %v3524_v38 = vmul.f32 %v3523_v55, %v3515_v31 }
 0x907   :  { %8539 = vmatmul.msk.f32.vlgmr.msra.gmra.mxu0 %vm3525_vm8, %v3524_v38  ;;  %8540 = vmatmul.msk.f32.vlgmr.msra.gmra.mxu1 %vm3525_vm8, %v3524_v38 }
 0x984   :  { %v3546_v53 = vpop.f32.mrf.mxu0  ;;  %v3566_v43 = vpop.f32.mrf.mxu1 }
 0x985   :  { %v3569_v13 = vperm.slane %v3546_v53, 0  ;;  %v3570_v56 = vperm.slane %v3566_v43, 0 }
 0x987   :  { %v13099_v3 = vsub.f32 %v3451_v35, %v3569_v13  ;;  %v13101_v2 = vsub.f32 %v3453_v20, %v3569_v13  ;;  %v13103_v0 = vsub.f32 %v3455_v23, %v3569_v13  ;;  %v13106_v10 = vsub.f32 %v13079_v52, %v3570_v56 }
 0x988   :  { %v13109_v39 = vsub.f32 %v13070_v41, %v3570_v56  ;;  %v13112_v8 = vsub.f32 %v13081_v51, %v3570_v56  ;;  %v13114_v37 = vsub.f32 %v3457_v58, %v3569_v13  ;;  %v13120_v4 = vsub.f32 %v3458_v32, %v3570_v56 }
 0x989   :  { %v3579_v25 = vmul.f32 %v13099_v3, %v13099_v3  ;;  %v3581_v17 = vmul.f32 %v13101_v2, %v13101_v2  ;;  %v3580_v52 = vmul.f32 %v13106_v10, %v13106_v10  ;;  %v3583_v51 = vmul.f32 %v13103_v0, %v13103_v0 }
 0x98a   :  { %v3582_v41 = vmul.f32 %v13109_v39, %v13109_v39  ;;  %v3584_v48 = vmul.f32 %v13112_v8, %v13112_v8  ;;  %v3585_v29 = vmul.f32 %v13114_v37, %v13114_v37  ;;  %v3586_v24 = vmul.f32 %v13120_v4, %v13120_v4 }
 0x98b   :  { %v3587_v42 = vadd.f32 %v3581_v17, %v3579_v25 }
 0x98c   :  { %v3596_v60 = vadd.f32 %v3582_v41, %v3580_v52 }
 0x98d   :  { %v3588_v46 = vadd.f32 %v3587_v42, %v3583_v51 }
 0x98e   :  { %v3597_v1 = vadd.f32 %v3596_v60, %v3584_v48 }
 0x98f   :  { %v3589_v34 = vadd.f32 %v3588_v46, %v3585_v29 }
 0x990   :  { %v3598_v5 = vadd.f32 %v3597_v1, %v3586_v24 }
 0x991   :  { %v3590_v27 = vrot.slane %v3589_v34, 4 }
 0x992   :  { %v3599_v20 = vrot.slane %v3598_v5, 4 }
 0x993   :  { %v3591_v14 = vadd.f32 %v3590_v27, %v3589_v34  ;;  %v10383_v34 = vld [vmem:[%s15556_s7 + $0x174] sm:$0xf0] }
 0x994   :  { %v3600_v32 = vadd.f32 %v3599_v20, %v3598_v5  ;;  %v8713_v5 = vld [vmem:[%s15556_s7 + $0x1f0] sm:$0xf] }
 0x995   :  { %v3592_v57 = vrot.slane %v3591_v14, 2 }
 0x996   :  { %v3601_v35 = vrot.slane %v3600_v32, 2 }
 0x997   :  { %v3593_v23 = vadd.f32 %v3592_v57, %v3591_v14  ;;  %v10399_v14 = vld [vmem:[%s15556_s7 + $0x1f4] sm:$0xf0] }
 0x998   :  { %v3602_v54 = vadd.f32 %v3601_v35, %v3600_v32 }
 0x999   :  { %v3594_v44 = vrot.slane %v3593_v23, 1 }
 0x99a   :  { %v3603_v47 = vrot.slane %v3602_v54, 1 }
 0x99b   :  { %v3595_v33 = vadd.f32 %v3594_v44, %v3593_v23  ;;  %v10334_v44 = vld [vmem:[%s15557_s3] sm:$0xff] }
 0x99c   :  { %v3604_v21 = vadd.f32 %v3603_v47, %v3602_v54  ;;  %v10367_v54 = vld [vmem:[%s15557_s3 + $0x8] sm:$0xff] }
 0x99d   :  { %3621 = vmatmul.f32.vlgmr.msra.gmra.mxu2 %v3595_v33  ;;  %v10382_v33 = vld [vmem:[%s15556_s7 + $0x174] sm:$0xf] }
 0x99e   :  { %3641 = vmatmul.f32.vlgmr.msra.gmra.mxu3 %v3604_v21  ;;  %v8651_v21 = vld [vmem:[%s15556_s7 + $0x178] sm:$0xf0] }
 0x9a5   :  { %8543 = vmatmul.msk.f32.vlgmr.msrb.gmra.mxu2 %vm3525_vm8, %v3702_v40 }
 0x9a6   :  { %8544 = vmatmul.msk.f32.vlgmr.msrb.gmra.mxu3 %vm3525_vm8, %v3702_v40 }
 0xa20   :  { %v3622_v7 = vpop.f32.mrf.mxu2 }
 0xa21   :  { %v3642_v15 = vpop.f32.mrf.mxu3 }
 0xa22   :  { %v3643_v58 = vadd.f32 %v3642_v15, %v3622_v7 }
 0xa24   :  { %v3645_v22 = vmul.f32 %v3643_v58, %v3523_v55  ;;  %v8714_v58 = vor.u32 %v10399_v14, %v8713_v5  ;;  %v8619_v5 = vld [vmem:[%s15556_s7 + $0x138] sm:$0xf0] }
 0xa26   :  { %v3647_v61 = vadd.f32 1e-05, %v3645_v22  ;;  %v10398_v22 = vld [vmem:[%s15556_s7 + $0x1f4] sm:$0xf] }
 0xa28   :  { %10668 = vrsqrt.f32 %v3647_v61  ;;  %vm3654_vm10 = vweird.f32 %v3647_v61  ;;  %v3723_v19 = vpop.f32.mrf.mxu2 }
 0xa29   :  { %v3743_v63 = vpop.f32.mrf.mxu3  ;;  %v3756_v11 = vperm.slane %v3723_v19, 0 }
 0xa2a   :  { %v3757_v49 = vperm.slane %v3743_v63, 0 }
 0xa2e   :  { %v10669_v45 = vpop.eup %10668 }
 0xa2f   :  { %v3649_v9 = vmul.f32 %v10669_v45, %v3647_v61  ;;  %vm3655_vm9 = vweird.f32 %v10669_v45  ;;  %v8715_v61 = vld [vmem:[%s15556_s7 + $0x1f8] sm:$0xf0] }
 0xa30   :  { %vm3656_vm11 = vmor %vm3654_vm10, %vm3655_vm9 }
 0xa31   :  { %v3650_v30 = vmul.f32 %v10669_v45, %v3649_v9 }
 0xa33   :  { %v3651_v36 = vmul.f32 0.5, %v3650_v30  ;;  %v10381_v30 = vld [vmem:[%s15556_s7 + $0x164] sm:$0xf0] }
 0xa35   :  { %v3652_v16 = vsub.f32 1.5, %v3651_v36  ;;  %v8705_v36 = vld [vmem:[%s15556_s7 + $0x1e0] sm:$0xf] }
 0xa37   :  { %v3653_v26 = vmul.f32 %v10669_v45, %v3652_v16  ;;  %v10397_v16 = vld [vmem:[%s15556_s7 + $0x1e4] sm:$0xf0] }
 0xa38   :  { %v8706_v63 = vor.u32 %v10397_v16, %v8705_v36  ;;  %v8665_v36 = vld [vmem:[%s15556_s7 + $0x190] sm:$0xf]  ;;  %v10387_v16 = vld [vmem:[%s15556_s7 + $0x194] sm:$0xf0] }
 0xa39   :  { %v3657_v18 = vsel %vm3656_vm11, %v10669_v45, %v3653_v26  ;;  %v8641_v45 = vld [vmem:[%s15556_s7 + $0x160] sm:$0xf]  ;;  %v8718_v26 = vor.u32 %v10398_v22, %v8715_v61  ;;  %v10388_v22 = vld [vmem:[%s15556_s7 + $0x1a4] sm:$0xf]  ;;  %v8675_v61 = vld [vmem:[%s15556_s7 + $0x1a8] sm:$0xf0] }
 0xa3a   :  { %v3658_v50 = vmul.f32 %v3657_v18, %v3646_v59  ;;  %v8654_v59 = vor.u32 %v10382_v33, %v8651_v21  ;;  %v10380_v18 = vld [vmem:[%s15556_s7 + $0x164] sm:$0xf]  ;;  %v8642_v19 = vor.u32 %v10381_v30, %v8641_v45  ;;  %v8601_v45 = vld [vmem:[%s15556_s7 + $0x110] sm:$0xf]  ;;  %v10371_v30 = vld [vmem:[%s15556_s7 + $0x114] sm:$0xf0] }
 0xa3b   :  { %v10372_v21 = vld [vmem:[%s15556_s7 + $0x124] sm:$0xf] }
 0xa3c   :  { %8541 = vmatmul.msk.f32.vlgmr.msrb.gmra.mxu0 %vm3525_vm8, %v3658_v50  ;;  %8542 = vmatmul.msk.f32.vlgmr.msrb.gmra.mxu1 %vm3525_vm8, %v3658_v50  ;;  %v8643_v50 = vld [vmem:[%s15556_s7 + $0x168] sm:$0xf0] }
 0xab9   :  { %v3679_v12 = vpop.f32.mrf.mxu0  ;;  %v3699_v6 = vpop.f32.mrf.mxu1 }
 0xaba   :  { %v3746_v62 = vperm.slane %v3679_v12, 0  ;;  %v3747_v28 = vperm.slane %v3699_v6, 0  ;;  %v10396_v12 = vld [vmem:[%s15556_s7 + $0x1e4] sm:$0xf]  ;;  %v8707_v6 = vld [vmem:[%s15556_s7 + $0x1e8] sm:$0xf0] }
 0xabc   :  { %v3748_v55 = vmul.f32 %v3746_v62, %v13099_v3  ;;  %v3750_v31 = vmul.f32 %v3746_v62, %v13101_v2  ;;  %v3752_v38 = vmul.f32 %v3746_v62, %v13103_v0  ;;  %v3754_v53 = vmul.f32 %v3746_v62, %v13114_v37  ;;  %v8633_v62 = vld [vmem:[%s15556_s7 + $0x150] sm:$0xf] }
 0xabd   :  { %v3749_v43 = vmul.f32 %v3747_v28, %v13106_v10  ;;  %v3751_v13 = vmul.f32 %v3747_v28, %v13109_v39  ;;  %v3753_v56 = vmul.f32 %v3747_v28, %v13112_v8  ;;  %v3755_v25 = vmul.f32 %v3747_v28, %v13120_v4  ;;  %v8649_v4 = vld [vmem:[%s15556_s7 + $0x170] sm:$0xf]  ;;  %v10379_v28 = vld [vmem:[%s15556_s7 + $0x154] sm:$0xf0] }
 0xabe   :  { %v3758_v17 = vadd.f32 %v3756_v11, %v3748_v55  ;;  %v3760_v52 = vadd.f32 %v3756_v11, %v3750_v31  ;;  %v3762_v41 = vadd.f32 %v3756_v11, %v3752_v38  ;;  %v3764_v51 = vadd.f32 %v3756_v11, %v3754_v53  ;;  %v8697_v11 = vld [vmem:[%s15556_s7 + $0x1d0] sm:$0xf]  ;;  %v10378_v38 = vld [vmem:[%s15556_s7 + $0x154] sm:$0xf]  ;;  %v8635_v53 = vld [vmem:[%s15556_s7 + $0x158] sm:$0xf0] }
 0xabf   :  { %v3759_v42 = vadd.f32 %v3757_v49, %v3749_v43  ;;  %v3761_v3 = vadd.f32 %v3757_v49, %v3751_v13  ;;  %v3763_v48 = vadd.f32 %v3757_v49, %v3753_v56  ;;  %v3765_v2 = vadd.f32 %v3757_v49, %v3755_v25  ;;  %v10395_v49 = vld [vmem:[%s15556_s7 + $0x1d4] sm:$0xf0]  ;;  %v10394_v56 = vld [vmem:[%s15556_s7 + $0x1d4] sm:$0xf]  ;;  %v8699_v25 = vld [vmem:[%s15556_s7 + $0x1d8] sm:$0xf0] }
 0xac0   :  { %vm3770_vm12 = vcmp.ge.f32.partialorder %v3762_v41, 0.0  ;;  %vm3772_vm13 = vcmp.ge.f32.partialorder %v3764_v51, 0.0  ;;  %v3778_v0 = vmul.f32 0.2, %v3762_v41  ;;  %v3780_v37 = vmul.f32 0.2, %v3764_v51 }
 0xac1   :  { %vm3771_vm14 = vcmp.ge.f32.partialorder %v3763_v48, 0.0  ;;  %vm3773_vm15 = vcmp.ge.f32.partialorder %v3765_v2, 0.0  ;;  %v3779_v10 = vmul.f32 0.2, %v3763_v48  ;;  %v3781_v39 = vmul.f32 0.2, %v3765_v2 }
 0xac2   :  { %v3786_v60 = vsel %vm3770_vm12, %v3762_v41, %v3778_v0  ;;  %v3788_v8 = vsel %vm3772_vm13, %v3764_v51, %v3780_v37  ;;  %vm3766_vm1 = vcmp.ge.f32.partialorder %v3758_v17, 0.0  ;;  %vm3768_vm2 = vcmp.ge.f32.partialorder %v3760_v52, 0.0  ;;  %v8689_v41 = vld [vmem:[%s15556_s7 + $0x1c0] sm:$0xf]  ;;  %v10393_v51 = vld [vmem:[%s15556_s7 + $0x1c4] sm:$0xf0] }
 0xac3   :  { %v13155_v29 = vpack.c.bf16 %v3788_v8, %v3786_v60  ;;  %v3787_v46 = vsel %vm3771_vm14, %v3763_v48, %v3779_v10  ;;  %v3789_v24 = vsel %vm3773_vm15, %v3765_v2, %v3781_v39  ;;  %v3774_v1 = vmul.f32 0.2, %v3758_v17  ;;  %v10376_v48 = vld [vmem:[%s15556_s7 + $0x144] sm:$0xf]  ;;  %v8627_v2 = vld [vmem:[%s15556_s7 + $0x148] sm:$0xf0] }
 0xac4   :  { %v13163_v27 = vpack.c.bf16 %v3789_v24, %v3787_v46  ;;  %v3776_v20 = vmul.f32 0.2, %v3760_v52  ;;  %vm3767_vm3 = vcmp.ge.f32.partialorder %v3759_v42, 0.0  ;;  %vm3769_vm4 = vcmp.ge.f32.partialorder %v3761_v3, 0.0  ;;  %v10392_v10 = vld [vmem:[%s15556_s7 + $0x1c4] sm:$0xf] }
 0xac5   :  { %3819 = vmatpush.bf16.msra.mxu0 %v13155_v29  ;;  %3892 = vmatpush.bf16.msra.mxu2 %v13155_v29  ;;  %v3782_v32 = vsel %vm3766_vm1, %v3758_v17, %v3774_v1  ;;  %v3775_v57 = vmul.f32 0.2, %v3759_v42  ;;  %v3777_v35 = vmul.f32 0.2, %v3761_v3  ;;  %v8650_v47 = vor.u32 %v10383_v34, %v8649_v4  ;;  %v8625_v17 = vld [vmem:[%s15556_s7 + $0x140] sm:$0xf] }
 0xac6   :  { %3833 = vmatpush.bf16.msra.mxu1 %v13163_v27  ;;  %3906 = vmatpush.bf16.msra.mxu3 %v13163_v27  ;;  %v3784_v23 = vsel %vm3768_vm2, %v3760_v52, %v3776_v20  ;;  %v8646_v55 = vor.u32 %v10380_v18, %v8643_v50  ;;  %v8710_v31 = vor.u32 %v10396_v12, %v8707_v6  ;;  %v10377_v52 = vld [vmem:[%s15556_s7 + $0x144] sm:$0xf0]  ;;  %v8691_v39 = vld [vmem:[%s15556_s7 + $0x1c8] sm:$0xf0]  ;;  %v8617_v60 = vld [vmem:[%s15556_s7 + $0x130] sm:$0xf] }
 0xac7   :  { %v13186_v40 = vpack.c.bf16 %v3784_v23, %v3782_v32  ;;  %v3783_v7 = vsel %vm3767_vm3, %v3759_v42, %v3775_v57  ;;  %v3785_v15 = vsel %vm3769_vm4, %v3761_v3, %v3777_v35  ;;  %v8634_v43 = vor.u32 %v10379_v28, %v8633_v62  ;;  %v10375_v8 = vld [vmem:[%s15556_s7 + $0x134] sm:$0xf0]  ;;  %v8681_v4 = vld [vmem:[%s15556_s7 + $0x1b0] sm:$0xf]  ;;  %v10374_v34 = vld [vmem:[%s15556_s7 + $0x134] sm:$0xf] }
 0xac8   :  { %v13199_v9 = vpack.c.bf16 %v3785_v15, %v3783_v7  ;;  %v8698_v13 = vor.u32 %v10395_v49, %v8697_v11  ;;  %v8638_v42 = vor.u32 %v10378_v38, %v8635_v53  ;;  %v8702_v3 = vor.u32 %v10394_v56, %v8699_v25  ;;  %v10391_v46 = vld [vmem:[%s15556_s7 + $0x1b4] sm:$0xf0]  ;;  %v10390_v32 = vld [vmem:[%s15556_s7 + $0x1b4] sm:$0xf]  ;;  %v8683_v57 = vld [vmem:[%s15556_s7 + $0x1b8] sm:$0xf0] }
 0xac9   :  { %3820 = vmatpush.bf16.msra.mxu0 %v13186_v40  ;;  %3893 = vmatpush.bf16.msra.mxu2 %v13186_v40  ;;  %v8626_v0 = vor.u32 %v10377_v52, %v8625_v17  ;;  %v8690_v37 = vor.u32 %v10393_v51, %v8689_v41  ;;  %v8630_v24 = vor.u32 %v10376_v48, %v8627_v2  ;;  %v8609_v35 = vld [vmem:[%s15556_s7 + $0x120] sm:$0xf]  ;;  %v10373_v23 = vld [vmem:[%s15556_s7 + $0x124] sm:$0xf0]  ;;  %v8611_v7 = vld [vmem:[%s15556_s7 + $0x128] sm:$0xf0] }
 0xaca   :  { %3834 = vmatpush.bf16.msra.mxu1 %v13199_v9  ;;  %3907 = vmatpush.bf16.msra.mxu3 %v13199_v9  ;;  %v8694_v1 = vor.u32 %v10392_v10, %v8691_v39  ;;  %v8618_v20 = vor.u32 %v10375_v8, %v8617_v60  ;;  %v8682_v14 = vor.u32 %v10391_v46, %v8681_v4  ;;  %v10370_v18 = vld [vmem:[%s15556_s7 + $0x114] sm:$0xf]  ;;  %v8603_v50 = vld [vmem:[%s15556_s7 + $0x118] sm:$0xf0]  ;;  %v8593_v62 = vld [vmem:[%s15556_s7 + $0x100] sm:$0xf] }
 0xacb   :  { %v8686_v33 = vor.u32 %v10390_v32, %v8683_v57  ;;  %v8610_v15 = vor.u32 %v10373_v23, %v8609_v35  ;;  %v8666_v12 = vor.u32 %v10387_v16, %v8665_v36  ;;  %v8667_v6 = vld [vmem:[%s15556_s7 + $0x198] sm:$0xf0]  ;;  %v10369_v28 = vld [vmem:[%s15556_s7 + $0x104] sm:$0xf0]  ;;  %v8657_v11 = vld [vmem:[%s15556_s7 + $0x180] sm:$0xf] }
 0xacc   :  { %8557 = vmatmul.msk.bf16.vlgmr.msra.gmra.mxu2 %vm3809_vm5, %v10367_v54  ;;  %8549 = vmatmul.msk.bf16.vlgmr.msra.gmra.mxu0 %vm3809_vm5, %v10334_v44  ;;  %v10385_v49 = vld [vmem:[%s15556_s7 + $0x184] sm:$0xf0]  ;;  %v8841_v38 = vld [vmem:[%s15556_s7 + $0xf0] sm:$0xf]  ;;  %v10366_v53 = vld [vmem:[%s15556_s7 + $0xf4] sm:$0xf0]  ;;  %v8594_v52 = vor.u32 %v10369_v28, %v8593_v62 }
 0xacd   :  { %4109 = vmatpush.bf16.msrb.mxu0 %v8650_v47  ;;  %8558 = vmatmul.msk.bf16.vlgmr.msra.gmra.mxu3 %vm3809_vm5, %v10367_v54  ;;  %v8673_v54 = vld [vmem:[%s15556_s7 + $0x1a0] sm:$0xf]  ;;  %v8622_v47 = vor.u32 %v10374_v34, %v8619_v5  ;;  %v10368_v56 = vld [vmem:[%s15556_s7 + $0x104] sm:$0xf]  ;;  %v8595_v25 = vld [vmem:[%s15556_s7 + $0x108] sm:$0xf0]  ;;  %v8658_v41 = vor.u32 %v10385_v49, %v8657_v11  ;;  %v8842_v2 = vor.u32 %v10366_v53, %v8841_v38 }
 0xace   :  { %4123 = vmatpush.bf16.msrb.mxu1 %v8714_v58  ;;  %4137 = vmatpush.bf16.msrb.mxu2 %v8654_v59  ;;  %v8614_v59 = vor.u32 %v10372_v21, %v8611_v7  ;;  %v10384_v17 = vld [vmem:[%s15556_s7 + $0x184] sm:$0xf]  ;;  %v8659_v51 = vld [vmem:[%s15556_s7 + $0x188] sm:$0xf0]  ;;  %v8769_v10 = vld [vmem:[%s15556_s7 + $0x60] sm:$0xf]  ;;  %v8598_v4 = vor.u32 %v10368_v56, %v8595_v25 }
 0xacf   :  { %8550 = vmatmul.msk.bf16.vlgmr.msra.gmra.mxu1 %vm3809_vm5, %v10334_v44  ;;  %4151 = vmatpush.bf16.msrb.mxu3 %v8718_v26  ;;  %v10389_v44 = vld [vmem:[%s15556_s7 + $0x1a4] sm:$0xf0]  ;;  %v8678_v26 = vor.u32 %v10388_v22, %v8675_v61  ;;  %v8833_v60 = vld [vmem:[%s15556_s7 + $0xe0] sm:$0xf]  ;;  %v8662_v46 = vor.u32 %v10384_v17, %v8659_v51  ;;  %v10347_v34 = vld [vmem:[%s15556_s7 + $0x64] sm:$0xf] }
 0xad0   :  { %v8674_v58 = vor.u32 %v10389_v44, %v8673_v54  ;;  %v10348_v39 = vld [vmem:[%s15556_s7 + $0x64] sm:$0xf0]  ;;  %v8771_v5 = vld [vmem:[%s15556_s7 + $0x68] sm:$0xf0]  ;;  %v10363_v32 = vld [vmem:[%s15556_s7 + $0xe4] sm:$0xf] }
 0xad1   :  { %4110 = vmatpush.bf16.msrb.mxu0 %v8642_v19  ;;  %v10386_v19 = vld [vmem:[%s15556_s7 + $0x194] sm:$0xf]  ;;  %v10364_v8 = vld [vmem:[%s15556_s7 + $0xe4] sm:$0xf0]  ;;  %v8835_v57 = vld [vmem:[%s15556_s7 + $0xe8] sm:$0xf0] }
 0xad2   :  { %4124 = vmatpush.bf16.msrb.mxu1 %v8706_v63  ;;  %4138 = vmatpush.bf16.msrb.mxu2 %v8646_v55  ;;  %v8602_v63 = vor.u32 %v10371_v30, %v8601_v45  ;;  %v8777_v55 = vld [vmem:[%s15556_s7 + $0x70] sm:$0xf]  ;;  %v10346_v23 = vld [vmem:[%s15556_s7 + $0x54] sm:$0xf0]  ;;  %v10345_v21 = vld [vmem:[%s15556_s7 + $0x54] sm:$0xf] }
 0xad3   :  { %4152 = vmatpush.bf16.msrb.mxu3 %v8710_v31  ;;  %v10350_v31 = vld [vmem:[%s15556_s7 + $0x74] sm:$0xf0]  ;;  %v8761_v35 = vld [vmem:[%s15556_s7 + $0x50] sm:$0xf]  ;;  %v8763_v7 = vld [vmem:[%s15556_s7 + $0x58] sm:$0xf0] }
 0xad4   :  { %v8778_v48 = vor.u32 %v10350_v31, %v8777_v55  ;;  %v8825_v54 = vld [vmem:[%s15556_s7 + $0xd0] sm:$0xf]  ;;  %v10362_v44 = vld [vmem:[%s15556_s7 + $0xd4] sm:$0xf0]  ;;  %v10361_v22 = vld [vmem:[%s15556_s7 + $0xd4] sm:$0xf] }
 0xad5   :  { %4111 = vmatpush.bf16.msrb.mxu0 %v8634_v43  ;;  %v8606_v43 = vor.u32 %v10370_v18, %v8603_v50  ;;  %v8827_v61 = vld [vmem:[%s15556_s7 + $0xd8] sm:$0xf0]  ;;  %v8753_v45 = vld [vmem:[%s15556_s7 + $0x40] sm:$0xf]  ;;  %v10344_v30 = vld [vmem:[%s15556_s7 + $0x44] sm:$0xf0] }
 0xad6   :  { %4125 = vmatpush.bf16.msrb.mxu1 %v8698_v13  ;;  %4139 = vmatpush.bf16.msrb.mxu2 %v8638_v42  ;;  %v8670_v13 = vor.u32 %v10386_v19, %v8667_v6  ;;  %v10349_v42 = vld [vmem:[%s15556_s7 + $0x74] sm:$0xf]  ;;  %v8817_v36 = vld [vmem:[%s15556_s7 + $0xc0] sm:$0xf]  ;;  %v10360_v16 = vld [vmem:[%s15556_s7 + $0xc4] sm:$0xf0]  ;;  %v8754_v19 = vor.u32 %v10344_v30, %v8753_v45 }
 0xad7   :  { %4153 = vmatpush.bf16.msrb.mxu3 %v8702_v3  ;;  %v8779_v3 = vld [vmem:[%s15556_s7 + $0x78] sm:$0xf0]  ;;  %v10343_v18 = vld [vmem:[%s15556_s7 + $0x44] sm:$0xf]  ;;  %v8755_v50 = vld [vmem:[%s15556_s7 + $0x48] sm:$0xf0] }
 0xad8   :  { %v8819_v6 = vld [vmem:[%s15556_s7 + $0xc8] sm:$0xf0]  ;;  %v8745_v62 = vld [vmem:[%s15556_s7 + $0x30] sm:$0xf]  ;;  %v10342_v28 = vld [vmem:[%s15556_s7 + $0x34] sm:$0xf0]  ;;  %v8758_v55 = vor.u32 %v10343_v18, %v8755_v50 }
 0xad9   :  { %4112 = vmatpush.bf16.msrb.mxu0 %v8626_v0  ;;  %v10365_v0 = vld [vmem:[%s15556_s7 + $0xf4] sm:$0xf]  ;;  %v8809_v11 = vld [vmem:[%s15556_s7 + $0xb0] sm:$0xf]  ;;  %v10358_v49 = vld [vmem:[%s15556_s7 + $0xb4] sm:$0xf0]  ;;  %v8746_v53 = vor.u32 %v10342_v28, %v8745_v62 }
 0xada   :  { %4126 = vmatpush.bf16.msrb.mxu1 %v8690_v37  ;;  %4140 = vmatpush.bf16.msrb.mxu2 %v8630_v24  ;;  %v8843_v37 = vld [vmem:[%s15556_s7 + $0xf8] sm:$0xf0]  ;;  %v8782_v24 = vor.u32 %v10349_v42, %v8779_v3  ;;  %v10341_v38 = vld [vmem:[%s15556_s7 + $0x34] sm:$0xf]  ;;  %v10340_v51 = vld [vmem:[%s15556_s7 + $0x24] sm:$0xf0] }
 0xadb   :  { %4154 = vmatpush.bf16.msrb.mxu3 %v8694_v1  ;;  %v8846_v1 = vor.u32 %v10365_v0, %v8843_v37  ;;  %v10357_v56 = vld [vmem:[%s15556_s7 + $0xb4] sm:$0xf]  ;;  %v8811_v25 = vld [vmem:[%s15556_s7 + $0xb8] sm:$0xf0]  ;;  %v8801_v42 = vld [vmem:[%s15556_s7 + $0xa0] sm:$0xf] }
 0xadc   :  { %v8739_v0 = vld [vmem:[%s15556_s7 + $0x28] sm:$0xf0]  ;;  %v9009_v18 = vld [vmem:[%s15556_s7 + $0x2f0] sm:$0xf]  ;;  %v10432_v50 = vld [vmem:[%s15556_s7 + $0x2f4] sm:$0xf0] }
 0xadd   :  { %4113 = vmatpush.bf16.msrb.mxu0 %v8618_v20  ;;  %v8770_v20 = vor.u32 %v10348_v39, %v8769_v10  ;;  %v10355_v39 = vld [vmem:[%s15556_s7 + $0xa4] sm:$0xf]  ;;  %v8787_v45 = vld [vmem:[%s15556_s7 + $0x88] sm:$0xf0]  ;;  %v9010_v28 = vor.u32 %v10432_v50, %v9009_v18  ;;  %vm7192_vm4 = vcmask 1043456  }
 0xade   :  { %4127 = vmatpush.bf16.msrb.mxu1 %v8682_v14  ;;  %4141 = vmatpush.bf16.msrb.mxu2 %v8622_v47  ;;  %v8834_v14 = vor.u32 %v10364_v8, %v8833_v60  ;;  %v8774_v47 = vor.u32 %v10347_v34, %v8771_v5  ;;  %v8803_v60 = vld [vmem:[%s15556_s7 + $0xa8] sm:$0xf0]  ;;  %v8729_v8 = vld [vmem:[%s15556_s7 + $0x10] sm:$0xf]  ;;  %v10429_v50 = vld [vmem:[%s15556_s7 + $0x2e4] sm:$0xf] }
 0xadf   :  { %4155 = vmatpush.bf16.msrb.mxu3 %v8686_v33  ;;  %v8838_v33 = vor.u32 %v10363_v32, %v8835_v57  ;;  %v10353_v32 = vld [vmem:[%s15556_s7 + $0x94] sm:$0xf]  ;;  %v8939_v18 = vld [vmem:[%s15556_s7 + $0x268] sm:$0xf0] }
 0xae1   :  { %4114 = vmatpush.bf16.msrb.mxu0 %v8610_v15  ;;  %v8762_v15 = vor.u32 %v10346_v23, %v8761_v35  ;;  %v8795_v35 = vld [vmem:[%s15556_s7 + $0x98] sm:$0xf0] }
 0xae2   :  { %4128 = vmatpush.bf16.msrb.mxu1 %v8674_v58  ;;  %4142 = vmatpush.bf16.msrb.mxu2 %v8614_v59  ;;  %v8826_v58 = vor.u32 %v10362_v44, %v8825_v54  ;;  %v8766_v59 = vor.u32 %v10345_v21, %v8763_v7  ;;  %v8798_v23 = vor.u32 %v10353_v32, %v8795_v35  ;;  %v8721_v54 = vld [vmem:[%s15556_s7] sm:$0xf]  ;;  %v10336_v44 = vld [vmem:[%s15556_s7 + $0x4] sm:$0xf0]  ;;  %v10335_v7 = vld [vmem:[%s15556_s7 + $0x4] sm:$0xf] }
 0xae3   :  { %4156 = vmatpush.bf16.msrb.mxu3 %v8678_v26  ;;  %v8830_v26 = vor.u32 %v10361_v22, %v8827_v61  ;;  %v10352_v21 = vld [vmem:[%s15556_s7 + $0x84] sm:$0xf0]  ;;  %v10351_v61 = vld [vmem:[%s15556_s7 + $0x84] sm:$0xf]  ;;  %v8969_v32 = vld [vmem:[%s15556_s7 + $0x2a0] sm:$0xf] }
 0xae4   :  { %v8790_v30 = vor.u32 %v10351_v61, %v8787_v45  ;;  %v10418_v61 = vld [vmem:[%s15556_s7 + $0x284] sm:$0xf0] }
 0xae5   :  { %4115 = vmatpush.bf16.msrb.mxu0 %v8602_v63  ;;  %v8818_v63 = vor.u32 %v10360_v16, %v8817_v36 }
 0xae6   :  { %4129 = vmatpush.bf16.msrb.mxu1 %v8666_v12  ;;  %4143 = vmatpush.bf16.msrb.mxu2 %v8606_v43  ;;  %v10359_v12 = vld [vmem:[%s15556_s7 + $0xc4] sm:$0xf]  ;;  %v8810_v43 = vor.u32 %v10358_v49, %v8809_v11  ;;  %v8937_v11 = vld [vmem:[%s15556_s7 + $0x260] sm:$0xf]  ;;  %v10414_v49 = vld [vmem:[%s15556_s7 + $0x264] sm:$0xf0] }
 0xae7   :  { %4157 = vmatpush.bf16.msrb.mxu3 %v8670_v13  ;;  %v8822_v31 = vor.u32 %v10359_v12, %v8819_v6  ;;  %v8747_v13 = vld [vmem:[%s15556_s7 + $0x38] sm:$0xf0] }
 0xae8   :  { %v8750_v17 = vor.u32 %v10341_v38, %v8747_v13 }
 0xae9   :  { %4116 = vmatpush.bf16.msrb.mxu0 %v8594_v52  ;;  %v8814_v52 = vor.u32 %v10357_v56, %v8811_v25  ;;  %v8929_v56 = vld [vmem:[%s15556_s7 + $0x250] sm:$0xf]  ;;  %v10412_v25 = vld [vmem:[%s15556_s7 + $0x254] sm:$0xf0] }
 0xaea   :  { %4130 = vmatpush.bf16.msrb.mxu1 %v8658_v41  ;;  %4144 = vmatpush.bf16.msrb.mxu2 %v8598_v4  ;;  %v8737_v41 = vld [vmem:[%s15556_s7 + $0x20] sm:$0xf]  ;;  %v8806_v4 = vor.u32 %v10355_v39, %v8803_v60  ;;  %v8913_v39 = vld [vmem:[%s15556_s7 + $0x230] sm:$0xf] }
 0xaeb   :  { %4158 = vmatpush.bf16.msrb.mxu3 %v8662_v46  ;;  %v8738_v3 = vor.u32 %v10340_v51, %v8737_v41  ;;  %v10338_v46 = vld [vmem:[%s15556_s7 + $0x14] sm:$0xf0]  ;;  %v8930_v41 = vor.u32 %v10412_v25, %v8929_v56  ;;  %v10407_v56 = vld [vmem:[%s15556_s7 + $0x234] sm:$0xf]  ;;  %v8915_v25 = vld [vmem:[%s15556_s7 + $0x238] sm:$0xf0] }
 0xaec   :  { %v8730_v34 = vor.u32 %v10338_v46, %v8729_v8  ;;  %v10408_v8 = vld [vmem:[%s15556_s7 + $0x234] sm:$0xf0] }
 0xaed   :  { %4325 = vmatpush.bf16.msra.mxu0 %v8778_v48  ;;  %v10356_v48 = vld [vmem:[%s15556_s7 + $0xa4] sm:$0xf0]  ;;  %v10424_v46 = vld [vmem:[%s15556_s7 + $0x2b4] sm:$0xf0] }
 0xaee   :  { %4339 = vmatpush.bf16.msra.mxu1 %v8842_v2  ;;  %4353 = vmatpush.bf16.msra.mxu2 %v8782_v24  ;;  %v10339_v2 = vld [vmem:[%s15556_s7 + $0x24] sm:$0xf]  ;;  %v8802_v37 = vor.u32 %v10356_v48, %v8801_v42  ;;  %v8793_v24 = vld [vmem:[%s15556_s7 + $0x90] sm:$0xf]  ;;  %v8921_v42 = vld [vmem:[%s15556_s7 + $0x240] sm:$0xf] }
 0xaef   :  { %4367 = vmatpush.bf16.msra.mxu3 %v8846_v1  ;;  %v8742_v10 = vor.u32 %v10339_v2, %v8739_v0  ;;  %v10354_v1 = vld [vmem:[%s15556_s7 + $0x94] sm:$0xf0]  ;;  %v8985_v48 = vld [vmem:[%s15556_s7 + $0x2c0] sm:$0xf]  ;;  %v10426_v2 = vld [vmem:[%s15556_s7 + $0x2c4] sm:$0xf0] }
 0xaf0   :  { %v8794_v5 = vor.u32 %v10354_v1, %v8793_v24 }
 0xaf1   :  { %4326 = vmatpush.bf16.msra.mxu0 %v8770_v20  ;;  %v10337_v20 = vld [vmem:[%s15556_s7 + $0x14] sm:$0xf] }
 0xaf2   :  { %4340 = vmatpush.bf16.msra.mxu1 %v8834_v14  ;;  %4354 = vmatpush.bf16.msra.mxu2 %v8774_v47  ;;  %v8731_v14 = vld [vmem:[%s15556_s7 + $0x18] sm:$0xf0]  ;;  %v8785_v47 = vld [vmem:[%s15556_s7 + $0x80] sm:$0xf] }
 0xaf3   :  { %4368 = vmatpush.bf16.msra.mxu3 %v8838_v33  ;;  %v8734_v57 = vor.u32 %v10337_v20, %v8731_v14  ;;  %v8722_v33 = vor.u32 %v10336_v44, %v8721_v54  ;;  %v8905_v20 = vld [vmem:[%s15556_s7 + $0x220] sm:$0xf]  ;;  %v10406_v14 = vld [vmem:[%s15556_s7 + $0x224] sm:$0xf0]  ;;  %v8897_v54 = vld [vmem:[%s15556_s7 + $0x210] sm:$0xf] }
 0xaf4   :  { %v8906_v35 = vor.u32 %v10406_v14, %v8905_v20  ;;  %v10404_v44 = vld [vmem:[%s15556_s7 + $0x214] sm:$0xf0] }
 0xaf5   :  { %4327 = vmatpush.bf16.msra.mxu0 %v8762_v15  ;;  %v8723_v15 = vld [vmem:[%s15556_s7 + $0x8] sm:$0xf0] }
 0xaf6   :  { %4341 = vmatpush.bf16.msra.mxu1 %v8826_v58  ;;  %4355 = vmatpush.bf16.msra.mxu2 %v8766_v59  ;;  %v8786_v58 = vor.u32 %v10352_v21, %v8785_v47  ;;  %v8726_v22 = vor.u32 %v10335_v7, %v8723_v15  ;;  %v8945_v59 = vld [vmem:[%s15556_s7 + $0x270] sm:$0xf]  ;;  %v8898_v21 = vor.u32 %v10404_v44, %v8897_v54  ;;  %v8889_v15 = vld [vmem:[%s15556_s7 + $0x200] sm:$0xf]  ;;  %v10417_v54 = vld [vmem:[%s15556_s7 + $0x284] sm:$0xf] }
 0xaf7   :  { %4369 = vmatpush.bf16.msra.mxu3 %v8830_v26  ;;  %v10416_v26 = vld [vmem:[%s15556_s7 + $0x274] sm:$0xf0]  ;;  %v8961_v47 = vld [vmem:[%s15556_s7 + $0x290] sm:$0xf] }
 0xaf8   :  { %v8946_v62 = vor.u32 %v10416_v26, %v8945_v59  ;;  %v8947_v59 = vld [vmem:[%s15556_s7 + $0x278] sm:$0xf0] }
 0xaf9   :  { %4328 = vmatpush.bf16.msra.mxu0 %v8754_v19  ;;  %v9011_v26 = vld [vmem:[%s15556_s7 + $0x2f8] sm:$0xf0] }
 0xafa   :  { %4342 = vmatpush.bf16.msra.mxu1 %v8818_v63  ;;  %4356 = vmatpush.bf16.msra.mxu2 %v8758_v55  ;;  %v9001_v55 = vld [vmem:[%s15556_s7 + $0x2e0] sm:$0xf] }
 0xafb   :  { %4370 = vmatpush.bf16.msra.mxu3 %v8822_v31  ;;  %v10430_v31 = vld [vmem:[%s15556_s7 + $0x2e4] sm:$0xf0] }
 0xafc   :  { %v9002_v13 = vor.u32 %v10430_v31, %v9001_v55  ;;  %v10409_v31 = vld [vmem:[%s15556_s7 + $0x244] sm:$0xf] }
 0xafd   :  { %4329 = vmatpush.bf16.msra.mxu0 %v8746_v53 }
 0xafe   :  { %4343 = vmatpush.bf16.msra.mxu1 %v8810_v43  ;;  %4357 = vmatpush.bf16.msra.mxu2 %v8750_v17  ;;  %v8938_v43 = vor.u32 %v10414_v49, %v8937_v11  ;;  %v8993_v17 = vld [vmem:[%s15556_s7 + $0x2d0] sm:$0xf]  ;;  %v8995_v11 = vld [vmem:[%s15556_s7 + $0x2d8] sm:$0xf0] }
 0xaff   :  { %4371 = vmatpush.bf16.msra.mxu3 %v8814_v52  ;;  %v10428_v52 = vld [vmem:[%s15556_s7 + $0x2d4] sm:$0xf0] }
 0xb00   :  { %v8994_v51 = vor.u32 %v10428_v52, %v8993_v17  ;;  %v10423_v52 = vld [vmem:[%s15556_s7 + $0x2b4] sm:$0xf] }
 0xb01   :  { %4330 = vmatpush.bf16.msra.mxu0 %v8738_v3  ;;  %v10410_v3 = vld [vmem:[%s15556_s7 + $0x244] sm:$0xf0] }
 0xb02   :  { %4344 = vmatpush.bf16.msra.mxu1 %v8802_v37  ;;  %4358 = vmatpush.bf16.msra.mxu2 %v8742_v10  ;;  %v8922_v37 = vor.u32 %v10410_v3, %v8921_v42  ;;  %v8986_v10 = vor.u32 %v10426_v2, %v8985_v48  ;;  %v10405_v2 = vld [vmem:[%s15556_s7 + $0x224] sm:$0xf] }
 0xb03   :  { %4372 = vmatpush.bf16.msra.mxu3 %v8806_v4  ;;  %v8977_v4 = vld [vmem:[%s15556_s7 + $0x2b0] sm:$0xf] }
 0xb05   :  { %4331 = vmatpush.bf16.msra.mxu0 %v8730_v34  ;;  %v8914_v34 = vor.u32 %v10408_v8, %v8913_v39 }
 0xb06   :  { %4345 = vmatpush.bf16.msra.mxu1 %v8794_v5  ;;  %4359 = vmatpush.bf16.msra.mxu2 %v8734_v57  ;;  %v8978_v5 = vor.u32 %v10424_v46, %v8977_v4  ;;  %v10422_v57 = vld [vmem:[%s15556_s7 + $0x2a4] sm:$0xf0]  ;;  %v10403_v4 = vld [vmem:[%s15556_s7 + $0x214] sm:$0xf]  ;;  %v8899_v46 = vld [vmem:[%s15556_s7 + $0x218] sm:$0xf0] }
 0xb07   :  { %4373 = vmatpush.bf16.msra.mxu3 %v8798_v23  ;;  %v8970_v23 = vor.u32 %v10422_v57, %v8969_v32 }
 0xb09   :  { %4332 = vmatpush.bf16.msra.mxu0 %v8722_v33  ;;  %v10420_v33 = vld [vmem:[%s15556_s7 + $0x294] sm:$0xf0] }
 0xb0a   :  { %4346 = vmatpush.bf16.msra.mxu1 %v8786_v58  ;;  %4360 = vmatpush.bf16.msra.mxu2 %v8726_v22  ;;  %v8962_v7 = vor.u32 %v10420_v33, %v8961_v47  ;;  %v10402_v58 = vld [vmem:[%s15556_s7 + $0x204] sm:$0xf0]  ;;  %v8953_v22 = vld [vmem:[%s15556_s7 + $0x280] sm:$0xf]  ;;  %v8955_v47 = vld [vmem:[%s15556_s7 + $0x288] sm:$0xf0] }
 0xb0b   :  { %4374 = vmatpush.bf16.msra.mxu3 %v8790_v30  ;;  %v8890_v45 = vor.u32 %v10402_v58, %v8889_v15  ;;  %v8954_v30 = vor.u32 %v10418_v61, %v8953_v22  ;;  %v8958_v33 = vor.u32 %v10417_v54, %v8955_v47  ;;  %v10459_v54 = vld [vmem:[%s15556_s7 + $0x3c4] sm:$0xf0]  ;;  %v9091_v47 = vld [vmem:[%s15556_s7 + $0x348] sm:$0xf0] }
 0xb49   :  { %v3822_v38 = vpop.f32.mrf.mxu0 }
 0xb4c   :  { %v3836_v53 = vpop.f32.mrf.mxu1 }
 0xb4f   :  { %v3895_v36 = vpop.f32.mrf.mxu2 }
 0xb50   :  { %v3909_v16 = vpop.f32.mrf.mxu3 }
 0xb51   :  { %v3824_v0 = vpop.f32.mrf.mxu0 }
 0xb52   :  { %v3841_v24 = vpack.c.bf16 %v3824_v0, %v3822_v38  ;;  %v8923_v38 = vld [vmem:[%s15556_s7 + $0x248] sm:$0xf0] }
 0xb53   :  { %v8907_v0 = vld [vmem:[%s15556_s7 + $0x228] sm:$0xf0] }
 0xb54   :  { %v3838_v60 = vpop.f32.mrf.mxu1  ;;  %v8910_v39 = vor.u32 %v10405_v2, %v8907_v0  ;;  %v10445_v2 = vld [vmem:[%s15556_s7 + $0x354] sm:$0xf0]  ;;  %v9161_v0 = vld [vmem:[%s15556_s7 + $0x3d0] sm:$0xf] }
 0xb55   :  { %v3842_v1 = vpack.c.bf16 %v3838_v60, %v3836_v53  ;;  %v10425_v53 = vld [vmem:[%s15556_s7 + $0x2c4] sm:$0xf]  ;;  %v8971_v60 = vld [vmem:[%s15556_s7 + $0x2a8] sm:$0xf0] }
 0xb57   :  { %v3897_v19 = vpop.f32.mrf.mxu2 }
 0xb58   :  { %v3914_v63 = vpack.c.bf16 %v3897_v19, %v3895_v36  ;;  %v3911_v12 = vpop.f32.mrf.mxu3  ;;  %v10400_v36 = vld [vmem:[%s15557_s3 + $0x10] sm:$0xff] }
 0xb59   :  { %v3915_v6 = vpack.c.bf16 %v3911_v12, %v3909_v16  ;;  %v10415_v16 = vld [vmem:[%s15556_s7 + $0x274] sm:$0xf] }
 0xb5a   :  { %4117 = vmatmul.bf16.vlgmr.msrb.gmra.mxu0 %v3914_v63  ;;  %4145 = vmatmul.bf16.vlgmr.msrb.gmra.mxu2 %v3914_v63  ;;  %v9003_v63 = vld [vmem:[%s15556_s7 + $0x2e8] sm:$0xf0]  ;;  %v10411_v12 = vld [vmem:[%s15556_s7 + $0x254] sm:$0xf] }
 0xb5b   :  { %4131 = vmatmul.bf16.vlgmr.msrb.gmra.mxu1 %v3915_v6  ;;  %4159 = vmatmul.bf16.vlgmr.msrb.gmra.mxu3 %v3915_v6  ;;  %v8931_v6 = vld [vmem:[%s15556_s7 + $0x258] sm:$0xf0] }
 0xb5c   :  { %4398 = vmatpush.bf16.msrb.mxu0 %v13155_v29  ;;  %4412 = vmatpush.bf16.msrb.mxu1 %v13163_v27  ;;  %v8934_v49 = vor.u32 %v10411_v12, %v8931_v6  ;;  %v10465_v12 = vld [vmem:[%s15556_s7 + $0x3f4] sm:$0xf0]  ;;  %v10448_v6 = vld [vmem:[%s15556_s7 + $0x374] sm:$0xf] }
 0xb5d   :  { %4615 = vmatpush.bf16.msrb.mxu2 %v8946_v62  ;;  %4629 = vmatpush.bf16.msrb.mxu3 %v9010_v28  ;;  %v9006_v62 = vor.u32 %v10429_v50, %v9003_v63  ;;  %v10427_v28 = vld [vmem:[%s15556_s7 + $0x2d4] sm:$0xf]  ;;  %v10449_v50 = vld [vmem:[%s15556_s7 + $0x374] sm:$0xf0] }
 0xb5e   :  { %v8998_v55 = vor.u32 %v10427_v28, %v8995_v11 }
 0xb60   :  { %4399 = vmatpush.bf16.msrb.mxu0 %v13186_v40  ;;  %4413 = vmatpush.bf16.msrb.mxu1 %v13199_v9 }
 0xb61   :  { %4616 = vmatpush.bf16.msrb.mxu2 %v8938_v43  ;;  %4630 = vmatpush.bf16.msrb.mxu3 %v9002_v13  ;;  %v8926_v43 = vor.u32 %v10409_v31, %v8923_v38  ;;  %v8987_v13 = vld [vmem:[%s15556_s7 + $0x2c8] sm:$0xf0]  ;;  %v9105_v38 = vld [vmem:[%s15556_s7 + $0x360] sm:$0xf] }
 0xb62   :  { %v8990_v17 = vor.u32 %v10425_v53, %v8987_v13  ;;  %v10447_v53 = vld [vmem:[%s15556_s7 + $0x364] sm:$0xf0] }
 0xb63   :  { %v9106_v13 = vor.u32 %v10447_v53, %v9105_v38  ;;  %v9075_v38 = vld [vmem:[%s15556_s7 + $0x328] sm:$0xf0]  ;;  %v10454_v53 = vld [vmem:[%s15556_s7 + $0x3a4] sm:$0xf] }
 0xb65   :  { %4617 = vmatpush.bf16.msrb.mxu2 %v8930_v41  ;;  %4631 = vmatpush.bf16.msrb.mxu3 %v8994_v51  ;;  %v8979_v41 = vld [vmem:[%s15556_s7 + $0x2b8] sm:$0xf0]  ;;  %v8918_v51 = vor.u32 %v10407_v56, %v8915_v25  ;;  %v10463_v56 = vld [vmem:[%s15556_s7 + $0x3e4] sm:$0xf0]  ;;  %v10446_v25 = vld [vmem:[%s15556_s7 + $0x364] sm:$0xf] }
 0xb66   :  { %v8982_v42 = vor.u32 %v10423_v52, %v8979_v41 }
 0xb69   :  { %4618 = vmatpush.bf16.msrb.mxu2 %v8922_v37  ;;  %4632 = vmatpush.bf16.msrb.mxu3 %v8986_v10  ;;  %v10421_v37 = vld [vmem:[%s15556_s7 + $0x2a4] sm:$0xf] }
 0xb6a   :  { %4333 = vmatmul.bf16.vlgmr.msra.gmra.mxu0 %v3841_v24  ;;  %4361 = vmatmul.bf16.vlgmr.msra.gmra.mxu2 %v3841_v24  ;;  %v8974_v8 = vor.u32 %v10421_v37, %v8971_v60  ;;  %v10419_v24 = vld [vmem:[%s15556_s7 + $0x294] sm:$0xf]  ;;  %v9099_v60 = vld [vmem:[%s15556_s7 + $0x358] sm:$0xf0] }
 0xb6b   :  { %4347 = vmatmul.bf16.vlgmr.msra.gmra.mxu1 %v3842_v1  ;;  %4375 = vmatmul.bf16.vlgmr.msra.gmra.mxu3 %v3842_v1  ;;  %v8963_v1 = vld [vmem:[%s15556_s7 + $0x298] sm:$0xf0] }
 0xb6c   :  { %v8966_v14 = vor.u32 %v10419_v24, %v8963_v1  ;;  %v9163_v24 = vld [vmem:[%s15556_s7 + $0x3d8] sm:$0xf0] }
 0xb6d   :  { %4619 = vmatpush.bf16.msrb.mxu2 %v8914_v34  ;;  %4633 = vmatpush.bf16.msrb.mxu3 %v8978_v5  ;;  %v8902_v5 = vor.u32 %v10403_v4, %v8899_v46  ;;  %v10460_v46 = vld [vmem:[%s15556_s7 + $0x3d4] sm:$0xf] }
 0xb6e   :  { %v9166_v1 = vor.u32 %v10460_v46, %v9163_v24  ;;  %v10435_v46 = vld [vmem:[%s15556_s7 + $0x304] sm:$0xf0]  ;;  %v9121_v24 = vld [vmem:[%s15556_s7 + $0x380] sm:$0xf] }
 0xb71   :  { %4620 = vmatpush.bf16.msrb.mxu2 %v8906_v35  ;;  %4634 = vmatpush.bf16.msrb.mxu3 %v8970_v23  ;;  %v10401_v35 = vld [vmem:[%s15556_s7 + $0x204] sm:$0xf]  ;;  %v8891_v23 = vld [vmem:[%s15556_s7 + $0x208] sm:$0xf0] }
 0xb72   :  { %v8894_v44 = vor.u32 %v10401_v35, %v8891_v23  ;;  %v9153_v35 = vld [vmem:[%s15556_s7 + $0x3c0] sm:$0xf] }
 0xb75   :  { %4621 = vmatpush.bf16.msrb.mxu2 %v8898_v21  ;;  %4635 = vmatpush.bf16.msrb.mxu3 %v8962_v7 }
 0xb79   :  { %4622 = vmatpush.bf16.msrb.mxu2 %v8890_v45  ;;  %4636 = vmatpush.bf16.msrb.mxu3 %v8954_v30 }
 0xb7a   :  { %8853 = vmatmul.msk.bf16.vlgmr.msrb.gmra.mxu0 %vm3809_vm5, %v10400_v36 }
 0xb7b   :  { %8854 = vmatmul.msk.bf16.vlgmr.msrb.gmra.mxu1 %vm3809_vm5, %v10400_v36 }
 0xb7d   :  { %4692 = vmatpush.bf16.msra.mxu2 %v13155_v29  ;;  %4706 = vmatpush.bf16.msra.mxu3 %v13163_v27  ;;  %v10431_v29 = vld [vmem:[%s15556_s7 + $0x2f4] sm:$0xf]  ;;  %v8950_v27 = vor.u32 %v10415_v16, %v8947_v59 }
 0xb7f   :  { %4643 = vmatpush.bf16.msra.mxu0 %v8950_v27 }
 0xb81   :  { %4693 = vmatpush.bf16.msra.mxu2 %v13186_v40  ;;  %4707 = vmatpush.bf16.msra.mxu3 %v13199_v9  ;;  %v9014_v40 = vor.u32 %v10431_v29, %v9011_v26  ;;  %v10413_v9 = vld [vmem:[%s15556_s7 + $0x264] sm:$0xf] }
 0xb82   :  { %v8942_v19 = vor.u32 %v10413_v9, %v8939_v18  ;;  %v10433_v9 = vld [vmem:[%s15557_s3 + $0x18] sm:$0xff]  ;;  %v9113_v18 = vld [vmem:[%s15556_s7 + $0x370] sm:$0xf] }
 0xb83   :  { %4657 = vmatpush.bf16.msra.mxu1 %v9014_v40  ;;  %v9114_v63 = vor.u32 %v10449_v50, %v9113_v18  ;;  %v10440_v18 = vld [vmem:[%s15556_s7 + $0x334] sm:$0xf]  ;;  %v9083_v50 = vld [vmem:[%s15556_s7 + $0x338] sm:$0xf0] }
 0xb84   :  { %4644 = vmatpush.bf16.msra.mxu0 %v8942_v19  ;;  %v9177_v19 = vld [vmem:[%s15556_s7 + $0x3f0] sm:$0xf] }
 0xb85   :  { %v9178_v28 = vor.u32 %v10465_v12, %v9177_v19  ;;  %v10456_v19 = vld [vmem:[%s15556_s7 + $0x3b4] sm:$0xf]  ;;  %v9147_v12 = vld [vmem:[%s15556_s7 + $0x3b8] sm:$0xf0] }
 0xb87   :  { %4658 = vmatpush.bf16.msra.mxu1 %v9006_v62  ;;  %v9115_v62 = vld [vmem:[%s15556_s7 + $0x378] sm:$0xf0] }
 0xb88   :  { %4645 = vmatpush.bf16.msra.mxu0 %v8934_v49  ;;  %v9118_v11 = vor.u32 %v10448_v6, %v9115_v62  ;;  %v10464_v49 = vld [vmem:[%s15556_s7 + $0x3f4] sm:$0xf]  ;;  %v9073_v6 = vld [vmem:[%s15556_s7 + $0x320] sm:$0xf]  ;;  %v10439_v62 = vld [vmem:[%s15556_s7 + $0x324] sm:$0xf0] }
 0xb8b   :  { %4659 = vmatpush.bf16.msra.mxu1 %v8998_v55  ;;  %v9179_v55 = vld [vmem:[%s15556_s7 + $0x3f8] sm:$0xf0] }
 0xb8c   :  { %4646 = vmatpush.bf16.msra.mxu0 %v8926_v43  ;;  %v9182_v31 = vor.u32 %v10464_v49, %v9179_v55  ;;  %v9169_v43 = vld [vmem:[%s15556_s7 + $0x3e0] sm:$0xf]  ;;  %v10455_v49 = vld [vmem:[%s15556_s7 + $0x3a4] sm:$0xf0]  ;;  %v10438_v55 = vld [vmem:[%s15556_s7 + $0x324] sm:$0xf] }
 0xb8d   :  { %v9170_v52 = vor.u32 %v10463_v56, %v9169_v43  ;;  %v9139_v43 = vld [vmem:[%s15556_s7 + $0x3a8] sm:$0xf0]  ;;  %v9078_v56 = vor.u32 %v10438_v55, %v9075_v38 }
 0xb8f   :  { %4660 = vmatpush.bf16.msra.mxu1 %v8990_v17  ;;  %v9107_v17 = vld [vmem:[%s15556_s7 + $0x368] sm:$0xf0] }
 0xb90   :  { %4647 = vmatpush.bf16.msra.mxu0 %v8918_v51  ;;  %v9110_v41 = vor.u32 %v10446_v25, %v9107_v17  ;;  %v10462_v51 = vld [vmem:[%s15556_s7 + $0x3e4] sm:$0xf]  ;;  %v9065_v25 = vld [vmem:[%s15556_s7 + $0x310] sm:$0xf]  ;;  %v10437_v17 = vld [vmem:[%s15556_s7 + $0x314] sm:$0xf0] }
 0xb93   :  { %4661 = vmatpush.bf16.msra.mxu1 %v8982_v42  ;;  %v9171_v42 = vld [vmem:[%s15556_s7 + $0x3e8] sm:$0xf0] }
 0xb94   :  { %4648 = vmatpush.bf16.msra.mxu0 %v8910_v39  ;;  %v10444_v39 = vld [vmem:[%s15556_s7 + $0x354] sm:$0xf] }
 0xb95   :  { %v9102_v4 = vor.u32 %v10444_v39, %v9099_v60 }
 0xb97   :  { %4662 = vmatpush.bf16.msra.mxu1 %v8974_v8 }
 0xb98   :  { %4649 = vmatpush.bf16.msra.mxu0 %v8902_v5  ;;  %v9089_v5 = vld [vmem:[%s15556_s7 + $0x340] sm:$0xf] }
 0xb9b   :  { %4663 = vmatpush.bf16.msra.mxu1 %v8966_v14  ;;  %v10443_v14 = vld [vmem:[%s15556_s7 + $0x344] sm:$0xf0] }
 0xb9c   :  { %4650 = vmatpush.bf16.msra.mxu0 %v8894_v44  ;;  %v9090_v23 = vor.u32 %v10443_v14, %v9089_v5  ;;  %v10442_v44 = vld [vmem:[%s15556_s7 + $0x344] sm:$0xf]  ;;  %v10451_v5 = vld [vmem:[%s15556_s7 + $0x384] sm:$0xf0] }
 0xb9d   :  { %v10434_v14 = vld [vmem:[%s15556_s7 + $0x304] sm:$0xf] }
 0xb9f   :  { %4664 = vmatpush.bf16.msra.mxu1 %v8958_v33  ;;  %v9154_v33 = vor.u32 %v10459_v54, %v9153_v35  ;;  %v9059_v35 = vld [vmem:[%s15556_s7 + $0x308] sm:$0xf0] }
 0xba0   :  { %4909 = vmatpush.bf16.msrb.mxu0 %v9114_v63  ;;  %v9086_v63 = vor.u32 %v10440_v18, %v9083_v50  ;;  %v9062_v54 = vor.u32 %v10434_v14, %v9059_v35 }
 0xba3   :  { %4923 = vmatpush.bf16.msrb.mxu1 %v9178_v28  ;;  %v9150_v28 = vor.u32 %v10456_v19, %v9147_v12  ;;  %v13995_v19 = vld [vmem:[%s15558_s19 + $0x30] sm:$0xff] }
 0xba4   :  { %4910 = vmatpush.bf16.msrb.mxu0 %v9106_v13 }
 0xba7   :  { %4924 = vmatpush.bf16.msrb.mxu1 %v9170_v52  ;;  %v9129_v52 = vld [vmem:[%s15556_s7 + $0x390] sm:$0xf] }
 0xbd7   :  { %v4118_v3 = vpop.f32.mrf.mxu0 }
 0xbd8   :  { %v4132_v48 = vpop.f32.mrf.mxu1 }
 0xbd9   :  { %v4133_v10 = vadd.f32 %v4132_v48, %v4118_v3  ;;  %v9174_v3 = vor.u32 %v10462_v51, %v9171_v42  ;;  %v9097_v48 = vld [vmem:[%s15556_s7 + $0x350] sm:$0xf]  ;;  %v10453_v51 = vld [vmem:[%s15556_s7 + $0x394] sm:$0xf0]  ;;  %v10436_v42 = vld [vmem:[%s15556_s7 + $0x314] sm:$0xf] }
 0xbda   :  { %v9098_v37 = vor.u32 %v10445_v2, %v9097_v48  ;;  %v10452_v48 = vld [vmem:[%s15556_s7 + $0x394] sm:$0xf]  ;;  %v9131_v2 = vld [vmem:[%s15556_s7 + $0x398] sm:$0xf0] }
 0xbdc   :  { %4911 = vmatpush.bf16.msrb.mxu0 %v9098_v37  ;;  %v9130_v37 = vor.u32 %v10453_v51, %v9129_v52 }
 0xbdd   :  { %v13759_v34 = vpop.f32.mrf.mxu2 }
 0xbde   :  { %v13761_v20 = vpop.f32.mrf.mxu3 }
 0xbdf   :  { %v13763_v32 = vpop.f32.mrf.mxu0  ;;  %v4161_v52 = vadd.f32 %v13761_v20, %v13759_v34 }
 0xbe0   :  { %v13765_v57 = vpop.f32.mrf.mxu1  ;;  %4912 = vmatpush.bf16.msrb.mxu0 %v9090_v23  ;;  %v9122_v23 = vor.u32 %v10451_v5, %v9121_v24 }
 0xbe1   :  { %v4135_v38 = vadd.f32 %v13765_v57, %v13763_v32 }
 0xbe5   :  { %v4148_v21 = vpop.f32.mrf.mxu2 }
 0xbe6   :  { %v4162_v7 = vpop.f32.mrf.mxu3 }
 0xbe7   :  { %v13779_v15 = vadd.f32 %v4162_v7, %v4148_v21  ;;  %v4334_v58 = vpop.f32.mrf.mxu0  ;;  %v9094_v21 = vor.u32 %v10442_v44, %v9091_v47  ;;  %v10458_v7 = vld [vmem:[%s15556_s7 + $0x3c4] sm:$0xf]  ;;  %v9123_v47 = vld [vmem:[%s15556_s7 + $0x388] sm:$0xf0] }
 0xbe8   :  { %v4335_v22 = vadd.f32 %v4334_v58, %v4133_v10  ;;  %v4348_v61 = vpop.f32.mrf.mxu1  ;;  %v10461_v10 = vld [vmem:[%s15556_s7 + $0x3d4] sm:$0xf0]  ;;  %v9155_v58 = vld [vmem:[%s15556_s7 + $0x3c8] sm:$0xf0]  ;;  %v10450_v44 = vld [vmem:[%s15556_s7 + $0x384] sm:$0xf] }
 0xbe9   :  { %v9162_v8 = vor.u32 %v10461_v10, %v9161_v0  ;;  %v9066_v0 = vor.u32 %v10437_v17, %v9065_v25 }
 0xbea   :  { %v13781_v45 = vadd.f32 %v4348_v61, %v4335_v22  ;;  %v9081_v22 = vld [vmem:[%s15556_s7 + $0x330] sm:$0xf] }
 0xbeb   :  { %4925 = vmatpush.bf16.msrb.mxu1 %v9162_v8  ;;  %v9134_v8 = vor.u32 %v10452_v48, %v9131_v2 }
 0xbed   :  { %v13891_v61 = vpop.f32.mrf.mxu2 }
 0xbee   :  { %v4363_v48 = vadd.f32 %v13891_v61, %v4161_v52 }
 0xbef   :  { %v13783_v30 = vpop.f32.mrf.mxu0  ;;  %4926 = vmatpush.bf16.msrb.mxu1 %v9154_v33  ;;  %v9126_v33 = vor.u32 %v10450_v44, %v9123_v47 }
 0xbf0   :  { %v13785_v36 = vpop.f32.mrf.mxu1 }
 0xbf5   :  { %v13964_v39 = vpop.f32.mrf.mxu2 }
 0xbf6   :  { %v4365_v2 = vadd.f32 %v13964_v39, %v13779_v15 }
 0xbf7   :  { %v4401_v16 = vpop.f32.mrf.mxu0 }
 0xbf8   :  { %v4415_v59 = vpop.f32.mrf.mxu1 }
 0xbff   :  { %v4403_v29 = vpop.f32.mrf.mxu0 }
 0xc00   :  { %v4417_v27 = vpop.f32.mrf.mxu1  ;;  %v4420_v26 = vpack.c.bf16 %v4403_v29, %v4401_v16  ;;  %v13893_v16 = vpop.f32.mrf.mxu3  ;;  %v10441_v29 = vld [vmem:[%s15556_s7 + $0x334] sm:$0xf0] }
 0xc01   :  { %v4421_v40 = vpack.c.bf16 %v4417_v27, %v4415_v59  ;;  %v9158_v59 = vor.u32 %v10458_v7, %v9155_v58  ;;  %v9145_v27 = vld [vmem:[%s15556_s7 + $0x3b0] sm:$0xf]  ;;  %v4377_v61 = vadd.f32 %v13893_v16, %v4363_v48 }
 0xc02   :  { %4623 = vmatmul.bf16.vlgmr.msrb.gmra.mxu2 %v4420_v26  ;;  %4651 = vmatmul.bf16.vlgmr.msra.gmra.mxu0 %v4420_v26  ;;  %v10457_v26 = vld [vmem:[%s15556_s7 + $0x3b4] sm:$0xf0] }
 0xc03   :  { %4637 = vmatmul.bf16.vlgmr.msrb.gmra.mxu3 %v4421_v40  ;;  %4665 = vmatmul.bf16.vlgmr.msra.gmra.mxu1 %v4421_v40  ;;  %v9082_v40 = vor.u32 %v10441_v29, %v9081_v22 }
 0xc04   :  { %4937 = vmatpush.bf16.msrb.mxu2 %v9118_v11  ;;  %4951 = vmatpush.bf16.msrb.mxu3 %v9182_v31  ;;  %v9137_v11 = vld [vmem:[%s15556_s7 + $0x3a0] sm:$0xf]  ;;  %v9074_v31 = vor.u32 %v10439_v62, %v9073_v6  ;;  %v14009_v62 = vld [vmem:[%s15558_s19 + $0x38] sm:$0xff] }
 0xc05   :  { %4913 = vmatpush.bf16.msrb.mxu0 %v9082_v40  ;;  %v9138_v13 = vor.u32 %v10455_v49, %v9137_v11  ;;  %v14002_v6 = vld [vmem:[%s15558_s19 + $0x20] sm:$0xff]  ;;  %v14023_v11 = vld [vmem:[%s15558_s19 + $0x28] sm:$0xff] }
 0xc08   :  { %4938 = vmatpush.bf16.msrb.mxu2 %v9110_v41  ;;  %4952 = vmatpush.bf16.msrb.mxu3 %v9174_v3  ;;  %v9142_v41 = vor.u32 %v10454_v53, %v9139_v43  ;;  %v9067_v3 = vld [vmem:[%s15556_s7 + $0x318] sm:$0xf0]  ;;  %v13966_v60 = vpop.f32.mrf.mxu3  ;;  %v4337_v43 = vadd.f32 %v13783_v30, %v4135_v38 }
 0xc09   :  { %4914 = vmatpush.bf16.msrb.mxu0 %v9074_v31  ;;  %v9070_v10 = vor.u32 %v10436_v42, %v9067_v3  ;;  %v14029_v31 = vld [vmem:[%s15558_s19] sm:$0xff]  ;;  %v14037_v53 = vld [vmem:[%s15558_s19 + $0x18] sm:$0xff]  ;;  %v4379_v15 = vadd.f32 %v13966_v60, %v4365_v2 }
 0xc0a   :  { %v4351_v30 = vadd.f32 %v13785_v36, %v4337_v43 }
 0xc0c   :  { %4939 = vmatpush.bf16.msrb.mxu2 %v9102_v4  ;;  %4953 = vmatpush.bf16.msrb.mxu3 %v9166_v1  ;;  %v9057_v4 = vld [vmem:[%s15556_s7 + $0x300] sm:$0xf] }
 0xc0d   :  { %4915 = vmatpush.bf16.msrb.mxu0 %v9066_v0  ;;  %v9058_v1 = vor.u32 %v10435_v46, %v9057_v4 }
 0xc10   :  { %4940 = vmatpush.bf16.msrb.mxu2 %v9094_v21  ;;  %4954 = vmatpush.bf16.msrb.mxu3 %v9158_v59 }
 0xc11   :  { %4916 = vmatpush.bf16.msrb.mxu0 %v9058_v1 }
 0xc12   :  { %9021 = vmatmul.msk.bf16.vlgmr.msra.gmra.mxu2 %vm3809_vm5, %v10433_v9 }
 0xc13   :  { %9022 = vmatmul.msk.bf16.vlgmr.msra.gmra.mxu3 %vm3809_vm5, %v10433_v9  ;;  %v9146_v9 = vor.u32 %v10457_v26, %v9145_v27 }
 0xc14   :  { %4941 = vmatpush.bf16.msrb.mxu2 %v9086_v63  ;;  %4955 = vmatpush.bf16.msrb.mxu3 %v9150_v28  ;;  %v14016_v28 = vld [vmem:[%s15558_s19 + $0x10] sm:$0xff] }
 0xc15   :  { %4927 = vmatpush.bf16.msrb.mxu1 %v9146_v9  ;;  %4995 = vmatpush.xpose.msra.mxu0 %v13995_v19 }
 0xc18   :  { %4942 = vmatpush.bf16.msrb.mxu2 %v9078_v56  ;;  %4956 = vmatpush.bf16.msrb.mxu3 %v9142_v41 }
 0xc19   :  { %4928 = vmatpush.bf16.msrb.mxu1 %v9138_v13  ;;  %4996 = vmatpush.xpose.msra.mxu0 %v14002_v6  ;;  %v14046_v13 = vld [vmem:[%s15558_s19 + $0x8] sm:$0xff] }
 0xc1c   :  { %4943 = vmatpush.bf16.msrb.mxu2 %v9070_v10  ;;  %4957 = vmatpush.bf16.msrb.mxu3 %v9134_v8 }
 0xc1d   :  { %4929 = vmatpush.bf16.msrb.mxu1 %v9130_v37  ;;  %4997 = vmatpush.xpose.msra.mxu0 %v14016_v28 }
 0xc20   :  { %4944 = vmatpush.bf16.msrb.mxu2 %v9062_v54  ;;  %4958 = vmatpush.bf16.msrb.mxu3 %v9126_v33 }
 0xc21   :  { %4930 = vmatpush.bf16.msrb.mxu1 %v9122_v23  ;;  %4998 = vmatpush.xpose.msra.mxu0 %v14029_v31 }
 0xc24   :  { %5046 = vmatpush.msra.mxu2 %v13995_v19  ;;  %5066 = vmatpush.msra.mxu3 %v14009_v62 }
 0xc25   :  { %5015 = vmatpush.xpose.msra.mxu1 %v14009_v62 }
 0xc26   :  { %5047 = vmatpush.msra.mxu2 %v14002_v6  ;;  %5067 = vmatpush.msra.mxu3 %v14023_v11 }
 0xc28   :  { %5048 = vmatpush.msra.mxu2 %v14016_v28  ;;  %5068 = vmatpush.msra.mxu3 %v14037_v53 }
 0xc29   :  { %5016 = vmatpush.xpose.msra.mxu1 %v14023_v11 }
 0xc2a   :  { %5049 = vmatpush.msra.mxu2 %v14029_v31  ;;  %5069 = vmatpush.msra.mxu3 %v14046_v13 }
 0xc2d   :  { %5017 = vmatpush.xpose.msra.mxu1 %v14037_v53 }
 0xc31   :  { %5018 = vmatpush.xpose.msra.mxu1 %v14046_v13 }
 0xc7f   :  { %v4652_v18 = vpop.f32.mrf.mxu0 }
 0xc80   :  { %v4666_v50 = vpop.f32.mrf.mxu1 }
 0xc85   :  { %v4624_v21 = vpop.f32.mrf.mxu2 }
 0xc86   :  { %v4638_v7 = vpop.f32.mrf.mxu3 }
 0xc87   :  { %v4654_v63 = vpop.f32.mrf.mxu0  ;;  %v4639_v32 = vadd.f32 %v4638_v7, %v4624_v21 }
 0xc88   :  { %v4668_v12 = vpop.f32.mrf.mxu1 }
 0xc89   :  { %v4671_v42 = vadd.f32 %v4639_v32, %v13781_v45  ;;  %v4667_v45 = vadd.f32 %v4666_v50, %v4652_v18  ;;  %v4669_v0 = vadd.f32 %v4668_v12, %v4654_v63 }
 0xc8b   :  { %v4672_v46 = vadd.f32 %v4667_v45, %v4377_v61  ;;  %v4674_v24 = vadd.f32 %v4669_v0, %v4379_v15  ;;  %v9303_v61 = vld [vmem:[%s15559_s23 + $0xe0] sm:$0xf]  ;;  %v10496_v15 = vld [vmem:[%s15559_s23 + $0xec] sm:$0xf0] }
 0xc8d   :  { %v4626_v58 = vpop.f32.mrf.mxu2 }
 0xc8e   :  { %v4640_v22 = vpop.f32.mrf.mxu3 }
 0xc8f   :  { %v4641_v57 = vadd.f32 %v4640_v22, %v4626_v58 }
 0xc91   :  { %v4673_v3 = vadd.f32 %v4641_v57, %v4351_v30 }
 0xc95   :  { %v4695_v59 = vpop.f32.mrf.mxu2 }
 0xc96   :  { %v4709_v29 = vpop.f32.mrf.mxu3 }
 0xc9d   :  { %v4697_v27 = vpop.f32.mrf.mxu2 }
 0xc9e   :  { %v4711_v26 = vpop.f32.mrf.mxu3  ;;  %v4714_v40 = vpack.c.bf16 %v4697_v27, %v4695_v59  ;;  %v10680_v59 = vmov 128.0  }
 0xc9f   :  { %v4715_v9 = vpack.c.bf16 %v4711_v26, %v4709_v29  ;;  %10670 = vrcp.f32 %v10680_v59 }
 0xca0   :  { %4917 = vmatmul.bf16.vlgmr.msrb.gmra.mxu0 %v4714_v40  ;;  %4945 = vmatmul.bf16.vlgmr.msrb.gmra.mxu2 %v4714_v40 }
 0xca1   :  { %4931 = vmatmul.bf16.vlgmr.msrb.gmra.mxu1 %v4715_v9  ;;  %4959 = vmatmul.bf16.vlgmr.msrb.gmra.mxu3 %v4715_v9 }
 0xca2   :  { %5110 = vmatpush.xpose.msrb.mxu0 %v13995_v19  ;;  %5167 = vmatpush.msrb.mxu2 %v13995_v19 }
 0xca3   :  { %5187 = vmatpush.msrb.mxu3 %v14009_v62  ;;  %5130 = vmatpush.xpose.msrb.mxu1 %v14009_v62 }
 0xca4   :  { %5168 = vmatpush.msrb.mxu2 %v14002_v6 }
 0xca5   :  { %5188 = vmatpush.msrb.mxu3 %v14023_v11  ;;  %v10671_v29 = vpop.eup %10670 }
 0xca6   :  { %5111 = vmatpush.xpose.msrb.mxu0 %v14002_v6  ;;  %5169 = vmatpush.msrb.mxu2 %v14016_v28  ;;  %v5024_v27 = vmul.f32 128.0, %v10671_v29  ;;  %vm5028_vm6 = vweird.f32 %v10671_v29 }
 0xca7   :  { %5189 = vmatpush.msrb.mxu3 %v14037_v53  ;;  %5131 = vmatpush.xpose.msrb.mxu1 %v14023_v11 }
 0xca8   :  { %5170 = vmatpush.msrb.mxu2 %v14029_v31  ;;  %v5025_v26 = vsub.f32 1.0, %v5024_v27 }
 0xca9   :  { %5190 = vmatpush.msrb.mxu3 %v14046_v13 }
 0xcaa   :  { %5112 = vmatpush.xpose.msrb.mxu0 %v14016_v28  ;;  %v5026_v40 = vmul.f32 %v10671_v29, %v5025_v26 }
 0xcab   :  { %5132 = vmatpush.xpose.msrb.mxu1 %v14037_v53 }
 0xcac   :  { %v5027_v9 = vadd.f32 %v10671_v29, %v5026_v40  ;;  %v9239_v40 = vld [vmem:[%s15559_s23 + $0x60] sm:$0xf] }
 0xcae   :  { %5113 = vmatpush.xpose.msrb.mxu0 %v14029_v31  ;;  %v5029_v63 = vsel %vm5028_vm6, %v10671_v29, %v5027_v9  ;;  %v10480_v9 = vld [vmem:[%s15559_s23 + $0x6c] sm:$0xf0] }
 0xcaf   :  { %5133 = vmatpush.xpose.msrb.mxu1 %v14046_v13 }
 0xd1d   :  { %v4918_v49 = vpop.f32.mrf.mxu0 }
 0xd1e   :  { %v4932_v55 = vpop.f32.mrf.mxu1 }
 0xd1f   :  { %v4933_v56 = vadd.f32 %v4932_v55, %v4918_v49 }
 0xd21   :  { %v14068_v34 = vadd.f32 %v4933_v56, %v4671_v42 }
 0xd23   :  { %v4946_v25 = vpop.f32.mrf.mxu2 }
 0xd24   :  { %v4960_v17 = vpop.f32.mrf.mxu3 }
 0xd25   :  { %v4920_v41 = vpop.f32.mrf.mxu0  ;;  %v4961_v10 = vadd.f32 %v4960_v17, %v4946_v25 }
 0xd26   :  { %v4934_v51 = vpop.f32.mrf.mxu1 }
 0xd27   :  { %v4935_v36 = vadd.f32 %v4934_v51, %v4920_v41  ;;  %v4966_v14 = vadd.f32 %v4961_v10, %v4672_v46  ;;  %v9431_v10 = vld [vmem:[%s15559_s23 + $0x1e0] sm:$0xf] }
 0xd29   :  { %v14070_v20 = vadd.f32 %v4935_v36, %v4673_v3 }
 0xd2b   :  { %v4969_v37 = vadd.f32 %v14070_v20, %v14068_v34  ;;  %v4948_v8 = vpop.f32.mrf.mxu2 }
 0xd2c   :  { %v4962_v4 = vpop.f32.mrf.mxu3 }
 0xd2d   :  { %v4970_v39 = vrot.slane %v4969_v37, 4  ;;  %v4963_v1 = vadd.f32 %v4962_v4, %v4948_v8  ;;  %v10528_v8 = vld [vmem:[%s15559_s23 + $0x1ec] sm:$0xf0] }
 0xd2e   :  { %v9432_v46 = vor.u32 %v10528_v8, %v9431_v10  ;;  %v10468_v10 = vld [vmem:[%s15559_s23 + $0xc] sm:$0xf0] }
 0xd2f   :  { %v4971_v5 = vadd.f32 %v4970_v39, %v4969_v37  ;;  %v4968_v35 = vadd.f32 %v4963_v1, %v4674_v24  ;;  %v9304_v39 = vor.u32 %v10496_v15, %v9303_v61  ;;  %v9287_v24 = vld [vmem:[%s15559_s23 + $0xc0] sm:$0xf]  ;;  %v10492_v1 = vld [vmem:[%s15559_s23 + $0xcc] sm:$0xf0] }
 0xd30   :  { %v10504_v61 = vld [vmem:[%s15559_s23 + $0x12c] sm:$0xf0]  ;;  %v9191_v15 = vld [vmem:[%s15559_s23] sm:$0xf] }
 0xd31   :  { %v4972_v23 = vrot.slane %v4971_v5, 2  ;;  %v4976_v54 = vadd.f32 %v4968_v35, %v4966_v14 }
 0xd33   :  { %v4973_v44 = vadd.f32 %v4972_v23, %v4971_v5  ;;  %v4977_v16 = vrot.slane %v4976_v54, 4  ;;  %v9415_v5 = vld [vmem:[%s15559_s23 + $0x1c0] sm:$0xf] }
 0xd35   :  { %v4974_v60 = vrot.slane %v4973_v44, 1  ;;  %v4978_v47 = vadd.f32 %v4977_v16, %v4976_v54  ;;  %v9271_v54 = vld [vmem:[%s15559_s23 + $0xa0] sm:$0xf] }
 0xd36   :  { %v9399_v16 = vld [vmem:[%s15559_s23 + $0x1a0] sm:$0xf] }
 0xd37   :  { %v4975_v33 = vadd.f32 %v4974_v60, %v4973_v44  ;;  %v4979_v21 = vrot.slane %v4978_v47, 2  ;;  %v10488_v44 = vld [vmem:[%s15559_s23 + $0xac] sm:$0xf0] }
 0xd38   :  { %v10520_v60 = vld [vmem:[%s15559_s23 + $0x1ac] sm:$0xf0] }
 0xd39   :  { %4999 = vmatmul.f32.vlgmr.msra.gmra.mxu0 %v4975_v33  ;;  %v4980_v7 = vadd.f32 %v4979_v21, %v4978_v47  ;;  %v9272_v47 = vor.u32 %v10488_v44, %v9271_v54  ;;  %v9400_v33 = vor.u32 %v10520_v60, %v9399_v16  ;;  %v9255_v21 = vld [vmem:[%s15559_s23 + $0x80] sm:$0xf]  ;;  %v9311_v54 = vld [vmem:[%s15559_s23 + $0xe8] sm:$0xf]  ;;  %v10497_v44 = vld [vmem:[%s15559_s23 + $0xf4] sm:$0xf0] }
 0xd3a   :  { %5659 = vmatpush.bf16.msra.mxu0 %v9304_v39  ;;  %v9439_v16 = vld [vmem:[%s15559_s23 + $0x1e8] sm:$0xf]  ;;  %v10529_v60 = vld [vmem:[%s15559_s23 + $0x1f4] sm:$0xf0] }
 0xd3b   :  { %v4981_v58 = vrot.slane %v4980_v7, 1 }
 0xd3d   :  { %v4982_v22 = vadd.f32 %v4981_v58, %v4980_v7  ;;  %v10484_v7 = vld [vmem:[%s15559_s23 + $0x8c] sm:$0xf0]  ;;  %v9383_v58 = vld [vmem:[%s15559_s23 + $0x180] sm:$0xf] }
 0xd3e   :  { %v9256_v27 = vor.u32 %v10484_v7, %v9255_v21  ;;  %v10482_v7 = vld [vmem:[%s15559_s23 + $0x84] sm:$0xf] }
 0xd3f   :  { %5019 = vmatmul.f32.vlgmr.msra.gmra.mxu1 %v4982_v22  ;;  %v10516_v22 = vld [vmem:[%s15559_s23 + $0x18c] sm:$0xf0] }
 0xd40   :  { %5673 = vmatpush.bf16.msra.mxu1 %v9432_v46  ;;  %v9384_v26 = vor.u32 %v10516_v22, %v9383_v58  ;;  %v9273_v46 = vld [vmem:[%s15559_s23 + $0xb0] sm:$0xf0]  ;;  %v10514_v22 = vld [vmem:[%s15559_s23 + $0x184] sm:$0xf] }
 0xd41   :  { %v9257_v58 = vld [vmem:[%s15559_s23 + $0x90] sm:$0xf0] }
 0xdb6   :  { %v5000_v18 = vpop.f32.mrf.mxu0 }
 0xdbc   :  { %v5020_v50 = vpop.f32.mrf.mxu1 }
 0xdbd   :  { %v5021_v12 = vadd.f32 %v5020_v50, %v5000_v18  ;;  %v9367_v50 = vld [vmem:[%s15559_s23 + $0x160] sm:$0xf] }
 0xdbf   :  { %v5030_v49 = vmul.f32 %v5029_v63, %v5021_v12 }
 0xdc1   :  { %9183 = vmatmul.msk.f32.vlgmr.msra.gmra.mxu2 %vm3809_vm5, %v5030_v49  ;;  %9184 = vmatmul.msk.f32.vlgmr.msra.gmra.mxu3 %vm3809_vm5, %v5030_v49  ;;  %v9240_v49 = vor.u32 %v10480_v9, %v9239_v40  ;;  %v9295_v40 = vld [vmem:[%s15559_s23 + $0xc8] sm:$0xf]  ;;  %v10493_v9 = vld [vmem:[%s15559_s23 + $0xd4] sm:$0xf0] }
 0xdc2   :  { %5211 = vmatpush.msra.mxu2 %v13995_v19  ;;  %5231 = vmatpush.msra.mxu3 %v14009_v62 }
 0xdc4   :  { %5212 = vmatpush.msra.mxu2 %v14002_v6  ;;  %5232 = vmatpush.msra.mxu3 %v14023_v11 }
 0xdc6   :  { %5213 = vmatpush.msra.mxu2 %v14016_v28  ;;  %5233 = vmatpush.msra.mxu3 %v14037_v53 }
 0xdc8   :  { %5214 = vmatpush.msra.mxu2 %v14029_v31  ;;  %5234 = vmatpush.msra.mxu3 %v14046_v13 }
 0xe44   :  { %v5051_v55 = vpop.f32.mrf.mxu2  ;;  %v5071_v38 = vpop.f32.mrf.mxu3 }
 0xe45   :  { %v5074_v43 = vperm.slane %v5051_v55, 0  ;;  %v5075_v32 = vperm.slane %v5071_v38, 0  ;;  %v9223_v38 = vld [vmem:[%s15559_s23 + $0x40] sm:$0xf] }
 0xe47   :  { %v14093_v19 = vsub.f32 %v14068_v34, %v5074_v43  ;;  %v14096_v62 = vsub.f32 %v14070_v20, %v5074_v43  ;;  %v14098_v6 = vsub.f32 %v4966_v14, %v5075_v32  ;;  %v14100_v11 = vsub.f32 %v4968_v35, %v5075_v32  ;;  %v10524_v35 = vld [vmem:[%s15559_s23 + $0x1cc] sm:$0xf0] }
 0xe48   :  { %v9288_v14 = vor.u32 %v10492_v1, %v9287_v24  ;;  %v9416_v23 = vor.u32 %v10524_v35, %v9415_v5  ;;  %v10476_v43 = vld [vmem:[%s15559_s23 + $0x4c] sm:$0xf0]  ;;  %v10518_v24 = vld [vmem:[%s15559_s23 + $0x1a4] sm:$0xf]  ;;  %v9401_v1 = vld [vmem:[%s15559_s23 + $0x1b0] sm:$0xf0]  ;;  %v9192_v35 = vor.u32 %v10468_v10, %v9191_v15 }
 0xe49   :  { %v5080_v28 = vmul.f32 %v14093_v19, %v14093_v19  ;;  %v5082_v31 = vmul.f32 %v14096_v62, %v14096_v62  ;;  %v5081_v53 = vmul.f32 %v14098_v6, %v14098_v6  ;;  %v5083_v13 = vmul.f32 %v14100_v11, %v14100_v11  ;;  %v10498_v15 = vld [vmem:[%s15559_s23 + $0x104] sm:$0xf]  ;;  %v9321_v10 = vld [vmem:[%s15559_s23 + $0x110] sm:$0xf0] }
 0xe4a   :  { %5660 = vmatpush.bf16.msra.mxu0 %v9288_v14  ;;  %5674 = vmatpush.bf16.msra.mxu1 %v9416_v23  ;;  %v9319_v14 = vld [vmem:[%s15559_s23 + $0x100] sm:$0xf]  ;;  %v10500_v23 = vld [vmem:[%s15559_s23 + $0x10c] sm:$0xf0]  ;;  %v9404_v21 = vor.u32 %v10518_v24, %v9401_v1  ;;  %v9324_v1 = vor.u32 %v10498_v15, %v9321_v10  ;;  %v9343_v15 = vld [vmem:[%s15559_s23 + $0x128] sm:$0xf] }
 0xe4b   :  { %v5084_v57 = vadd.f32 %v5082_v31, %v5080_v28  ;;  %v5091_v30 = vadd.f32 %v5083_v13, %v5081_v53  ;;  %v10494_v28 = vld [vmem:[%s15559_s23 + $0xe4] sm:$0xf]  ;;  %v9305_v31 = vld [vmem:[%s15559_s23 + $0xf0] sm:$0xf0]  ;;  %v10505_v10 = vld [vmem:[%s15559_s23 + $0x134] sm:$0xf0] }
 0xe4c   :  { %v10526_v53 = vld [vmem:[%s15559_s23 + $0x1e4] sm:$0xf]  ;;  %v9433_v13 = vld [vmem:[%s15559_s23 + $0x1f0] sm:$0xf0] }
 0xe4d   :  { %v5085_v56 = vrot.slane %v5084_v57, 4  ;;  %v5092_v25 = vrot.slane %v5091_v30, 4 }
 0xe4e   :  { %5661 = vmatpush.bf16.msra.mxu0 %v9272_v47  ;;  %5675 = vmatpush.bf16.msra.mxu1 %v9400_v33  ;;  %v5195_v47 = vld [vmem:[%s15561_s14] sm:$0x1] }
 0xe4f   :  { %v5086_v17 = vadd.f32 %v5085_v56, %v5084_v57  ;;  %v5093_v52 = vadd.f32 %v5092_v25, %v5091_v30  ;;  %v5139_v57 = vld [vmem:[%s15560_s13] sm:$0x1]  ;;  %v9224_v56 = vor.u32 %v10476_v43, %v9223_v38  ;;  %v10510_v38 = vld [vmem:[%s15559_s23 + $0x164] sm:$0xf]  ;;  %v9369_v43 = vld [vmem:[%s15559_s23 + $0x170] sm:$0xf0] }
 0xe50   :  { %v9351_v25 = vld [vmem:[%s15559_s23 + $0x140] sm:$0xf] }
 0xe51   :  { %v5087_v41 = vrot.slane %v5086_v17, 2  ;;  %v5094_v51 = vrot.slane %v5093_v52, 2 }
 0xe52   :  { %5662 = vmatpush.bf16.msra.mxu0 %v9256_v27  ;;  %5676 = vmatpush.bf16.msra.mxu1 %v9384_v26  ;;  %v9312_v27 = vor.u32 %v10497_v44, %v9311_v54  ;;  %v9440_v26 = vor.u32 %v10529_v60, %v9439_v16  ;;  %v10523_v54 = vld [vmem:[%s15559_s23 + $0x1cc] sm:$0xf]  ;;  %v9425_v44 = vld [vmem:[%s15559_s23 + $0x1d8] sm:$0xf0] }
 0xe53   :  { %v5088_v42 = vadd.f32 %v5087_v41, %v5086_v17  ;;  %v5095_v3 = vadd.f32 %v5094_v51, %v5093_v52  ;;  %v10508_v17 = vld [vmem:[%s15559_s23 + $0x14c] sm:$0xf0]  ;;  %v9207_v52 = vld [vmem:[%s15559_s23 + $0x20] sm:$0xf]  ;;  %v9428_v60 = vor.u32 %v10523_v54, %v9425_v44  ;;  %v9327_v54 = vld [vmem:[%s15559_s23 + $0x108] sm:$0xf] }
 0xe54   :  { %v10472_v41 = vld [vmem:[%s15559_s23 + $0x2c] sm:$0xf0]  ;;  %v10501_v44 = vld [vmem:[%s15559_s23 + $0x114] sm:$0xf0] }
 0xe55   :  { %v5089_v36 = vrot.slane %v5088_v42, 1  ;;  %v5096_v48 = vrot.slane %v5095_v3, 1 }
 0xe56   :  { %5663 = vmatpush.bf16.msra.mxu0 %v9240_v49  ;;  %v10478_v49 = vld [vmem:[%s15559_s23 + $0x64] sm:$0xf] }
 0xe57   :  { %v5090_v2 = vadd.f32 %v5089_v36, %v5088_v42  ;;  %v5097_v34 = vadd.f32 %v5096_v48, %v5095_v3  ;;  %v9308_v42 = vor.u32 %v10494_v28, %v9305_v31  ;;  %v9436_v3 = vor.u32 %v10526_v53, %v9433_v13  ;;  %v10490_v36 = vld [vmem:[%s15559_s23 + $0xc4] sm:$0xf]  ;;  %v9279_v31 = vld [vmem:[%s15559_s23 + $0xa8] sm:$0xf]  ;;  %v10489_v53 = vld [vmem:[%s15559_s23 + $0xb4] sm:$0xf0] }
 0xe58   :  { %v9407_v13 = vld [vmem:[%s15559_s23 + $0x1a8] sm:$0xf] }
 0xe59   :  { %5114 = vmatmul.f32.vlgmr.msrb.gmra.mxu0 %v5090_v2  ;;  %5134 = vmatmul.f32.vlgmr.msrb.gmra.mxu1 %v5097_v34  ;;  %v9289_v2 = vld [vmem:[%s15559_s23 + $0xd0] sm:$0xf0]  ;;  %v10522_v34 = vld [vmem:[%s15559_s23 + $0x1c4] sm:$0xf] }
 0xe5a   :  { %5664 = vmatpush.bf16.msra.mxu0 %v9224_v56  ;;  %v9292_v39 = vor.u32 %v10490_v36, %v9289_v2  ;;  %v9372_v56 = vor.u32 %v10510_v38, %v9369_v43  ;;  %v9209_v2 = vld [vmem:[%s15559_s23 + $0x30] sm:$0xf0]  ;;  %v10481_v43 = vld [vmem:[%s15559_s23 + $0x74] sm:$0xf0] }
 0xed6   :  { %v5115_v20 = vpop.f32.mrf.mxu0  ;;  %v5135_v45 = vpop.f32.mrf.mxu1 }
 0xed7   :  { %v5136_v0 = vadd.f32 %v5135_v45, %v5115_v20  ;;  %v9417_v20 = vld [vmem:[%s15559_s23 + $0x1d0] sm:$0xf0]  ;;  %v9352_v45 = vor.u32 %v10508_v17, %v9351_v25  ;;  %v10474_v25 = vld [vmem:[%s15559_s23 + $0x44] sm:$0xf] }
 0xed8   :  { %v9420_v8 = vor.u32 %v10522_v34, %v9417_v20  ;;  %v9225_v17 = vld [vmem:[%s15559_s23 + $0x50] sm:$0xf0]  ;;  %v10502_v34 = vld [vmem:[%s15559_s23 + $0x124] sm:$0xf] }
 0xed9   :  { %v5138_v37 = vmul.f32 %v5136_v0, %v5029_v63  ;;  %v10512_v63 = vld [vmem:[%s15559_s23 + $0x16c] sm:$0xf0]  ;;  %v9208_v0 = vor.u32 %v10472_v41, %v9207_v52  ;;  %v10506_v52 = vld [vmem:[%s15559_s23 + $0x144] sm:$0xf]  ;;  %v9353_v41 = vld [vmem:[%s15559_s23 + $0x150] sm:$0xf0] }
 0xeda   :  { %v9368_v55 = vor.u32 %v10512_v63, %v9367_v50  ;;  %v10525_v50 = vld [vmem:[%s15559_s23 + $0x1d4] sm:$0xf0]  ;;  %v9260_v63 = vor.u32 %v10482_v7, %v9257_v58  ;;  %v9356_v36 = vor.u32 %v10506_v52, %v9353_v41  ;;  %v9337_v20 = vld [vmem:[%s15559_s23 + $0x130] sm:$0xf0]  ;;  %v9409_v7 = vld [vmem:[%s15559_s23 + $0x1b8] sm:$0xf0] }
 0xedb   :  { %v5140_v4 = vadd.f32 1e-05, %v5138_v37  ;;  %v9335_v37 = vld [vmem:[%s15559_s23 + $0x120] sm:$0xf]  ;;  %5665 = vmatpush.bf16.msra.mxu0 %v9208_v0  ;;  %v9340_v0 = vor.u32 %v10502_v34, %v9337_v20  ;;  %v9231_v52 = vld [vmem:[%s15559_s23 + $0x48] sm:$0xf] }
 0xedc   :  { %5677 = vmatpush.bf16.msra.mxu1 %v9368_v55  ;;  %v9336_v5 = vor.u32 %v10504_v61, %v9335_v37  ;;  %v9241_v55 = vld [vmem:[%s15559_s23 + $0x70] sm:$0xf0]  ;;  %v10466_v37 = vld [vmem:[%s15559_s23 + $0x4] sm:$0xf]  ;;  %v10477_v41 = vld [vmem:[%s15559_s23 + $0x54] sm:$0xf0] }
 0xedd   :  { %10672 = vrsqrt.f32 %v5140_v4  ;;  %vm5147_vm9 = vweird.f32 %v5140_v4  ;;  %v9193_v61 = vld [vmem:[%s15559_s23 + $0x10] sm:$0xf0]  ;;  %v10507_v20 = vld [vmem:[%s15559_s23 + $0x14c] sm:$0xf] }
 0xede   :  { %v9196_v24 = vor.u32 %v10466_v37, %v9193_v61  ;;  %v10473_v61 = vld [vmem:[%s15559_s23 + $0x34] sm:$0xf0] }
 0xedf   :  { %5666 = vmatpush.bf16.msra.mxu0 %v9192_v35  ;;  %v10491_v35 = vld [vmem:[%s15559_s23 + $0xcc] sm:$0xf] }
 0xee0   :  { %5678 = vmatpush.bf16.msra.mxu1 %v9352_v45 }
 0xee3   :  { %v10673_v59 = vpop.eup %10672  ;;  %5715 = vmatpush.bf16.msrb.mxu0 %v9312_v27  ;;  %v9391_v27 = vld [vmem:[%s15559_s23 + $0x188] sm:$0xf] }
 0xee4   :  { %v5142_v29 = vmul.f32 %v10673_v59, %v5140_v4  ;;  %vm5148_vm7 = vweird.f32 %v10673_v59  ;;  %v10486_v4 = vld [vmem:[%s15559_s23 + $0xa4] sm:$0xf]  ;;  %5679 = vmatpush.bf16.msra.mxu1 %v9336_v5 }
 0xee5   :  { %vm5149_vm10 = vmor %vm5147_vm9, %vm5148_vm7  ;;  %v9276_v33 = vor.u32 %v10486_v4, %v9273_v46  ;;  %v10527_v4 = vld [vmem:[%s15559_s23 + $0x1ec] sm:$0xf]  ;;  %v9441_v46 = vld [vmem:[%s15559_s23 + $0x1f8] sm:$0xf0] }
 0xee6   :  { %v5143_v18 = vmul.f32 %v10673_v59, %v5142_v29  ;;  %v9320_v29 = vor.u32 %v10500_v23, %v9319_v14  ;;  %v9444_v14 = vor.u32 %v10527_v4, %v9441_v46  ;;  %v9297_v23 = vld [vmem:[%s15559_s23 + $0xd8] sm:$0xf0]  ;;  %v10471_v4 = vld [vmem:[%s15559_s23 + $0x2c] sm:$0xf] }
 0xee7   :  { %v9300_v16 = vor.u32 %v10491_v35, %v9297_v23  ;;  %v9217_v46 = vld [vmem:[%s15559_s23 + $0x38] sm:$0xf0]  ;;  %v10469_v35 = vld [vmem:[%s15559_s23 + $0x14] sm:$0xf0] }
 0xee8   :  { %v5144_v12 = vmul.f32 0.5, %v5143_v18  ;;  %v9423_v18 = vld [vmem:[%s15559_s23 + $0x1c8] sm:$0xf]  ;;  %5680 = vmatpush.bf16.msra.mxu1 %v9320_v29  ;;  %v10485_v29 = vld [vmem:[%s15559_s23 + $0x94] sm:$0xf0] }
 0xee9   :  { %v9424_v28 = vor.u32 %v10525_v50, %v9423_v18  ;;  %v9265_v18 = vld [vmem:[%s15559_s23 + $0x98] sm:$0xf0] }
 0xeea   :  { %v5145_v32 = vsub.f32 1.5, %v5144_v12 }
 0xeec   :  { %v5146_v30 = vmul.f32 %v10673_v59, %v5145_v32  ;;  %v9296_v32 = vor.u32 %v10493_v9, %v9295_v40  ;;  %5729 = vmatpush.bf16.msrb.mxu1 %v9440_v26  ;;  %v10517_v40 = vld [vmem:[%s15559_s23 + $0x194] sm:$0xf0]  ;;  %v10483_v9 = vld [vmem:[%s15559_s23 + $0x8c] sm:$0xf] }
 0xeed   :  { %v9392_v50 = vor.u32 %v10517_v40, %v9391_v27 }
 0xeee   :  { %v5150_v51 = vsel %vm5149_vm10, %v10673_v59, %v5146_v30  ;;  %v9385_v59 = vld [vmem:[%s15559_s23 + $0x190] sm:$0xf0]  ;;  %v9244_v30 = vor.u32 %v10478_v49, %v9241_v55  ;;  %5716 = vmatpush.bf16.msrb.mxu0 %v9296_v32  ;;  %v9393_v49 = vld [vmem:[%s15559_s23 + $0x198] sm:$0xf0]  ;;  %v9247_v55 = vld [vmem:[%s15559_s23 + $0x68] sm:$0xf] }
 0xeef   :  { %v5151_v48 = vmul.f32 %v5150_v51, %v5139_v57  ;;  %v9388_v12 = vor.u32 %v10514_v22, %v9385_v59  ;;  %v10521_v57 = vld [vmem:[%s15559_s23 + $0x1b4] sm:$0xf0]  ;;  %v9280_v51 = vor.u32 %v10489_v53, %v9279_v31  ;;  %v9263_v59 = vld [vmem:[%s15559_s23 + $0x88] sm:$0xf]  ;;  %v9248_v31 = vor.u32 %v10481_v43, %v9247_v55 }
 0xef0   :  { %5730 = vmatpush.bf16.msrb.mxu1 %v9424_v28  ;;  %v9264_v26 = vor.u32 %v10485_v29, %v9263_v59  ;;  %v9375_v32 = vld [vmem:[%s15559_s23 + $0x168] sm:$0xf]  ;;  %v10513_v28 = vld [vmem:[%s15559_s23 + $0x174] sm:$0xf0] }
 0xef1   :  { %9185 = vmatmul.msk.f32.vlgmr.msrb.gmra.mxu2 %vm3809_vm5, %v5151_v48  ;;  %9186 = vmatmul.msk.f32.vlgmr.msrb.gmra.mxu3 %vm3809_vm5, %v5151_v48  ;;  %v10470_v48 = vld [vmem:[%s15559_s23 + $0x24] sm:$0xf]  ;;  %v9376_v53 = vor.u32 %v10513_v28, %v9375_v32 }
 0xef2   :  { %5687 = vmatpush.bf16.msrb.mxu2 %v9308_v42  ;;  %5701 = vmatpush.bf16.msrb.mxu3 %v9436_v3  ;;  %v9408_v42 = vor.u32 %v10521_v57, %v9407_v13  ;;  %v9228_v3 = vor.u32 %v10474_v25, %v9225_v17  ;;  %v9212_v45 = vor.u32 %v10470_v48, %v9209_v2  ;;  %v10479_v13 = vld [vmem:[%s15559_s23 + $0x6c] sm:$0xf]  ;;  %v9249_v57 = vld [vmem:[%s15559_s23 + $0x78] sm:$0xf0] }
 0xef3   :  { %5717 = vmatpush.bf16.msrb.mxu0 %v9280_v51  ;;  %v9377_v25 = vld [vmem:[%s15559_s23 + $0x178] sm:$0xf0]  ;;  %v9359_v51 = vld [vmem:[%s15559_s23 + $0x148] sm:$0xf] }
 0xef4   :  { %5731 = vmatpush.bf16.msrb.mxu1 %v9408_v42  ;;  %v9232_v42 = vor.u32 %v10477_v41, %v9231_v52  ;;  %v9233_v48 = vld [vmem:[%s15559_s23 + $0x58] sm:$0xf0]  ;;  %v9604_v52 = vld [vmem:[%s15562_s8 + $0x1f0] sm:$0xf]  ;;  %v10593_v41 = vld [vmem:[%s15562_s8 + $0x1f4] sm:$0xf0] }
 0xef6   :  { %5688 = vmatpush.bf16.msrb.mxu2 %v9292_v39  ;;  %5702 = vmatpush.bf16.msrb.mxu3 %v9420_v8  ;;  %v10495_v39 = vld [vmem:[%s15559_s23 + $0xec] sm:$0xf]  ;;  %v9313_v8 = vld [vmem:[%s15559_s23 + $0xf8] sm:$0xf0] }
 0xef7   :  { %v9316_v5 = vor.u32 %v10495_v39, %v9313_v8  ;;  %5718 = vmatpush.bf16.msrb.mxu0 %v9264_v26  ;;  %v9344_v8 = vor.u32 %v10505_v10, %v9343_v15  ;;  %v10574_v15 = vld [vmem:[%s15562_s8 + $0x164] sm:$0xf]  ;;  %v9534_v10 = vld [vmem:[%s15562_s8 + $0x168] sm:$0xf0] }
 0xef8   :  { %5732 = vmatpush.bf16.msrb.mxu1 %v9392_v50 }
 0xef9   :  { %9187 = vmatmul.msk.f32.vlgmr.msra.gmra.mxu2 %vm3809_vm5, %v5195_v47  ;;  %9188 = vmatmul.msk.f32.vlgmr.msra.gmra.mxu3 %vm3809_vm5, %v5195_v47  ;;  %v10487_v47 = vld [vmem:[%s15559_s23 + $0xac] sm:$0xf]  ;;  %vm7202_vm5 = vcmask 0  }
 0xefa   :  { %5689 = vmatpush.bf16.msrb.mxu2 %v9276_v33  ;;  %5703 = vmatpush.bf16.msrb.mxu3 %v9404_v21  ;;  %v9281_v33 = vld [vmem:[%s15559_s23 + $0xb8] sm:$0xf0]  ;;  %v10519_v21 = vld [vmem:[%s15559_s23 + $0x1ac] sm:$0xf] }
 0xefb   :  { %v9284_v58 = vor.u32 %v10487_v47, %v9281_v33  ;;  %v9412_v22 = vor.u32 %v10519_v21, %v9409_v7  ;;  %5719 = vmatpush.bf16.msrb.mxu0 %v9248_v31  ;;  %v9201_v47 = vld [vmem:[%s15559_s23 + $0x18] sm:$0xf0]  ;;  %v10499_v33 = vld [vmem:[%s15559_s23 + $0x10c] sm:$0xf]  ;;  %v9328_v7 = vor.u32 %v10501_v44, %v9327_v54  ;;  %v10572_v54 = vld [vmem:[%s15562_s8 + $0x154] sm:$0xf] }
 0xefc   :  { %5733 = vmatpush.bf16.msrb.mxu1 %v9376_v53  ;;  %v9329_v21 = vld [vmem:[%s15559_s23 + $0x118] sm:$0xf0] }
 0xefd   :  { %v9526_v44 = vld [vmem:[%s15562_s8 + $0x158] sm:$0xf0] }
 0xefe   :  { %5690 = vmatpush.bf16.msrb.mxu2 %v9260_v63  ;;  %5704 = vmatpush.bf16.msrb.mxu3 %v9388_v12  ;;  %v9268_v63 = vor.u32 %v10483_v9, %v9265_v18  ;;  %v10515_v12 = vld [vmem:[%s15559_s23 + $0x18c] sm:$0xf] }
 0xeff   :  { %v9396_v38 = vor.u32 %v10515_v12, %v9393_v49  ;;  %5720 = vmatpush.bf16.msrb.mxu0 %v9232_v42  ;;  %v9542_v42 = vld [vmem:[%s15562_s8 + $0x178] sm:$0xf0] }
 0xf02   :  { %5691 = vmatpush.bf16.msrb.mxu2 %v9244_v30  ;;  %5705 = vmatpush.bf16.msrb.mxu3 %v9372_v56  ;;  %v10511_v30 = vld [vmem:[%s15559_s23 + $0x16c] sm:$0xf]  ;;  %v9252_v56 = vor.u32 %v10479_v13, %v9249_v57 }
 0xf03   :  { %v9380_v17 = vor.u32 %v10511_v30, %v9377_v25  ;;  %v9540_v25 = vld [vmem:[%s15562_s8 + $0x170] sm:$0xf] }
 0xf06   :  { %5692 = vmatpush.bf16.msrb.mxu2 %v9228_v3  ;;  %5706 = vmatpush.bf16.msrb.mxu3 %v9356_v36  ;;  %v10509_v3 = vld [vmem:[%s15559_s23 + $0x154] sm:$0xf0]  ;;  %v10475_v36 = vld [vmem:[%s15559_s23 + $0x4c] sm:$0xf] }
 0xf07   :  { %v9360_v2 = vor.u32 %v10509_v3, %v9359_v51  ;;  %v9236_v34 = vor.u32 %v10475_v36, %v9233_v48  ;;  %v10576_v51 = vld [vmem:[%s15562_s8 + $0x174] sm:$0xf]  ;;  %v9606_v36 = vld [vmem:[%s15562_s8 + $0x1f8] sm:$0xf0] }
 0xf08   :  { %v10592_v3 = vld [vmem:[%s15562_s8 + $0x1f4] sm:$0xf] }
 0xf09   :  { %5734 = vmatpush.bf16.msrb.mxu1 %v9360_v2  ;;  %v9605_v2 = vor.u32 %v10593_v41, %v9604_v52  ;;  %v9564_v52 = vld [vmem:[%s15562_s8 + $0x1a0] sm:$0xf] }
 0xf0a   :  { %5693 = vmatpush.bf16.msrb.mxu2 %v9212_v45  ;;  %5707 = vmatpush.bf16.msrb.mxu3 %v9340_v0  ;;  %v9361_v45 = vld [vmem:[%s15559_s23 + $0x158] sm:$0xf0]  ;;  %v9215_v0 = vld [vmem:[%s15559_s23 + $0x28] sm:$0xf] }
 0xf0b   :  { %v9364_v37 = vor.u32 %v10507_v20, %v9361_v45  ;;  %v9216_v39 = vor.u32 %v10473_v61, %v9215_v0  ;;  %v10575_v20 = vld [vmem:[%s15562_s8 + $0x164] sm:$0xf0]  ;;  %v9545_v45 = vor.u32 %v10576_v51, %v9542_v42  ;;  %v9609_v0 = vor.u32 %v10592_v3, %v9606_v36  ;;  %v10566_v42 = vld [vmem:[%s15562_s8 + $0x124] sm:$0xf]  ;;  %v9502_v3 = vld [vmem:[%s15562_s8 + $0x128] sm:$0xf0] }
 0xf0c   :  { %v10591_v61 = vld [vmem:[%s15562_s8 + $0x1e4] sm:$0xf0] }
 0xf0d   :  { %5721 = vmatpush.bf16.msrb.mxu0 %v9216_v39  ;;  %5735 = vmatpush.bf16.msrb.mxu1 %v9344_v8  ;;  %v10590_v39 = vld [vmem:[%s15562_s8 + $0x1e4] sm:$0xf]  ;;  %v9598_v8 = vld [vmem:[%s15562_s8 + $0x1e8] sm:$0xf0]  ;;  %v10583_v51 = vld [vmem:[%s15562_s8 + $0x1a4] sm:$0xf0] }
 0xf0e   :  { %5694 = vmatpush.bf16.msrb.mxu2 %v9196_v24  ;;  %5708 = vmatpush.bf16.msrb.mxu3 %v9324_v1  ;;  %v10503_v24 = vld [vmem:[%s15559_s23 + $0x12c] sm:$0xf]  ;;  %v9220_v1 = vor.u32 %v10471_v4, %v9217_v46  ;;  %v9565_v36 = vor.u32 %v10583_v51, %v9564_v52  ;;  %v10557_v52 = vld [vmem:[%s15562_s8 + $0xd4] sm:$0xf0]  ;;  %v9654_v51 = vld [vmem:[%s15562_s8 + $0x58] sm:$0xf0] }
 0xf11   :  { %5736 = vmatpush.bf16.msrb.mxu1 %v9328_v7  ;;  %v10571_v7 = vld [vmem:[%s15562_s8 + $0x144] sm:$0xf0] }
 0xf12   :  { %5743 = vmatpush.bf16.msra.mxu2 %v9316_v5  ;;  %5757 = vmatpush.bf16.msra.mxu3 %v9444_v14  ;;  %v9345_v5 = vld [vmem:[%s15559_s23 + $0x138] sm:$0xf0]  ;;  %v9199_v14 = vld [vmem:[%s15559_s23 + $0x8] sm:$0xf] }
 0xf13   :  { %v9348_v23 = vor.u32 %v10503_v24, %v9345_v5  ;;  %v9524_v24 = vld [vmem:[%s15562_s8 + $0x150] sm:$0xf]  ;;  %v9537_v5 = vor.u32 %v10574_v15, %v9534_v10  ;;  %v10581_v15 = vld [vmem:[%s15562_s8 + $0x194] sm:$0xf0]  ;;  %v10564_v10 = vld [vmem:[%s15562_s8 + $0x114] sm:$0xf] }
 0xf16   :  { %5744 = vmatpush.bf16.msra.mxu2 %v9300_v16  ;;  %5758 = vmatpush.bf16.msra.mxu3 %v9428_v60  ;;  %v10467_v16 = vld [vmem:[%s15559_s23 + $0xc] sm:$0xf]  ;;  %v9200_v60 = vor.u32 %v10469_v35, %v9199_v14  ;;  %v9601_v14 = vor.u32 %v10590_v39, %v9598_v8  ;;  %v9588_v35 = vld [vmem:[%s15562_s8 + $0x1d0] sm:$0xf]  ;;  %v9494_v39 = vld [vmem:[%s15562_s8 + $0x118] sm:$0xf0] }
 0xf18   :  { %5722 = vmatpush.bf16.msrb.mxu0 %v9200_v60  ;;  %v9590_v60 = vld [vmem:[%s15562_s8 + $0x1d8] sm:$0xf0] }
 0xf1a   :  { %5745 = vmatpush.bf16.msra.mxu2 %v9284_v58  ;;  %5759 = vmatpush.bf16.msra.mxu3 %v9412_v22  ;;  %v9204_v58 = vor.u32 %v10467_v16, %v9201_v47  ;;  %v9332_v22 = vor.u32 %v10499_v33, %v9329_v21  ;;  %v10588_v16 = vld [vmem:[%s15562_s8 + $0x1d4] sm:$0xf]  ;;  %v9516_v21 = vld [vmem:[%s15562_s8 + $0x140] sm:$0xf] }
 0xf1e   :  { %5746 = vmatpush.bf16.msra.mxu2 %v9268_v63  ;;  %5760 = vmatpush.bf16.msra.mxu3 %v9396_v38 }
 0xf22   :  { %5747 = vmatpush.bf16.msra.mxu2 %v9252_v56  ;;  %5761 = vmatpush.bf16.msra.mxu3 %v9380_v17  ;;  %v10577_v17 = vld [vmem:[%s15562_s8 + $0x174] sm:$0xf0] }
 0xf23   :  { %v9541_v48 = vor.u32 %v10577_v17, %v9540_v25  ;;  %v9500_v25 = vld [vmem:[%s15562_s8 + $0x120] sm:$0xf]  ;;  %v10567_v17 = vld [vmem:[%s15562_s8 + $0x124] sm:$0xf0] }
 0xf24   :  { %v9501_v41 = vor.u32 %v10567_v17, %v9500_v25  ;;  %v10541_v25 = vld [vmem:[%s15562_s8 + $0x54] sm:$0xf0]  ;;  %v9716_v17 = vld [vmem:[%s15562_s8 + $0xd0] sm:$0xf] }
 0xf26   :  { %5748 = vmatpush.bf16.msra.mxu2 %v9236_v34  ;;  %5762 = vmatpush.bf16.msra.mxu3 %v9364_v37  ;;  %v9532_v34 = vld [vmem:[%s15562_s8 + $0x160] sm:$0xf] }
 0xf27   :  { %v9596_v37 = vld [vmem:[%s15562_s8 + $0x1e0] sm:$0xf]  ;;  %v9533_v4 = vor.u32 %v10575_v20, %v9532_v34  ;;  %v9566_v34 = vld [vmem:[%s15562_s8 + $0x1a8] sm:$0xf0] }
 0xf28   :  { %v9597_v46 = vor.u32 %v10591_v61, %v9596_v37  ;;  %v9556_v37 = vld [vmem:[%s15562_s8 + $0x190] sm:$0xf] }
 0xf29   :  { %v9557_v8 = vor.u32 %v10581_v15, %v9556_v37  ;;  %v9708_v37 = vld [vmem:[%s15562_s8 + $0xc0] sm:$0xf]  ;;  %v10555_v15 = vld [vmem:[%s15562_s8 + $0xc4] sm:$0xf0] }
 0xf2a   :  { %5749 = vmatpush.bf16.msra.mxu2 %v9220_v1  ;;  %5763 = vmatpush.bf16.msra.mxu3 %v9348_v23  ;;  %v10573_v1 = vld [vmem:[%s15562_s8 + $0x154] sm:$0xf0] }
 0xf2b   :  { %v10589_v23 = vld [vmem:[%s15562_s8 + $0x1d4] sm:$0xf0]  ;;  %v9525_v47 = vor.u32 %v10573_v1, %v9524_v24  ;;  %v9558_v24 = vld [vmem:[%s15562_s8 + $0x198] sm:$0xf0]  ;;  %v9484_v1 = vld [vmem:[%s15562_s8 + $0x100] sm:$0xf] }
 0xf2c   :  { %v9589_v33 = vor.u32 %v10589_v23, %v9588_v35  ;;  %v9548_v35 = vld [vmem:[%s15562_s8 + $0x180] sm:$0xf]  ;;  %v10579_v23 = vld [vmem:[%s15562_s8 + $0x184] sm:$0xf0] }
 0xf2e   :  { %5750 = vmatpush.bf16.msra.mxu2 %v9204_v58  ;;  %5764 = vmatpush.bf16.msra.mxu3 %v9332_v22  ;;  %v9529_v58 = vor.u32 %v10572_v54, %v9526_v44  ;;  %v9593_v22 = vor.u32 %v10588_v16, %v9590_v60  ;;  %v9549_v44 = vor.u32 %v10579_v23, %v9548_v35  ;;  %v10562_v16 = vld [vmem:[%s15562_s8 + $0x104] sm:$0xf]  ;;  %v9486_v60 = vld [vmem:[%s15562_s8 + $0x108] sm:$0xf0]  ;;  %v10537_v35 = vld [vmem:[%s15562_s8 + $0x34] sm:$0xf0] }
 0xf2f   :  { %v9700_v23 = vld [vmem:[%s15562_s8 + $0xb0] sm:$0xf] }
 0xf74   :  { %v5172_v59 = vpop.f32.mrf.mxu2  ;;  %v5192_v29 = vpop.f32.mrf.mxu3 }
 0xf75   :  { %v5239_v27 = vperm.slane %v5172_v59, 0  ;;  %v5240_v26 = vperm.slane %v5192_v29, 0  ;;  %v9580_v59 = vld [vmem:[%s15562_s8 + $0x1c0] sm:$0xf]  ;;  %v10587_v29 = vld [vmem:[%s15562_s8 + $0x1c4] sm:$0xf0] }
 0xf77   :  { %v5241_v40 = vmul.f32 %v5239_v27, %v14093_v19  ;;  %v5243_v9 = vmul.f32 %v5239_v27, %v14096_v62  ;;  %v5242_v63 = vmul.f32 %v5240_v26, %v14098_v6  ;;  %v5244_v12 = vmul.f32 %v5240_v26, %v14100_v11  ;;  %v10570_v27 = vld [vmem:[%s15562_s8 + $0x144] sm:$0xf]  ;;  %v9518_v26 = vld [vmem:[%s15562_s8 + $0x148] sm:$0xf0] }
 0xf7c   :  { %v5216_v18 = vpop.f32.mrf.mxu2  ;;  %v5236_v50 = vpop.f32.mrf.mxu3 }
 0xf7d   :  { %v5245_v49 = vperm.slane %v5216_v18, 0  ;;  %v5246_v55 = vperm.slane %v5236_v50, 0  ;;  %v9517_v18 = vor.u32 %v10571_v7, %v9516_v21  ;;  %v9581_v50 = vor.u32 %v10587_v29, %v9580_v59  ;;  %v9550_v21 = vld [vmem:[%s15562_s8 + $0x188] sm:$0xf0]  ;;  %v9668_v7 = vld [vmem:[%s15562_s8 + $0x70] sm:$0xf] }
 0xf7e   :  { %v9732_v29 = vld [vmem:[%s15562_s8 + $0xf0] sm:$0xf] }
 0xf7f   :  { %v5247_v38 = vadd.f32 %v5245_v49, %v5241_v40  ;;  %v5249_v43 = vadd.f32 %v5245_v49, %v5243_v9  ;;  %v5248_v32 = vadd.f32 %v5246_v55, %v5242_v63  ;;  %v5250_v28 = vadd.f32 %v5246_v55, %v5244_v12  ;;  %v10586_v40 = vld [vmem:[%s15562_s8 + $0x1c4] sm:$0xf]  ;;  %v9582_v9 = vld [vmem:[%s15562_s8 + $0x1c8] sm:$0xf0]  ;;  %v9508_v63 = vld [vmem:[%s15562_s8 + $0x130] sm:$0xf] }
 0xf80   :  { %v10569_v12 = vld [vmem:[%s15562_s8 + $0x134] sm:$0xf0]  ;;  %v9521_v49 = vor.u32 %v10570_v27, %v9518_v26  ;;  %v9585_v55 = vor.u32 %v10586_v40, %v9582_v9  ;;  %v10544_v26 = vld [vmem:[%s15562_s8 + $0x74] sm:$0xf]  ;;  %v9670_v9 = vld [vmem:[%s15562_s8 + $0x78] sm:$0xf0] }
 0xf81   :  { %vm5251_vm11 = vcmp.ge.f32.partialorder %v5247_v38, 0.0  ;;  %vm5253_vm12 = vcmp.ge.f32.partialorder %v5249_v43, 0.0  ;;  %v5255_v31 = vmul.f32 0.2, %v5247_v38  ;;  %v5257_v53 = vmul.f32 0.2, %v5249_v43 }
 0xf82   :  { %vm5252_vm13 = vcmp.ge.f32.partialorder %v5248_v32, 0.0  ;;  %vm5254_vm14 = vcmp.ge.f32.partialorder %v5250_v28, 0.0  ;;  %v5256_v19 = vmul.f32 0.2, %v5248_v32  ;;  %v5258_v62 = vmul.f32 0.2, %v5250_v28 }
 0xf83   :  { %v5259_v13 = vsel %vm5251_vm11, %v5247_v38, %v5255_v31  ;;  %v5261_v57 = vsel %vm5253_vm12, %v5249_v43, %v5257_v53  ;;  %v9572_v38 = vld [vmem:[%s15562_s8 + $0x1b0] sm:$0xf]  ;;  %v10585_v43 = vld [vmem:[%s15562_s8 + $0x1b4] sm:$0xf0]  ;;  %v10584_v31 = vld [vmem:[%s15562_s8 + $0x1b4] sm:$0xf] }
 0xf84   :  { %v14508_v30 = vpack.c.bf16 %v5261_v57, %v5259_v13  ;;  %v5260_v6 = vsel %vm5252_vm13, %v5248_v32, %v5256_v19  ;;  %v5262_v11 = vsel %vm5254_vm14, %v5250_v28, %v5258_v62  ;;  %v10568_v32 = vld [vmem:[%s15562_s8 + $0x134] sm:$0xf]  ;;  %v9510_v28 = vld [vmem:[%s15562_s8 + $0x138] sm:$0xf0]  ;;  %v9447_v19 = vld [vmem:[%s15563_s4 + $0x4] sm:$0xf]  ;;  %v9509_v13 = vor.u32 %v10569_v12, %v9508_v63 }
 0xf85   :  { %v14510_v56 = vpack.c.bf16 %v5262_v11, %v5260_v6  ;;  %v9574_v53 = vld [vmem:[%s15562_s8 + $0x1b8] sm:$0xf0]  ;;  %v5795_v62 = vld [vmem:[%s15563_s4] sm:$0xf]  ;;  %v9573_v57 = vor.u32 %v10585_v43, %v9572_v38  ;;  %v9513_v6 = vor.u32 %v10568_v32, %v9510_v28  ;;  %v10561_v27 = vld [vmem:[%s15562_s8 + $0xf4] sm:$0xf0]  ;;  %v9673_v63 = vor.u32 %v10544_v26, %v9670_v9 }
 0xf86   :  { %5667 = vmatmul.bf16.vlgmr.msra.gmra.mxu0 %v14508_v30  ;;  %5695 = vmatmul.bf16.vlgmr.msrb.gmra.mxu2 %v14508_v30  ;;  %v9577_v11 = vor.u32 %v10584_v31, %v9574_v53  ;;  %v9733_v40 = vor.u32 %v10561_v27, %v9732_v29  ;;  %v9724_v43 = vld [vmem:[%s15562_s8 + $0xe0] sm:$0xf]  ;;  %v10559_v32 = vld [vmem:[%s15562_s8 + $0xe4] sm:$0xf0]  ;;  %v10542_v28 = vld [vmem:[%s15562_s8 + $0x64] sm:$0xf] }
 0xf87   :  { %5681 = vmatmul.bf16.vlgmr.msra.gmra.mxu1 %v14510_v56  ;;  %5709 = vmatmul.bf16.vlgmr.msrb.gmra.mxu3 %v14510_v56  ;;  %v14768_v31 = vld [vmem:[%s15564_s24] sm:$0xf]  ;;  %v9725_v53 = vor.u32 %v10559_v32, %v9724_v43  ;;  %v10535_v26 = vld [vmem:[%s15562_s8 + $0x24] sm:$0xf0]  ;;  %v10550_v32 = vld [vmem:[%s15562_s8 + $0xa4] sm:$0xf] }
 0xf88   :  { %5806 = vmatpush.bf16.msra.mxu0 %v14508_v30  ;;  %5819 = vmatpush.bf16.msra.mxu1 %v14510_v56  ;;  %v9628_v27 = vld [vmem:[%s15562_s8 + $0x20] sm:$0xf] }
 0xf89   :  { %5871 = vmatpush.bf16.msrb.mxu2 %v14508_v30  ;;  %5884 = vmatpush.bf16.msrb.mxu3 %v14510_v56 }
 0xf96   :  { %5723 = vmatmul.bf16.vlgmr.msrb.gmra.mxu0 %v14508_v30  ;;  %5751 = vmatmul.bf16.vlgmr.msra.gmra.mxu2 %v14508_v30 }
 0xf97   :  { %5737 = vmatmul.bf16.vlgmr.msrb.gmra.mxu1 %v14510_v56  ;;  %5765 = vmatmul.bf16.vlgmr.msra.gmra.mxu3 %v14510_v56 }
 0xf98   :  { %6085 = vmatpush.bf16.msrb.mxu0 %v9541_v48  ;;  %6098 = vmatpush.bf16.msrb.mxu1 %v9605_v2  ;;  %v9505_v48 = vor.u32 %v10566_v42, %v9502_v3  ;;  %v10582_v2 = vld [vmem:[%s15562_s8 + $0x1a4] sm:$0xf]  ;;  %v10556_v3 = vld [vmem:[%s15562_s8 + $0xd4] sm:$0xf] }
 0xf99   :  { %6111 = vmatpush.bf16.msra.mxu2 %v9545_v45  ;;  %6124 = vmatpush.bf16.msra.mxu3 %v9609_v0  ;;  %v9569_v20 = vor.u32 %v10582_v2, %v9566_v34  ;;  %v9492_v45 = vld [vmem:[%s15562_s8 + $0x110] sm:$0xf]  ;;  %v10565_v0 = vld [vmem:[%s15562_s8 + $0x114] sm:$0xf0]  ;;  %v5331_v34 = vperm.slane %v14768_v31, 0 }
 0xf9a   :  { %v9493_v61 = vor.u32 %v10565_v0, %v9492_v45  ;;  %v9644_v45 = vld [vmem:[%s15562_s8 + $0x40] sm:$0xf]  ;;  %v10539_v0 = vld [vmem:[%s15562_s8 + $0x44] sm:$0xf0] }
 0xf9c   :  { %6086 = vmatpush.bf16.msrb.mxu0 %v9533_v4  ;;  %6099 = vmatpush.bf16.msrb.mxu1 %v9597_v46  ;;  %v9497_v4 = vor.u32 %v10564_v10, %v9494_v39  ;;  %v10580_v46 = vld [vmem:[%s15562_s8 + $0x194] sm:$0xf]  ;;  %v10538_v10 = vld [vmem:[%s15562_s8 + $0x44] sm:$0xf]  ;;  %v9646_v39 = vld [vmem:[%s15562_s8 + $0x48] sm:$0xf0] }
 0xf9d   :  { %6112 = vmatpush.bf16.msra.mxu2 %v9537_v5  ;;  %6125 = vmatpush.bf16.msra.mxu3 %v9601_v14  ;;  %v9561_v5 = vor.u32 %v10580_v46, %v9558_v24  ;;  %v10563_v14 = vld [vmem:[%s15562_s8 + $0x104] sm:$0xf0]  ;;  %v10554_v46 = vld [vmem:[%s15562_s8 + $0xc4] sm:$0xf]  ;;  %v9710_v24 = vld [vmem:[%s15562_s8 + $0xc8] sm:$0xf0] }
 0xf9e   :  { %v9485_v54 = vor.u32 %v10563_v14, %v9484_v1  ;;  %v9636_v1 = vld [vmem:[%s15562_s8 + $0x30] sm:$0xf]  ;;  %v9713_v14 = vor.u32 %v10554_v46, %v9710_v24 }
 0xfa0   :  { %6087 = vmatpush.bf16.msrb.mxu0 %v9525_v47  ;;  %6100 = vmatpush.bf16.msrb.mxu1 %v9589_v33  ;;  %v10578_v47 = vld [vmem:[%s15562_s8 + $0x184] sm:$0xf]  ;;  %v9489_v33 = vor.u32 %v10562_v16, %v9486_v60  ;;  %v10536_v16 = vld [vmem:[%s15562_s8 + $0x34] sm:$0xf]  ;;  %v9638_v60 = vld [vmem:[%s15562_s8 + $0x38] sm:$0xf0] }
 0xfa1   :  { %6113 = vmatpush.bf16.msra.mxu2 %v9529_v58  ;;  %6126 = vmatpush.bf16.msra.mxu3 %v9593_v22  ;;  %v10545_v58 = vld [vmem:[%s15562_s8 + $0x74] sm:$0xf0]  ;;  %v9553_v22 = vor.u32 %v10578_v47, %v9550_v21  ;;  %v10552_v47 = vld [vmem:[%s15562_s8 + $0xb4] sm:$0xf]  ;;  %v9702_v21 = vld [vmem:[%s15562_s8 + $0xb8] sm:$0xf0] }
 0xfa2   :  { %v9669_v59 = vor.u32 %v10545_v58, %v9668_v7  ;;  %v5332_v7 = vperm.slane %v14768_v31, 1 }
 0xfa4   :  { %6088 = vmatpush.bf16.msrb.mxu0 %v9517_v18  ;;  %6101 = vmatpush.bf16.msrb.mxu1 %v9581_v50  ;;  %v10560_v18 = vld [vmem:[%s15562_s8 + $0xf4] sm:$0xf]  ;;  %v9734_v50 = vld [vmem:[%s15562_s8 + $0xf8] sm:$0xf0] }
 0xfa5   :  { %6114 = vmatpush.bf16.msra.mxu2 %v9521_v49  ;;  %6127 = vmatpush.bf16.msra.mxu3 %v9585_v55  ;;  %v9737_v12 = vor.u32 %v10560_v18, %v9734_v50  ;;  %v9660_v49 = vld [vmem:[%s15562_s8 + $0x60] sm:$0xf]  ;;  %v10543_v55 = vld [vmem:[%s15562_s8 + $0x64] sm:$0xf0]  ;;  %v9629_v18 = vor.u32 %v10535_v26, %v9628_v27 }
 0xfa6   :  { %9448 = vmatmul.msk.bf16.vlgmr.msrb.gmra.mxu2 %vm3525_vm8, %v9447_v19  ;;  %9445 = vmatmul.msk.bf16.vlgmr.msra.gmra.mxu0 %vm3525_vm8, %v5795_v62  ;;  %v9661_v38 = vor.u32 %v10543_v55, %v9660_v49  ;;  %v10551_v50 = vld [vmem:[%s15562_s8 + $0xa4] sm:$0xf0] }
 0xfa7   :  { %9449 = vmatmul.msk.bf16.vlgmr.msrb.gmra.mxu3 %vm3525_vm8, %v9447_v19  ;;  %9446 = vmatmul.msk.bf16.vlgmr.msra.gmra.mxu1 %vm3525_vm8, %v5795_v62  ;;  %v9662_v19 = vld [vmem:[%s15562_s8 + $0x68] sm:$0xf0]  ;;  %v10558_v62 = vld [vmem:[%s15562_s8 + $0xe4] sm:$0xf] }
 0xfa8   :  { %6089 = vmatpush.bf16.msrb.mxu0 %v9509_v13  ;;  %6102 = vmatpush.bf16.msrb.mxu1 %v9573_v57  ;;  %v9726_v13 = vld [vmem:[%s15562_s8 + $0xe8] sm:$0xf0]  ;;  %v9665_v57 = vor.u32 %v10542_v28, %v9662_v19 }
 0xfa9   :  { %6115 = vmatpush.bf16.msra.mxu2 %v9513_v6  ;;  %6128 = vmatpush.bf16.msra.mxu3 %v9577_v11  ;;  %v9729_v6 = vor.u32 %v10558_v62, %v9726_v13  ;;  %v9652_v11 = vld [vmem:[%s15562_s8 + $0x50] sm:$0xf]  ;;  %v9694_v28 = vld [vmem:[%s15562_s8 + $0xa8] sm:$0xf0]  ;;  %v10533_v13 = vld [vmem:[%s15562_s8 + $0x14] sm:$0xf0] }
 0xfaa   :  { %v9653_v42 = vor.u32 %v10541_v25, %v9652_v11  ;;  %v9697_v62 = vor.u32 %v10550_v32, %v9694_v28  ;;  %v10609_v32 = vld [vmem:[%s15562_s8 + $0x274] sm:$0xf0]  ;;  %v9895_v28 = vld [vmem:[%s15562_s8 + $0x2f0] sm:$0xf] }
 0xfac   :  { %6090 = vmatpush.bf16.msrb.mxu0 %v9501_v41  ;;  %6103 = vmatpush.bf16.msrb.mxu1 %v9565_v36  ;;  %v10540_v41 = vld [vmem:[%s15562_s8 + $0x54] sm:$0xf]  ;;  %v9718_v36 = vld [vmem:[%s15562_s8 + $0xd8] sm:$0xf0] }
 0xfad   :  { %6116 = vmatpush.bf16.msra.mxu2 %v9505_v48  ;;  %6129 = vmatpush.bf16.msra.mxu3 %v9569_v20  ;;  %v9717_v48 = vor.u32 %v10557_v52, %v9716_v17  ;;  %v9657_v2 = vor.u32 %v10540_v41, %v9654_v51  ;;  %v9721_v20 = vor.u32 %v10556_v3, %v9718_v36  ;;  %v10532_v52 = vld [vmem:[%s15562_s8 + $0x14] sm:$0xf]  ;;  %v9622_v41 = vld [vmem:[%s15562_s8 + $0x18] sm:$0xf0] }
 0xfae   :  { %v10548_v51 = vld [vmem:[%s15562_s8 + $0x94] sm:$0xf]  ;;  %v9686_v3 = vld [vmem:[%s15562_s8 + $0x98] sm:$0xf0] }
 0xfb0   :  { %6091 = vmatpush.bf16.msrb.mxu0 %v9493_v61  ;;  %6104 = vmatpush.bf16.msrb.mxu1 %v9557_v8  ;;  %v9645_v61 = vor.u32 %v10539_v0, %v9644_v45  ;;  %v9709_v8 = vor.u32 %v10555_v15, %v9708_v37  ;;  %v10531_v45 = vld [vmem:[%s15562_s8 + $0x4] sm:$0xf0]  ;;  %v9676_v0 = vld [vmem:[%s15562_s8 + $0x80] sm:$0xf]  ;;  %v9689_v37 = vor.u32 %v10548_v51, %v9686_v3  ;;  %v10530_v15 = vld [vmem:[%s15562_s8 + $0x4] sm:$0xf] }
 0xfb1   :  { %6117 = vmatpush.bf16.msra.mxu2 %v9497_v4  ;;  %6130 = vmatpush.bf16.msra.mxu3 %v9561_v5  ;;  %v9649_v4 = vor.u32 %v10538_v10, %v9646_v39  ;;  %v9614_v10 = vld [vmem:[%s15562_s8 + $0x8] sm:$0xf0]  ;;  %v10623_v51 = vld [vmem:[%s15562_s8 + $0x2e4] sm:$0xf0] }
 0xfb4   :  { %6092 = vmatpush.bf16.msrb.mxu0 %v9485_v54  ;;  %6105 = vmatpush.bf16.msrb.mxu1 %v9549_v44  ;;  %v10553_v54 = vld [vmem:[%s15562_s8 + $0xb4] sm:$0xf0] }
 0xfb5   :  { %6118 = vmatpush.bf16.msra.mxu2 %v9489_v33  ;;  %6131 = vmatpush.bf16.msra.mxu3 %v9553_v22  ;;  %v9637_v33 = vor.u32 %v10537_v35, %v9636_v1  ;;  %v9701_v58 = vor.u32 %v10553_v54, %v9700_v23  ;;  %v9641_v22 = vor.u32 %v10536_v16, %v9638_v60  ;;  %v5333_v16 = vperm.slane %v14768_v31, 2 }
 0xfb6   :  { %v9617_v35 = vor.u32 %v10530_v15, %v9614_v10  ;;  %v9807_v10 = vld [vmem:[%s15562_s8 + $0x240] sm:$0xf] }
 0xfb8   :  { %6297 = vmatpush.bf16.msra.mxu0 %v9669_v59  ;;  %6310 = vmatpush.bf16.msra.mxu1 %v9733_v40  ;;  %v9705_v59 = vor.u32 %v10552_v47, %v9702_v21  ;;  %v9692_v40 = vld [vmem:[%s15562_s8 + $0xa0] sm:$0xf] }
 0xfb9   :  { %6323 = vmatpush.bf16.msrb.mxu2 %v9673_v63  ;;  %6336 = vmatpush.bf16.msrb.mxu3 %v9737_v12  ;;  %v10534_v63 = vld [vmem:[%s15562_s8 + $0x24] sm:$0xf]  ;;  %v9630_v12 = vld [vmem:[%s15562_s8 + $0x28] sm:$0xf0] }
 0xfba   :  { %v9633_v43 = vor.u32 %v10534_v63, %v9630_v12 }
 0xfbc   :  { %6298 = vmatpush.bf16.msra.mxu0 %v9661_v38  ;;  %6311 = vmatpush.bf16.msra.mxu1 %v9725_v53  ;;  %v9693_v38 = vor.u32 %v10551_v50, %v9692_v40  ;;  %v9620_v53 = vld [vmem:[%s15562_s8 + $0x10] sm:$0xf] }
 0xfbd   :  { %6324 = vmatpush.bf16.msrb.mxu2 %v9665_v57  ;;  %6337 = vmatpush.bf16.msrb.mxu3 %v9729_v6  ;;  %v9684_v57 = vld [vmem:[%s15562_s8 + $0x90] sm:$0xf]  ;;  %v10549_v6 = vld [vmem:[%s15562_s8 + $0x94] sm:$0xf0] }
 0xfc0   :  { %6299 = vmatpush.bf16.msra.mxu0 %v9653_v42  ;;  %6312 = vmatpush.bf16.msra.mxu1 %v9717_v48  ;;  %v9621_v42 = vor.u32 %v10533_v13, %v9620_v53  ;;  %v9685_v48 = vor.u32 %v10549_v6, %v9684_v57  ;;  %v10625_v53 = vld [vmem:[%s15562_s8 + $0x2f4] sm:$0xf0] }
 0xfc1   :  { %6325 = vmatpush.bf16.msrb.mxu2 %v9657_v2  ;;  %6338 = vmatpush.bf16.msrb.mxu3 %v9721_v20  ;;  %v9625_v2 = vor.u32 %v10532_v52, %v9622_v41  ;;  %v9612_v20 = vld [vmem:[%s15562_s8] sm:$0xf]  ;;  %v10607_v52 = vld [vmem:[%s15562_s8 + $0x264] sm:$0xf0] }
 0xfc2   :  { %v9613_v24 = vor.u32 %v10531_v45, %v9612_v20  ;;  %v9887_v41 = vld [vmem:[%s15562_s8 + $0x2e0] sm:$0xf]  ;;  %v9879_v20 = vld [vmem:[%s15562_s8 + $0x2d0] sm:$0xf]  ;;  %v10621_v45 = vld [vmem:[%s15562_s8 + $0x2d4] sm:$0xf0] }
 0xfc3   :  { %v9880_v15 = vor.u32 %v10621_v45, %v9879_v20  ;;  %v10616_v45 = vld [vmem:[%s15562_s8 + $0x2b4] sm:$0xf] }
 0xfc4   :  { %6300 = vmatpush.bf16.msra.mxu0 %v9645_v61  ;;  %6313 = vmatpush.bf16.msra.mxu1 %v9709_v8  ;;  %v10547_v61 = vld [vmem:[%s15562_s8 + $0x84] sm:$0xf0]  ;;  %v10546_v8 = vld [vmem:[%s15562_s8 + $0x84] sm:$0xf] }
 0xfc5   :  { %6326 = vmatpush.bf16.msrb.mxu2 %v9649_v4  ;;  %6339 = vmatpush.bf16.msrb.mxu3 %v9713_v14  ;;  %v9678_v4 = vld [vmem:[%s15562_s8 + $0x88] sm:$0xf0]  ;;  %v9677_v14 = vor.u32 %v10547_v61, %v9676_v0 }
 0xfc8   :  { %6301 = vmatpush.bf16.msra.mxu0 %v9637_v33  ;;  %6314 = vmatpush.bf16.msra.mxu1 %v9701_v58  ;;  %v5334_v33 = vperm.slane %v14768_v31, 3 }
 0xfc9   :  { %6327 = vmatpush.bf16.msrb.mxu2 %v9641_v22  ;;  %6340 = vmatpush.bf16.msrb.mxu3 %v9705_v59 }
 0xfcc   :  { %6302 = vmatpush.bf16.msra.mxu0 %v9629_v18  ;;  %6315 = vmatpush.bf16.msra.mxu1 %v9693_v38 }
 0xfcd   :  { %6328 = vmatpush.bf16.msrb.mxu2 %v9633_v43  ;;  %6341 = vmatpush.bf16.msrb.mxu3 %v9697_v62  ;;  %v9831_v43 = vld [vmem:[%s15562_s8 + $0x270] sm:$0xf] }
 0xfce   :  { %v9832_v6 = vor.u32 %v10609_v32, %v9831_v43  ;;  %v10606_v32 = vld [vmem:[%s15562_s8 + $0x264] sm:$0xf] }
 0xfd0   :  { %6303 = vmatpush.bf16.msra.mxu0 %v9621_v42  ;;  %6316 = vmatpush.bf16.msra.mxu1 %v9685_v48  ;;  %v9815_v48 = vld [vmem:[%s15562_s8 + $0x250] sm:$0xf] }
 0xfd1   :  { %6329 = vmatpush.bf16.msrb.mxu2 %v9625_v2  ;;  %6342 = vmatpush.bf16.msrb.mxu3 %v9689_v37  ;;  %v10605_v2 = vld [vmem:[%s15562_s8 + $0x254] sm:$0xf0] }
 0xfd2   :  { %v9816_v61 = vor.u32 %v10605_v2, %v9815_v48  ;;  %v10600_v48 = vld [vmem:[%s15562_s8 + $0x234] sm:$0xf]  ;;  %v9801_v2 = vld [vmem:[%s15562_s8 + $0x238] sm:$0xf0] }
 0xfd4   :  { %6304 = vmatpush.bf16.msra.mxu0 %v9613_v24  ;;  %6317 = vmatpush.bf16.msra.mxu1 %v9677_v14  ;;  %v10601_v14 = vld [vmem:[%s15562_s8 + $0x234] sm:$0xf0] }
 0xfd5   :  { %6330 = vmatpush.bf16.msrb.mxu2 %v9617_v35  ;;  %v9863_v35 = vld [vmem:[%s15562_s8 + $0x2b0] sm:$0xf] }
0x1003   :  { %v5668_v5 = vpop.f32.mrf.mxu0 }
0x1004   :  { %v5682_v44 = vpop.f32.mrf.mxu1  ;;  %v5669_v29 = vadd.f32 %v5668_v5, %v5331_v34 }
0x1006   :  { %v5683_v11 = vadd.f32 %v5682_v44, %v5669_v29 }
0x1009   :  { %v5696_v9 = vpop.f32.mrf.mxu2 }
0x100a   :  { %v5697_v49 = vadd.f32 %v5696_v9, %v5332_v7  ;;  %v5710_v55 = vpop.f32.mrf.mxu3 }
0x100b   :  { %v5670_v19 = vpop.f32.mrf.mxu0 }
0x100c   :  { %v5711_v25 = vadd.f32 %v5710_v55, %v5697_v49  ;;  %v5684_v17 = vpop.f32.mrf.mxu1  ;;  %v5671_v39 = vadd.f32 %v5670_v19, %v5331_v34  ;;  %v9681_v34 = vor.u32 %v10546_v8, %v9678_v4  ;;  %v9871_v8 = vld [vmem:[%s15562_s8 + $0x2c0] sm:$0xf]  ;;  %v10619_v4 = vld [vmem:[%s15562_s8 + $0x2c4] sm:$0xf0] }
0x100d   :  { %v9872_v24 = vor.u32 %v10619_v4, %v9871_v8  ;;  %v9857_v4 = vld [vmem:[%s15562_s8 + $0x2a8] sm:$0xf0] }
0x100e   :  { %v5771_v36 = vpack.c.bf16 %v5711_v25, %v5683_v11  ;;  %v5685_v54 = vadd.f32 %v5684_v17, %v5671_v39  ;;  %6343 = vmatpush.bf16.msrb.mxu3 %v9681_v34  ;;  %v9896_v11 = vor.u32 %v10625_v53, %v9895_v28  ;;  %v9823_v25 = vld [vmem:[%s15562_s8 + $0x260] sm:$0xf]  ;;  %v10603_v39 = vld [vmem:[%s15562_s8 + $0x244] sm:$0xf0]  ;;  %v9825_v28 = vld [vmem:[%s15562_s8 + $0x268] sm:$0xf0] }
0x100f   :  { %v9824_v3 = vor.u32 %v10607_v52, %v9823_v25  ;;  %v10622_v53 = vld [vmem:[%s15562_s8 + $0x2e4] sm:$0xf]  ;;  %v9881_v25 = vld [vmem:[%s15562_s8 + $0x2d8] sm:$0xf0] }
0x1010   :  { %5775 = vst [vmem:[%s15565_s26] sm:$0xff] %v5771_v36  ;;  %v9888_v36 = vor.u32 %v10623_v51, %v9887_v41  ;;  %v10602_v41 = vld [vmem:[%s15562_s8 + $0x244] sm:$0xf]  ;;  %v9809_v51 = vld [vmem:[%s15562_s8 + $0x248] sm:$0xf0] }
0x1011   :  { %v5698_v46 = vpop.f32.mrf.mxu2 }
0x1012   :  { %v5699_v1 = vadd.f32 %v5698_v46, %v5332_v7  ;;  %v5712_v5 = vpop.f32.mrf.mxu3  ;;  %v9808_v46 = vor.u32 %v10603_v39, %v9807_v10  ;;  %v9793_v10 = vld [vmem:[%s15562_s8 + $0x228] sm:$0xf0]  ;;  %v10614_v39 = vld [vmem:[%s15562_s8 + $0x2a4] sm:$0xf] }
0x1013   :  { %v5724_v23 = vpop.f32.mrf.mxu0 }
0x1014   :  { %v5713_v44 = vadd.f32 %v5712_v5, %v5699_v1  ;;  %v5738_v60 = vpop.f32.mrf.mxu1  ;;  %v5725_v21 = vadd.f32 %v5724_v23, %v5333_v16  ;;  %v9799_v1 = vld [vmem:[%s15562_s8 + $0x230] sm:$0xf]  ;;  %v10617_v23 = vld [vmem:[%s15562_s8 + $0x2b4] sm:$0xf0] }
0x1016   :  { %v5773_v47 = vpack.c.bf16 %v5713_v44, %v5685_v54  ;;  %v5739_v29 = vadd.f32 %v5738_v60, %v5725_v21  ;;  %v9800_v54 = vor.u32 %v10601_v14, %v9799_v1  ;;  %v9864_v44 = vor.u32 %v10617_v23, %v9863_v35  ;;  %v10599_v60 = vld [vmem:[%s15562_s8 + $0x224] sm:$0xf0]  ;;  %v9785_v1 = vld [vmem:[%s15562_s8 + $0x218] sm:$0xf0] }
0x1017   :  { %v9849_v14 = vld [vmem:[%s15562_s8 + $0x298] sm:$0xf0] }
0x1018   :  { %5777 = vst [vmem:[%s15565_s26 + $0x10] sm:$0xff] %v5773_v47  ;;  %v9855_v47 = vld [vmem:[%s15562_s8 + $0x2a0] sm:$0xf] }
0x1019   :  { %v5752_v7 = vpop.f32.mrf.mxu2 }
0x101a   :  { %v5753_v58 = vadd.f32 %v5752_v7, %v5334_v33  ;;  %v5766_v22 = vpop.f32.mrf.mxu3 }
0x101b   :  { %v5726_v59 = vpop.f32.mrf.mxu0 }
0x101c   :  { %v5767_v27 = vadd.f32 %v5766_v22, %v5753_v58  ;;  %v5740_v26 = vpop.f32.mrf.mxu1  ;;  %v5727_v31 = vadd.f32 %v5726_v59, %v5333_v16  ;;  %v9791_v16 = vld [vmem:[%s15562_s8 + $0x220] sm:$0xf]  ;;  %v9783_v58 = vld [vmem:[%s15562_s8 + $0x210] sm:$0xf]  ;;  %v10597_v22 = vld [vmem:[%s15562_s8 + $0x214] sm:$0xf0] }
0x101d   :  { %v9792_v21 = vor.u32 %v10599_v60, %v9791_v16  ;;  %v9847_v59 = vld [vmem:[%s15562_s8 + $0x290] sm:$0xf]  ;;  %v10594_v16 = vld [vmem:[%s15562_s8 + $0x204] sm:$0xf]  ;;  %v9777_v60 = vld [vmem:[%s15562_s8 + $0x208] sm:$0xf0] }
0x101e   :  { %v5772_v40 = vpack.c.bf16 %v5767_v27, %v5739_v29  ;;  %v5741_v12 = vadd.f32 %v5740_v26, %v5727_v31  ;;  %v10613_v29 = vld [vmem:[%s15562_s8 + $0x294] sm:$0xf0]  ;;  %v9784_v27 = vor.u32 %v10597_v22, %v9783_v58  ;;  %v10595_v31 = vld [vmem:[%s15562_s8 + $0x204] sm:$0xf0] }
0x101f   :  { %v9848_v26 = vor.u32 %v10613_v29, %v9847_v59 }
0x1020   :  { %5776 = vst [vmem:[%s15565_s26 + $0x8] sm:$0xff] %v5772_v40  ;;  %v9775_v40 = vld [vmem:[%s15562_s8 + $0x200] sm:$0xf] }
0x1021   :  { %v5754_v9 = vpop.f32.mrf.mxu2 }
0x1022   :  { %v5755_v18 = vadd.f32 %v5754_v9, %v5334_v33  ;;  %v5768_v50 = vpop.f32.mrf.mxu3  ;;  %v10615_v33 = vld [vmem:[%s15562_s8 + $0x2a4] sm:$0xf0]  ;;  %v9839_v9 = vld [vmem:[%s15562_s8 + $0x280] sm:$0xf] }
0x1023   :  { %v5808_v63 = vpop.f32.mrf.mxu0  ;;  %v9856_v7 = vor.u32 %v10615_v33, %v9855_v47  ;;  %v10610_v47 = vld [vmem:[%s15562_s8 + $0x284] sm:$0xf]  ;;  %v9780_v33 = vor.u32 %v10594_v16, %v9777_v60  ;;  %v10652_v60 = vld [vmem:[%s15562_s8 + $0x3d4] sm:$0xf] }
0x1024   :  { %v5769_v49 = vadd.f32 %v5768_v50, %v5755_v18  ;;  %v5821_v55 = vpop.f32.mrf.mxu1  ;;  %v5825_v5 = vpack.c.bf16 %v5808_v63, %v5808_v63  ;;  %v10611_v18 = vld [vmem:[%s15562_s8 + $0x284] sm:$0xf0]  ;;  %v9776_v50 = vor.u32 %v10595_v31, %v9775_v40 }
0x1025   :  { %v5826_v34 = vpack.c.bf16 %v5821_v55, %v5821_v55  ;;  %v9840_v63 = vor.u32 %v10611_v18, %v9839_v9  ;;  %v9833_v55 = vld [vmem:[%s15562_s8 + $0x278] sm:$0xf0] }
0x1026   :  { %v5774_v38 = vpack.c.bf16 %v5769_v49, %v5741_v12  ;;  %v9738_v12 = vld [vmem:[%s15563_s4 + $0x8] sm:$0xf]  ;;  %v10608_v49 = vld [vmem:[%s15562_s8 + $0x274] sm:$0xf] }
0x1027   :  { %v9836_v43 = vor.u32 %v10608_v49, %v9833_v55  ;;  %v10058_v49 = vld [vmem:[%s15562_s8 + $0x3f0] sm:$0xf] }
0x1028   :  { %5778 = vst [vmem:[%s15565_s26 + $0x18] sm:$0xff] %v5774_v38  ;;  %v10624_v38 = vld [vmem:[%s15562_s8 + $0x2f4] sm:$0xf] }
0x1029   :  { %v5873_v19 = vpop.f32.mrf.mxu2 }
0x102a   :  { %v5890_v62 = vpack.c.bf16 %v5873_v19, %v5873_v19  ;;  %v5886_v13 = vpop.f32.mrf.mxu3  ;;  %v9828_v19 = vor.u32 %v10606_v32, %v9825_v28 }
0x102b   :  { %v5891_v57 = vpack.c.bf16 %v5886_v13, %v5886_v13  ;;  %v5810_v17 = vpop.f32.mrf.mxu0  ;;  %v10604_v13 = vld [vmem:[%s15562_s8 + $0x254] sm:$0xf] }
0x102c   :  { %6093 = vmatmul.bf16.vlgmr.msrb.gmra.mxu0 %v5890_v62  ;;  %6119 = vmatmul.bf16.vlgmr.msra.gmra.mxu2 %v5890_v62  ;;  %v5823_v42 = vpop.f32.mrf.mxu1  ;;  %v9889_v62 = vld [vmem:[%s15562_s8 + $0x2e8] sm:$0xf0] }
0x102d   :  { %6106 = vmatmul.bf16.vlgmr.msrb.gmra.mxu1 %v5891_v57  ;;  %6132 = vmatmul.bf16.vlgmr.msra.gmra.mxu3 %v5891_v57  ;;  %v9817_v57 = vld [vmem:[%s15562_s8 + $0x258] sm:$0xf0]  ;;  %v10618_v42 = vld [vmem:[%s15562_s8 + $0x2c4] sm:$0xf] }
0x102e   :  { %6361 = vmatpush.bf16.msrb.mxu0 %v14508_v30  ;;  %6374 = vmatpush.bf16.msrb.mxu1 %v14510_v56  ;;  %v9820_v17 = vor.u32 %v10604_v13, %v9817_v57 }
0x102f   :  { %6575 = vmatpush.bf16.msra.mxu2 %v9832_v6  ;;  %6588 = vmatpush.bf16.msra.mxu3 %v9896_v11  ;;  %v9892_v6 = vor.u32 %v10622_v53, %v9889_v62  ;;  %v10620_v11 = vld [vmem:[%s15562_s8 + $0x2d4] sm:$0xf]  ;;  %v10639_v53 = vld [vmem:[%s15562_s8 + $0x364] sm:$0xf0] }
0x1030   :  { %v9884_v52 = vor.u32 %v10620_v11, %v9881_v25  ;;  %v10655_v62 = vld [vmem:[%s15562_s8 + $0x3e4] sm:$0xf0] }
0x1031   :  { %v5875_v0 = vpop.f32.mrf.mxu2 }
0x1032   :  { %v5888_v37 = vpop.f32.mrf.mxu3  ;;  %v9865_v0 = vld [vmem:[%s15562_s8 + $0x2b8] sm:$0xf0] }
0x1033   :  { %6576 = vmatpush.bf16.msra.mxu2 %v9824_v3  ;;  %6589 = vmatpush.bf16.msra.mxu3 %v9888_v36  ;;  %v9812_v3 = vor.u32 %v10602_v41, %v9809_v51  ;;  %v9873_v36 = vld [vmem:[%s15562_s8 + $0x2c8] sm:$0xf0]  ;;  %v9804_v37 = vor.u32 %v10600_v48, %v9801_v2  ;;  %v9996_v51 = vld [vmem:[%s15562_s8 + $0x378] sm:$0xf0] }
0x1034   :  { %v9876_v20 = vor.u32 %v10618_v42, %v9873_v36  ;;  %v10656_v42 = vld [vmem:[%s15562_s8 + $0x3f4] sm:$0xf] }
0x1037   :  { %6577 = vmatpush.bf16.msra.mxu2 %v9816_v61  ;;  %6590 = vmatpush.bf16.msra.mxu3 %v9880_v15  ;;  %v9868_v61 = vor.u32 %v10616_v45, %v9865_v0  ;;  %v10598_v15 = vld [vmem:[%s15562_s8 + $0x224] sm:$0xf] }
0x1038   :  { %v9796_v8 = vor.u32 %v10598_v15, %v9793_v10  ;;  %v10654_v15 = vld [vmem:[%s15562_s8 + $0x3e4] sm:$0xf]  ;;  %v10052_v10 = vld [vmem:[%s15562_s8 + $0x3e8] sm:$0xf0] }
0x103b   :  { %6578 = vmatpush.bf16.msra.mxu2 %v9808_v46  ;;  %6591 = vmatpush.bf16.msra.mxu3 %v9872_v24  ;;  %v9860_v46 = vor.u32 %v10614_v39, %v9857_v4  ;;  %v10596_v24 = vld [vmem:[%s15562_s8 + $0x214] sm:$0xf] }
0x103c   :  { %6305 = vmatmul.bf16.vlgmr.msra.gmra.mxu0 %v5825_v5  ;;  %6331 = vmatmul.bf16.vlgmr.msrb.gmra.mxu2 %v5825_v5  ;;  %v10612_v5 = vld [vmem:[%s15562_s8 + $0x294] sm:$0xf]  ;;  %v9788_v35 = vor.u32 %v10596_v24, %v9785_v1  ;;  %v9901_v24 = vld [vmem:[%s15563_s4 + $0xc] sm:$0xf]  ;;  %v9978_v1 = vld [vmem:[%s15562_s8 + $0x350] sm:$0xf] }
0x103d   :  { %6318 = vmatmul.bf16.vlgmr.msra.gmra.mxu1 %v5826_v34  ;;  %6344 = vmatmul.bf16.vlgmr.msrb.gmra.mxu3 %v5826_v34  ;;  %v9852_v23 = vor.u32 %v10612_v5, %v9849_v14  ;;  %v10637_v5 = vld [vmem:[%s15562_s8 + $0x354] sm:$0xf0]  ;;  %v10042_v14 = vld [vmem:[%s15562_s8 + $0x3d0] sm:$0xf] }
0x103e   :  { %6601 = vmatpush.bf16.msra.mxu0 %v9836_v43 }
0x103f   :  { %6579 = vmatpush.bf16.msra.mxu2 %v9800_v54  ;;  %6592 = vmatpush.bf16.msra.mxu3 %v9864_v44 }
0x1042   :  { %6602 = vmatpush.bf16.msra.mxu0 %v9828_v19  ;;  %v10050_v19 = vld [vmem:[%s15562_s8 + $0x3e0] sm:$0xf] }
0x1043   :  { %6580 = vmatpush.bf16.msra.mxu2 %v9792_v21  ;;  %6593 = vmatpush.bf16.msra.mxu3 %v9856_v7  ;;  %v9841_v21 = vld [vmem:[%s15562_s8 + $0x288] sm:$0xf0] }
0x1044   :  { %v9844_v7 = vor.u32 %v10610_v47, %v9841_v21  ;;  %v10044_v47 = vld [vmem:[%s15562_s8 + $0x3d8] sm:$0xf0]  ;;  %v9970_v21 = vld [vmem:[%s15562_s8 + $0x340] sm:$0xf] }
0x1046   :  { %6603 = vmatpush.bf16.msra.mxu0 %v9820_v17 }
0x1047   :  { %6581 = vmatpush.bf16.msra.mxu2 %v9784_v27  ;;  %6594 = vmatpush.bf16.msra.mxu3 %v9848_v26 }
0x104a   :  { %6604 = vmatpush.bf16.msra.mxu0 %v9812_v3  ;;  %v10060_v3 = vld [vmem:[%s15562_s8 + $0x3f8] sm:$0xf0] }
0x104b   :  { %6582 = vmatpush.bf16.msra.mxu2 %v9776_v50  ;;  %6595 = vmatpush.bf16.msra.mxu3 %v9840_v63  ;;  %v9994_v63 = vld [vmem:[%s15562_s8 + $0x370] sm:$0xf]  ;;  %v10063_v0 = vor.u32 %v10656_v42, %v10060_v3 }
0x104c   :  { %9739 = vmatmul.msk.bf16.vlgmr.msrb.gmra.mxu0 %vm3525_vm8, %v9738_v12 }
0x104d   :  { %9740 = vmatmul.msk.bf16.vlgmr.msrb.gmra.mxu1 %vm3525_vm8, %v9738_v12  ;;  %v10641_v12 = vld [vmem:[%s15562_s8 + $0x374] sm:$0xf0] }
0x104e   :  { %6605 = vmatpush.bf16.msra.mxu0 %v9804_v37  ;;  %v9995_v55 = vor.u32 %v10641_v12, %v9994_v63  ;;  %v10638_v37 = vld [vmem:[%s15562_s8 + $0x364] sm:$0xf]  ;;  %v10633_v12 = vld [vmem:[%s15562_s8 + $0x334] sm:$0xf0] }
0x104f   :  { %6641 = vmatpush.bf16.msrb.mxu2 %v14508_v30  ;;  %6654 = vmatpush.bf16.msrb.mxu3 %v14510_v56  ;;  %v9897_v30 = vld [vmem:[%s15562_s8 + $0x2f8] sm:$0xf0] }
0x1050   :  { %v9900_v56 = vor.u32 %v10624_v38, %v9897_v30  ;;  %v10657_v38 = vld [vmem:[%s15562_s8 + $0x3f4] sm:$0xf0] }
0x1051   :  { %v10059_v30 = vor.u32 %v10657_v38, %v10058_v49  ;;  %v10026_v49 = vld [vmem:[%s15562_s8 + $0x3b0] sm:$0xf] }
0x1052   :  { %6614 = vmatpush.bf16.msra.mxu1 %v9900_v56  ;;  %6606 = vmatpush.bf16.msra.mxu0 %v9796_v8  ;;  %v9986_v56 = vld [vmem:[%s15562_s8 + $0x360] sm:$0xf]  ;;  %v10055_v8 = vor.u32 %v10654_v15, %v10052_v10  ;;  %v10012_v15 = vld [vmem:[%s15562_s8 + $0x398] sm:$0xf0] }
0x1053   :  { %v9987_v57 = vor.u32 %v10639_v53, %v9986_v56  ;;  %v9964_v56 = vld [vmem:[%s15562_s8 + $0x338] sm:$0xf0] }
0x1054   :  { %v10028_v53 = vld [vmem:[%s15562_s8 + $0x3b8] sm:$0xf0] }
0x1056   :  { %6615 = vmatpush.bf16.msra.mxu1 %v9892_v6  ;;  %6607 = vmatpush.bf16.msra.mxu0 %v9788_v35  ;;  %v10051_v6 = vor.u32 %v10655_v62, %v10050_v19  ;;  %v9979_v35 = vor.u32 %v10637_v5, %v9978_v1  ;;  %v9954_v19 = vld [vmem:[%s15562_s8 + $0x320] sm:$0xf]  ;;  %v10631_v62 = vld [vmem:[%s15562_s8 + $0x324] sm:$0xf0] }
0x1057   :  { %v10002_v1 = vld [vmem:[%s15562_s8 + $0x380] sm:$0xf] }
0x105a   :  { %6616 = vmatpush.bf16.msra.mxu1 %v9884_v52  ;;  %6608 = vmatpush.bf16.msra.mxu0 %v9780_v33  ;;  %v10640_v52 = vld [vmem:[%s15562_s8 + $0x374] sm:$0xf]  ;;  %v10047_v33 = vor.u32 %v10652_v60, %v10044_v47 }
0x105b   :  { %v9999_v45 = vor.u32 %v10640_v52, %v9996_v51  ;;  %v9956_v52 = vld [vmem:[%s15562_s8 + $0x328] sm:$0xf0]  ;;  %v15348_v47 = vld [vmem:[%s15566_s20 + $0x70] sm:$0xff] }
0x105c   :  { %v10020_v51 = vld [vmem:[%s15562_s8 + $0x3a8] sm:$0xf0] }
0x105e   :  { %6617 = vmatpush.bf16.msra.mxu1 %v9876_v20  ;;  %6855 = vmatpush.bf16.msrb.mxu0 %v9995_v55  ;;  %v10649_v55 = vld [vmem:[%s15562_s8 + $0x3b4] sm:$0xf0] }
0x1062   :  { %6618 = vmatpush.bf16.msra.mxu1 %v9868_v61  ;;  %6856 = vmatpush.bf16.msrb.mxu0 %v9987_v57  ;;  %v9988_v61 = vld [vmem:[%s15562_s8 + $0x368] sm:$0xf0]  ;;  %v10018_v57 = vld [vmem:[%s15562_s8 + $0x3a0] sm:$0xf] }
0x1063   :  { %v9991_v39 = vor.u32 %v10638_v37, %v9988_v61  ;;  %v9948_v37 = vld [vmem:[%s15562_s8 + $0x318] sm:$0xf0]  ;;  %v10644_v61 = vld [vmem:[%s15562_s8 + $0x394] sm:$0xf] }
0x1066   :  { %6619 = vmatpush.bf16.msra.mxu1 %v9860_v46  ;;  %6857 = vmatpush.bf16.msrb.mxu0 %v9979_v35  ;;  %v10626_v35 = vld [vmem:[%s15562_s8 + $0x304] sm:$0xf] }
0x106a   :  { %6620 = vmatpush.bf16.msra.mxu1 %v9852_v23  ;;  %v10653_v23 = vld [vmem:[%s15562_s8 + $0x3d4] sm:$0xf0] }
0x106e   :  { %6621 = vmatpush.bf16.msra.mxu1 %v9844_v7  ;;  %v10635_v7 = vld [vmem:[%s15562_s8 + $0x344] sm:$0xf0] }
0x1072   :  { %6868 = vmatpush.bf16.msrb.mxu1 %v10059_v30  ;;  %v10632_v30 = vld [vmem:[%s15562_s8 + $0x334] sm:$0xf] }
0x1076   :  { %6869 = vmatpush.bf16.msrb.mxu1 %v10051_v6  ;;  %v10647_v6 = vld [vmem:[%s15562_s8 + $0x3a4] sm:$0xf0] }
0x1077   :  { %v10019_v42 = vor.u32 %v10647_v6, %v10018_v57  ;;  %v15438_v57 = vld [vmem:[%s15566_s20 + $0x28] sm:$0xff]  ;;  %v15445_v6 = vld [vmem:[%s15566_s20] sm:$0xff] }
0x10a9   :  { %v6094_v34 = vpop.f32.mrf.mxu0 }
0x10aa   :  { %v6107_v54 = vpop.f32.mrf.mxu1 }
0x10ab   :  { %v6108_v44 = vadd.f32 %v6107_v54, %v6094_v34  ;;  %v10636_v34 = vld [vmem:[%s15562_s8 + $0x354] sm:$0xf]  ;;  %v9980_v54 = vld [vmem:[%s15562_s8 + $0x358] sm:$0xf0] }
0x10ac   :  { %v9983_v16 = vor.u32 %v10636_v34, %v9980_v54 }
0x10af   :  { %v6120_v58 = vpop.f32.mrf.mxu2 }
0x10b0   :  { %v6133_v22 = vpop.f32.mrf.mxu3 }
0x10b1   :  { %v6134_v59 = vadd.f32 %v6133_v22, %v6120_v58  ;;  %v6096_v29 = vpop.f32.mrf.mxu0  ;;  %v10034_v58 = vld [vmem:[%s15562_s8 + $0x3c0] sm:$0xf]  ;;  %v9971_v22 = vor.u32 %v10635_v7, %v9970_v21  ;;  %v15365_v7 = vld [vmem:[%s15566_s20 + $0x68] sm:$0xff] }
0x10b2   :  { %v6109_v27 = vpop.f32.mrf.mxu1  ;;  %v10634_v29 = vld [vmem:[%s15562_s8 + $0x344] sm:$0xf] }
0x10b3   :  { %v9972_v27 = vld [vmem:[%s15562_s8 + $0x348] sm:$0xf0]  ;;  %6858 = vmatpush.bf16.msrb.mxu0 %v9971_v22  ;;  %v15360_v21 = vld [vmem:[%s15566_s20 + $0x60] sm:$0xff] }
0x10b7   :  { %v6122_v26 = vpop.f32.mrf.mxu2 }
0x10b8   :  { %v6135_v40 = vpop.f32.mrf.mxu3 }
0x10b9   :  { %v6306_v31 = vpop.f32.mrf.mxu0  ;;  %v9975_v40 = vor.u32 %v10634_v29, %v9972_v27  ;;  %v15375_v29 = vld [vmem:[%s15566_s20 + $0x50] sm:$0xff] }
0x10ba   :  { %v6307_v9 = vadd.f32 %v6306_v31, %v6108_v44  ;;  %v6319_v18 = vpop.f32.mrf.mxu1  ;;  %v10043_v44 = vor.u32 %v10653_v23, %v10042_v14  ;;  %v10650_v31 = vld [vmem:[%s15562_s8 + $0x3c4] sm:$0xf]  ;;  %v10643_v14 = vld [vmem:[%s15562_s8 + $0x384] sm:$0xf0]  ;;  %v9940_v23 = vld [vmem:[%s15562_s8 + $0x308] sm:$0xf0] }
0x10bb   :  { %v10003_v34 = vor.u32 %v10643_v14, %v10002_v1  ;;  %v9943_v54 = vor.u32 %v10626_v35, %v9940_v23  ;;  %v10681_v23 = vmov 32.0  }
0x10bc   :  { %v15144_v50 = vadd.f32 %v6319_v18, %v6307_v9  ;;  %6870 = vmatpush.bf16.msrb.mxu1 %v10043_v44  ;;  %v10036_v9 = vld [vmem:[%s15562_s8 + $0x3c8] sm:$0xf0]  ;;  %v9962_v18 = vld [vmem:[%s15562_s8 + $0x330] sm:$0xf]  ;;  %v10642_v44 = vld [vmem:[%s15562_s8 + $0x384] sm:$0xf]  ;;  %10674 = vrcp.f32 %v10681_v23 }
0x10bd   :  { %v10039_v63 = vor.u32 %v10650_v31, %v10036_v9  ;;  %v9963_v38 = vor.u32 %v10633_v12, %v9962_v18 }
0x10bf   :  { %v6332_v43 = vpop.f32.mrf.mxu2  ;;  %6859 = vmatpush.bf16.msrb.mxu0 %v9963_v38 }
0x10c0   :  { %v6333_v32 = vadd.f32 %v6332_v43, %v6134_v59  ;;  %v6345_v28 = vpop.f32.mrf.mxu3  ;;  %v10651_v59 = vld [vmem:[%s15562_s8 + $0x3c4] sm:$0xf0]  ;;  %v10027_v43 = vor.u32 %v10649_v55, %v10026_v49 }
0x10c1   :  { %v6308_v13 = vpop.f32.mrf.mxu0  ;;  %v10035_v26 = vor.u32 %v10651_v59, %v10034_v58 }
0x10c2   :  { %v15170_v11 = vadd.f32 %v6345_v28, %v6333_v32  ;;  %v6321_v25 = vpop.f32.mrf.mxu1  ;;  %v10648_v32 = vld [vmem:[%s15562_s8 + $0x3b4] sm:$0xf]  ;;  %v9967_v28 = vor.u32 %v10632_v30, %v9964_v56 }
0x10c3   :  { %6871 = vmatpush.bf16.msrb.mxu1 %v10035_v26  ;;  %v10031_v13 = vor.u32 %v10648_v32, %v10028_v53  ;;  %v10630_v25 = vld [vmem:[%s15562_s8 + $0x324] sm:$0xf]  ;;  %v15410_v53 = vld [vmem:[%s15566_s20 + $0x48] sm:$0xff] }
0x10c4   :  { %v9959_v3 = vor.u32 %v10630_v25, %v9956_v52  ;;  %v15385_v26 = vld [vmem:[%s15566_s20 + $0x40] sm:$0xff]  ;;  %v15451_v25 = vld [vmem:[%s15566_s20 + $0x18] sm:$0xff] }
0x10c7   :  { %v6334_v17 = vpop.f32.mrf.mxu2  ;;  %6872 = vmatpush.bf16.msrb.mxu1 %v10027_v43 }
0x10c8   :  { %v6347_v41 = vpop.f32.mrf.mxu3  ;;  %v9955_v17 = vor.u32 %v10631_v62, %v9954_v19  ;;  %v15417_v19 = vld [vmem:[%s15566_s20 + $0x20] sm:$0xff]  ;;  %v15424_v62 = vld [vmem:[%s15566_s20 + $0x38] sm:$0xff] }
0x10c9   :  { %v6363_v36 = vpop.f32.mrf.mxu0  ;;  %v10646_v41 = vld [vmem:[%s15562_s8 + $0x3a4] sm:$0xf] }
0x10ca   :  { %v6376_v48 = vpop.f32.mrf.mxu1  ;;  %v6380_v2 = vpack.c.bf16 %v6363_v36, %v6363_v36  ;;  %v9946_v36 = vld [vmem:[%s15562_s8 + $0x310] sm:$0xf]  ;;  %6860 = vmatpush.bf16.msrb.mxu0 %v9955_v17  ;;  %v15460_v17 = vld [vmem:[%s15566_s20 + $0x8] sm:$0xff] }
0x10cb   :  { %v6381_v20 = vpack.c.bf16 %v6376_v48, %v6376_v48  ;;  %v10629_v48 = vld [vmem:[%s15562_s8 + $0x314] sm:$0xf0]  ;;  %6873 = vmatpush.bf16.msrb.mxu1 %v10019_v42 }
0x10cc   :  { %6583 = vmatmul.bf16.vlgmr.msra.gmra.mxu2 %v6380_v2  ;;  %6609 = vmatmul.bf16.vlgmr.msra.gmra.mxu0 %v6380_v2  ;;  %v10010_v2 = vld [vmem:[%s15562_s8 + $0x390] sm:$0xf]  ;;  %v9947_v10 = vor.u32 %v10629_v48, %v9946_v36 }
0x10cd   :  { %6596 = vmatmul.bf16.vlgmr.msra.gmra.mxu3 %v6381_v20  ;;  %6622 = vmatmul.bf16.vlgmr.msra.gmra.mxu1 %v6381_v20  ;;  %v10023_v20 = vor.u32 %v10646_v41, %v10020_v51 }
0x10ce   :  { %6881 = vmatpush.bf16.msra.mxu2 %v9999_v45  ;;  %6894 = vmatpush.bf16.msra.mxu3 %v10063_v0  ;;  %v10645_v45 = vld [vmem:[%s15562_s8 + $0x394] sm:$0xf0]  ;;  %v10628_v0 = vld [vmem:[%s15562_s8 + $0x314] sm:$0xf] }
0x10cf   :  { %6861 = vmatpush.bf16.msrb.mxu0 %v9947_v10 }
0x10d1   :  { %v6365_v4 = vpop.f32.mrf.mxu0 }
0x10d2   :  { %v6378_v46 = vpop.f32.mrf.mxu1  ;;  %6882 = vmatpush.bf16.msra.mxu2 %v9991_v39  ;;  %6895 = vmatpush.bf16.msra.mxu3 %v10055_v8  ;;  %v10011_v39 = vor.u32 %v10645_v45, %v10010_v2  ;;  %v9951_v8 = vor.u32 %v10628_v0, %v9948_v37  ;;  %v10015_v4 = vor.u32 %v10644_v61, %v10012_v15 }
0x10d3   :  { %v9938_v46 = vld [vmem:[%s15562_s8 + $0x300] sm:$0xf] }
0x10d4   :  { %6874 = vmatpush.bf16.msrb.mxu1 %v10011_v39 }
0x10d6   :  { %6883 = vmatpush.bf16.msra.mxu2 %v9983_v16  ;;  %6896 = vmatpush.bf16.msra.mxu3 %v10047_v33  ;;  %v10004_v16 = vld [vmem:[%s15562_s8 + $0x388] sm:$0xf0]  ;;  %v15353_v33 = vld [vmem:[%s15566_s20 + $0x78] sm:$0xff] }
0x10d7   :  { %v10007_v60 = vor.u32 %v10642_v44, %v10004_v16 }
0x10d8   :  { %6875 = vmatpush.bf16.msrb.mxu1 %v10003_v34  ;;  %v10675_v34 = vpop.eup %10674 }
0x10da   :  { %6884 = vmatpush.bf16.msra.mxu2 %v9975_v40  ;;  %6897 = vmatpush.bf16.msra.mxu3 %v10039_v63 }
0x10dc   :  { %9902 = vmatmul.msk.bf16.vlgmr.msrb.gmra.mxu2 %vm3525_vm8, %v9901_v24  ;;  %6949 = vmatpush.xpose.msra.mxu1 %v15353_v33 }
0x10dd   :  { %9903 = vmatmul.msk.bf16.vlgmr.msrb.gmra.mxu3 %vm3525_vm8, %v9901_v24  ;;  %v10627_v24 = vld [vmem:[%s15562_s8 + $0x304] sm:$0xf0]  ;;  %vm6966_vm8 = vweird.f32 %v10675_v34 }
0x10de   :  { %6885 = vmatpush.bf16.msra.mxu2 %v9967_v28  ;;  %6898 = vmatpush.bf16.msra.mxu3 %v10031_v13  ;;  %v9939_v5 = vor.u32 %v10627_v24, %v9938_v46  ;;  %v15403_v28 = vld [vmem:[%s15566_s20 + $0x30] sm:$0xff] }
0x10df   :  { %v15431_v13 = vld [vmem:[%s15566_s20 + $0x10] sm:$0xff] }
0x10e0   :  { %6862 = vmatpush.bf16.msrb.mxu0 %v9939_v5  ;;  %6950 = vmatpush.xpose.msra.mxu1 %v15365_v7 }
0x10e2   :  { %6886 = vmatpush.bf16.msra.mxu2 %v9959_v3  ;;  %6899 = vmatpush.bf16.msra.mxu3 %v10023_v20 }
0x10e4   :  { %6929 = vmatpush.xpose.msra.mxu0 %v15348_v47 }
0x10e6   :  { %6887 = vmatpush.bf16.msra.mxu2 %v9951_v8  ;;  %6900 = vmatpush.bf16.msra.mxu3 %v10015_v4 }
0x10e8   :  { %6930 = vmatpush.xpose.msra.mxu0 %v15360_v21 }
0x10ea   :  { %6888 = vmatpush.bf16.msra.mxu2 %v9943_v54  ;;  %6901 = vmatpush.bf16.msra.mxu3 %v10007_v60  ;;  %v6962_v54 = vmul.f32 32.0, %v10675_v34 }
0x10ec   :  { %6931 = vmatpush.xpose.msra.mxu0 %v15375_v29  ;;  %v6963_v44 = vsub.f32 1.0, %v6962_v54 }
0x10ee   :  { %6980 = vmatpush.msrb.mxu2 %v15348_v47  ;;  %7000 = vmatpush.msrb.mxu3 %v15353_v33  ;;  %v6964_v16 = vmul.f32 %v10675_v34, %v6963_v44 }
0x10f0   :  { %6981 = vmatpush.msrb.mxu2 %v15360_v21  ;;  %7001 = vmatpush.msrb.mxu3 %v15365_v7  ;;  %v6965_v60 = vadd.f32 %v10675_v34, %v6964_v16 }
0x10f1   :  { %6932 = vmatpush.xpose.msra.mxu0 %v15385_v26 }
0x10f2   :  { %6982 = vmatpush.msrb.mxu2 %v15375_v29 }
0x10f4   :  { %6983 = vmatpush.msrb.mxu2 %v15385_v26 }
0x10f5   :  { %6933 = vmatpush.xpose.msra.mxu0 %v15403_v28 }
0x10f6   :  { %6984 = vmatpush.msrb.mxu2 %v15403_v28 }
0x10f8   :  { %6985 = vmatpush.msrb.mxu2 %v15417_v19 }
0x10f9   :  { %6934 = vmatpush.xpose.msra.mxu0 %v15417_v19 }
0x10fa   :  { %6986 = vmatpush.msrb.mxu2 %v15431_v13 }
0x10fc   :  { %6987 = vmatpush.msrb.mxu2 %v15445_v6 }
0x10fd   :  { %6935 = vmatpush.xpose.msra.mxu0 %v15431_v13 }
0x1101   :  { %6936 = vmatpush.xpose.msra.mxu0 %v15445_v6 }
0x1149   :  { %v6610_v58 = vpop.f32.mrf.mxu0 }
0x114a   :  { %v6623_v22 = vpop.f32.mrf.mxu1 }
0x114b   :  { %v6624_v59 = vadd.f32 %v6623_v22, %v6610_v58 }
0x114d   :  { %v15379_v27 = vadd.f32 %v6624_v59, %v15170_v11 }
0x114f   :  { %v6584_v40 = vpop.f32.mrf.mxu2 }
0x1150   :  { %v6597_v31 = vpop.f32.mrf.mxu3 }
0x1151   :  { %v6598_v9 = vadd.f32 %v6597_v31, %v6584_v40  ;;  %v6612_v63 = vpop.f32.mrf.mxu0 }
0x1152   :  { %v6625_v11 = vpop.f32.mrf.mxu1 }
0x1153   :  { %v15390_v18 = vadd.f32 %v6598_v9, %v15144_v50  ;;  %v15396_v50 = vld [vmem:[%s15566_s20 + $0x58] sm:$0xff] }
0x1154   :  { %6951 = vmatpush.xpose.msra.mxu1 %v15396_v50  ;;  %7002 = vmatpush.msrb.mxu3 %v15396_v50 }
0x1156   :  { %7003 = vmatpush.msrb.mxu3 %v15410_v53 }
0x1157   :  { %v6586_v12 = vpop.f32.mrf.mxu2 }
0x1158   :  { %v6599_v49 = vpop.f32.mrf.mxu3  ;;  %6952 = vmatpush.xpose.msra.mxu1 %v15410_v53  ;;  %7004 = vmatpush.msrb.mxu3 %v15424_v62 }
0x115a   :  { %7005 = vmatpush.msrb.mxu3 %v15438_v57 }
0x115c   :  { %6953 = vmatpush.xpose.msra.mxu1 %v15424_v62  ;;  %7006 = vmatpush.msrb.mxu3 %v15451_v25 }
0x115e   :  { %7007 = vmatpush.msrb.mxu3 %v15460_v17 }
0x115f   :  { %v6643_v55 = vpop.f32.mrf.mxu2 }
0x1160   :  { %v6656_v38 = vpop.f32.mrf.mxu3  ;;  %v6660_v43 = vpack.c.bf16 %v6643_v55, %v6643_v55  ;;  %6954 = vmatpush.xpose.msra.mxu1 %v15438_v57 }
0x1161   :  { %v6661_v30 = vpack.c.bf16 %v6656_v38, %v6656_v38 }
0x1162   :  { %6863 = vmatmul.bf16.vlgmr.msrb.gmra.mxu0 %v6660_v43  ;;  %6889 = vmatmul.bf16.vlgmr.msra.gmra.mxu2 %v6660_v43 }
0x1163   :  { %6876 = vmatmul.bf16.vlgmr.msrb.gmra.mxu1 %v6661_v30  ;;  %6902 = vmatmul.bf16.vlgmr.msra.gmra.mxu3 %v6661_v30 }
0x1164   :  { %7038 = vmatpush.xpose.msra.mxu2 %v15348_v47  ;;  %6955 = vmatpush.xpose.msra.mxu1 %v15451_v25 }
0x1165   :  { %7095 = vmatpush.msrb.mxu0 %v15348_v47  ;;  %7058 = vmatpush.xpose.msra.mxu3 %v15353_v33 }
0x1167   :  { %v6645_v56 = vpop.f32.mrf.mxu2  ;;  %7096 = vmatpush.msrb.mxu0 %v15360_v21 }
0x1168   :  { %v6658_v32 = vpop.f32.mrf.mxu3  ;;  %7039 = vmatpush.xpose.msra.mxu2 %v15360_v21  ;;  %6956 = vmatpush.xpose.msra.mxu1 %v15460_v17 }
0x1169   :  { %7097 = vmatpush.msrb.mxu0 %v15375_v29  ;;  %7059 = vmatpush.xpose.msra.mxu3 %v15365_v7 }
0x116b   :  { %7098 = vmatpush.msrb.mxu0 %v15385_v26 }
0x116c   :  { %7115 = vmatpush.msrb.mxu1 %v15353_v33  ;;  %7040 = vmatpush.xpose.msra.mxu2 %v15375_v29 }
0x116d   :  { %7099 = vmatpush.msrb.mxu0 %v15403_v28  ;;  %7060 = vmatpush.xpose.msra.mxu3 %v15396_v50 }
0x116e   :  { %7116 = vmatpush.msrb.mxu1 %v15365_v7 }
0x116f   :  { %7100 = vmatpush.msrb.mxu0 %v15417_v19 }
0x1170   :  { %7117 = vmatpush.msrb.mxu1 %v15396_v50  ;;  %7041 = vmatpush.xpose.msra.mxu2 %v15385_v26 }
0x1171   :  { %7101 = vmatpush.msrb.mxu0 %v15431_v13  ;;  %7061 = vmatpush.xpose.msra.mxu3 %v15410_v53 }
0x1172   :  { %7118 = vmatpush.msrb.mxu1 %v15410_v53 }
0x1173   :  { %7102 = vmatpush.msrb.mxu0 %v15445_v6 }
0x1174   :  { %7119 = vmatpush.msrb.mxu1 %v15424_v62  ;;  %7042 = vmatpush.xpose.msra.mxu2 %v15403_v28 }
0x1175   :  { %7062 = vmatpush.xpose.msra.mxu3 %v15424_v62 }
0x1176   :  { %7120 = vmatpush.msrb.mxu1 %v15438_v57 }
0x1178   :  { %7121 = vmatpush.msrb.mxu1 %v15451_v25  ;;  %7043 = vmatpush.xpose.msra.mxu2 %v15417_v19 }
0x1179   :  { %7063 = vmatpush.xpose.msra.mxu3 %v15438_v57 }
0x117a   :  { %7122 = vmatpush.msrb.mxu1 %v15460_v17 }
0x117c   :  { %7044 = vmatpush.xpose.msra.mxu2 %v15431_v13 }
0x117d   :  { %7064 = vmatpush.xpose.msra.mxu3 %v15451_v25 }
0x1180   :  { %7045 = vmatpush.xpose.msra.mxu2 %v15445_v6 }
0x1181   :  { %7065 = vmatpush.xpose.msra.mxu3 %v15460_v17 }
0x11df   :  { %v6864_v52 = vpop.f32.mrf.mxu0 }
0x11e0   :  { %v6877_v41 = vpop.f32.mrf.mxu1 }
0x11e1   :  { %v6878_v51 = vadd.f32 %v6877_v41, %v6864_v52  ;;  %v7071_v41 = vld [vmem:[%s15567_s15] sm:$0x1] }
0x11e3   :  { %v15479_v42 = vadd.f32 %v6878_v51, %v15390_v18 }
0x11e5   :  { %v6909_v3 = vrot.slane %v15479_v42, 4  ;;  %v6890_v48 = vpop.f32.mrf.mxu2 }
0x11e6   :  { %v6903_v2 = vpop.f32.mrf.mxu3 }
0x11e7   :  { %v6910_v36 = vadd.f32 %v6909_v3, %v15479_v42  ;;  %v6904_v20 = vadd.f32 %v6903_v2, %v6890_v48  ;;  %v6866_v45 = vpop.f32.mrf.mxu0  ;;  %v32_v48 = vstv %s15569_s22 }
0x11e8   :  { %v6879_v0 = vpop.f32.mrf.mxu1  ;;  %33 = vst [vmem:[#allocation2] sm:$0x1] %v32_v48 }
0x11e9   :  { %v6911_v37 = vrot.slane %v6910_v36, 2  ;;  %v6908_v61 = vadd.f32 %v6904_v20, %v15379_v27 }
0x11eb   :  { %v6912_v15 = vadd.f32 %v6911_v37, %v6910_v36  ;;  %v6915_v10 = vrot.slane %v6908_v61, 4  ;;  %v7127_v36 = vld [vmem:[%s15568_s16] sm:$0x1] }
0x11ed   :  { %v6913_v39 = vrot.slane %v6912_v15, 1  ;;  %v6916_v8 = vadd.f32 %v6915_v10, %v6908_v61  ;;  %v6892_v46 = vpop.f32.mrf.mxu2 }
0x11ee   :  { %v6905_v24 = vpop.f32.mrf.mxu3 }
0x11ef   :  { %v6914_v4 = vadd.f32 %v6913_v39, %v6912_v15  ;;  %v6917_v1 = vrot.slane %v6916_v8, 2  ;;  %v7185_v24 = vld [vmem:[%s15570_s21] sm:$0xff] }
0x11f1   :  { %6937 = vmatmul.f32.vlgmr.msra.gmra.mxu0 %v6914_v4  ;;  %v6918_v5 = vadd.f32 %v6917_v1, %v6916_v8  ;;  %v7186_v1 = vld [vmem:[%s15570_s21 + $0x8] sm:$0xff] }
0x11f2   :  { %7139 = vmatpush.msra.mxu0 %v15348_v47 }
0x11f3   :  { %v6919_v14 = vrot.slane %v6918_v5, 1 }
0x11f4   :  { %7140 = vmatpush.msra.mxu0 %v15360_v21  ;;  %v6967_v21 = vsel %vm6966_vm8, %v10675_v34, %v6965_v60 }
0x11f5   :  { %v6920_v35 = vadd.f32 %v6919_v14, %v6918_v5 }
0x11f6   :  { %7141 = vmatpush.msra.mxu0 %v15375_v29 }
0x11f7   :  { %6957 = vmatmul.f32.vlgmr.msra.gmra.mxu1 %v6920_v35 }
0x11f8   :  { %7142 = vmatpush.msra.mxu0 %v15385_v26  ;;  %7159 = vmatpush.msra.mxu1 %v15353_v33 }
0x11fa   :  { %7143 = vmatpush.msra.mxu0 %v15403_v28  ;;  %7160 = vmatpush.msra.mxu1 %v15365_v7 }
0x11fc   :  { %7144 = vmatpush.msra.mxu0 %v15417_v19  ;;  %7161 = vmatpush.msra.mxu1 %v15396_v50 }
0x11fe   :  { %7145 = vmatpush.msra.mxu0 %v15431_v13  ;;  %7162 = vmatpush.msra.mxu1 %v15410_v53 }
0x1200   :  { %7146 = vmatpush.msra.mxu0 %v15445_v6  ;;  %7163 = vmatpush.msra.mxu1 %v15424_v62 }
0x1202   :  { %7164 = vmatpush.msra.mxu1 %v15438_v57 }
0x1204   :  { %7165 = vmatpush.msra.mxu1 %v15451_v25 }
0x1206   :  { %7166 = vmatpush.msra.mxu1 %v15460_v17 }
0x126e   :  { %v6938_v47 = vpop.f32.mrf.mxu0 }
0x1274   :  { %v6958_v33 = vpop.f32.mrf.mxu1 }
0x1275   :  { %v6959_v7 = vadd.f32 %v6958_v33, %v6938_v47 }
0x1277   :  { %v6968_v58 = vmul.f32 %v6967_v21, %v6959_v7 }
0x1279   :  { %10064 = vmatmul.msk.f32.vlgmr.msrb.gmra.mxu2 %vm549_vm0, %v6968_v58  ;;  %10065 = vmatmul.msk.f32.vlgmr.msrb.gmra.mxu3 %vm549_vm0, %v6968_v58 }
0x12fc   :  { %v6989_v22 = vpop.f32.mrf.mxu2  ;;  %v7009_v59 = vpop.f32.mrf.mxu3 }
0x12fd   :  { %v7012_v29 = vperm.slane %v6989_v22, 0  ;;  %v7013_v27 = vperm.slane %v7009_v59, 0 }
0x12ff   :  { %v7014_v26 = vsub.f32 %v15479_v42, %v7012_v29  ;;  %v7015_v40 = vsub.f32 %v6908_v61, %v7013_v27 }
0x1301   :  { %v7016_v31 = vmul.f32 %v7014_v26, %v7014_v26  ;;  %v7017_v9 = vmul.f32 %v7015_v40, %v7015_v40 }
0x1303   :  { %v7018_v18 = vrot.slane %v7016_v31, 4  ;;  %v7024_v63 = vrot.slane %v7017_v9, 4 }
0x1305   :  { %v7019_v11 = vadd.f32 %v7018_v18, %v7016_v31  ;;  %v7025_v12 = vadd.f32 %v7024_v63, %v7017_v9  ;;  %v7200_v31 = vld [vmem:[#allocation2] sm:$0x1] }
0x1306   :  { %v7214_v63 = vld [vmem:[#allocation2] sm:$0x1] }
0x1307   :  { %v7020_v49 = vrot.slane %v7019_v11, 2  ;;  %v7026_v55 = vrot.slane %v7025_v12, 2 }
0x1309   :  { %v7021_v38 = vadd.f32 %v7020_v49, %v7019_v11  ;;  %v7027_v43 = vadd.f32 %v7026_v55, %v7025_v12 }
0x130b   :  { %v7022_v30 = vrot.slane %v7021_v38, 1  ;;  %v7028_v56 = vrot.slane %v7027_v43, 1 }
0x130d   :  { %v7023_v32 = vadd.f32 %v7022_v30, %v7021_v38  ;;  %v7029_v50 = vadd.f32 %v7028_v56, %v7027_v43 }
0x130f   :  { %7046 = vmatmul.f32.vlgmr.msra.gmra.mxu2 %v7023_v32  ;;  %7066 = vmatmul.f32.vlgmr.msra.gmra.mxu3 %v7029_v50 }
0x1392   :  { %v7047_v28 = vpop.f32.mrf.mxu2  ;;  %v7067_v53 = vpop.f32.mrf.mxu3 }
0x1393   :  { %v7068_v19 = vadd.f32 %v7067_v53, %v7047_v28 }
0x1395   :  { %v7070_v62 = vmul.f32 %v7068_v19, %v6967_v21 }
0x1397   :  { %v7072_v13 = vadd.f32 1e-05, %v7070_v62 }
0x1399   :  { %10676 = vrsqrt.f32 %v7072_v13  ;;  %vm7079_vm1 = vweird.f32 %v7072_v13 }
0x139f   :  { %v10677_v57 = vpop.eup %10676 }
0x13a0   :  { %v7074_v6 = vmul.f32 %v10677_v57, %v7072_v13  ;;  %vm7080_vm15 = vweird.f32 %v10677_v57 }
0x13a1   :  { %vm7081_vm2 = vmor %vm7079_vm1, %vm7080_vm15 }
0x13a2   :  { %v7075_v25 = vmul.f32 %v10677_v57, %v7074_v6 }
0x13a4   :  { %v7076_v17 = vmul.f32 0.5, %v7075_v25 }
0x13a6   :  { %v7077_v52 = vsub.f32 1.5, %v7076_v17 }
0x13a8   :  { %v7078_v51 = vmul.f32 %v10677_v57, %v7077_v52 }
0x13aa   :  { %v7082_v42 = vsel %vm7081_vm2, %v10677_v57, %v7078_v51 }
0x13ab   :  { %v7083_v3 = vmul.f32 %v7082_v42, %v7071_v41 }
0x13ad   :  { %10066 = vmatmul.msk.f32.vlgmr.msrb.gmra.mxu0 %vm549_vm0, %v7083_v3  ;;  %10067 = vmatmul.msk.f32.vlgmr.msrb.gmra.mxu1 %vm549_vm0, %v7083_v3 }
0x13b5   :  { %10068 = vmatmul.msk.f32.vlgmr.msra.gmra.mxu0 %vm549_vm0, %v7127_v36  ;;  %10069 = vmatmul.msk.f32.vlgmr.msra.gmra.mxu1 %vm549_vm0, %v7127_v36 }
0x142a   :  { %v7104_v2 = vpop.f32.mrf.mxu0  ;;  %v7124_v20 = vpop.f32.mrf.mxu1 }
0x142b   :  { %v7171_v45 = vperm.slane %v7104_v2, 0  ;;  %v7172_v0 = vperm.slane %v7124_v20, 0 }
0x142d   :  { %v7173_v15 = vmul.f32 %v7171_v45, %v7014_v26  ;;  %v7174_v10 = vmul.f32 %v7172_v0, %v7015_v40 }
0x1432   :  { %v7148_v37 = vpop.f32.mrf.mxu0  ;;  %v7168_v61 = vpop.f32.mrf.mxu1 }
0x1433   :  { %v7175_v39 = vperm.slane %v7148_v37, 0  ;;  %v7176_v8 = vperm.slane %v7168_v61, 0 }
0x1435   :  { %v7177_v4 = vadd.f32 %v7175_v39, %v7173_v15  ;;  %v7178_v46 = vadd.f32 %v7176_v8, %v7174_v10 }
0x1437   :  { %v7181_v5 = vmul.f32 0.2, %v7177_v4  ;;  %v7182_v14 = vmul.f32 0.2, %v7178_v46  ;;  %vm7179_vm0 = vcmp.ge.f32.partialorder %v7177_v4, 0.0  ;;  %vm7180_vm3 = vcmp.ge.f32.partialorder %v7178_v46, 0.0 }
0x1439   :  { %v7183_v35 = vsel %vm7179_vm0, %v7177_v4, %v7181_v5  ;;  %v7184_v23 = vsel %vm7180_vm3, %v7178_v46, %v7182_v14 }
0x143a   :  { %v7187_v34 = vmul.f32 %v7185_v24, %v7183_v35  ;;  %v7188_v54 = vmul.f32 %v7186_v1, %v7184_v23 }
0x143c   :  { %v7189_v44 = vadd.f32 %v7188_v54, %v7187_v34 }
0x143e   :  { %7190 = vadd.xlane.f32.xlu0 %v7189_v44 }
0x14b1   :  { %v7191_v16 = vpop.xlane.xlu0 %7190 }
0x14b2   :  { %v7193_v60 = vsel %vm7192_vm4, %v7191_v16, 0.0  ;;  %v7205_v47 = vrot.slane %v7191_v16, 4 }
0x14b3   :  { %v7194_v33 = vrot.slane %v7193_v60, 4 }
0x14b4   :  { %v7207_v21 = vsel %vm7192_vm4, %v7205_v47, 0.0 }
0x14b5   :  { %v7195_v7 = vadd.f32 %v7194_v33, %v7193_v60  ;;  %v7208_v58 = vrot.slane %v7207_v21, 4 }
0x14b7   :  { %v7196_v22 = vrot.slane %v7195_v7, 2  ;;  %v7209_v59 = vadd.f32 %v7208_v58, %v7207_v21 }
0x14b9   :  { %v7197_v29 = vadd.f32 %v7196_v22, %v7195_v7  ;;  %v7210_v27 = vrot.slane %v7209_v59, 2 }
0x14bb   :  { %v7198_v26 = vrot.slane %v7197_v29, 1  ;;  %v7211_v40 = vadd.f32 %v7210_v27, %v7209_v59 }
0x14bd   :  { %v7199_v9 = vadd.f32 %v7198_v26, %v7197_v29  ;;  %v7212_v18 = vrot.slane %v7211_v40, 1 }
0x14bf   :  { %v7201_v11 = vadd.f32 %v7200_v31, %v7199_v9  ;;  %v7213_v12 = vadd.f32 %v7212_v18, %v7211_v40 }
0x14c1   :  { %7203 = vst.msk [vmem:[%s15571_s25] sm:$0x1] %vm7202_vm5, %v7201_v11  ;;  %v7215_v49 = vadd.f32 %v7214_v63, %v7213_v12 }
0x14c3   :  { %7216 = vst.msk [vmem:[%s15571_s25 + $0x1] sm:$0x1] %vm7202_vm5, %v7215_v49 }

</bundles_post_ra>
